<compile_context>
chip_gen: v7x
topology: tpu7x:2x2x1
jax: 0.10.0
libtpu: 0.0.40
codegen_flags: <defaults>
</compile_context>

<pallas_src>
import functools

import jax
import jax.numpy as jnp
from jax import lax
from jax.experimental import pallas as pl
from jax.experimental.pallas import tpu as pltpu

EPS = 1e-5
LANES = 128
SUBLANES = 8
channel_scale = [0.5, 0.75, 1.0]


def _round_up(v, m):
    return (v + m - 1) // m * m


# ------------------------------ Pallas kernels ------------------------------ #

def _bn_rows(y, n_rows):
    # BatchNorm2d(affine=False), training mode: biased batch stats over the
    # n_rows real rows. Halo rows are exactly zero so they do not perturb the
    # sums; single pass (sum / sum-of-squares), all math in f32.
    inv_n = jnp.float32(1.0 / n_rows)
    s1 = jnp.sum(y, axis=0, keepdims=True)
    s2 = jnp.sum(y * y, axis=0, keepdims=True)
    mu = s1 * inv_n
    var = s2 * inv_n - mu * mu
    return (y - mu) * lax.rsqrt(var + EPS)


def _bottleneck_core(xp_ref, mask_ref, w1_ref, w2_ref, w3_ref, *, H, W):
    """conv1+bn1+relu -> 3x3 conv+bn2+relu -> conv3+bn3, all VMEM resident.

    xp_ref:   (N, H+2, Wp, CP) f32 NHWC input with a zero spatial halo at
              [:, 1:H+1, 1:W+1, :] and channels zero-padded to CP lanes.
    mask_ref: (N*(H+2)*Wp, 1) f32, 1.0 on real rows / 0.0 on halo rows.
    Returns (a, x_center): post-bn3 activation and the (M2, CP) residual source.
    """
    N, Hp, Wp, CP = xp_ref.shape
    M1p = N * Hp * Wp
    M2 = N * H * W                    # stride == 1 -> output rows == real rows

    xp = xp_ref[...]
    x2dp = xp.reshape(M1p, CP)

    # conv1 (1x1) + bn1 + relu. Halo rows stay zero through the matmul, so the
    # batch statistics over all M1p rows equal those over the M2 real rows; the
    # halo is re-zeroed with `mask` after normalisation so it remains a true
    # zero pad for the 3x3 conv.
    y1 = jnp.dot(x2dp.astype(jnp.bfloat16), w1_ref[...],
                 preferred_element_type=jnp.float32)
    y1 = mask_ref[...] * jnp.maximum(_bn_rows(y1, M2), 0.0)
    y1_4d = y1.reshape(N, Hp, Wp, CP)

    # conv2 (3x3, pad=1, stride=1): 9 accumulated in-VMEM MXU matmuls over
    # shifted windows of the zero-padded activation (no im2col blow-up).
    acc = jnp.zeros((M2, CP), jnp.float32)
    for kh in range(3):
        for kw in range(3):
            patch = y1_4d[:, kh:kh + H, kw:kw + W, :].reshape(M2, CP)
            acc = acc + jnp.dot(patch.astype(jnp.bfloat16), w2_ref[kh * 3 + kw],
                                preferred_element_type=jnp.float32)
    y2 = jnp.maximum(_bn_rows(acc, M2), 0.0)

    # conv3 (1x1) + bn3
    y3 = jnp.dot(y2.astype(jnp.bfloat16), w3_ref[...],
                 preferred_element_type=jnp.float32)
    a = _bn_rows(y3, M2)

    # residual source: the real (un-padded) spatial centre of x, lane padded.
    x_center = xp[:, 1:H + 1, 1:W + 1, :].reshape(M2, CP)
    return a, x_center


def _bottleneck_id_kernel(xp_ref, mask_ref, w1_ref, w2_ref, w3_ref, o_ref, *, H, W):
    # out = relu(bn3(conv3(...)) + x)          (identity shortcut: inp == oup)
    a, x_center = _bottleneck_core(xp_ref, mask_ref, w1_ref, w2_ref, w3_ref,
                                   H=H, W=W)
    # Padded lanes of both `a` and `x_center` are exactly zero, so this is one
    # full-lane (unmasked) store; the wrapper slices the live channels.
    o_ref[...] = jnp.maximum(a + x_center, 0.0)


def _bottleneck_ds_kernel(xp_ref, mask_ref, w1_ref, w2_ref, w3_ref, wd_ref,
                          o_ref, *, H, W):
    # out = relu(bn3(conv3(...)) + bn_down(conv_down(x)))
    N = xp_ref.shape[0]
    M2 = N * H * W
    a, x_center = _bottleneck_core(xp_ref, mask_ref, w1_ref, w2_ref, w3_ref,
                                   H=H, W=W)
    b = jnp.dot(x_center.astype(jnp.bfloat16), wd_ref[...],
                preferred_element_type=jnp.float32)
    b = _bn_rows(b, M2)
    o_ref[...] = jnp.maximum(a + b, 0.0)


def _full_spec(shape):
    zeros = (0,) * len(shape)
    return pl.BlockSpec(shape, lambda i: zeros)


# --------------------------- parameter utilities ---------------------------- #

def _init_linear(key, in_f, out_f):
    kw, kb = jax.random.split(key)
    bound = 1.0 / (in_f ** 0.5)
    w = jax.random.uniform(kw, (out_f, in_f), jnp.float32, -bound, bound)
    b = jax.random.uniform(kb, (out_f,), jnp.float32, -bound, bound)
    return (w, b)


def _linear(params, x):
    w, b = params
    return x @ w.T + b


# -------------------------------- Bottleneck -------------------------------- #

class BottleneckPallas:
    def __init__(self, key, base_inplanes, base_planes, stride=1, is_downsample=False):
        expansion = 4
        self.max_inp = base_inplanes
        self.max_oup = base_planes
        self.max_mid = base_planes // expansion
        self.stride = stride
        self.is_downsample = is_downsample
        ks = jax.random.split(key, 8)
        self.fc11 = _init_linear(ks[0], 3, 32)
        self.fc12 = _init_linear(ks[1], 32, self.max_mid * self.max_inp)
        self.fc21 = _init_linear(ks[2], 3, 32)
        self.fc22 = _init_linear(ks[3], 32, self.max_mid * self.max_mid * 9)
        self.fc31 = _init_linear(ks[4], 3, 32)
        self.fc32 = _init_linear(ks[5], 32, self.max_oup * self.max_mid)
        if is_downsample:
            self.fc11_d = _init_linear(ks[6], 3, 32)
            self.fc12_d = _init_linear(ks[7], 32, self.max_oup * self.max_inp)

    # hypernetwork weight generation (tiny MLPs -> conv weights); plain-JAX glue
    def generate_weights(self, scale_vec):
        w1 = _linear(self.fc12, jax.nn.relu(_linear(self.fc11, scale_vec)))
        w1 = w1.reshape(self.max_mid, self.max_inp, 1, 1)
        w2 = _linear(self.fc22, jax.nn.relu(_linear(self.fc21, scale_vec)))
        w2 = w2.reshape(self.max_mid, self.max_mid, 3, 3)
        w3 = _linear(self.fc32, jax.nn.relu(_linear(self.fc31, scale_vec)))
        w3 = w3.reshape(self.max_oup, self.max_mid, 1, 1)
        wd = None
        if self.is_downsample:
            wd = _linear(self.fc12_d, jax.nn.relu(_linear(self.fc11_d, scale_vec)))
            wd = wd.reshape(self.max_oup, self.max_inp, 1, 1)
        return w1, w2, w3, wd

    def forward(self, x, mid_scale_id, inp_scale_id, oup_scale_id):
        mid_scale = channel_scale[mid_scale_id]
        inp_scale = channel_scale[inp_scale_id]
        oup_scale = channel_scale[oup_scale_id]
        mid = int(self.max_mid * mid_scale)
        inp = int(self.max_inp * inp_scale)
        oup = int(self.max_oup * oup_scale)
        scale_vec = jnp.array([mid_scale, inp_scale, oup_scale], jnp.float32)
        w1, w2, w3, wd = self.generate_weights(scale_vec)

        N, Cx, H, W = x.shape                       # NCHW, Cx == inp
        assert Cx == inp, (Cx, inp)
        # TODO(synk): stride > 1 needs strided window extraction inside the
        # fused kernel; only stride == 1 is implemented (matches the tests).
        assert self.stride == 1, "fused Pallas path implements stride == 1"

        CP = _round_up(max(inp, mid, oup), LANES)   # one lane-dense channel width
        Hp = H + 2
        Wp = _round_up(W + 2, SUBLANES)             # sublane-aligned padded width
        M1p = N * Hp * Wp
        M2 = N * H * W

        # Single input layout transform: NCHW -> NHWC, zero spatial halo, zero
        # lane padding. All conv / BN / ReLU / residual work is fused below.
        x_nhwc = jnp.transpose(x, (0, 2, 3, 1)).astype(jnp.float32)
        xp = jnp.zeros((N, Hp, Wp, CP), jnp.float32)
        xp = xp.at[:, 1:H + 1, 1:W + 1, :inp].set(x_nhwc)

        # Real-row mask (1 inside the halo, 0 on the pad), flattened row-major.
        hh = jnp.arange(Hp)
        ww = jnp.arange(Wp)
        valid = (((hh >= 1) & (hh <= H))[:, None]
                 & ((ww >= 1) & (ww <= W))[None, :]).astype(jnp.float32)
        mask = jnp.broadcast_to(valid[None], (N, Hp, Wp)).reshape(M1p, 1)

        # Hypernetwork conv weights transposed to (in, out) and zero-padded to a
        # CP x CP lane-dense layout; bf16 MXU operands (f32 accumulation in-kernel).
        w1p = jnp.zeros((CP, CP), jnp.float32).at[:inp, :mid].set(
            jnp.transpose(w1[:mid, :inp, 0, 0], (1, 0))).astype(jnp.bfloat16)
        w2p = jnp.zeros((9, CP, CP), jnp.float32).at[:, :mid, :mid].set(
            jnp.transpose(w2[:mid, :mid, :, :], (2, 3, 1, 0)).reshape(9, mid, mid)
        ).astype(jnp.bfloat16)
        w3p = jnp.zeros((CP, CP), jnp.float32).at[:mid, :oup].set(
            jnp.transpose(w3[:oup, :mid, 0, 0], (1, 0))).astype(jnp.bfloat16)

        if self.is_downsample:
            wdp = jnp.zeros((CP, CP), jnp.float32).at[:inp, :oup].set(
                jnp.transpose(wd[:oup, :inp, 0, 0], (1, 0))).astype(jnp.bfloat16)
            kernel = functools.partial(_bottleneck_ds_kernel, H=H, W=W)
            args = (xp, mask, w1p, w2p, w3p, wdp)
        else:
            assert inp == oup, "identity path needs inp == oup"
            kernel = functools.partial(_bottleneck_id_kernel, H=H, W=W)
            args = (xp, mask, w1p, w2p, w3p)

        out2d = pl.pallas_call(
            kernel,
            out_shape=jax.ShapeDtypeStruct((M2, CP), jnp.float32),
            grid=(1,),
            in_specs=[_full_spec(a.shape) for a in args],
            out_specs=_full_spec((M2, CP)),
            compiler_params=pltpu.CompilerParams(
                dimension_semantics=("arbitrary",)),
        )(*args)

        out = out2d[:, :oup].reshape(N, H, W, oup)
        return jnp.transpose(out, (0, 3, 1, 2))      # back to NCHW


# ----------------------------- pure-JAX reference ---------------------------- #

def _bn_ref(y):
    mu = jnp.mean(y, axis=(0, 2, 3), keepdims=True)
    var = jnp.mean((y - mu) ** 2, axis=(0, 2, 3), keepdims=True)
    return (y - mu) / jnp.sqrt(var + EPS)


def reference_forward(m, x, mid_id, inp_id, oup_id):
    # Mirrors the kernel's precision choice: bf16 conv operands, f32 accumulation,
    # f32 BN / ReLU / residual.
    mid_scale, inp_scale, oup_scale = (channel_scale[mid_id],
                                       channel_scale[inp_id],
                                       channel_scale[oup_id])
    mid = int(m.max_mid * mid_scale)
    inp = int(m.max_inp * inp_scale)
    oup = int(m.max_oup * oup_scale)
    sv = jnp.array([mid_scale, inp_scale, oup_scale], jnp.float32)
    w1, w2, w3, wd = m.generate_weights(sv)
    dn = ('NCHW', 'OIHW', 'NCHW')
    bf = lambda a: a.astype(jnp.bfloat16)
    conv = lambda a, w, st, pad: lax.conv_general_dilated(
        bf(a), bf(w), window_strides=(st, st), padding=pad,
        dimension_numbers=dn, preferred_element_type=jnp.float32)
    out = conv(x, w1[:mid, :inp], 1, 'VALID')
    out = jax.nn.relu(_bn_ref(out))
    out = conv(out, w2[:mid, :mid], m.stride, ((1, 1), (1, 1)))
    out = jax.nn.relu(_bn_ref(out))
    out = conv(out, w3[:oup, :mid], 1, 'VALID')
    out = _bn_ref(out)
    if m.is_downsample:
        identity = conv(x, wd[:oup, :inp], m.stride, 'VALID')
        identity = _bn_ref(identity)
    else:
        identity = x
    return jax.nn.relu(out + identity)


# ----------------------------------- main ------------------------------------ #

if __name__ == "__main__":
    key = jax.random.PRNGKey(0)
    k1, k2, kx1, kx2 = jax.random.split(key, 4)

    # Tolerance note: kernel and reference both use bf16 matmul operands with f32
    # accumulation; residual differences come only from accumulation order, so
    # 1e-2 is a safe but still bug-catching bound.
    ATOL = RTOL = 1e-2

    # --- config A: downsample shortcut (1x1 conv), stride 1 ------------------ #
    blockA = BottleneckPallas(k1, base_inplanes=16, base_planes=32,
                              stride=1, is_downsample=True)
    xA = jax.random.normal(kx1, (2, 16, 16, 16), jnp.float32)    # NCHW, inp=16
    outA = jax.block_until_ready(blockA.forward(xA, 0, 2, 1))    # mid=4, inp=16, oup=24
    refA = jax.block_until_ready(reference_forward(blockA, xA, 0, 2, 1))
    assert outA.shape == refA.shape, (outA.shape, refA.shape)
    assert jnp.allclose(outA, refA, atol=ATOL, rtol=RTOL), \
        float(jnp.max(jnp.abs(outA - refA)))

    # --- config B: identity shortcut (inp == oup), stride 1 ------------------ #
    blockB = BottleneckPallas(k2, base_inplanes=32, base_planes=32,
                              stride=1, is_downsample=False)
    xB = jax.random.normal(kx2, (2, 24, 16, 16), jnp.float32)    # inp = oup = 24
    outB = jax.block_until_ready(blockB.forward(xB, 2, 1, 1))    # mid=8
    refB = jax.block_until_ready(reference_forward(blockB, xB, 2, 1, 1))
    assert outB.shape == refB.shape, (outB.shape, refB.shape)
    assert jnp.allclose(outB, refB, atol=ATOL, rtol=RTOL), \
        float(jnp.max(jnp.abs(outB - refB)))

    print("KERNEL_OK")
</pallas_src>

<mosaic_0001>
module attributes {stable_mosaic.version = 11 : i64} {
  func.func @_bottleneck_ds_kernel(%arg0: i32, %arg1: memref<2x18x24x128xf32, #tpu.memory_space<vmem>>, %arg2: memref<864x1xf32, #tpu.memory_space<vmem>>, %arg3: memref<128x128xbf16, #tpu.memory_space<vmem>>, %arg4: memref<9x128x128xbf16, #tpu.memory_space<vmem>>, %arg5: memref<128x128xbf16, #tpu.memory_space<vmem>>, %arg6: memref<128x128xbf16, #tpu.memory_space<vmem>>, %arg7: memref<512x128xf32, #tpu.memory_space<vmem>>) attributes {dimension_semantics = [#tpu.dimension_semantics<arbitrary>], iteration_bounds = array<i64: 1>, scalar_prefetch = 0 : i64, scratch_operands = 0 : i64, tpu.core_type = #tpu.core_type<tc>, window_params = [{pipeline_mode = #tpu.pipeline_mode<synchronous>, transform_indices = @transform_0, window_bounds = array<i64: 2, 18, 24, 128>}, {pipeline_mode = #tpu.pipeline_mode<synchronous>, transform_indices = @transform_1, window_bounds = array<i64: 864, 1>}, {pipeline_mode = #tpu.pipeline_mode<synchronous>, transform_indices = @transform_2, window_bounds = array<i64: 128, 128>}, {pipeline_mode = #tpu.pipeline_mode<synchronous>, transform_indices = @transform_3, window_bounds = array<i64: 9, 128, 128>}, {pipeline_mode = #tpu.pipeline_mode<synchronous>, transform_indices = @transform_4, window_bounds = array<i64: 128, 128>}, {pipeline_mode = #tpu.pipeline_mode<synchronous>, transform_indices = @transform_5, window_bounds = array<i64: 128, 128>}, {pipeline_mode = #tpu.pipeline_mode<synchronous>, transform_indices = @transform_6, window_bounds = array<i64: 512, 128>}]} {
    %c0 = arith.constant 0 : index
    %c0_0 = arith.constant 0 : index
    %c0_1 = arith.constant 0 : index
    %c0_2 = arith.constant 0 : index
    %0 = vector.load %arg1[%c0, %c0_0, %c0_1, %c0_2] : memref<2x18x24x128xf32, #tpu.memory_space<vmem>>, vector<2x18x24x128xf32>
    %1 = vector.shape_cast %0 : vector<2x18x24x128xf32> to vector<864x128xf32>
    %2 = arith.truncf %1 : vector<864x128xf32> to vector<864x128xbf16>
    %c0_3 = arith.constant 0 : index
    %c0_4 = arith.constant 0 : index
    %3 = vector.load %arg3[%c0_3, %c0_4] : memref<128x128xbf16, #tpu.memory_space<vmem>>, vector<128x128xbf16>
    %cst = arith.constant dense<0.000000e+00> : vector<864x128xf32>
    %4 = tpu.matmul %2, %3, %cst {dimension_numbers = #tpu.dot_dimension_numbers<[1], [0], [0], [1], [0, 0, 1, 1], [], []>} : vector<864x128xbf16>, vector<128x128xbf16>, vector<864x128xf32> -> vector<864x128xf32>
    %c0_5 = arith.constant 0 : index
    %c0_6 = arith.constant 0 : index
    %5 = vector.load %arg2[%c0_5, %c0_6] : memref<864x1xf32, #tpu.memory_space<vmem>>, vector<864x1xf32>
    %cst_7 = arith.constant dense<0.000000e+00> : vector<128xf32>
    %6 = vector.multi_reduction <add>, %4, %cst_7 [0] : vector<864x128xf32> to vector<128xf32>
    %7 = vector.shape_cast %6 : vector<128xf32> to vector<1x128xf32>
    %8 = arith.mulf %4, %4 : vector<864x128xf32>
    %cst_8 = arith.constant dense<0.000000e+00> : vector<128xf32>
    %9 = vector.multi_reduction <add>, %8, %cst_8 [0] : vector<864x128xf32> to vector<128xf32>
    %10 = vector.shape_cast %9 : vector<128xf32> to vector<1x128xf32>
    %cst_9 = arith.constant 0.001953125 : f32
    %11 = vector.broadcast %cst_9 : f32 to vector<1x128xf32>
    %12 = arith.mulf %7, %11 : vector<1x128xf32>
    %cst_10 = arith.constant 0.001953125 : f32
    %13 = vector.broadcast %cst_10 : f32 to vector<1x128xf32>
    %14 = arith.mulf %10, %13 : vector<1x128xf32>
    %15 = arith.mulf %12, %12 : vector<1x128xf32>
    %16 = arith.subf %14, %15 : vector<1x128xf32>
    %17 = vector.broadcast %12 : vector<1x128xf32> to vector<864x128xf32>
    %18 = arith.subf %4, %17 : vector<864x128xf32>
    %cst_11 = arith.constant 9.99999974E-6 : f32
    %19 = vector.broadcast %cst_11 : f32 to vector<1x128xf32>
    %20 = arith.addf %16, %19 : vector<1x128xf32>
    %21 = math.rsqrt %20 : vector<1x128xf32>
    %22 = vector.broadcast %21 : vector<1x128xf32> to vector<864x128xf32>
    %23 = arith.mulf %18, %22 : vector<864x128xf32>
    %cst_12 = arith.constant 0.000000e+00 : f32
    %24 = vector.broadcast %cst_12 : f32 to vector<864x128xf32>
    %25 = arith.maximumf %23, %24 : vector<864x128xf32>
    %26 = vector.broadcast %5 : vector<864x1xf32> to vector<864x128xf32>
    %27 = arith.mulf %26, %25 : vector<864x128xf32>
    %28 = vector.shape_cast %27 : vector<864x128xf32> to vector<2x18x24x128xf32>
    %cst_13 = arith.constant 0.000000e+00 : f32
    %29 = vector.broadcast %cst_13 : f32 to vector<512x128xf32>
    %30 = vector.extract_strided_slice %28 {offsets = [0, 0, 0, 0], sizes = [2, 16, 16, 128], strides = [1, 1, 1, 1]} : vector<2x18x24x128xf32> to vector<2x16x16x128xf32>
    %31 = vector.shape_cast %30 : vector<2x16x16x128xf32> to vector<512x128xf32>
    %32 = arith.truncf %31 : vector<512x128xf32> to vector<512x128xbf16>
    %c0_14 = arith.constant 0 : index
    %c0_15 = arith.constant 0 : index
    %c0_16 = arith.constant 0 : index
    %33 = vector.load %arg4[%c0_14, %c0_15, %c0_16] : memref<9x128x128xbf16, #tpu.memory_space<vmem>>, vector<1x128x128xbf16>
    %34 = vector.shape_cast %33 : vector<1x128x128xbf16> to vector<128x128xbf16>
    %cst_17 = arith.constant dense<0.000000e+00> : vector<512x128xf32>
    %35 = tpu.matmul %32, %34, %cst_17 {dimension_numbers = #tpu.dot_dimension_numbers<[1], [0], [0], [1], [0, 0, 1, 1], [], []>} : vector<512x128xbf16>, vector<128x128xbf16>, vector<512x128xf32> -> vector<512x128xf32>
    %36 = arith.addf %29, %35 : vector<512x128xf32>
    %37 = vector.extract_strided_slice %28 {offsets = [0, 0, 1, 0], sizes = [2, 16, 16, 128], strides = [1, 1, 1, 1]} : vector<2x18x24x128xf32> to vector<2x16x16x128xf32>
    %38 = vector.shape_cast %37 : vector<2x16x16x128xf32> to vector<512x128xf32>
    %39 = arith.truncf %38 : vector<512x128xf32> to vector<512x128xbf16>
    %c1 = arith.constant 1 : index
    %c0_18 = arith.constant 0 : index
    %c0_19 = arith.constant 0 : index
    %40 = vector.load %arg4[%c1, %c0_18, %c0_19] : memref<9x128x128xbf16, #tpu.memory_space<vmem>>, vector<1x128x128xbf16>
    %41 = vector.shape_cast %40 : vector<1x128x128xbf16> to vector<128x128xbf16>
    %cst_20 = arith.constant dense<0.000000e+00> : vector<512x128xf32>
    %42 = tpu.matmul %39, %41, %cst_20 {dimension_numbers = #tpu.dot_dimension_numbers<[1], [0], [0], [1], [0, 0, 1, 1], [], []>} : vector<512x128xbf16>, vector<128x128xbf16>, vector<512x128xf32> -> vector<512x128xf32>
    %43 = arith.addf %36, %42 : vector<512x128xf32>
    %44 = vector.extract_strided_slice %28 {offsets = [0, 0, 2, 0], sizes = [2, 16, 16, 128], strides = [1, 1, 1, 1]} : vector<2x18x24x128xf32> to vector<2x16x16x128xf32>
    %45 = vector.shape_cast %44 : vector<2x16x16x128xf32> to vector<512x128xf32>
    %46 = arith.truncf %45 : vector<512x128xf32> to vector<512x128xbf16>
    %c2 = arith.constant 2 : index
    %c0_21 = arith.constant 0 : index
    %c0_22 = arith.constant 0 : index
    %47 = vector.load %arg4[%c2, %c0_21, %c0_22] : memref<9x128x128xbf16, #tpu.memory_space<vmem>>, vector<1x128x128xbf16>
    %48 = vector.shape_cast %47 : vector<1x128x128xbf16> to vector<128x128xbf16>
    %cst_23 = arith.constant dense<0.000000e+00> : vector<512x128xf32>
    %49 = tpu.matmul %46, %48, %cst_23 {dimension_numbers = #tpu.dot_dimension_numbers<[1], [0], [0], [1], [0, 0, 1, 1], [], []>} : vector<512x128xbf16>, vector<128x128xbf16>, vector<512x128xf32> -> vector<512x128xf32>
    %50 = arith.addf %43, %49 : vector<512x128xf32>
    %51 = vector.extract_strided_slice %28 {offsets = [0, 1, 0, 0], sizes = [2, 16, 16, 128], strides = [1, 1, 1, 1]} : vector<2x18x24x128xf32> to vector<2x16x16x128xf32>
    %52 = vector.shape_cast %51 : vector<2x16x16x128xf32> to vector<512x128xf32>
    %53 = arith.truncf %52 : vector<512x128xf32> to vector<512x128xbf16>
    %c3 = arith.constant 3 : index
    %c0_24 = arith.constant 0 : index
    %c0_25 = arith.constant 0 : index
    %54 = vector.load %arg4[%c3, %c0_24, %c0_25] : memref<9x128x128xbf16, #tpu.memory_space<vmem>>, vector<1x128x128xbf16>
    %55 = vector.shape_cast %54 : vector<1x128x128xbf16> to vector<128x128xbf16>
    %cst_26 = arith.constant dense<0.000000e+00> : vector<512x128xf32>
    %56 = tpu.matmul %53, %55, %cst_26 {dimension_numbers = #tpu.dot_dimension_numbers<[1], [0], [0], [1], [0, 0, 1, 1], [], []>} : vector<512x128xbf16>, vector<128x128xbf16>, vector<512x128xf32> -> vector<512x128xf32>
    %57 = arith.addf %50, %56 : vector<512x128xf32>
    %58 = vector.extract_strided_slice %28 {offsets = [0, 1, 1, 0], sizes = [2, 16, 16, 128], strides = [1, 1, 1, 1]} : vector<2x18x24x128xf32> to vector<2x16x16x128xf32>
    %59 = vector.shape_cast %58 : vector<2x16x16x128xf32> to vector<512x128xf32>
    %60 = arith.truncf %59 : vector<512x128xf32> to vector<512x128xbf16>
    %c4 = arith.constant 4 : index
    %c0_27 = arith.constant 0 : index
    %c0_28 = arith.constant 0 : index
    %61 = vector.load %arg4[%c4, %c0_27, %c0_28] : memref<9x128x128xbf16, #tpu.memory_space<vmem>>, vector<1x128x128xbf16>
    %62 = vector.shape_cast %61 : vector<1x128x128xbf16> to vector<128x128xbf16>
    %cst_29 = arith.constant dense<0.000000e+00> : vector<512x128xf32>
    %63 = tpu.matmul %60, %62, %cst_29 {dimension_numbers = #tpu.dot_dimension_numbers<[1], [0], [0], [1], [0, 0, 1, 1], [], []>} : vector<512x128xbf16>, vector<128x128xbf16>, vector<512x128xf32> -> vector<512x128xf32>
    %64 = arith.addf %57, %63 : vector<512x128xf32>
    %65 = vector.extract_strided_slice %28 {offsets = [0, 1, 2, 0], sizes = [2, 16, 16, 128], strides = [1, 1, 1, 1]} : vector<2x18x24x128xf32> to vector<2x16x16x128xf32>
    %66 = vector.shape_cast %65 : vector<2x16x16x128xf32> to vector<512x128xf32>
    %67 = arith.truncf %66 : vector<512x128xf32> to vector<512x128xbf16>
    %c5 = arith.constant 5 : index
    %c0_30 = arith.constant 0 : index
    %c0_31 = arith.constant 0 : index
    %68 = vector.load %arg4[%c5, %c0_30, %c0_31] : memref<9x128x128xbf16, #tpu.memory_space<vmem>>, vector<1x128x128xbf16>
    %69 = vector.shape_cast %68 : vector<1x128x128xbf16> to vector<128x128xbf16>
    %cst_32 = arith.constant dense<0.000000e+00> : vector<512x128xf32>
    %70 = tpu.matmul %67, %69, %cst_32 {dimension_numbers = #tpu.dot_dimension_numbers<[1], [0], [0], [1], [0, 0, 1, 1], [], []>} : vector<512x128xbf16>, vector<128x128xbf16>, vector<512x128xf32> -> vector<512x128xf32>
    %71 = arith.addf %64, %70 : vector<512x128xf32>
    %72 = vector.extract_strided_slice %28 {offsets = [0, 2, 0, 0], sizes = [2, 16, 16, 128], strides = [1, 1, 1, 1]} : vector<2x18x24x128xf32> to vector<2x16x16x128xf32>
    %73 = vector.shape_cast %72 : vector<2x16x16x128xf32> to vector<512x128xf32>
    %74 = arith.truncf %73 : vector<512x128xf32> to vector<512x128xbf16>
    %c6 = arith.constant 6 : index
    %c0_33 = arith.constant 0 : index
    %c0_34 = arith.constant 0 : index
    %75 = vector.load %arg4[%c6, %c0_33, %c0_34] : memref<9x128x128xbf16, #tpu.memory_space<vmem>>, vector<1x128x128xbf16>
    %76 = vector.shape_cast %75 : vector<1x128x128xbf16> to vector<128x128xbf16>
    %cst_35 = arith.constant dense<0.000000e+00> : vector<512x128xf32>
    %77 = tpu.matmul %74, %76, %cst_35 {dimension_numbers = #tpu.dot_dimension_numbers<[1], [0], [0], [1], [0, 0, 1, 1], [], []>} : vector<512x128xbf16>, vector<128x128xbf16>, vector<512x128xf32> -> vector<512x128xf32>
    %78 = arith.addf %71, %77 : vector<512x128xf32>
    %79 = vector.extract_strided_slice %28 {offsets = [0, 2, 1, 0], sizes = [2, 16, 16, 128], strides = [1, 1, 1, 1]} : vector<2x18x24x128xf32> to vector<2x16x16x128xf32>
    %80 = vector.shape_cast %79 : vector<2x16x16x128xf32> to vector<512x128xf32>
    %81 = arith.truncf %80 : vector<512x128xf32> to vector<512x128xbf16>
    %c7 = arith.constant 7 : index
    %c0_36 = arith.constant 0 : index
    %c0_37 = arith.constant 0 : index
    %82 = vector.load %arg4[%c7, %c0_36, %c0_37] : memref<9x128x128xbf16, #tpu.memory_space<vmem>>, vector<1x128x128xbf16>
    %83 = vector.shape_cast %82 : vector<1x128x128xbf16> to vector<128x128xbf16>
    %cst_38 = arith.constant dense<0.000000e+00> : vector<512x128xf32>
    %84 = tpu.matmul %81, %83, %cst_38 {dimension_numbers = #tpu.dot_dimension_numbers<[1], [0], [0], [1], [0, 0, 1, 1], [], []>} : vector<512x128xbf16>, vector<128x128xbf16>, vector<512x128xf32> -> vector<512x128xf32>
    %85 = arith.addf %78, %84 : vector<512x128xf32>
    %86 = vector.extract_strided_slice %28 {offsets = [0, 2, 2, 0], sizes = [2, 16, 16, 128], strides = [1, 1, 1, 1]} : vector<2x18x24x128xf32> to vector<2x16x16x128xf32>
    %87 = vector.shape_cast %86 : vector<2x16x16x128xf32> to vector<512x128xf32>
    %88 = arith.truncf %87 : vector<512x128xf32> to vector<512x128xbf16>
    %c8 = arith.constant 8 : index
    %c0_39 = arith.constant 0 : index
    %c0_40 = arith.constant 0 : index
    %89 = vector.load %arg4[%c8, %c0_39, %c0_40] : memref<9x128x128xbf16, #tpu.memory_space<vmem>>, vector<1x128x128xbf16>
    %90 = vector.shape_cast %89 : vector<1x128x128xbf16> to vector<128x128xbf16>
    %cst_41 = arith.constant dense<0.000000e+00> : vector<512x128xf32>
    %91 = tpu.matmul %88, %90, %cst_41 {dimension_numbers = #tpu.dot_dimension_numbers<[1], [0], [0], [1], [0, 0, 1, 1], [], []>} : vector<512x128xbf16>, vector<128x128xbf16>, vector<512x128xf32> -> vector<512x128xf32>
    %92 = arith.addf %85, %91 : vector<512x128xf32>
    %cst_42 = arith.constant dense<0.000000e+00> : vector<128xf32>
    %93 = vector.multi_reduction <add>, %92, %cst_42 [0] : vector<512x128xf32> to vector<128xf32>
    %94 = vector.shape_cast %93 : vector<128xf32> to vector<1x128xf32>
    %95 = arith.mulf %92, %92 : vector<512x128xf32>
    %cst_43 = arith.constant dense<0.000000e+00> : vector<128xf32>
    %96 = vector.multi_reduction <add>, %95, %cst_43 [0] : vector<512x128xf32> to vector<128xf32>
    %97 = vector.shape_cast %96 : vector<128xf32> to vector<1x128xf32>
    %cst_44 = arith.constant 0.001953125 : f32
    %98 = vector.broadcast %cst_44 : f32 to vector<1x128xf32>
    %99 = arith.mulf %94, %98 : vector<1x128xf32>
    %cst_45 = arith.constant 0.001953125 : f32
    %100 = vector.broadcast %cst_45 : f32 to vector<1x128xf32>
    %101 = arith.mulf %97, %100 : vector<1x128xf32>
    %102 = arith.mulf %99, %99 : vector<1x128xf32>
    %103 = arith.subf %101, %102 : vector<1x128xf32>
    %104 = vector.broadcast %99 : vector<1x128xf32> to vector<512x128xf32>
    %105 = arith.subf %92, %104 : vector<512x128xf32>
    %cst_46 = arith.constant 9.99999974E-6 : f32
    %106 = vector.broadcast %cst_46 : f32 to vector<1x128xf32>
    %107 = arith.addf %103, %106 : vector<1x128xf32>
    %108 = math.rsqrt %107 : vector<1x128xf32>
    %109 = vector.broadcast %108 : vector<1x128xf32> to vector<512x128xf32>
    %110 = arith.mulf %105, %109 : vector<512x128xf32>
    %cst_47 = arith.constant 0.000000e+00 : f32
    %111 = vector.broadcast %cst_47 : f32 to vector<512x128xf32>
    %112 = arith.maximumf %110, %111 : vector<512x128xf32>
    %113 = arith.truncf %112 : vector<512x128xf32> to vector<512x128xbf16>
    %c0_48 = arith.constant 0 : index
    %c0_49 = arith.constant 0 : index
    %114 = vector.load %arg5[%c0_48, %c0_49] : memref<128x128xbf16, #tpu.memory_space<vmem>>, vector<128x128xbf16>
    %cst_50 = arith.constant dense<0.000000e+00> : vector<512x128xf32>
    %115 = tpu.matmul %113, %114, %cst_50 {dimension_numbers = #tpu.dot_dimension_numbers<[1], [0], [0], [1], [0, 0, 1, 1], [], []>} : vector<512x128xbf16>, vector<128x128xbf16>, vector<512x128xf32> -> vector<512x128xf32>
    %cst_51 = arith.constant dense<0.000000e+00> : vector<128xf32>
    %116 = vector.multi_reduction <add>, %115, %cst_51 [0] : vector<512x128xf32> to vector<128xf32>
    %117 = vector.shape_cast %116 : vector<128xf32> to vector<1x128xf32>
    %118 = arith.mulf %115, %115 : vector<512x128xf32>
    %cst_52 = arith.constant dense<0.000000e+00> : vector<128xf32>
    %119 = vector.multi_reduction <add>, %118, %cst_52 [0] : vector<512x128xf32> to vector<128xf32>
    %120 = vector.shape_cast %119 : vector<128xf32> to vector<1x128xf32>
    %cst_53 = arith.constant 0.001953125 : f32
    %121 = vector.broadcast %cst_53 : f32 to vector<1x128xf32>
    %122 = arith.mulf %117, %121 : vector<1x128xf32>
    %cst_54 = arith.constant 0.001953125 : f32
    %123 = vector.broadcast %cst_54 : f32 to vector<1x128xf32>
    %124 = arith.mulf %120, %123 : vector<1x128xf32>
    %125 = arith.mulf %122, %122 : vector<1x128xf32>
    %126 = arith.subf %124, %125 : vector<1x128xf32>
    %127 = vector.broadcast %122 : vector<1x128xf32> to vector<512x128xf32>
    %128 = arith.subf %115, %127 : vector<512x128xf32>
    %cst_55 = arith.constant 9.99999974E-6 : f32
    %129 = vector.broadcast %cst_55 : f32 to vector<1x128xf32>
    %130 = arith.addf %126, %129 : vector<1x128xf32>
    %131 = math.rsqrt %130 : vector<1x128xf32>
    %132 = vector.broadcast %131 : vector<1x128xf32> to vector<512x128xf32>
    %133 = arith.mulf %128, %132 : vector<512x128xf32>
    %134 = vector.extract_strided_slice %0 {offsets = [0, 1, 1, 0], sizes = [2, 16, 16, 128], strides = [1, 1, 1, 1]} : vector<2x18x24x128xf32> to vector<2x16x16x128xf32>
    %135 = vector.shape_cast %134 : vector<2x16x16x128xf32> to vector<512x128xf32>
    %136 = arith.truncf %135 : vector<512x128xf32> to vector<512x128xbf16>
    %c0_56 = arith.constant 0 : index
    %c0_57 = arith.constant 0 : index
    %137 = vector.load %arg6[%c0_56, %c0_57] : memref<128x128xbf16, #tpu.memory_space<vmem>>, vector<128x128xbf16>
    %cst_58 = arith.constant dense<0.000000e+00> : vector<512x128xf32>
    %138 = tpu.matmul %136, %137, %cst_58 {dimension_numbers = #tpu.dot_dimension_numbers<[1], [0], [0], [1], [0, 0, 1, 1], [], []>} : vector<512x128xbf16>, vector<128x128xbf16>, vector<512x128xf32> -> vector<512x128xf32>
    %cst_59 = arith.constant dense<0.000000e+00> : vector<128xf32>
    %139 = vector.multi_reduction <add>, %138, %cst_59 [0] : vector<512x128xf32> to vector<128xf32>
    %140 = vector.shape_cast %139 : vector<128xf32> to vector<1x128xf32>
    %141 = arith.mulf %138, %138 : vector<512x128xf32>
    %cst_60 = arith.constant dense<0.000000e+00> : vector<128xf32>
    %142 = vector.multi_reduction <add>, %141, %cst_60 [0] : vector<512x128xf32> to vector<128xf32>
    %143 = vector.shape_cast %142 : vector<128xf32> to vector<1x128xf32>
    %cst_61 = arith.constant 0.001953125 : f32
    %144 = vector.broadcast %cst_61 : f32 to vector<1x128xf32>
    %145 = arith.mulf %140, %144 : vector<1x128xf32>
    %cst_62 = arith.constant 0.001953125 : f32
    %146 = vector.broadcast %cst_62 : f32 to vector<1x128xf32>
    %147 = arith.mulf %143, %146 : vector<1x128xf32>
    %148 = arith.mulf %145, %145 : vector<1x128xf32>
    %149 = arith.subf %147, %148 : vector<1x128xf32>
    %150 = vector.broadcast %145 : vector<1x128xf32> to vector<512x128xf32>
    %151 = arith.subf %138, %150 : vector<512x128xf32>
    %cst_63 = arith.constant 9.99999974E-6 : f32
    %152 = vector.broadcast %cst_63 : f32 to vector<1x128xf32>
    %153 = arith.addf %149, %152 : vector<1x128xf32>
    %154 = math.rsqrt %153 : vector<1x128xf32>
    %155 = vector.broadcast %154 : vector<1x128xf32> to vector<512x128xf32>
    %156 = arith.mulf %151, %155 : vector<512x128xf32>
    %157 = arith.addf %133, %156 : vector<512x128xf32>
    %cst_64 = arith.constant 0.000000e+00 : f32
    %158 = vector.broadcast %cst_64 : f32 to vector<512x128xf32>
    %159 = arith.maximumf %157, %158 : vector<512x128xf32>
    %c0_65 = arith.constant 0 : index
    %c0_66 = arith.constant 0 : index
    %160 = vector.load %arg7[%c0_65, %c0_66] : memref<512x128xf32, #tpu.memory_space<vmem>>, vector<512x128xf32>
    tpu.vector_store %arg7[%c0_65, %c0_66], %159 {strides = array<i32>} : memref<512x128xf32, #tpu.memory_space<vmem>>, vector<512x128xf32>,
    return
  }
  func.func @transform_0(%arg0: i32) -> (i32, i32, i32, i32) {
    %c0_i32 = arith.constant 0 : i32
    %c0_i32_0 = arith.constant 0 : i32
    %c0_i32_1 = arith.constant 0 : i32
    %c0_i32_2 = arith.constant 0 : i32
    %c0_i32_3 = arith.constant 0 : i32
    return %c0_i32, %c0_i32_0, %c0_i32_1, %c0_i32_2 : i32, i32, i32, i32
  }
  func.func @transform_1(%arg0: i32) -> (i32, i32) {
    %c0_i32 = arith.constant 0 : i32
    %c0_i32_0 = arith.constant 0 : i32
    %c0_i32_1 = arith.constant 0 : i32
    return %c0_i32, %c0_i32_0 : i32, i32
  }
  func.func @transform_2(%arg0: i32) -> (i32, i32) {
    %c0_i32 = arith.constant 0 : i32
    %c0_i32_0 = arith.constant 0 : i32
    %c0_i32_1 = arith.constant 0 : i32
    return %c0_i32, %c0_i32_0 : i32, i32
  }
  func.func @transform_3(%arg0: i32) -> (i32, i32, i32) {
    %c0_i32 = arith.constant 0 : i32
    %c0_i32_0 = arith.constant 0 : i32
    %c0_i32_1 = arith.constant 0 : i32
    %c0_i32_2 = arith.constant 0 : i32
    return %c0_i32, %c0_i32_0, %c0_i32_1 : i32, i32, i32
  }
  func.func @transform_4(%arg0: i32) -> (i32, i32) {
    %c0_i32 = arith.constant 0 : i32
    %c0_i32_0 = arith.constant 0 : i32
    %c0_i32_1 = arith.constant 0 : i32
    return %c0_i32, %c0_i32_0 : i32, i32
  }
  func.func @transform_5(%arg0: i32) -> (i32, i32) {
    %c0_i32 = arith.constant 0 : i32
    %c0_i32_0 = arith.constant 0 : i32
    %c0_i32_1 = arith.constant 0 : i32
    return %c0_i32, %c0_i32_0 : i32, i32
  }
  func.func @transform_6(%arg0: i32) -> (i32, i32) {
    %c0_i32 = arith.constant 0 : i32
    %c0_i32_0 = arith.constant 0 : i32
    %c0_i32_1 = arith.constant 0 : i32
    return %c0_i32, %c0_i32_0 : i32, i32
  }
}

</mosaic_0001>

<bundles_post_ra>
// kernel: tpu_custom_call.1
= control target key start
LH: loop header
LB: loop body
LE: loop exit
PB: predicated region body
PF: predicated region fallthrough
CT: control target
= control target key end

     0   :  { %11 = vsyncpa [#allocation3], 0  ;;  %s19292_s0 = inlined_call_operand.vmem [shape: f32[2,18,24,128], index: 0, kind: input, shape index: {}]   ;;  %s19293_s1 = inlined_call_operand.vmem [shape: f32[864,1], index: 1, kind: input, shape index: {}]   ;;  %s19294_s2 = inlined_call_operand.hbm [shape: bf16[128,128], index: 2, kind: input, shape index: {}]   ;;  %s19295_s3 = inlined_call_operand.hbm [shape: bf16[9,128,128], index: 3, kind: input, shape index: {}]   ;;  %s19296_s4 = inlined_call_operand.hbm [shape: bf16[128,128], index: 4, kind: input, shape index: {}]   ;;  %s19297_s5 = inlined_call_operand.hbm [shape: bf16[128,128], index: 5, kind: input, shape index: {}]   ;;  %s19298_s6 = inlined_call_operand.hbm [shape: f32[512,128], index: 6, kind: output, shape index: {}]  }
   0x1   :  { %12 = vsyncpa [#allocation6], 0 }
   0x2   :  { %13 = vsyncpa [#allocation9], 0 }
   0x3   :  { %14 = vsyncpa [#allocation4], 0  ;;  %s11351_s21 = smov [#allocation5]   ;;  %s11352_s23 = smov [#allocation2]  }
   0x4   :  { %s36_s22 = sshll.u32 %s11351_s21, 4  ;;  %s24_s24 = sshll.u32 %s11352_s23, 4  ;;  %s37_s22 = int_to_ptr.vmem [resolvable:$true] %s36_s22  ;;  %s11396_s24 = int_to_ptr.vmem [resolvable:$true] %s24_s24 }
   0x5   :  { %s11233_s27 = scalar_lea.hbm %s19295_s3, 9216 }
   0x6   :  { %p11234_p0 = scmp.ne.s32.totalorder %s19295_s3, %s11233_s27  ;;  %p11237_p1 = scmp.lt.u32.totalorder %s11233_s27, %s19295_s3 }
   0x8   :  { %p11239_p2 = pnand %p11237_p1, %p11234_p0 }
   0xa   :  { %11242 = shalt.err (!%p11239_p2)
}
   0xb   :  { %s11243_s8 = scalar_lea.vmem %s37_s22, 9216  ;;  %p11248_p4 = scmp.lt.s32.totalorder %s37_s22, %s37_s22 }
   0xc   :  { %p11244_p3 = scmp.ne.s32.totalorder %s37_s22, %s11243_s8  ;;  %p11249_p5 = scmp.lt.s32.totalorder %s11243_s8, %s11243_s8 }
   0xe   :  { %p11250_p6 = por %p11249_p5, %p11248_p4 }
  0x10   :  { %p11251_p7 = pnand %p11250_p6, %p11244_p3 }
  0x12   :  { %11254 = shalt.err (!%p11251_p7)
}
  0x13   :  { %s11353_s9 = smov 64   ;;  %s11354_s10 = smov 4  }
  0x14   :  { %42 = dma.hbm_to_vmem [thread:$0]  %s19295_s3, 9216, %s37_s22, [#allocation6], %s11353_s9, %s11353_s9, %s11354_s10  }
  0x15   :  { %s11255_s15 = scalar_lea.hbm %s19294_s2, 1024 }
  0x16   :  { %p11256_p8 = scmp.ne.s32.totalorder %s19294_s2, %s11255_s15  ;;  %p11259_p9 = scmp.lt.u32.totalorder %s11255_s15, %s19294_s2 }
  0x18   :  { %p11261_p10 = pnand %p11259_p9, %p11256_p8 }
  0x1a   :  { %11264 = shalt.err (!%p11261_p10)
}
  0x1b   :  { %s11265_s20 = scalar_lea.vmem %s11396_s24, 1024  ;;  %p11270_p12 = scmp.lt.s32.totalorder %s11396_s24, %s11396_s24 }
  0x1c   :  { %p11266_p11 = scmp.ne.s32.totalorder %s11396_s24, %s11265_s20  ;;  %p11271_p13 = scmp.lt.s32.totalorder %s11265_s20, %s11265_s20 }
  0x1e   :  { %p11272_p0 = por %p11271_p13, %p11270_p12 }
  0x20   :  { %p11273_p1 = pnand %p11272_p0, %p11266_p11 }
  0x22   :  { %11276 = shalt.err (!%p11273_p1)
}
  0x23   :  { %30 = dma.hbm_to_vmem [thread:$0]  %s19294_s2, 1024, %s11396_s24, [#allocation3], %s11353_s9, %s11353_s9, %s11354_s10  }
  0x24   :  { %s11355_s22 = smov [#allocation7]   ;;  %s11356_s25 = smov [#allocation8]  }
  0x25   :  { %s48_s23 = sshll.u32 %s11355_s22, 4  ;;  %s60_s26 = sshll.u32 %s11356_s25, 4  ;;  %s49_s23 = int_to_ptr.vmem [resolvable:$true] %s48_s23  ;;  %s11433_s26 = int_to_ptr.vmem [resolvable:$true] %s60_s26 }
  0x26   :  { %s11277_s29 = scalar_lea.hbm %s19296_s4, 1024 }
  0x27   :  { %p11278_p2 = scmp.ne.s32.totalorder %s19296_s4, %s11277_s29  ;;  %p11281_p3 = scmp.lt.u32.totalorder %s11277_s29, %s19296_s4 }
  0x29   :  { %p11283_p4 = pnand %p11281_p3, %p11278_p2 }
  0x2b   :  { %11286 = shalt.err (!%p11283_p4)
}
  0x2c   :  { %s11287_s2 = scalar_lea.vmem %s49_s23, 1024  ;;  %p11292_p6 = scmp.lt.s32.totalorder %s49_s23, %s49_s23 }
  0x2d   :  { %p11288_p5 = scmp.ne.s32.totalorder %s49_s23, %s11287_s2  ;;  %p11293_p7 = scmp.lt.s32.totalorder %s11287_s2, %s11287_s2 }
  0x2f   :  { %p11294_p8 = por %p11293_p7, %p11292_p6 }
  0x31   :  { %p11295_p9 = pnand %p11294_p8, %p11288_p5 }
  0x33   :  { %11298 = shalt.err (!%p11295_p9)
}
  0x34   :  { %54 = dma.hbm_to_vmem [thread:$0]  %s19296_s4, 1024, %s49_s23, [#allocation6], %s11353_s9, %s11353_s9, %s11354_s10  }
  0x35   :  { %s11299_s15 = scalar_lea.hbm %s19297_s5, 1024 }
  0x36   :  { %p11300_p10 = scmp.ne.s32.totalorder %s19297_s5, %s11299_s15  ;;  %p11303_p11 = scmp.lt.u32.totalorder %s11299_s15, %s19297_s5 }
  0x38   :  { %p11305_p12 = pnand %p11303_p11, %p11300_p10 }
  0x3a   :  { %11308 = shalt.err (!%p11305_p12)
}
  0x3b   :  { %s11309_s20 = scalar_lea.vmem %s11433_s26, 1024  ;;  %p11314_p0 = scmp.lt.s32.totalorder %s11433_s26, %s11433_s26 }
  0x3c   :  { %p11310_p13 = scmp.ne.s32.totalorder %s11433_s26, %s11309_s20  ;;  %p11315_p1 = scmp.lt.s32.totalorder %s11309_s20, %s11309_s20 }
  0x3e   :  { %p11316_p2 = por %p11315_p1, %p11314_p0 }
  0x40   :  { %p11317_p3 = pnand %p11316_p2, %p11310_p13 }
  0x42   :  { %11320 = shalt.err (!%p11317_p3)
}
  0x43   :  { %66 = dma.hbm_to_vmem [thread:$0]  %s19297_s5, 1024, %s11433_s26, [#allocation9], %s11353_s9, %s11353_s9, %s11354_s10  }
  0x44   :  { %11343 = dma.done.wait [#allocation3], 1024  }
  0x45   :  { %11344 = vsyncadd [#allocation3], 4294966272 }
  0x46   :  { %11345 = dma.done.wait [#allocation6], 10240  }
  0x47   :  { %11346 = vsyncadd [#allocation6], 4294957056 }
  0x48   :  { %11347 = dma.done.wait [#allocation9], 1024  }
  0x49   :  { %11348 = vsyncadd [#allocation9], 4294966272  ;;  %v11357_v0 = vmov 0   ;;  %v11061_v1 = vld [vmem:[#allocation2] sm:$0xff]   ;;  %v11062_v2 = vld [vmem:[#allocation2 + $0x8] sm:$0xff]   ;;  %vm2335_vm0 = vcmask 1046528  }
  0x4a   :  { %11060 = vset.pattern.permute.xlu1 %v11357_v0  ;;  %11059 = vset.pattern.permute.xlu0 %v11357_v0  ;;  %v11063_v3 = vld [vmem:[#allocation2 + $0x10] sm:$0xff]   ;;  %v11064_v4 = vld [vmem:[#allocation2 + $0x18] sm:$0xff]   ;;  %v80_v5 = vld [vmem:[%s19292_s0] sm:$0xff]  ;;  %vm3283_vm1 = vcmask 1045504  }
  0x4b   :  { %9517 = vmatprep.subr.bf16.mxu0 %v11061_v1  ;;  %v81_v6 = vld [vmem:[%s19292_s0 + $0x8] sm:$0xff]  ;;  %v11479_v8 = vld [vmem:[%s19292_s0 + $0x30] sm:$0xff]  ;;  %v11484_v9 = vld [vmem:[%s19292_s0 + $0x38] sm:$0xff] }
  0x4c   :  { %9518 = vmatpush3.bf16.msra.mxu0 %v11061_v1  ;;  %v188_v7 = vpack.c.bf16 %v81_v6, %v80_v5  ;;  %v7768_v10 = vrot.slane %v11479_v8, 1  ;;  %v7769_v11 = vrot.slane %v11484_v9, 1  ;;  %v11491_v12 = vld [vmem:[%s19292_s0 + $0x40] sm:$0xff]  ;;  %v11066_v18 = vld [vmem:[#allocation2 + $0x28] sm:$0xff]   ;;  %v11067_v19 = vld [vmem:[#allocation2 + $0x30] sm:$0xff]  }
  0x4d   :  { %9519 = vmatprep.subr.bf16.mxu0 %v11062_v2  ;;  %v11065_v13 = vld [vmem:[#allocation2 + $0x20] sm:$0xff]   ;;  %v7771_v14 = vrot.slane %v11491_v12, 1  ;;  %v11510_v21 = vld [vmem:[%s19292_s0 + $0x128] sm:$0xff]  ;;  %v11517_v24 = vld [vmem:[%s19292_s0 + $0x130] sm:$0xff] }
  0x4e   :  { %9533 = vmatprep.mubr.bf16.mxu0 %v188_v7  ;;  %v11495_v15 = vsel %vm2335_vm0, %v7768_v10, %v7769_v11  ;;  %v11505_v20 = vld [vmem:[%s19292_s0 + $0x120] sm:$0xff]  ;;  %v7819_v23 = vrot.slane %v11510_v21, 1  ;;  %v11068_v25 = vld [vmem:[#allocation2 + $0x38] sm:$0xff]   ;;  %v7821_v26 = vrot.slane %v11517_v24, 1  ;;  %v11523_v27 = vld [vmem:[%s19292_s0 + $0x150] sm:$0xff] }
  0x4f   :  { %19911 = vst [vmem:[#allocation15_spill] sm:$0xff] %v11495_v15  ;;  %v11498_v16 = vsel %vm2335_vm0, %v7769_v11, %v7771_v14  ;;  %v7818_v22 = vrot.slane %v11505_v20, 1  ;;  %v11531_v29 = vld [vmem:[%s19292_s0 + $0x158] sm:$0xff]  ;;  %v839_v30 = vld [vmem:[%s19293_s1 + $0x220] sm:$0xff]  ;;  %v837_v31 = vld [vmem:[%s19293_s1 + $0x210] sm:$0xff]  ;;  %v7828_v35 = vrot.slane %v11523_v27, 1 }
  0x50   :  { %9520 = vmatpush3.bf16.msra.mxu0 %v11062_v2  ;;  %19912 = vst [vmem:[#allocation16_spill] sm:$0xff] %v11498_v16  ;;  %v82_v32 = vld [vmem:[%s19292_s0 + $0x10] sm:$0xff]  ;;  %v83_v33 = vld [vmem:[%s19292_s0 + $0x18] sm:$0xff]  ;;  %v11546_v34 = vsel %vm2335_vm0, %v7819_v23, %v7821_v26  ;;  %v7829_v36 = vrot.slane %v11531_v29, 1  ;;  %v11553_v37 = vld [vmem:[%s19292_s0 + $0x160] sm:$0xff]  ;;  %1885 = vperm.xlu1 %11060, %v839_v30  }
  0x51   :  { %9521 = vmatprep.subr.bf16.mxu0 %v11063_v3  ;;  %v11526_v28 = vsel %vm2335_vm0, %v7818_v22, %v7819_v23  ;;  %19914 = vst [vmem:[#allocation18_spill] sm:$0xff] %v11546_v34  ;;  %1875 = vperm.xlu0 %11059, %v837_v31   ;;  %v84_v38 = vld [vmem:[%s19292_s0 + $0x20] sm:$0xff]  ;;  %v7831_v40 = vrot.slane %v11553_v37, 1  ;;  %v840_v41 = vld [vmem:[%s19293_s1 + $0x228] sm:$0xff]  ;;  %v838_v42 = vld [vmem:[%s19293_s1 + $0x218] sm:$0xff]  ;;  %v189_v51 = vpack.c.bf16 %v83_v33, %v82_v32 }
  0x52   :  { %19913 = vst [vmem:[#allocation17_spill] sm:$0xff] %v11526_v28  ;;  %v85_v43 = vld [vmem:[%s19292_s0 + $0x28] sm:$0xff]  ;;  %v11571_v44 = vsel %vm2335_vm0, %v7828_v35, %v7829_v36  ;;  %v11576_v45 = vld [vmem:[%s19292_s0 + $0x180] sm:$0xff]  ;;  %v11591_v50 = vld [vmem:[%s19292_s0 + $0x190] sm:$0xff] }
  0x53   :  { %19915 = vst [vmem:[#allocation19_spill] sm:$0xff] %v11571_v44  ;;  %v11581_v46 = vld [vmem:[%s19292_s0 + $0x188] sm:$0xff]  ;;  %v11584_v47 = vsel %vm2335_vm0, %v7829_v36, %v7831_v40  ;;  %v7838_v48 = vrot.slane %v11576_v45, 1  ;;  %v7841_v53 = vrot.slane %v11591_v50, 1  ;;  %v190_v54 = vpack.c.bf16 %v85_v43, %v84_v38  ;;  %v842_v56 = vld [vmem:[%s19293_s1 + $0x238] sm:$0xff]  ;;  %v841_v58 = vld [vmem:[%s19293_s1 + $0x230] sm:$0xff] }
  0x54   :  { %9522 = vmatpush3.bf16.msra.mxu0 %v11063_v3  ;;  %19916 = vst [vmem:[#allocation20_spill] sm:$0xff] %v11584_v47  ;;  %v7839_v49 = vrot.slane %v11581_v46, 1  ;;  %1890 = vperm.xlu1 %11060, %v840_v41   ;;  %v11611_v59 = vld [vmem:[%s19292_s0 + $0x1e0] sm:$0xff]  ;;  %v11616_v60 = vld [vmem:[%s19292_s0 + $0x1e8] sm:$0xff]  ;;  %v11625_v0 = vld [vmem:[%s19292_s0 + $0x1f0] sm:$0xff] }
  0x55   :  { %9523 = vmatprep.subr.bf16.mxu0 %v11064_v4  ;;  %1880 = vperm.xlu0 %11059, %v838_v42   ;;  %v7848_v62 = vrot.slane %v11611_v59, 1  ;;  %v7849_v63 = vrot.slane %v11616_v60, 1  ;;  %v7851_v1 = vrot.slane %v11625_v0, 1  ;;  %v89_v2 = vld [vmem:[%s19292_s0 + $0x48] sm:$0xff]  ;;  %v843_v5 = vld [vmem:[%s19293_s1 + $0x240] sm:$0xff]  ;;  %v11646_v7 = vld [vmem:[%s19292_s0 + $0x210] sm:$0xff] }
  0x56   :  { %v11597_v55 = vsel %vm2335_vm0, %v7838_v48, %v7839_v49  ;;  %v11603_v57 = vsel %vm2335_vm0, %v7839_v49, %v7841_v53  ;;  %v844_v3 = vld [vmem:[%s19293_s1 + $0x248] sm:$0xff]  ;;  %v11651_v10 = vld [vmem:[%s19292_s0 + $0x218] sm:$0xff]  ;;  %v845_v23 = vld [vmem:[%s19293_s1 + $0x250] sm:$0xff]  ;;  %v192_v26 = vpack.c.bf16 %v89_v2, %v11491_v12 }
  0x57   :  { %19917 = vst [vmem:[#allocation21_spill] sm:$0xff] %v11597_v55  ;;  %19918 = vst [vmem:[#allocation22_spill] sm:$0xff] %v11603_v57  ;;  %v11641_v6 = vsel %vm2335_vm0, %v7849_v63, %v7851_v1  ;;  %v7859_v14 = vrot.slane %v11651_v10, 1  ;;  %v846_v22 = vld [vmem:[%s19293_s1 + $0x258] sm:$0xff]  ;;  %v92_v12 = vld [vmem:[%s19292_s0 + $0x60] sm:$0xff] }
  0x58   :  { %9524 = vmatpush3.bf16.msra.mxu0 %v11064_v4  ;;  %1900 = vperm.xlu1 %11060, %v842_v56   ;;  %v11635_v4 = vsel %vm2335_vm0, %v7848_v62, %v7849_v63  ;;  %19920 = vst [vmem:[#allocation24_spill] sm:$0xff] %v11641_v6  ;;  %v91_v32 = vld [vmem:[%s19292_s0 + $0x58] sm:$0xff]  ;;  %v848_v33 = vld [vmem:[%s19293_s1 + $0x268] sm:$0xff]  ;;  %v11695_v35 = vld [vmem:[%s19292_s0 + $0x240] sm:$0xff] }
  0x59   :  { %9525 = vmatprep.subr.bf16.mxu0 %v11065_v13  ;;  %1895 = vperm.xlu0 %11059, %v841_v58   ;;  %19919 = vst [vmem:[#allocation23_spill] sm:$0xff] %v11635_v4  ;;  %v11700_v36 = vld [vmem:[%s19292_s0 + $0x248] sm:$0xff]  ;;  %v847_v40 = vld [vmem:[%s19293_s1 + $0x260] sm:$0xff]  ;;  %v7868_v41 = vrot.slane %v11695_v35, 1  ;;  %v850_v43 = vld [vmem:[%s19293_s1 + $0x278] sm:$0xff] }
  0x5a   :  { %v93_v38 = vld [vmem:[%s19292_s0 + $0x68] sm:$0xff]  ;;  %v7869_v42 = vrot.slane %v11700_v36, 1  ;;  %v849_v49 = vld [vmem:[%s19293_s1 + $0x270] sm:$0xff]  ;;  %v95_v62 = vld [vmem:[%s19292_s0 + $0x78] sm:$0xff] }
  0x5b   :  { %v194_v53 = vpack.c.bf16 %v93_v38, %v92_v12  ;;  %v94_v56 = vld [vmem:[%s19292_s0 + $0x70] sm:$0xff]  ;;  %v96_v63 = vld [vmem:[%s19292_s0 + $0x80] sm:$0xff]  ;;  %v852_v1 = vld [vmem:[%s19293_s1 + $0x288] sm:$0xff] }
  0x5c   :  { %9526 = vmatpush3.bf16.msra.mxu0 %v11065_v13  ;;  %v7858_v13 = vrot.slane %v11646_v7, 1  ;;  %1910 = vperm.xlu1 %11060, %v844_v3   ;;  %v97_v2 = vld [vmem:[%s19292_s0 + $0x88] sm:$0xff]  ;;  %v851_v3 = vld [vmem:[%s19293_s1 + $0x280] sm:$0xff]  ;;  %v114_v61 = vld [vmem:[%s19292_s0 + $0x110] sm:$0xff] }
  0x5d   :  { %9527 = vmatprep.subr.bf16.mxu0 %v11066_v18  ;;  %1905 = vperm.xlu0 %11059, %v843_v5   ;;  %v100_v38 = vld [vmem:[%s19292_s0 + $0xa0] sm:$0xff] }
  0x5e   :  { %v11673_v30 = vsel %vm2335_vm0, %v7858_v13, %v7859_v14  ;;  %v854_v13 = vld [vmem:[%s19293_s1 + $0x298] sm:$0xff] }
  0x5f   :  { %19921 = vst [vmem:[#allocation25_spill] sm:$0xff] %v11673_v30 }
  0x60   :  { %9528 = vmatpush3.bf16.msra.mxu0 %v11066_v18  ;;  %v11660_v18 = vld [vmem:[%s19292_s0 + $0x220] sm:$0xff]  ;;  %1920 = vperm.xlu1 %11060, %v846_v22   ;;  %v853_v22 = vld [vmem:[%s19293_s1 + $0x290] sm:$0xff] }
  0x61   :  { %9529 = vmatprep.subr.bf16.mxu0 %v11067_v19  ;;  %1915 = vperm.xlu0 %11059, %v845_v23   ;;  %v196_v23 = vpack.c.bf16 %v97_v2, %v96_v63  ;;  %v102_v2 = vld [vmem:[%s19292_s0 + $0xb0] sm:$0xff] }
  0x64   :  { %9530 = vmatpush3.bf16.msra.mxu0 %v11067_v19  ;;  %v191_v19 = vpack.c.bf16 %v11484_v9, %v11479_v8  ;;  %v90_v9 = vld [vmem:[%s19292_s0 + $0x50] sm:$0xff]  ;;  %1930 = vperm.xlu1 %11060, %v848_v33  }
  0x65   :  { %9531 = vmatprep.subr.bf16.mxu0 %v11068_v25  ;;  %v193_v48 = vpack.c.bf16 %v91_v32, %v90_v9  ;;  %1925 = vperm.xlu0 %11059, %v847_v40   ;;  %v98_v9 = vld [vmem:[%s19292_s0 + $0x90] sm:$0xff]  ;;  %v99_v32 = vld [vmem:[%s19292_s0 + $0x98] sm:$0xff]  ;;  %v856_v40 = vld [vmem:[%s19293_s1 + $0x2a8] sm:$0xff] }
  0x68   :  { %9532 = vmatpush3.bf16.msra.mxu0 %v11068_v25  ;;  %v7861_v25 = vrot.slane %v11660_v18, 1  ;;  %1940 = vperm.xlu1 %11060, %v850_v43   ;;  %v855_v43 = vld [vmem:[%s19293_s1 + $0x2a0] sm:$0xff] }
  0x69   :  { %1935 = vperm.xlu0 %11059, %v849_v49  }
  0x6a   :  { %v11676_v31 = vsel %vm2335_vm0, %v7859_v14, %v7861_v25  ;;  %v11757_v25 = vld [vmem:[%s19292_s0 + $0x270] sm:$0xff] }
  0x6b   :  { %9534 = vmatmul.mubr.bf16.vlgmr.msra.gmra.mrb[0].mxu0 %v189_v51  ;;  %19922 = vst [vmem:[#allocation26_spill] sm:$0xff] %v11676_v31  ;;  %v11717_v51 = vsel %vm2335_vm0, %v7868_v41, %v7869_v42  ;;  %v7878_v12 = vrot.slane %v11757_v25, 1  ;;  %v11781_v41 = vld [vmem:[%s19292_s0 + $0x280] sm:$0xff]  ;;  %v869_v14 = vld [vmem:[%s19293_s1 + $0x310] sm:$0xff] }
  0x6c   :  { %9537 = vmatprep.mubr.bf16.mxu0 %v190_v54  ;;  %19923 = vst [vmem:[#allocation27_spill] sm:$0xff] %v11717_v51  ;;  %v11722_v54 = vld [vmem:[%s19292_s0 + $0x250] sm:$0xff]  ;;  %1950 = vperm.xlu1 %11060, %v852_v1   ;;  %v7881_v49 = vrot.slane %v11781_v41, 1 }
  0x6d   :  { %v7871_v58 = vrot.slane %v11722_v54, 1  ;;  %1945 = vperm.xlu0 %11059, %v851_v3   ;;  %v103_v3 = vld [vmem:[%s19292_s0 + $0xb8] sm:$0xff] }
  0x6f   :  { %v11744_v5 = vsel %vm2335_vm0, %v7869_v42, %v7871_v58  ;;  %v101_v42 = vld [vmem:[%s19292_s0 + $0xa8] sm:$0xff]  ;;  %v857_v58 = vld [vmem:[%s19293_s1 + $0x2b0] sm:$0xff] }
  0x70   :  { %19924 = vst [vmem:[#allocation28_spill] sm:$0xff] %v11744_v5  ;;  %1960 = vperm.xlu1 %11060, %v854_v13   ;;  %v198_v63 = vpack.c.bf16 %v101_v42, %v100_v38  ;;  %v104_v13 = vld [vmem:[%s19292_s0 + $0xc0] sm:$0xff]  ;;  %v862_v38 = vld [vmem:[%s19293_s1 + $0x2d8] sm:$0xff]  ;;  %v861_v42 = vld [vmem:[%s19293_s1 + $0x2d0] sm:$0xff] }
  0x71   :  { %1955 = vperm.xlu0 %11059, %v853_v22   ;;  %v11819_v22 = vld [vmem:[%s19292_s0 + $0x2a0] sm:$0xff] }
  0x73   :  { %9538 = vmatmul.mubr.bf16.gmra.mrb[4].mxu0 %v191_v19  ;;  %v195_v19 = vpack.c.bf16 %v95_v62, %v94_v56  ;;  %v197_v56 = vpack.c.bf16 %v99_v32, %v98_v9  ;;  %v105_v9 = vld [vmem:[%s19292_s0 + $0xc8] sm:$0xff]  ;;  %v859_v32 = vld [vmem:[%s19293_s1 + $0x2c0] sm:$0xff] }
  0x74   :  { %9541 = vmatprep.mubr.bf16.mxu0 %v192_v26  ;;  %v11762_v26 = vld [vmem:[%s19292_s0 + $0x278] sm:$0xff]  ;;  %1970 = vperm.xlu1 %11060, %v856_v40   ;;  %v199_v40 = vpack.c.bf16 %v103_v3, %v102_v2  ;;  %v108_v2 = vld [vmem:[%s19292_s0 + $0xe0] sm:$0xff]  ;;  %v864_v3 = vld [vmem:[%s19293_s1 + $0x2e8] sm:$0xff] }
  0x75   :  { %v7879_v33 = vrot.slane %v11762_v26, 1  ;;  %1965 = vperm.xlu0 %11059, %v855_v43  }
  0x77   :  { %v11800_v62 = vsel %vm2335_vm0, %v7879_v33, %v7881_v49  ;;  %v200_v49 = vpack.c.bf16 %v105_v9, %v104_v13  ;;  %v109_v13 = vld [vmem:[%s19292_s0 + $0xe8] sm:$0xff] }
  0x78   :  { %19926 = vst [vmem:[#allocation30_spill] sm:$0xff] %v11800_v62 }
  0x79   :  { %1975 = vperm.xlu0 %11059, %v857_v58  }
  0x7b   :  { %9542 = vmatmul.mubr.bf16.gmra.mrb[8].mxu0 %v193_v48  ;;  %v11790_v48 = vsel %vm2335_vm0, %v7878_v12, %v7879_v33  ;;  %v7888_v12 = vrot.slane %v11819_v22, 1 }
  0x7c   :  { %9545 = vmatprep.mubr.bf16.mxu0 %v194_v53  ;;  %19925 = vst [vmem:[#allocation29_spill] sm:$0xff] %v11790_v48  ;;  %v858_v53 = vld [vmem:[%s19293_s1 + $0x2b8] sm:$0xff] }
  0x7d   :  { %1980 = vperm.xlu1 %11060, %v858_v53   ;;  %1985 = vperm.xlu0 %11059, %v859_v32   ;;  %v11846_v53 = vld [vmem:[%s19292_s0 + $0x2b0] sm:$0xff]  ;;  %v866_v32 = vld [vmem:[%s19293_s1 + $0x2f8] sm:$0xff] }
  0x7e   :  { %v7891_v58 = vrot.slane %v11846_v53, 1 }
  0x81   :  { %1995 = vperm.xlu0 %11059, %v861_v42   ;;  %v202_v42 = vpack.c.bf16 %v109_v13, %v108_v2  ;;  %v868_v13 = vld [vmem:[%s19293_s1 + $0x308] sm:$0xff] }
  0x83   :  { %9546 = vmatmul.mubr.bf16.gmra.mrb[12].mxu0 %v195_v19  ;;  %v860_v19 = vld [vmem:[%s19293_s1 + $0x2c8] sm:$0xff] }
  0x84   :  { %9549 = vmatprep.mubr.bf16.mxu0 %v196_v23  ;;  %v11824_v23 = vld [vmem:[%s19292_s0 + $0x2a8] sm:$0xff]  ;;  %1990 = vperm.xlu1 %11060, %v860_v19   ;;  %v863_v19 = vld [vmem:[%s19293_s1 + $0x2e0] sm:$0xff] }
  0x85   :  { %v7889_v33 = vrot.slane %v11824_v23, 1  ;;  %2005 = vperm.xlu0 %11059, %v863_v19   ;;  %v11905_v19 = vld [vmem:[%s19292_s0 + $0x2e0] sm:$0xff] }
  0x87   :  { %v11841_v43 = vsel %vm2335_vm0, %v7888_v12, %v7889_v33  ;;  %v11868_v9 = vsel %vm2335_vm0, %v7889_v33, %v7891_v58  ;;  %v11881_v33 = vld [vmem:[%s19292_s0 + $0x2d0] sm:$0xff]  ;;  %v111_v58 = vld [vmem:[%s19292_s0 + $0xf8] sm:$0xff] }
  0x88   :  { %19927 = vst [vmem:[#allocation31_spill] sm:$0xff] %v11841_v43  ;;  %2000 = vperm.xlu1 %11060, %v862_v38   ;;  %19928 = vst [vmem:[#allocation32_spill] sm:$0xff] %v11868_v9  ;;  %v870_v12 = vld [vmem:[%s19293_s1 + $0x318] sm:$0xff] }
  0x8b   :  { %9550 = vmatmul.mubr.bf16.gmra.mrb[16].mxu0 %v197_v56  ;;  %v106_v56 = vld [vmem:[%s19292_s0 + $0xd0] sm:$0xff] }
  0x8c   :  { %9553 = vmatprep.mubr.bf16.mxu0 %v198_v63  ;;  %v107_v63 = vld [vmem:[%s19292_s0 + $0xd8] sm:$0xff]  ;;  %2010 = vperm.xlu1 %11060, %v864_v3   ;;  %v112_v3 = vld [vmem:[%s19292_s0 + $0x100] sm:$0xff] }
  0x8d   :  { %v201_v38 = vpack.c.bf16 %v107_v63, %v106_v56  ;;  %v110_v56 = vld [vmem:[%s19292_s0 + $0xf0] sm:$0xff]  ;;  %v7898_v63 = vrot.slane %v11881_v33, 1 }
  0x8e   :  { %v203_v1 = vpack.c.bf16 %v111_v58, %v110_v56  ;;  %v115_v56 = vld [vmem:[%s19292_s0 + $0x118] sm:$0xff]  ;;  %v872_v58 = vld [vmem:[%s19293_s1 + $0x328] sm:$0xff] }
  0x90   :  { %2020 = vperm.xlu1 %11060, %v866_v32   ;;  %v113_v32 = vld [vmem:[%s19292_s0 + $0x108] sm:$0xff] }
  0x91   :  { %v204_v11 = vpack.c.bf16 %v113_v32, %v112_v3  ;;  %v775_v3 = vld [vmem:[%s19293_s1 + $0x20] sm:$0xff]  ;;  %v774_v32 = vld [vmem:[%s19293_s1 + $0x18] sm:$0xff] }
  0x93   :  { %9554 = vmatmul.mubr.bf16.gmra.mrb[20].mxu0 %v199_v40  ;;  %v865_v40 = vld [vmem:[%s19293_s1 + $0x2f0] sm:$0xff] }
  0x94   :  { %9557 = vmatprep.mubr.bf16.mxu0 %v200_v49  ;;  %v11886_v49 = vld [vmem:[%s19292_s0 + $0x2d8] sm:$0xff]  ;;  %2015 = vperm.xlu0 %11059, %v865_v40   ;;  %v7901_v40 = vrot.slane %v11905_v19, 1 }
  0x95   :  { %v7899_v2 = vrot.slane %v11886_v49, 1  ;;  %2030 = vperm.xlu1 %11060, %v868_v13   ;;  %v205_v13 = vpack.c.bf16 %v115_v56, %v114_v61  ;;  %v119_v56 = vld [vmem:[%s19292_s0 + $0x138] sm:$0xff] }
  0x97   :  { %v11924_v8 = vsel %vm2335_vm0, %v7899_v2, %v7901_v40  ;;  %v206_v40 = vpack.c.bf16 %v11510_v21, %v11505_v20  ;;  %v778_v20 = vld [vmem:[%s19293_s1 + $0x38] sm:$0xff]  ;;  %v121_v21 = vld [vmem:[%s19292_s0 + $0x148] sm:$0xff] }
  0x98   :  { %19930 = vst [vmem:[#allocation34_spill] sm:$0xff] %v11924_v8 }
  0x99   :  { %2040 = vperm.xlu1 %11060, %v870_v12   ;;  %v871_v12 = vld [vmem:[%s19293_s1 + $0x320] sm:$0xff] }
  0x9b   :  { %9558 = vmatmul.mubr.bf16.gmra.mrb[24].mxu0 %v201_v38  ;;  %v867_v38 = vld [vmem:[%s19293_s1 + $0x300] sm:$0xff] }
  0x9c   :  { %9561 = vmatprep.mubr.bf16.mxu0 %v202_v42  ;;  %v11914_v42 = vsel %vm2335_vm0, %v7898_v63, %v7899_v2  ;;  %2025 = vperm.xlu0 %11059, %v867_v38   ;;  %v11940_v2 = vld [vmem:[%s19292_s0 + $0x300] sm:$0xff]  ;;  %v11966_v63 = vld [vmem:[%s19292_s0 + $0x310] sm:$0xff] }
  0x9d   :  { %19929 = vst [vmem:[#allocation33_spill] sm:$0xff] %v11914_v42  ;;  %2050 = vperm.xlu1 %11060, %v872_v58   ;;  %v7911_v61 = vrot.slane %v11966_v63, 1  ;;  %v120_v58 = vld [vmem:[%s19292_s0 + $0x140] sm:$0xff] }
  0x9e   :  { %v208_v52 = vpack.c.bf16 %v121_v21, %v120_v58  ;;  %v784_v58 = vld [vmem:[%s19293_s1 + $0x68] sm:$0xff] }
  0x9f   :  { %v125_v21 = vld [vmem:[%s19292_s0 + $0x168] sm:$0xff] }
  0xa0   :  { %2035 = vperm.xlu0 %11059, %v869_v14  }
  0xa1   :  { %1565 = vperm.xlu1 %11060, %v775_v3   ;;  %v781_v3 = vld [vmem:[%s19293_s1 + $0x50] sm:$0xff] }
  0xa3   :  { %9562 = vmatmul.mubr.bf16.gmra.mrb[28].mxu0 %v203_v1  ;;  %v11945_v1 = vld [vmem:[%s19292_s0 + $0x308] sm:$0xff] }
  0xa4   :  { %9565 = vmatprep.mubr.bf16.mxu0 %v204_v11  ;;  %v7908_v11 = vrot.slane %v11940_v2, 1  ;;  %v7909_v14 = vrot.slane %v11945_v1, 1  ;;  %2045 = vperm.xlu0 %11059, %v871_v12   ;;  %v777_v12 = vld [vmem:[%s19293_s1 + $0x30] sm:$0xff] }
  0xa5   :  { %1580 = vperm.xlu1 %11060, %v778_v20   ;;  %v12014_v20 = vld [vmem:[%s19292_s0 + $0x340] sm:$0xff] }
  0xa6   :  { %v11959_v38 = vsel %vm2335_vm0, %v7908_v11, %v7909_v14  ;;  %v11985_v11 = vsel %vm2335_vm0, %v7909_v14, %v7911_v61  ;;  %v11999_v14 = vld [vmem:[%s19292_s0 + $0x330] sm:$0xff]  ;;  %v12004_v61 = vld [vmem:[%s19292_s0 + $0x338] sm:$0xff] }
  0xa7   :  { %19931 = vst [vmem:[#allocation35_spill] sm:$0xff] %v11959_v38  ;;  %19932 = vst [vmem:[#allocation36_spill] sm:$0xff] %v11985_v11  ;;  %v126_v38 = vld [vmem:[%s19292_s0 + $0x170] sm:$0xff] }
  0xa8   :  { %1560 = vperm.xlu0 %11059, %v774_v32   ;;  %v207_v32 = vpack.c.bf16 %v119_v56, %v11517_v24  ;;  %v7918_v24 = vrot.slane %v11999_v14, 1  ;;  %v7919_v56 = vrot.slane %v12004_v61, 1 }
  0xa9   :  { %1595 = vperm.xlu1 %11060, %v781_v3   ;;  %v7921_v3 = vrot.slane %v12014_v20, 1 }
  0xab   :  { %9566 = vmatmul.mubr.bf16.gmra.mrb[32].mxu0 %v205_v13  ;;  %v786_v13 = vld [vmem:[%s19293_s1 + $0x78] sm:$0xff]  ;;  %v12035_v39 = vsel %vm2335_vm0, %v7919_v56, %v7921_v3  ;;  %v132_v3 = vld [vmem:[%s19292_s0 + $0x1a0] sm:$0xff] }
  0xac   :  { %9569 = vmatprep.mubr.bf16.mxu0 %v206_v40  ;;  %v780_v40 = vld [vmem:[%s19293_s1 + $0x48] sm:$0xff]  ;;  %1575 = vperm.xlu0 %11059, %v777_v12   ;;  %v783_v12 = vld [vmem:[%s19293_s1 + $0x60] sm:$0xff]  ;;  %19934 = vst [vmem:[#allocation38_spill] sm:$0xff] %v12035_v39 }
  0xad   :  { %1610 = vperm.xlu1 %11060, %v784_v58   ;;  %v793_v58 = vld [vmem:[%s19293_s1 + $0xb0] sm:$0xff] }
  0xb0   :  { %1590 = vperm.xlu0 %11059, %v780_v40   ;;  %v209_v40 = vpack.c.bf16 %v11531_v29, %v11523_v27  ;;  %v127_v27 = vld [vmem:[%s19292_s0 + $0x178] sm:$0xff] }
  0xb1   :  { %v790_v29 = vld [vmem:[%s19293_s1 + $0x98] sm:$0xff] }
  0xb3   :  { %9570 = vmatmul.mubr.bf16.gmra.mrb[36].mxu0 %v207_v32  ;;  %v787_v32 = vld [vmem:[%s19293_s1 + $0x80] sm:$0xff] }
  0xb4   :  { %9573 = vmatprep.mubr.bf16.mxu0 %v208_v52  ;;  %v12023_v52 = vsel %vm2335_vm0, %v7918_v24, %v7919_v56  ;;  %v210_v24 = vpack.c.bf16 %v125_v21, %v11553_v37  ;;  %1605 = vperm.xlu0 %11059, %v783_v12   ;;  %v789_v37 = vld [vmem:[%s19293_s1 + $0x90] sm:$0xff]  ;;  %v211_v56 = vpack.c.bf16 %v127_v27, %v126_v38  ;;  %v792_v21 = vld [vmem:[%s19293_s1 + $0xa8] sm:$0xff]  ;;  %v131_v38 = vld [vmem:[%s19292_s0 + $0x198] sm:$0xff] }
  0xb5   :  { %19933 = vst [vmem:[#allocation37_spill] sm:$0xff] %v12023_v52  ;;  %1625 = vperm.xlu1 %11060, %v787_v32   ;;  %v212_v12 = vpack.c.bf16 %v11581_v46, %v11576_v45  ;;  %v133_v45 = vld [vmem:[%s19292_s0 + $0x1a8] sm:$0xff]  ;;  %v795_v46 = vld [vmem:[%s19293_s1 + $0xc0] sm:$0xff]  ;;  %v213_v32 = vpack.c.bf16 %v131_v38, %v11591_v50  ;;  %v798_v27 = vld [vmem:[%s19293_s1 + $0xd8] sm:$0xff] }
  0xb6   :  { %v135_v50 = vld [vmem:[%s19292_s0 + $0x1b8] sm:$0xff] }
  0xb8   :  { %1620 = vperm.xlu0 %11059, %v786_v13   ;;  %v796_v13 = vld [vmem:[%s19293_s1 + $0xc8] sm:$0xff] }
  0xb9   :  { %1640 = vperm.xlu1 %11060, %v790_v29   ;;  %v134_v29 = vld [vmem:[%s19292_s0 + $0x1b0] sm:$0xff] }
  0xbb   :  { %9574 = vmatmul.mubr.bf16.gmra.mrb[40].mxu0 %v209_v40  ;;  %v214_v40 = vpack.c.bf16 %v133_v45, %v132_v3  ;;  %v804_v3 = vld [vmem:[%s19293_s1 + $0x108] sm:$0xff]  ;;  %v138_v45 = vld [vmem:[%s19292_s0 + $0x1d0] sm:$0xff] }
  0xbc   :  { %9577 = vmatprep.mubr.bf16.mxu0 %v210_v24  ;;  %1635 = vperm.xlu0 %11059, %v789_v37   ;;  %v799_v24 = vld [vmem:[%s19293_s1 + $0xe0] sm:$0xff]  ;;  %v802_v37 = vld [vmem:[%s19293_s1 + $0xf8] sm:$0xff] }
  0xbd   :  { %1655 = vperm.xlu1 %11060, %v793_v58   ;;  %v137_v58 = vld [vmem:[%s19292_s0 + $0x1c8] sm:$0xff] }
  0xc0   :  { %1650 = vperm.xlu0 %11059, %v792_v21   ;;  %v801_v21 = vld [vmem:[%s19293_s1 + $0xf0] sm:$0xff] }
  0xc1   :  { %1670 = vperm.xlu1 %11060, %v796_v13   ;;  %v805_v13 = vld [vmem:[%s19293_s1 + $0x110] sm:$0xff] }
  0xc3   :  { %9578 = vmatmul.mubr.bf16.gmra.mrb[44].mxu0 %v211_v56  ;;  %v136_v56 = vld [vmem:[%s19292_s0 + $0x1c0] sm:$0xff] }
  0xc4   :  { %9581 = vmatprep.mubr.bf16.mxu0 %v212_v12  ;;  %1665 = vperm.xlu0 %11059, %v795_v46   ;;  %v215_v12 = vpack.c.bf16 %v135_v50, %v134_v29  ;;  %v216_v38 = vpack.c.bf16 %v137_v58, %v136_v56  ;;  %v139_v46 = vld [vmem:[%s19292_s0 + $0x1d8] sm:$0xff]  ;;  %v811_v29 = vld [vmem:[%s19293_s1 + $0x140] sm:$0xff]  ;;  %v145_v56 = vld [vmem:[%s19292_s0 + $0x208] sm:$0xff] }
  0xc5   :  { %1685 = vperm.xlu1 %11060, %v799_v24   ;;  %v217_v24 = vpack.c.bf16 %v139_v46, %v138_v45  ;;  %v810_v50 = vld [vmem:[%s19293_s1 + $0x138] sm:$0xff]  ;;  %v813_v58 = vld [vmem:[%s19293_s1 + $0x150] sm:$0xff]  ;;  %v819_v45 = vld [vmem:[%s19293_s1 + $0x180] sm:$0xff]  ;;  %v221_v46 = vpack.c.bf16 %v11651_v10, %v11646_v7 }
  0xc6   :  { %v151_v7 = vld [vmem:[%s19292_s0 + $0x238] sm:$0xff]  ;;  %v832_v10 = vld [vmem:[%s19293_s1 + $0x1e8] sm:$0xff] }
  0xc8   :  { %1680 = vperm.xlu0 %11059, %v798_v27   ;;  %v218_v27 = vpack.c.bf16 %v11616_v60, %v11611_v59  ;;  %v814_v59 = vld [vmem:[%s19293_s1 + $0x158] sm:$0xff]  ;;  %v144_v60 = vld [vmem:[%s19292_s0 + $0x200] sm:$0xff] }
  0xc9   :  { %1700 = vperm.xlu1 %11060, %v802_v37   ;;  %v143_v37 = vld [vmem:[%s19292_s0 + $0x1f8] sm:$0xff] }
  0xcb   :  { %9582 = vmatmul.mubr.bf16.gmra.mrb[48].mxu0 %v213_v32  ;;  %v808_v32 = vld [vmem:[%s19293_s1 + $0x128] sm:$0xff] }
  0xcc   :  { %9585 = vmatprep.mubr.bf16.mxu0 %v214_v40  ;;  %1695 = vperm.xlu0 %11059, %v801_v21   ;;  %v807_v40 = vld [vmem:[%s19293_s1 + $0x120] sm:$0xff]  ;;  %v219_v21 = vpack.c.bf16 %v143_v37, %v11625_v0  ;;  %v149_v0 = vld [vmem:[%s19292_s0 + $0x228] sm:$0xff] }
  0xcd   :  { %1715 = vperm.xlu1 %11060, %v805_v13   ;;  %v816_v13 = vld [vmem:[%s19293_s1 + $0x168] sm:$0xff]  ;;  %v835_v37 = vld [vmem:[%s19293_s1 + $0x200] sm:$0xff] }
  0xd0   :  { %1710 = vperm.xlu0 %11059, %v804_v3   ;;  %v820_v3 = vld [vmem:[%s19293_s1 + $0x188] sm:$0xff] }
  0xd1   :  { %1730 = vperm.xlu1 %11060, %v808_v32   ;;  %v222_v32 = vpack.c.bf16 %v149_v0, %v11660_v18  ;;  %v831_v18 = vld [vmem:[%s19293_s1 + $0x1e0] sm:$0xff]  ;;  %v782_v0 = vld [vmem:[%s19293_s1 + $0x58] sm:$0xff] }
  0xd3   :  { %9586 = vmatmul.mubr.bf16.gmra.mrb[52].mxu0 %v215_v12  ;;  %v220_v12 = vpack.c.bf16 %v145_v56, %v144_v60  ;;  %v155_v60 = vld [vmem:[%s19292_s0 + $0x258] sm:$0xff]  ;;  %v157_v56 = vld [vmem:[%s19292_s0 + $0x268] sm:$0xff] }
  0xd4   :  { %9589 = vmatprep.mubr.bf16.mxu0 %v216_v38  ;;  %1725 = vperm.xlu0 %11059, %v807_v40   ;;  %v817_v38 = vld [vmem:[%s19293_s1 + $0x170] sm:$0xff] }
  0xd5   :  { %1745 = vperm.xlu1 %11060, %v811_v29   ;;  %v829_v40 = vld [vmem:[%s19293_s1 + $0x1d0] sm:$0xff] }
  0xd8   :  { %1740 = vperm.xlu0 %11059, %v810_v50   ;;  %v224_v50 = vpack.c.bf16 %v11700_v36, %v11695_v35  ;;  %v874_v35 = vld [vmem:[%s19293_s1 + $0x338] sm:$0xff]  ;;  %v156_v36 = vld [vmem:[%s19292_s0 + $0x260] sm:$0xff] }
  0xd9   :  { %1760 = vperm.xlu1 %11060, %v814_v59   ;;  %v834_v59 = vld [vmem:[%s19293_s1 + $0x1f8] sm:$0xff] }
  0xdb   :  { %9590 = vmatmul.mubr.bf16.gmra.mrb[56].mxu0 %v217_v24  ;;  %v828_v24 = vld [vmem:[%s19293_s1 + $0x1c8] sm:$0xff] }
  0xdc   :  { %9593 = vmatprep.mubr.bf16.mxu0 %v218_v27  ;;  %1755 = vperm.xlu0 %11059, %v813_v58   ;;  %v150_v27 = vld [vmem:[%s19292_s0 + $0x230] sm:$0xff] }
  0xdd   :  { %1775 = vperm.xlu1 %11060, %v817_v38   ;;  %v223_v29 = vpack.c.bf16 %v151_v7, %v150_v27  ;;  %v873_v58 = vld [vmem:[%s19293_s1 + $0x330] sm:$0xff]  ;;  %v779_v38 = vld [vmem:[%s19293_s1 + $0x40] sm:$0xff]  ;;  %v230_v7 = vpack.c.bf16 %v11824_v23, %v11819_v22 }
  0xde   :  { %v809_v22 = vld [vmem:[%s19293_s1 + $0x130] sm:$0xff]  ;;  %v168_v23 = vld [vmem:[%s19292_s0 + $0x2c0] sm:$0xff] }
  0xe0   :  { %1770 = vperm.xlu0 %11059, %v816_v13   ;;  %v776_v13 = vld [vmem:[%s19293_s1 + $0x28] sm:$0xff] }
  0xe1   :  { %1790 = vperm.xlu1 %11060, %v820_v3   ;;  %v785_v3 = vld [vmem:[%s19293_s1 + $0x70] sm:$0xff] }
  0xe3   :  { %9594 = vmatmul.mubr.bf16.gmra.mrb[60].mxu0 %v219_v21  ;;  %v225_v21 = vpack.c.bf16 %v155_v60, %v11722_v54  ;;  %v161_v54 = vld [vmem:[%s19292_s0 + $0x288] sm:$0xff] }
  0xe4   :  { %9597 = vmatprep.mubr.bf16.mxu0 %v220_v12  ;;  %1785 = vperm.xlu0 %11059, %v819_v45   ;;  %v226_v12 = vpack.c.bf16 %v157_v56, %v156_v36  ;;  %v227_v45 = vpack.c.bf16 %v11762_v26, %v11757_v25  ;;  %v163_v25 = vld [vmem:[%s19292_s0 + $0x298] sm:$0xff]  ;;  %v797_v26 = vld [vmem:[%s19293_s1 + $0xd0] sm:$0xff]  ;;  %v812_v36 = vld [vmem:[%s19293_s1 + $0x148] sm:$0xff] }
  0xe5   :  { %1835 = vperm.xlu1 %11060, %v829_v40   ;;  %v788_v40 = vld [vmem:[%s19293_s1 + $0x88] sm:$0xff]  ;;  %v821_v56 = vld [vmem:[%s19293_s1 + $0x190] sm:$0xff] }
  0xe8   :  { %1830 = vperm.xlu0 %11059, %v828_v24   ;;  %v162_v24 = vld [vmem:[%s19292_s0 + $0x290] sm:$0xff] }
  0xe9   :  { %1850 = vperm.xlu1 %11060, %v832_v10   ;;  %v229_v27 = vpack.c.bf16 %v163_v25, %v162_v24  ;;  %v803_v10 = vld [vmem:[%s19293_s1 + $0x100] sm:$0xff]  ;;  %v179_v24 = vld [vmem:[%s19292_s0 + $0x318] sm:$0xff]  ;;  %v181_v25 = vld [vmem:[%s19292_s0 + $0x328] sm:$0xff] }
  0xeb   :  { %9598 = vmatmul.mubr.bf16.gmra.mrb[64].mxu0 %v221_v46  ;;  %v228_v46 = vpack.c.bf16 %v161_v54, %v11781_v41  ;;  %v794_v41 = vld [vmem:[%s19293_s1 + $0xb8] sm:$0xff] }
  0xec   :  { %9601 = vmatprep.mubr.bf16.mxu0 %v222_v32  ;;  %1845 = vperm.xlu0 %11059, %v831_v18   ;;  %v791_v32 = vld [vmem:[%s19293_s1 + $0xa0] sm:$0xff]  ;;  %v800_v18 = vld [vmem:[%s19293_s1 + $0xe8] sm:$0xff] }
  0xed   :  { %1865 = vperm.xlu1 %11060, %v835_v37   ;;  %v806_v37 = vld [vmem:[%s19293_s1 + $0x118] sm:$0xff] }
  0xf0   :  { %1860 = vperm.xlu0 %11059, %v834_v59  }
  0xf1   :  { %2060 = vperm.xlu1 %11060, %v874_v35   ;;  %v815_v35 = vld [vmem:[%s19293_s1 + $0x160] sm:$0xff] }
  0xf3   :  { %9602 = vmatmul.mubr.bf16.gmra.mrb[68].mxu0 %v223_v29  ;;  %v167_v29 = vld [vmem:[%s19292_s0 + $0x2b8] sm:$0xff] }
  0xf4   :  { %9605 = vmatprep.mubr.bf16.mxu0 %v224_v50  ;;  %2055 = vperm.xlu0 %11059, %v873_v58   ;;  %v169_v50 = vld [vmem:[%s19292_s0 + $0x2c8] sm:$0xff]  ;;  %v231_v59 = vpack.c.bf16 %v167_v29, %v11846_v53  ;;  %v818_v58 = vld [vmem:[%s19293_s1 + $0x178] sm:$0xff]  ;;  %v823_v29 = vld [vmem:[%s19293_s1 + $0x1a0] sm:$0xff] }
  0xf5   :  { %1585 = vperm.xlu1 %11060, %v779_v38   ;;  %v232_v60 = vpack.c.bf16 %v169_v50, %v168_v23  ;;  %v173_v53 = vld [vmem:[%s19292_s0 + $0x2e8] sm:$0xff]  ;;  %v833_v38 = vld [vmem:[%s19293_s1 + $0x1f0] sm:$0xff] }
  0xf6   :  { %v185_v50 = vld [vmem:[%s19292_s0 + $0x348] sm:$0xff] }
  0xf8   :  { %1570 = vperm.xlu0 %11059, %v776_v13   ;;  %v830_v13 = vld [vmem:[%s19293_s1 + $0x1d8] sm:$0xff] }
  0xf9   :  { %1615 = vperm.xlu1 %11060, %v785_v3   ;;  %v174_v3 = vld [vmem:[%s19292_s0 + $0x2f0] sm:$0xff] }
  0xfb   :  { %9606 = vmatmul.mubr.bf16.gmra.mrb[72].mxu0 %v225_v21  ;;  %v233_v21 = vpack.c.bf16 %v11886_v49, %v11881_v33  ;;  %v175_v33 = vld [vmem:[%s19292_s0 + $0x2f8] sm:$0xff]  ;;  %v875_v49 = vld [vmem:[%s19293_s1 + $0x340] sm:$0xff] }
  0xfc   :  { %9609 = vmatprep.mubr.bf16.mxu0 %v226_v12  ;;  %1600 = vperm.xlu0 %11059, %v782_v0   ;;  %v234_v12 = vpack.c.bf16 %v173_v53, %v11905_v19  ;;  %v836_v19 = vld [vmem:[%s19293_s1 + $0x208] sm:$0xff]  ;;  %v235_v54 = vpack.c.bf16 %v175_v33, %v174_v3  ;;  %v12298_v0 = vpop.permute.xlu1 %1885 }
  0xfd   :  { %1645 = vperm.xlu1 %11060, %v791_v32   ;;  %19935 = vst [vmem:[#allocation39_spill] sm:$0xff] %v12298_v0  ;;  %v772_v32 = vld [vmem:[%s19293_s1 + $0x8] sm:$0xff] }
 0x100   :  { %1630 = vperm.xlu0 %11059, %v788_v40   ;;  %v771_v40 = vld [vmem:[%s19293_s1] sm:$0xff] }
 0x101   :  { %1675 = vperm.xlu1 %11060, %v797_v26   ;;  %v12322_v26 = vpop.permute.xlu1 %1890 }
 0x102   :  { %19937 = vst [vmem:[#allocation41_spill] sm:$0xff] %v12322_v26 }
 0x103   :  { %9610 = vmatmul.mubr.bf16.gmra.mrb[76].mxu0 %v227_v45  ;;  %v236_v45 = vpack.c.bf16 %v11945_v1, %v11940_v2  ;;  %v822_v2 = vld [vmem:[%s19293_s1 + $0x198] sm:$0xff]  ;;  %v180_v1 = vld [vmem:[%s19292_s0 + $0x320] sm:$0xff] }
 0x104   :  { %9613 = vmatprep.mubr.bf16.mxu0 %v228_v46  ;;  %1660 = vperm.xlu0 %11059, %v794_v41   ;;  %v12302_v46 = vpop.permute.xlu0 %1875  ;;  %v773_v41 = vld [vmem:[%s19293_s1 + $0x10] sm:$0xff] }
 0x105   :  { %1705 = vperm.xlu1 %11060, %v803_v10   ;;  %19936 = vst [vmem:[#allocation40_spill] sm:$0xff] %v12302_v46  ;;  %v238_v10 = vpack.c.bf16 %v181_v25, %v180_v1 }
 0x108   :  { %1690 = vperm.xlu0 %11059, %v800_v18   ;;  %v825_v18 = vld [vmem:[%s19293_s1 + $0x1b0] sm:$0xff] }
 0x109   :  { %1735 = vperm.xlu1 %11060, %v809_v22   ;;  %v12336_v22 = vpop.permute.xlu1 %1900 }
 0x10a   :  { %19939 = vst [vmem:[#allocation43_spill] sm:$0xff] %v12336_v22 }
 0x10b   :  { %9614 = vmatmul.mubr.bf16.gmra.mrb[80].mxu0 %v229_v27  ;;  %v12327_v27 = vpop.permute.xlu0 %1880 }
 0x10c   :  { %9617 = vmatprep.mubr.bf16.mxu0 %v230_v7  ;;  %1720 = vperm.xlu0 %11059, %v806_v37   ;;  %19938 = vst [vmem:[#allocation42_spill] sm:$0xff] %v12327_v27  ;;  %v237_v7 = vpack.c.bf16 %v179_v24, %v11966_v63  ;;  %v827_v63 = vld [vmem:[%s19293_s1 + $0x1c0] sm:$0xff]  ;;  %v826_v37 = vld [vmem:[%s19293_s1 + $0x1b8] sm:$0xff] }
 0x10d   :  { %1765 = vperm.xlu1 %11060, %v815_v35   ;;  %v877_v35 = vld [vmem:[%s19293_s1 + $0x350] sm:$0xff] }
 0x10f   :  { %v12338_v23 = vpop.permute.xlu0 %1895 }
 0x110   :  { %1750 = vperm.xlu0 %11059, %v812_v36   ;;  %19940 = vst [vmem:[#allocation44_spill] sm:$0xff] %v12338_v23  ;;  %v12355_v36 = vpop.permute.xlu1 %1910 }
 0x111   :  { %1795 = vperm.xlu1 %11060, %v821_v56   ;;  %19941 = vst [vmem:[#allocation45_spill] sm:$0xff] %v12355_v36  ;;  %v876_v56 = vld [vmem:[%s19293_s1 + $0x348] sm:$0xff] }
 0x113   :  { %9618 = vmatmul.mubr.bf16.gmra.mrb[84].mxu0 %v231_v59  ;;  %v239_v59 = vpack.c.bf16 %v12004_v61, %v11999_v14  ;;  %v12360_v53 = vpop.permute.xlu0 %1905  ;;  %v186_v14 = vld [vmem:[%s19292_s0 + $0x350] sm:$0xff]  ;;  %v187_v61 = vld [vmem:[%s19292_s0 + $0x358] sm:$0xff] }
 0x114   :  { %9621 = vmatprep.mubr.bf16.mxu0 %v232_v60  ;;  %1780 = vperm.xlu0 %11059, %v818_v58   ;;  %v240_v60 = vpack.c.bf16 %v185_v50, %v12014_v20  ;;  %19942 = vst [vmem:[#allocation46_spill] sm:$0xff] %v12360_v53  ;;  %v878_v20 = vld [vmem:[%s19293_s1 + $0x358] sm:$0xff]  ;;  %v824_v58 = vld [vmem:[%s19293_s1 + $0x1a8] sm:$0xff] }
 0x115   :  { %1855 = vperm.xlu1 %11060, %v833_v38  }
 0x117   :  { %v12376_v38 = vpop.permute.xlu0 %1915 }
 0x118   :  { %1840 = vperm.xlu0 %11059, %v830_v13   ;;  %19944 = vst [vmem:[#allocation48_spill] sm:$0xff] %v12376_v38 }
 0x119   :  { %2065 = vperm.xlu1 %11060, %v875_v49  }
 0x11b   :  { %9622 = vmatmul.mubr.bf16.gmra.mrb[88].mxu0 %v233_v21  ;;  %v241_v21 = vpack.c.bf16 %v187_v61, %v186_v14 }
 0x11c   :  { %9625 = vmatprep.mubr.bf16.mxu0 %v234_v12  ;;  %1870 = vperm.xlu0 %11059, %v836_v19   ;;  %v12374_v12 = vpop.permute.xlu1 %1920 }
 0x11d   :  { %1550 = vperm.xlu1 %11060, %v772_v32   ;;  %19943 = vst [vmem:[#allocation47_spill] sm:$0xff] %v12374_v12 }
 0x120   :  { %1545 = vperm.xlu0 %11059, %v771_v40  }
 0x121   :  { %1800 = vperm.xlu1 %11060, %v822_v2  }
 0x123   :  { %9626 = vmatmul.mubr.bf16.gmra.mrb[92].mxu0 %v235_v54 }
 0x124   :  { %9629 = vmatprep.mubr.bf16.mxu0 %v236_v45  ;;  %1555 = vperm.xlu0 %11059, %v773_v41  }
 0x125   :  { %1815 = vperm.xlu1 %11060, %v825_v18  }
 0x128   :  { %1805 = vperm.xlu0 %11059, %v823_v29  }
 0x129   :  { %1825 = vperm.xlu1 %11060, %v827_v63  }
 0x12b   :  { %9630 = vmatmul.mubr.bf16.gmra.mrb[96].mxu0 %v237_v7 }
 0x12c   :  { %9633 = vmatprep.mubr.bf16.mxu0 %v238_v10  ;;  %1820 = vperm.xlu0 %11059, %v826_v37  }
 0x12d   :  { %2075 = vperm.xlu1 %11060, %v877_v35  }
 0x130   :  { %2070 = vperm.xlu0 %11059, %v876_v56  }
 0x131   :  { %2080 = vperm.xlu1 %11060, %v878_v20  }
 0x133   :  { %9634 = vmatmul.mubr.bf16.gmra.mrb[100].mxu0 %v239_v59 }
 0x134   :  { %9637 = vmatprep.mubr.bf16.mxu0 %v240_v60  ;;  %1810 = vperm.xlu0 %11059, %v824_v58  }
 0x13b   :  { %9638 = vmatmul.mubr.bf16.gmra.mrb[104].mxu0 %v241_v21 }
 0x13e   :  { %v12378_v13 = vpop.f32.mrb[0].mxu0 }
 0x13f   :  { %v12380_v3 = vpop.f32.mrb[1].mxu0  ;;  %v994_v32 = vmul.f32 %v12378_v13, %v12378_v13 }
 0x140   :  { %v12382_v33 = vpop.f32.mrb[2].mxu0  ;;  %v992_v19 = vmul.f32 %v12380_v3, %v12380_v3 }
 0x141   :  { %v12384_v49 = vpop.f32.mrb[3].mxu0  ;;  %v995_v2 = vmul.f32 %v12382_v33, %v12382_v33 }
 0x142   :  { %v879_v54 = vadd.f32 %v12384_v49, %v12380_v3  ;;  %v993_v45 = vmul.f32 %v12384_v49, %v12384_v49 }
 0x144   :  { %v880_v40 = vadd.f32 %v12378_v13, %v879_v54  ;;  %v1100_v24 = vadd.f32 %v993_v45, %v992_v19  ;;  %v12420_v19 = vpop.permute.xlu1 %1930 }
 0x145   :  { %19945 = vst [vmem:[#allocation49_spill] sm:$0xff] %v12420_v19 }
 0x146   :  { %v881_v1 = vadd.f32 %v12382_v33, %v880_v40  ;;  %v1101_v25 = vadd.f32 %v1100_v24, %v994_v32  ;;  %v12398_v41 = vpop.f32.mrb[4].mxu0 }
 0x147   :  { %v12400_v7 = vpop.f32.mrb[5].mxu0  ;;  %v998_v35 = vmul.f32 %v12398_v41, %v12398_v41 }
 0x148   :  { %v1102_v10 = vadd.f32 %v1101_v25, %v995_v2  ;;  %v882_v18 = vadd.f32 %v881_v1, %v12400_v7  ;;  %v996_v29 = vmul.f32 %v12400_v7, %v12400_v7  ;;  %v12405_v63 = vpop.f32.mrb[6].mxu0 }
 0x149   :  { %v12407_v50 = vpop.f32.mrb[7].mxu0  ;;  %v999_v61 = vmul.f32 %v12405_v63, %v12405_v63 }
 0x14a   :  { %v1103_v37 = vadd.f32 %v1102_v10, %v996_v29  ;;  %v883_v59 = vadd.f32 %v882_v18, %v12407_v50  ;;  %v997_v60 = vmul.f32 %v12407_v50, %v12407_v50 }
 0x14c   :  { %v884_v56 = vadd.f32 %v12398_v41, %v883_v59  ;;  %v1104_v14 = vadd.f32 %v1103_v37, %v997_v60  ;;  %v12437_v59 = vpop.permute.xlu1 %1940 }
 0x14d   :  { %19946 = vst [vmem:[#allocation50_spill] sm:$0xff] %v12437_v59 }
 0x14e   :  { %v885_v20 = vadd.f32 %v12405_v63, %v884_v56  ;;  %v1105_v58 = vadd.f32 %v1104_v14, %v998_v35  ;;  %v12418_v21 = vpop.f32.mrb[8].mxu0 }
 0x14f   :  { %v12422_v54 = vpop.f32.mrb[9].mxu0  ;;  %v1002_v18 = vmul.f32 %v12418_v21, %v12418_v21 }
 0x150   :  { %v1106_v45 = vadd.f32 %v1105_v58, %v999_v61  ;;  %v886_v32 = vadd.f32 %v885_v20, %v12422_v54  ;;  %v1000_v40 = vmul.f32 %v12422_v54, %v12422_v54  ;;  %v12427_v24 = vpop.f32.mrb[10].mxu0 }
 0x151   :  { %v12429_v2 = vpop.f32.mrb[11].mxu0  ;;  %v1003_v60 = vmul.f32 %v12427_v24, %v12427_v24 }
 0x152   :  { %v1107_v1 = vadd.f32 %v1106_v45, %v1000_v40  ;;  %v887_v25 = vadd.f32 %v886_v32, %v12429_v2  ;;  %v1001_v10 = vmul.f32 %v12429_v2, %v12429_v2 }
 0x154   :  { %v888_v29 = vadd.f32 %v12418_v21, %v887_v25  ;;  %v1108_v37 = vadd.f32 %v1107_v1, %v1001_v10 }
 0x156   :  { %v889_v35 = vadd.f32 %v12427_v24, %v888_v29  ;;  %v1109_v56 = vadd.f32 %v1108_v37, %v1002_v18  ;;  %v12442_v14 = vpop.f32.mrb[12].mxu0  ;;  %v12456_v18 = vpop.permute.xlu1 %1950 }
 0x157   :  { %v12444_v61 = vpop.f32.mrb[13].mxu0  ;;  %19947 = vst [vmem:[#allocation51_spill] sm:$0xff] %v12456_v18  ;;  %v1006_v29 = vmul.f32 %v12442_v14, %v12442_v14 }
 0x158   :  { %v1110_v20 = vadd.f32 %v1109_v56, %v1003_v60  ;;  %v890_v58 = vadd.f32 %v889_v35, %v12444_v61  ;;  %v1004_v45 = vmul.f32 %v12444_v61, %v12444_v61  ;;  %v12449_v32 = vpop.f32.mrb[14].mxu0 }
 0x159   :  { %v12451_v40 = vpop.f32.mrb[15].mxu0  ;;  %v1007_v35 = vmul.f32 %v12449_v32, %v12449_v32 }
 0x15a   :  { %v1111_v1 = vadd.f32 %v1110_v20, %v1004_v45  ;;  %v891_v25 = vadd.f32 %v890_v58, %v12451_v40  ;;  %v1005_v10 = vmul.f32 %v12451_v40, %v12451_v40 }
 0x15c   :  { %v892_v37 = vadd.f32 %v12442_v14, %v891_v25  ;;  %v1112_v60 = vadd.f32 %v1111_v1, %v1005_v10  ;;  %v12473_v25 = vpop.permute.xlu1 %1960 }
 0x15d   :  { %19948 = vst [vmem:[#allocation52_spill] sm:$0xff] %v12473_v25 }
 0x15e   :  { %v893_v56 = vadd.f32 %v12449_v32, %v892_v37  ;;  %v1113_v17 = vadd.f32 %v1112_v60, %v1006_v29  ;;  %v12464_v20 = vpop.f32.mrb[16].mxu0 }
 0x15f   :  { %v12466_v58 = vpop.f32.mrb[17].mxu0 }
 0x160   :  { %v1114_v45 = vadd.f32 %v1113_v17, %v1007_v35  ;;  %v894_v52 = vadd.f32 %v893_v56, %v12466_v58  ;;  %v1008_v39 = vmul.f32 %v12466_v58, %v12466_v58  ;;  %v12471_v11 = vpop.f32.mrb[18].mxu0  ;;  %v1010_v17 = vmul.f32 %v12464_v20, %v12464_v20 }
 0x161   :  { %v12475_v1 = vpop.f32.mrb[19].mxu0  ;;  %v1011_v56 = vmul.f32 %v12471_v11, %v12471_v11 }
 0x162   :  { %v1115_v10 = vadd.f32 %v1114_v45, %v1008_v39  ;;  %v895_v37 = vadd.f32 %v894_v52, %v12475_v1  ;;  %v1009_v29 = vmul.f32 %v12475_v1, %v12475_v1  ;;  %v12488_v39 = vpop.permute.xlu1 %1970 }
 0x163   :  { %19949 = vst [vmem:[#allocation53_spill] sm:$0xff] %v12488_v39 }
 0x164   :  { %v896_v60 = vadd.f32 %v12464_v20, %v895_v37  ;;  %v1116_v35 = vadd.f32 %v1115_v10, %v1009_v29 }
 0x166   :  { %v897_v42 = vadd.f32 %v12471_v11, %v896_v60  ;;  %v1117_v8 = vadd.f32 %v1116_v35, %v1010_v17  ;;  %v12486_v43 = vpop.f32.mrb[20].mxu0 }
 0x167   :  { %v12490_v52 = vpop.f32.mrb[21].mxu0  ;;  %v1014_v35 = vmul.f32 %v12486_v43, %v12486_v43 }
 0x168   :  { %v1118_v45 = vadd.f32 %v1117_v8, %v1011_v56  ;;  %v898_v9 = vadd.f32 %v897_v42, %v12490_v52  ;;  %v1012_v48 = vmul.f32 %v12490_v52, %v12490_v52  ;;  %v12495_v37 = vpop.f32.mrb[22].mxu0  ;;  %v12505_v42 = vpop.permute.xlu1 %1980 }
 0x169   :  { %v12497_v10 = vpop.f32.mrb[23].mxu0  ;;  %19950 = vst [vmem:[#allocation54_spill] sm:$0xff] %v12505_v42  ;;  %v1015_v62 = vmul.f32 %v12495_v37, %v12495_v37 }
 0x16a   :  { %v1119_v29 = vadd.f32 %v1118_v45, %v1012_v48  ;;  %v899_v60 = vadd.f32 %v898_v9, %v12497_v10  ;;  %v1013_v17 = vmul.f32 %v12497_v10, %v12497_v10 }
 0x16c   :  { %v900_v8 = vadd.f32 %v12486_v43, %v899_v60  ;;  %v1120_v56 = vadd.f32 %v1119_v29, %v1013_v17 }
 0x16e   :  { %v901_v51 = vadd.f32 %v12495_v37, %v900_v8  ;;  %v1121_v5 = vadd.f32 %v1120_v56, %v1014_v35  ;;  %v12510_v48 = vpop.f32.mrb[24].mxu0  ;;  %v12524_v8 = vpop.permute.xlu1 %1990 }
 0x16f   :  { %v12512_v9 = vpop.f32.mrb[25].mxu0  ;;  %19951 = vst [vmem:[#allocation55_spill] sm:$0xff] %v12524_v8 }
 0x170   :  { %v1122_v45 = vadd.f32 %v1121_v5, %v1015_v62  ;;  %v902_v30 = vadd.f32 %v901_v51, %v12512_v9  ;;  %v1016_v31 = vmul.f32 %v12512_v9, %v12512_v9  ;;  %v12517_v60 = vpop.f32.mrb[26].mxu0  ;;  %v1018_v5 = vmul.f32 %v12510_v48, %v12510_v48 }
 0x171   :  { %v12519_v29 = vpop.f32.mrb[27].mxu0  ;;  %v1019_v56 = vmul.f32 %v12517_v60, %v12517_v60 }
 0x172   :  { %v1123_v17 = vadd.f32 %v1122_v45, %v1016_v31  ;;  %v903_v4 = vadd.f32 %v902_v30, %v12519_v29  ;;  %v1017_v35 = vmul.f32 %v12519_v29, %v12519_v29 }
 0x174   :  { %v904_v51 = vadd.f32 %v12510_v48, %v903_v4  ;;  %v1124_v62 = vadd.f32 %v1123_v17, %v1017_v35  ;;  %v12541_v4 = vpop.permute.xlu1 %2000 }
 0x175   :  { %19952 = vst [vmem:[#allocation56_spill] sm:$0xff] %v12541_v4 }
 0x176   :  { %v905_v6 = vadd.f32 %v12517_v60, %v904_v51  ;;  %v1125_v55 = vadd.f32 %v1124_v62, %v1018_v5  ;;  %v12532_v31 = vpop.f32.mrb[28].mxu0 }
 0x177   :  { %v12534_v30 = vpop.f32.mrb[29].mxu0 }
 0x178   :  { %v1126_v45 = vadd.f32 %v1125_v55, %v1019_v56  ;;  %v906_v57 = vadd.f32 %v905_v6, %v12534_v30  ;;  %v1020_v44 = vmul.f32 %v12534_v30, %v12534_v30  ;;  %v12539_v47 = vpop.f32.mrb[30].mxu0  ;;  %v1022_v55 = vmul.f32 %v12532_v31, %v12532_v31 }
 0x179   :  { %v12543_v17 = vpop.f32.mrb[31].mxu0  ;;  %v1023_v56 = vmul.f32 %v12539_v47, %v12539_v47 }
 0x17a   :  { %v1127_v35 = vadd.f32 %v1126_v45, %v1020_v44  ;;  %v907_v51 = vadd.f32 %v906_v57, %v12543_v17  ;;  %v1021_v5 = vmul.f32 %v12543_v17, %v12543_v17  ;;  %v12556_v44 = vpop.permute.xlu1 %2010 }
 0x17b   :  { %19953 = vst [vmem:[#allocation57_spill] sm:$0xff] %v12556_v44 }
 0x17c   :  { %v908_v6 = vadd.f32 %v12532_v31, %v907_v51  ;;  %v1128_v62 = vadd.f32 %v1127_v35, %v1021_v5 }
 0x17e   :  { %v909_v28 = vadd.f32 %v12539_v47, %v908_v6  ;;  %v1129_v34 = vadd.f32 %v1128_v62, %v1022_v55  ;;  %v12554_v15 = vpop.f32.mrb[32].mxu0 }
 0x17f   :  { %v12558_v57 = vpop.f32.mrb[33].mxu0  ;;  %v1026_v62 = vmul.f32 %v12554_v15, %v12554_v15 }
 0x180   :  { %v1130_v45 = vadd.f32 %v1129_v34, %v1023_v56  ;;  %v910_v16 = vadd.f32 %v909_v28, %v12558_v57  ;;  %v1024_v4 = vmul.f32 %v12558_v57, %v12558_v57  ;;  %v12563_v51 = vpop.f32.mrb[34].mxu0  ;;  %v12573_v28 = vpop.permute.xlu1 %2020 }
 0x181   :  { %v12565_v35 = vpop.f32.mrb[35].mxu0  ;;  %19954 = vst [vmem:[#allocation58_spill] sm:$0xff] %v12573_v28  ;;  %v1027_v44 = vmul.f32 %v12563_v51, %v12563_v51 }
 0x182   :  { %v1131_v5 = vadd.f32 %v1130_v45, %v1024_v4  ;;  %v911_v6 = vadd.f32 %v910_v16, %v12565_v35  ;;  %v1025_v55 = vmul.f32 %v12565_v35, %v12565_v35  ;;  %v12580_v16 = vpop.permute.xlu0 %1925 }
 0x183   :  { %19955 = vst [vmem:[#allocation59_spill] sm:$0xff] %v12580_v16 }
 0x184   :  { %v912_v34 = vadd.f32 %v12554_v15, %v911_v6  ;;  %v1132_v56 = vadd.f32 %v1131_v5, %v1025_v55  ;;  %v12591_v28 = vpop.permute.xlu1 %2030 }
 0x185   :  { %19956 = vst [vmem:[#allocation60_spill] sm:$0xff] %v12591_v28 }
 0x186   :  { %v913_v8 = vadd.f32 %v12563_v51, %v912_v34  ;;  %v1133_v42 = vadd.f32 %v1132_v56, %v1026_v62  ;;  %v12578_v4 = vpop.f32.mrb[36].mxu0  ;;  %v12599_v18 = vpop.permute.xlu0 %1935 }
 0x187   :  { %v12582_v45 = vpop.f32.mrb[37].mxu0  ;;  %19957 = vst [vmem:[#allocation61_spill] sm:$0xff] %v12599_v18 }
 0x188   :  { %v1134_v39 = vadd.f32 %v1133_v42, %v1027_v44  ;;  %v914_v25 = vadd.f32 %v913_v8, %v12582_v45  ;;  %v1028_v5 = vmul.f32 %v12582_v45, %v12582_v45  ;;  %v12587_v6 = vpop.f32.mrb[38].mxu0  ;;  %v1030_v42 = vmul.f32 %v12578_v4, %v12578_v4  ;;  %v12608_v16 = vpop.permute.xlu1 %2040 }
 0x189   :  { %v12589_v55 = vpop.f32.mrb[39].mxu0  ;;  %v1031_v59 = vmul.f32 %v12587_v6, %v12587_v6  ;;  %19959 = vst [vmem:[#allocation63_spill] sm:$0xff] %v12608_v16 }
 0x18a   :  { %v1135_v34 = vadd.f32 %v1134_v39, %v1028_v5  ;;  %v915_v62 = vadd.f32 %v914_v25, %v12589_v55  ;;  %v1029_v56 = vmul.f32 %v12589_v55, %v12589_v55 }
 0x18c   :  { %v916_v8 = vadd.f32 %v12578_v4, %v915_v62  ;;  %v1136_v44 = vadd.f32 %v1135_v34, %v1029_v56  ;;  %v12625_v16 = vpop.permute.xlu1 %2050 }
 0x18d   :  { %19962 = vst [vmem:[#allocation66_spill] sm:$0xff] %v12625_v16 }
 0x18e   :  { %v917_v19 = vadd.f32 %v12587_v6, %v916_v8  ;;  %v1137_v28 = vadd.f32 %v1136_v44, %v1030_v42  ;;  %v12604_v39 = vpop.f32.mrb[40].mxu0  ;;  %v12620_v44 = vpop.permute.xlu0 %1945 }
 0x18f   :  { %19958 = vst [vmem:[#allocation62_spill] sm:$0xff] %v12604_v39  ;;  %v12606_v25 = vpop.f32.mrb[41].mxu0  ;;  %19961 = vst [vmem:[#allocation65_spill] sm:$0xff] %v12620_v44 }
 0x190   :  { %v1138_v5 = vadd.f32 %v1137_v28, %v1031_v59  ;;  %v918_v12 = vadd.f32 %v917_v19, %v12606_v25  ;;  %v1032_v34 = vmul.f32 %v12606_v25, %v12606_v25  ;;  %v12613_v62 = vpop.f32.mrb[42].mxu0  ;;  %v1034_v59 = vmul.f32 %v12604_v39, %v12604_v39 }
 0x191   :  { %19960 = vst [vmem:[#allocation64_spill] sm:$0xff] %v12613_v62  ;;  %v12615_v56 = vpop.f32.mrb[43].mxu0  ;;  %v1035_v38 = vmul.f32 %v12613_v62, %v12613_v62 }
 0x192   :  { %v1139_v18 = vadd.f32 %v1138_v5, %v1032_v34  ;;  %v919_v8 = vadd.f32 %v918_v12, %v12615_v56  ;;  %v1033_v42 = vmul.f32 %v12615_v56, %v12615_v56 }
 0x194   :  { %v920_v19 = vadd.f32 %v12604_v39, %v919_v8  ;;  %v1140_v28 = vadd.f32 %v1139_v18, %v1033_v42  ;;  %v12639_v18 = vpop.permute.xlu0 %1955 }
 0x195   :  { %19966 = vst [vmem:[#allocation70_spill] sm:$0xff] %v12639_v18 }
 0x196   :  { %v921_v5 = vadd.f32 %v12613_v62, %v920_v19  ;;  %v1141_v34 = vadd.f32 %v1140_v28, %v1034_v59  ;;  %v12630_v12 = vpop.f32.mrb[44].mxu0  ;;  %v12646_v28 = vpop.permute.xlu1 %1565 }
 0x197   :  { %19963 = vst [vmem:[#allocation67_spill] sm:$0xff] %v12630_v12  ;;  %v12632_v36 = vpop.f32.mrb[45].mxu0  ;;  %19968 = vst [vmem:[#allocation72_spill] sm:$0xff] %v12646_v28 }
 0x198   :  { %19964 = vst [vmem:[#allocation68_spill] sm:$0xff] %v12632_v36  ;;  %v1142_v53 = vadd.f32 %v1141_v34, %v1035_v38  ;;  %v922_v44 = vadd.f32 %v921_v5, %v12632_v36  ;;  %v1036_v22 = vmul.f32 %v12632_v36, %v12632_v36  ;;  %v12637_v8 = vpop.f32.mrb[46].mxu0  ;;  %v1038_v38 = vmul.f32 %v12630_v12, %v12630_v12 }
 0x199   :  { %19965 = vst [vmem:[#allocation69_spill] sm:$0xff] %v12637_v8  ;;  %v12641_v42 = vpop.f32.mrb[47].mxu0  ;;  %v1039_v23 = vmul.f32 %v12637_v8, %v12637_v8 }
 0x19a   :  { %19967 = vst [vmem:[#allocation71_spill] sm:$0xff] %v12641_v42  ;;  %v1143_v16 = vadd.f32 %v1142_v53, %v1036_v22  ;;  %v923_v19 = vadd.f32 %v922_v44, %v12641_v42  ;;  %v1037_v59 = vmul.f32 %v12641_v42, %v12641_v42  ;;  %v12656_v53 = vpop.permute.xlu0 %1965 }
 0x19b   :  { %19970 = vst [vmem:[#allocation74_spill] sm:$0xff] %v12656_v53 }
 0x19c   :  { %v924_v5 = vadd.f32 %v12630_v12, %v923_v19  ;;  %v1144_v34 = vadd.f32 %v1143_v16, %v1037_v59  ;;  %v12667_v59 = vpop.permute.xlu1 %1580 }
 0x19d   :  { %19974 = vst [vmem:[#allocation78_spill] sm:$0xff] %v12667_v59 }
 0x19e   :  { %v1145_v18 = vadd.f32 %v1144_v34, %v1038_v38  ;;  %v12653_v26 = vpop.f32.mrb[48].mxu0  ;;  %v925_v22 = vadd.f32 %v12637_v8, %v924_v5 }
 0x19f   :  { %19969 = vst [vmem:[#allocation73_spill] sm:$0xff] %v12653_v26  ;;  %v12658_v44 = vpop.f32.mrb[49].mxu0  ;;  %v1042_v53 = vmul.f32 %v12653_v26, %v12653_v26 }
 0x1a0   :  { %19971 = vst [vmem:[#allocation75_spill] sm:$0xff] %v12658_v44  ;;  %v926_v0 = vadd.f32 %v925_v22, %v12658_v44  ;;  %v1040_v27 = vmul.f32 %v12658_v44, %v12658_v44  ;;  %v1146_v46 = vadd.f32 %v1145_v18, %v1039_v23  ;;  %v12663_v19 = vpop.f32.mrb[50].mxu0  ;;  %v12675_v44 = vpop.permute.xlu0 %1975 }
 0x1a1   :  { %19972 = vst [vmem:[#allocation76_spill] sm:$0xff] %v12663_v19  ;;  %v12665_v16 = vpop.f32.mrb[51].mxu0  ;;  %19975 = vst [vmem:[#allocation79_spill] sm:$0xff] %v12675_v44  ;;  %v1043_v23 = vmul.f32 %v12663_v19, %v12663_v19 }
 0x1a2   :  { %19973 = vst [vmem:[#allocation77_spill] sm:$0xff] %v12665_v16  ;;  %v1147_v38 = vadd.f32 %v1146_v46, %v1040_v27  ;;  %v927_v34 = vadd.f32 %v926_v0, %v12665_v16  ;;  %v1041_v5 = vmul.f32 %v12665_v16, %v12665_v16  ;;  %v12684_v27 = vpop.permute.xlu1 %1595 }
 0x1a3   :  { %19978 = vst [vmem:[#allocation82_spill] sm:$0xff] %v12684_v27 }
 0x1a4   :  { %v928_v22 = vadd.f32 %v12653_v26, %v927_v34  ;;  %v1148_v28 = vadd.f32 %v1147_v38, %v1041_v5 }
 0x1a6   :  { %v1149_v18 = vadd.f32 %v1148_v28, %v1042_v53  ;;  %v12679_v8 = vpop.f32.mrb[52].mxu0  ;;  %v929_v46 = vadd.f32 %v12663_v19, %v928_v22  ;;  %v12696_v22 = vpop.permute.xlu0 %1985 }
 0x1a7   :  { %19976 = vst [vmem:[#allocation80_spill] sm:$0xff] %v12679_v8  ;;  %v12682_v0 = vpop.f32.mrb[53].mxu0  ;;  %19981 = vst [vmem:[#allocation85_spill] sm:$0xff] %v12696_v22  ;;  %v1046_v27 = vmul.f32 %v12679_v8, %v12679_v8 }
 0x1a8   :  { %19977 = vst [vmem:[#allocation81_spill] sm:$0xff] %v12682_v0  ;;  %v930_v59 = vadd.f32 %v929_v46, %v12682_v0  ;;  %v1044_v34 = vmul.f32 %v12682_v0, %v12682_v0  ;;  %v1150_v38 = vadd.f32 %v1149_v18, %v1043_v23  ;;  %v12689_v5 = vpop.f32.mrb[54].mxu0  ;;  %v12701_v0 = vpop.permute.xlu1 %1610 }
 0x1a9   :  { %19979 = vst [vmem:[#allocation83_spill] sm:$0xff] %v12689_v5  ;;  %v12691_v44 = vpop.f32.mrb[55].mxu0  ;;  %19982 = vst [vmem:[#allocation86_spill] sm:$0xff] %v12701_v0  ;;  %v1047_v23 = vmul.f32 %v12689_v5, %v12689_v5 }
 0x1aa   :  { %19980 = vst [vmem:[#allocation84_spill] sm:$0xff] %v12691_v44  ;;  %v1151_v26 = vadd.f32 %v1150_v38, %v1044_v34  ;;  %v931_v28 = vadd.f32 %v930_v59, %v12691_v44  ;;  %v1045_v53 = vmul.f32 %v12691_v44, %v12691_v44 }
 0x1ac   :  { %v932_v46 = vadd.f32 %v12679_v8, %v931_v28  ;;  %v1152_v19 = vadd.f32 %v1151_v26, %v1045_v53  ;;  %v12715_v26 = vpop.permute.xlu0 %1995 }
 0x1ad   :  { %19986 = vst [vmem:[#allocation90_spill] sm:$0xff] %v12715_v26 }
 0x1ae   :  { %v1153_v18 = vadd.f32 %v1152_v19, %v1046_v27  ;;  %v12705_v34 = vpop.f32.mrb[56].mxu0  ;;  %v933_v59 = vadd.f32 %v12689_v5, %v932_v46  ;;  %v12722_v46 = vpop.permute.xlu1 %1625 }
 0x1af   :  { %19983 = vst [vmem:[#allocation87_spill] sm:$0xff] %v12705_v34  ;;  %v12708_v38 = vpop.f32.mrb[57].mxu0  ;;  %19988 = vst [vmem:[#allocation92_spill] sm:$0xff] %v12722_v46 }
 0x1b0   :  { %19984 = vst [vmem:[#allocation88_spill] sm:$0xff] %v12708_v38  ;;  %v934_v22 = vadd.f32 %v933_v59, %v12708_v38  ;;  %v1048_v44 = vmul.f32 %v12708_v38, %v12708_v38  ;;  %v1154_v16 = vadd.f32 %v1153_v18, %v1047_v23  ;;  %v12713_v28 = vpop.f32.mrb[58].mxu0  ;;  %v1050_v59 = vmul.f32 %v12705_v34, %v12705_v34 }
 0x1b1   :  { %19985 = vst [vmem:[#allocation89_spill] sm:$0xff] %v12713_v28  ;;  %v12717_v53 = vpop.f32.mrb[59].mxu0  ;;  %v1051_v18 = vmul.f32 %v12713_v28, %v12713_v28 }
 0x1b2   :  { %19987 = vst [vmem:[#allocation91_spill] sm:$0xff] %v12717_v53  ;;  %v1155_v0 = vadd.f32 %v1154_v16, %v1048_v44  ;;  %v935_v19 = vadd.f32 %v934_v22, %v12717_v53  ;;  %v1049_v27 = vmul.f32 %v12717_v53, %v12717_v53  ;;  %v12732_v16 = vpop.permute.xlu0 %2005 }
 0x1b3   :  { %19990 = vst [vmem:[#allocation94_spill] sm:$0xff] %v12732_v16 }
 0x1b4   :  { %v936_v38 = vadd.f32 %v12705_v34, %v935_v19  ;;  %v1156_v23 = vadd.f32 %v1155_v0, %v1049_v27  ;;  %v12743_v27 = vpop.permute.xlu1 %1640 }
 0x1b5   :  { %19994 = vst [vmem:[#allocation98_spill] sm:$0xff] %v12743_v27 }
 0x1b6   :  { %v1157_v26 = vadd.f32 %v1156_v23, %v1050_v59  ;;  %v12729_v5 = vpop.f32.mrb[60].mxu0  ;;  %v937_v44 = vadd.f32 %v12713_v28, %v936_v38 }
 0x1b7   :  { %19989 = vst [vmem:[#allocation93_spill] sm:$0xff] %v12729_v5  ;;  %v12734_v22 = vpop.f32.mrb[61].mxu0  ;;  %v1054_v16 = vmul.f32 %v12729_v5, %v12729_v5 }
 0x1b8   :  { %19991 = vst [vmem:[#allocation95_spill] sm:$0xff] %v12734_v22  ;;  %v938_v46 = vadd.f32 %v937_v44, %v12734_v22  ;;  %v1052_v53 = vmul.f32 %v12734_v22, %v12734_v22  ;;  %v1158_v8 = vadd.f32 %v1157_v26, %v1051_v18  ;;  %v12739_v19 = vpop.f32.mrb[62].mxu0  ;;  %v12751_v22 = vpop.permute.xlu0 %2015 }
 0x1b9   :  { %19992 = vst [vmem:[#allocation96_spill] sm:$0xff] %v12739_v19  ;;  %v12741_v0 = vpop.f32.mrb[63].mxu0  ;;  %19995 = vst [vmem:[#allocation99_spill] sm:$0xff] %v12751_v22  ;;  %v1055_v26 = vmul.f32 %v12739_v19, %v12739_v19 }
 0x1ba   :  { %19993 = vst [vmem:[#allocation97_spill] sm:$0xff] %v12741_v0  ;;  %v1159_v59 = vadd.f32 %v1158_v8, %v1052_v53  ;;  %v939_v23 = vadd.f32 %v938_v46, %v12741_v0  ;;  %v1053_v38 = vmul.f32 %v12741_v0, %v12741_v0  ;;  %v12760_v46 = vpop.permute.xlu1 %1655 }
 0x1bb   :  { %19998 = vst [vmem:[#allocation102_spill] sm:$0xff] %v12760_v46 }
 0x1bc   :  { %v940_v44 = vadd.f32 %v12729_v5, %v939_v23  ;;  %v1160_v28 = vadd.f32 %v1159_v59, %v1053_v38 }
 0x1be   :  { %v1161_v18 = vadd.f32 %v1160_v28, %v1054_v16  ;;  %v12755_v34 = vpop.f32.mrb[64].mxu0  ;;  %v941_v8 = vadd.f32 %v12739_v19, %v940_v44  ;;  %v12772_v44 = vpop.permute.xlu0 %2025 }
 0x1bf   :  { %19996 = vst [vmem:[#allocation100_spill] sm:$0xff] %v12755_v34  ;;  %v12758_v53 = vpop.f32.mrb[65].mxu0  ;;  %20001 = vst [vmem:[#allocation105_spill] sm:$0xff] %v12772_v44  ;;  %v1058_v46 = vmul.f32 %v12755_v34, %v12755_v34 }
 0x1c0   :  { %19997 = vst [vmem:[#allocation101_spill] sm:$0xff] %v12758_v53  ;;  %v942_v27 = vadd.f32 %v941_v8, %v12758_v53  ;;  %v1056_v23 = vmul.f32 %v12758_v53, %v12758_v53  ;;  %v1162_v59 = vadd.f32 %v1161_v18, %v1055_v26  ;;  %v12765_v38 = vpop.f32.mrb[66].mxu0  ;;  %v12777_v53 = vpop.permute.xlu1 %1670 }
 0x1c1   :  { %19999 = vst [vmem:[#allocation103_spill] sm:$0xff] %v12765_v38  ;;  %v12767_v22 = vpop.f32.mrb[67].mxu0  ;;  %20002 = vst [vmem:[#allocation106_spill] sm:$0xff] %v12777_v53  ;;  %v1059_v26 = vmul.f32 %v12765_v38, %v12765_v38 }
 0x1c2   :  { %20000 = vst [vmem:[#allocation104_spill] sm:$0xff] %v12767_v22  ;;  %v1163_v5 = vadd.f32 %v1162_v59, %v1056_v23  ;;  %v943_v28 = vadd.f32 %v942_v27, %v12767_v22  ;;  %v1057_v16 = vmul.f32 %v12767_v22, %v12767_v22 }
 0x1c4   :  { %v944_v8 = vadd.f32 %v12755_v34, %v943_v28  ;;  %v1164_v19 = vadd.f32 %v1163_v5, %v1057_v16  ;;  %v12791_v5 = vpop.permute.xlu0 %2035 }
 0x1c5   :  { %20006 = vst [vmem:[#allocation110_spill] sm:$0xff] %v12791_v5 }
 0x1c6   :  { %v1165_v18 = vadd.f32 %v1164_v19, %v1058_v46  ;;  %v12781_v23 = vpop.f32.mrb[68].mxu0  ;;  %v945_v27 = vadd.f32 %v12765_v38, %v944_v8  ;;  %v12798_v8 = vpop.permute.xlu1 %1685 }
 0x1c7   :  { %20003 = vst [vmem:[#allocation107_spill] sm:$0xff] %v12781_v23  ;;  %v12784_v59 = vpop.f32.mrb[69].mxu0  ;;  %20008 = vst [vmem:[#allocation112_spill] sm:$0xff] %v12798_v8 }
 0x1c8   :  { %20004 = vst [vmem:[#allocation108_spill] sm:$0xff] %v12784_v59  ;;  %v946_v44 = vadd.f32 %v945_v27, %v12784_v59  ;;  %v1060_v22 = vmul.f32 %v12784_v59, %v12784_v59  ;;  %v1166_v0 = vadd.f32 %v1165_v18, %v1059_v26  ;;  %v12789_v28 = vpop.f32.mrb[70].mxu0  ;;  %v1062_v27 = vmul.f32 %v12781_v23, %v12781_v23 }
 0x1c9   :  { %20005 = vst [vmem:[#allocation109_spill] sm:$0xff] %v12789_v28  ;;  %v12793_v16 = vpop.f32.mrb[71].mxu0  ;;  %v1063_v18 = vmul.f32 %v12789_v28, %v12789_v28 }
 0x1ca   :  { %20007 = vst [vmem:[#allocation111_spill] sm:$0xff] %v12793_v16  ;;  %v1167_v53 = vadd.f32 %v1166_v0, %v1060_v22  ;;  %v947_v19 = vadd.f32 %v946_v44, %v12793_v16  ;;  %v1061_v46 = vmul.f32 %v12793_v16, %v12793_v16  ;;  %v12808_v0 = vpop.permute.xlu0 %2045 }
 0x1cb   :  { %20010 = vst [vmem:[#allocation114_spill] sm:$0xff] %v12808_v0 }
 0x1cc   :  { %v948_v59 = vadd.f32 %v12781_v23, %v947_v19  ;;  %v1168_v26 = vadd.f32 %v1167_v53, %v1061_v46  ;;  %v12819_v46 = vpop.permute.xlu1 %1700 }
 0x1cd   :  { %20014 = vst [vmem:[#allocation118_spill] sm:$0xff] %v12819_v46 }
 0x1ce   :  { %v1169_v5 = vadd.f32 %v1168_v26, %v1062_v27  ;;  %v12805_v38 = vpop.f32.mrb[72].mxu0  ;;  %v949_v22 = vadd.f32 %v12789_v28, %v948_v59 }
 0x1cf   :  { %20009 = vst [vmem:[#allocation113_spill] sm:$0xff] %v12805_v38  ;;  %v12810_v44 = vpop.f32.mrb[73].mxu0  ;;  %v1066_v0 = vmul.f32 %v12805_v38, %v12805_v38 }
 0x1d0   :  { %20011 = vst [vmem:[#allocation115_spill] sm:$0xff] %v12810_v44  ;;  %v950_v8 = vadd.f32 %v949_v22, %v12810_v44  ;;  %v1064_v16 = vmul.f32 %v12810_v44, %v12810_v44  ;;  %v1170_v34 = vadd.f32 %v1169_v5, %v1063_v18  ;;  %v12815_v19 = vpop.f32.mrb[74].mxu0  ;;  %v12827_v44 = vpop.permute.xlu0 %1560 }
 0x1d1   :  { %20012 = vst [vmem:[#allocation116_spill] sm:$0xff] %v12815_v19  ;;  %v12817_v53 = vpop.f32.mrb[75].mxu0  ;;  %20015 = vst [vmem:[#allocation119_spill] sm:$0xff] %v12827_v44  ;;  %v1067_v5 = vmul.f32 %v12815_v19, %v12815_v19 }
 0x1d2   :  { %20013 = vst [vmem:[#allocation117_spill] sm:$0xff] %v12817_v53  ;;  %v1171_v27 = vadd.f32 %v1170_v34, %v1064_v16  ;;  %v951_v26 = vadd.f32 %v950_v8, %v12817_v53  ;;  %v1065_v59 = vmul.f32 %v12817_v53, %v12817_v53  ;;  %v12836_v8 = vpop.permute.xlu1 %1715 }
 0x1d3   :  { %20018 = vst [vmem:[#allocation122_spill] sm:$0xff] %v12836_v8 }
 0x1d4   :  { %v952_v22 = vadd.f32 %v12805_v38, %v951_v26  ;;  %v1172_v28 = vadd.f32 %v1171_v27, %v1065_v59 }
 0x1d6   :  { %v1173_v18 = vadd.f32 %v1172_v28, %v1066_v0  ;;  %v12831_v23 = vpop.f32.mrb[76].mxu0  ;;  %v953_v34 = vadd.f32 %v12815_v19, %v952_v22  ;;  %v12848_v22 = vpop.permute.xlu0 %1575 }
 0x1d7   :  { %20016 = vst [vmem:[#allocation120_spill] sm:$0xff] %v12831_v23  ;;  %v12834_v16 = vpop.f32.mrb[77].mxu0  ;;  %20021 = vst [vmem:[#allocation125_spill] sm:$0xff] %v12848_v22  ;;  %v1070_v8 = vmul.f32 %v12831_v23, %v12831_v23 }
 0x1d8   :  { %20017 = vst [vmem:[#allocation121_spill] sm:$0xff] %v12834_v16  ;;  %v954_v46 = vadd.f32 %v953_v34, %v12834_v16  ;;  %v1068_v26 = vmul.f32 %v12834_v16, %v12834_v16  ;;  %v1174_v27 = vadd.f32 %v1173_v18, %v1067_v5  ;;  %v12841_v59 = vpop.f32.mrb[78].mxu0  ;;  %v12853_v16 = vpop.permute.xlu1 %1730 }
 0x1d9   :  { %20019 = vst [vmem:[#allocation123_spill] sm:$0xff] %v12841_v59  ;;  %v12843_v44 = vpop.f32.mrb[79].mxu0  ;;  %20022 = vst [vmem:[#allocation126_spill] sm:$0xff] %v12853_v16  ;;  %v1071_v5 = vmul.f32 %v12841_v59, %v12841_v59 }
 0x1da   :  { %20020 = vst [vmem:[#allocation124_spill] sm:$0xff] %v12843_v44  ;;  %v1175_v38 = vadd.f32 %v1174_v27, %v1068_v26  ;;  %v955_v28 = vadd.f32 %v954_v46, %v12843_v44  ;;  %v1069_v0 = vmul.f32 %v12843_v44, %v12843_v44 }
 0x1dc   :  { %v956_v34 = vadd.f32 %v12831_v23, %v955_v28  ;;  %v1176_v19 = vadd.f32 %v1175_v38, %v1069_v0  ;;  %v12867_v38 = vpop.permute.xlu0 %1590 }
 0x1dd   :  { %20026 = vst [vmem:[#allocation130_spill] sm:$0xff] %v12867_v38 }
 0x1de   :  { %v1177_v18 = vadd.f32 %v1176_v19, %v1070_v8  ;;  %v12857_v26 = vpop.f32.mrb[80].mxu0  ;;  %v957_v46 = vadd.f32 %v12841_v59, %v956_v34  ;;  %v12874_v34 = vpop.permute.xlu1 %1745 }
 0x1df   :  { %20023 = vst [vmem:[#allocation127_spill] sm:$0xff] %v12857_v26  ;;  %v12860_v27 = vpop.f32.mrb[81].mxu0  ;;  %20028 = vst [vmem:[#allocation132_spill] sm:$0xff] %v12874_v34 }
 0x1e0   :  { %20024 = vst [vmem:[#allocation128_spill] sm:$0xff] %v12860_v27  ;;  %v958_v22 = vadd.f32 %v957_v46, %v12860_v27  ;;  %v1072_v44 = vmul.f32 %v12860_v27, %v12860_v27  ;;  %v1178_v53 = vadd.f32 %v1177_v18, %v1071_v5  ;;  %v12865_v28 = vpop.f32.mrb[82].mxu0  ;;  %v1074_v46 = vmul.f32 %v12857_v26, %v12857_v26 }
 0x1e1   :  { %20025 = vst [vmem:[#allocation129_spill] sm:$0xff] %v12865_v28  ;;  %v12869_v0 = vpop.f32.mrb[83].mxu0  ;;  %v1075_v18 = vmul.f32 %v12865_v28, %v12865_v28 }
 0x1e2   :  { %20027 = vst [vmem:[#allocation131_spill] sm:$0xff] %v12869_v0  ;;  %v1179_v16 = vadd.f32 %v1178_v53, %v1072_v44  ;;  %v959_v19 = vadd.f32 %v958_v22, %v12869_v0  ;;  %v1073_v8 = vmul.f32 %v12869_v0, %v12869_v0  ;;  %v12884_v53 = vpop.permute.xlu0 %1605 }
 0x1e3   :  { %20030 = vst [vmem:[#allocation134_spill] sm:$0xff] %v12884_v53 }
 0x1e4   :  { %v960_v27 = vadd.f32 %v12857_v26, %v959_v19  ;;  %v1180_v5 = vadd.f32 %v1179_v16, %v1073_v8  ;;  %v12895_v8 = vpop.permute.xlu1 %1760 }
 0x1e5   :  { %20034 = vst [vmem:[#allocation138_spill] sm:$0xff] %v12895_v8 }
 0x1e6   :  { %v1181_v38 = vadd.f32 %v1180_v5, %v1074_v46  ;;  %v12881_v59 = vpop.f32.mrb[84].mxu0  ;;  %v961_v44 = vadd.f32 %v12865_v28, %v960_v27 }
 0x1e7   :  { %20029 = vst [vmem:[#allocation133_spill] sm:$0xff] %v12881_v59  ;;  %v12886_v22 = vpop.f32.mrb[85].mxu0  ;;  %v1078_v53 = vmul.f32 %v12881_v59, %v12881_v59 }
 0x1e8   :  { %20031 = vst [vmem:[#allocation135_spill] sm:$0xff] %v12886_v22  ;;  %v962_v34 = vadd.f32 %v961_v44, %v12886_v22  ;;  %v1076_v0 = vmul.f32 %v12886_v22, %v12886_v22  ;;  %v1182_v23 = vadd.f32 %v1181_v38, %v1075_v18  ;;  %v12891_v19 = vpop.f32.mrb[86].mxu0  ;;  %v12903_v22 = vpop.permute.xlu0 %1620 }
 0x1e9   :  { %20032 = vst [vmem:[#allocation136_spill] sm:$0xff] %v12891_v19  ;;  %v12893_v16 = vpop.f32.mrb[87].mxu0  ;;  %20035 = vst [vmem:[#allocation139_spill] sm:$0xff] %v12903_v22  ;;  %v1079_v38 = vmul.f32 %v12891_v19, %v12891_v19 }
 0x1ea   :  { %20033 = vst [vmem:[#allocation137_spill] sm:$0xff] %v12893_v16  ;;  %v1183_v46 = vadd.f32 %v1182_v23, %v1076_v0  ;;  %v963_v5 = vadd.f32 %v962_v34, %v12893_v16  ;;  %v1077_v27 = vmul.f32 %v12893_v16, %v12893_v16  ;;  %v12912_v34 = vpop.permute.xlu1 %1775 }
 0x1eb   :  { %20038 = vst [vmem:[#allocation142_spill] sm:$0xff] %v12912_v34 }
 0x1ec   :  { %v964_v44 = vadd.f32 %v12881_v59, %v963_v5  ;;  %v1184_v28 = vadd.f32 %v1183_v46, %v1077_v27 }
 0x1ee   :  { %v1185_v18 = vadd.f32 %v1184_v28, %v1078_v53  ;;  %v12907_v26 = vpop.f32.mrb[88].mxu0  ;;  %v965_v23 = vadd.f32 %v12891_v19, %v964_v44  ;;  %v12924_v44 = vpop.permute.xlu0 %1635 }
 0x1ef   :  { %20036 = vst [vmem:[#allocation140_spill] sm:$0xff] %v12907_v26  ;;  %v12910_v0 = vpop.f32.mrb[89].mxu0  ;;  %20041 = vst [vmem:[#allocation145_spill] sm:$0xff] %v12924_v44  ;;  %v1082_v34 = vmul.f32 %v12907_v26, %v12907_v26 }
 0x1f0   :  { %20037 = vst [vmem:[#allocation141_spill] sm:$0xff] %v12910_v0  ;;  %v966_v8 = vadd.f32 %v965_v23, %v12910_v0  ;;  %v1080_v5 = vmul.f32 %v12910_v0, %v12910_v0  ;;  %v1186_v46 = vadd.f32 %v1185_v18, %v1079_v38  ;;  %v12917_v27 = vpop.f32.mrb[90].mxu0  ;;  %v12929_v0 = vpop.permute.xlu1 %1790 }
 0x1f1   :  { %20039 = vst [vmem:[#allocation143_spill] sm:$0xff] %v12917_v27  ;;  %v12919_v22 = vpop.f32.mrb[91].mxu0  ;;  %20042 = vst [vmem:[#allocation146_spill] sm:$0xff] %v12929_v0  ;;  %v1083_v38 = vmul.f32 %v12917_v27, %v12917_v27 }
 0x1f2   :  { %20040 = vst [vmem:[#allocation144_spill] sm:$0xff] %v12919_v22  ;;  %v1187_v59 = vadd.f32 %v1186_v46, %v1080_v5  ;;  %v967_v28 = vadd.f32 %v966_v8, %v12919_v22  ;;  %v1081_v53 = vmul.f32 %v12919_v22, %v12919_v22 }
 0x1f4   :  { %v968_v23 = vadd.f32 %v12907_v26, %v967_v28  ;;  %v1188_v19 = vadd.f32 %v1187_v59, %v1081_v53  ;;  %v12943_v59 = vpop.permute.xlu0 %1650 }
 0x1f5   :  { %20046 = vst [vmem:[#allocation150_spill] sm:$0xff] %v12943_v59 }
 0x1f6   :  { %v1189_v18 = vadd.f32 %v1188_v19, %v1082_v34  ;;  %v12933_v5 = vpop.f32.mrb[92].mxu0  ;;  %v969_v8 = vadd.f32 %v12917_v27, %v968_v23  ;;  %v12950_v23 = vpop.permute.xlu1 %1835 }
 0x1f7   :  { %20043 = vst [vmem:[#allocation147_spill] sm:$0xff] %v12933_v5  ;;  %v12936_v46 = vpop.f32.mrb[93].mxu0  ;;  %20048 = vst [vmem:[#allocation152_spill] sm:$0xff] %v12950_v23 }
 0x1f8   :  { %20044 = vst [vmem:[#allocation148_spill] sm:$0xff] %v12936_v46  ;;  %v970_v44 = vadd.f32 %v969_v8, %v12936_v46  ;;  %v1084_v22 = vmul.f32 %v12936_v46, %v12936_v46  ;;  %v1190_v16 = vadd.f32 %v1189_v18, %v1083_v38  ;;  %v12941_v28 = vpop.f32.mrb[94].mxu0  ;;  %v1086_v8 = vmul.f32 %v12933_v5, %v12933_v5 }
 0x1f9   :  { %20045 = vst [vmem:[#allocation149_spill] sm:$0xff] %v12941_v28  ;;  %v12945_v53 = vpop.f32.mrb[95].mxu0  ;;  %v1087_v18 = vmul.f32 %v12941_v28, %v12941_v28 }
 0x1fa   :  { %20047 = vst [vmem:[#allocation151_spill] sm:$0xff] %v12945_v53  ;;  %v1191_v0 = vadd.f32 %v1190_v16, %v1084_v22  ;;  %v971_v19 = vadd.f32 %v970_v44, %v12945_v53  ;;  %v1085_v34 = vmul.f32 %v12945_v53, %v12945_v53  ;;  %v12960_v16 = vpop.permute.xlu0 %1665 }
 0x1fb   :  { %20050 = vst [vmem:[#allocation154_spill] sm:$0xff] %v12960_v16 }
 0x1fc   :  { %v972_v46 = vadd.f32 %v12933_v5, %v971_v19  ;;  %v1192_v38 = vadd.f32 %v1191_v0, %v1085_v34  ;;  %v12971_v34 = vpop.permute.xlu1 %1850 }
 0x1fd   :  { %20054 = vst [vmem:[#allocation158_spill] sm:$0xff] %v12971_v34 }
 0x1fe   :  { %v1193_v59 = vadd.f32 %v1192_v38, %v1086_v8  ;;  %v12957_v27 = vpop.f32.mrb[96].mxu0  ;;  %v973_v22 = vadd.f32 %v12941_v28, %v972_v46 }
 0x1ff   :  { %20049 = vst [vmem:[#allocation153_spill] sm:$0xff] %v12957_v27  ;;  %v12962_v44 = vpop.f32.mrb[97].mxu0  ;;  %v1090_v16 = vmul.f32 %v12957_v27, %v12957_v27 }
 0x200   :  { %20051 = vst [vmem:[#allocation155_spill] sm:$0xff] %v12962_v44  ;;  %v974_v23 = vadd.f32 %v973_v22, %v12962_v44  ;;  %v1088_v53 = vmul.f32 %v12962_v44, %v12962_v44  ;;  %v1194_v26 = vadd.f32 %v1193_v59, %v1087_v18  ;;  %v12967_v19 = vpop.f32.mrb[98].mxu0  ;;  %v12979_v44 = vpop.permute.xlu0 %1680 }
 0x201   :  { %20052 = vst [vmem:[#allocation156_spill] sm:$0xff] %v12967_v19  ;;  %v12969_v0 = vpop.f32.mrb[99].mxu0  ;;  %20055 = vst [vmem:[#allocation159_spill] sm:$0xff] %v12979_v44  ;;  %v1091_v59 = vmul.f32 %v12967_v19, %v12967_v19 }
 0x202   :  { %20053 = vst [vmem:[#allocation157_spill] sm:$0xff] %v12969_v0  ;;  %v1195_v8 = vadd.f32 %v1194_v26, %v1088_v53  ;;  %v975_v38 = vadd.f32 %v974_v23, %v12969_v0  ;;  %v1089_v46 = vmul.f32 %v12969_v0, %v12969_v0  ;;  %v12988_v23 = vpop.permute.xlu1 %1865 }
 0x203   :  { %20058 = vst [vmem:[#allocation162_spill] sm:$0xff] %v12988_v23 }
 0x204   :  { %v976_v22 = vadd.f32 %v12957_v27, %v975_v38  ;;  %v1196_v28 = vadd.f32 %v1195_v8, %v1089_v46 }
 0x206   :  { %v1197_v18 = vadd.f32 %v1196_v28, %v1090_v16  ;;  %v12983_v5 = vpop.f32.mrb[100].mxu0  ;;  %v977_v26 = vadd.f32 %v12967_v19, %v976_v22  ;;  %v13000_v22 = vpop.permute.xlu0 %1695 }
 0x207   :  { %20056 = vst [vmem:[#allocation160_spill] sm:$0xff] %v12983_v5  ;;  %v12986_v53 = vpop.f32.mrb[101].mxu0  ;;  %20061 = vst [vmem:[#allocation165_spill] sm:$0xff] %v13000_v22  ;;  %v1094_v23 = vmul.f32 %v12983_v5, %v12983_v5 }
 0x208   :  { %20057 = vst [vmem:[#allocation161_spill] sm:$0xff] %v12986_v53  ;;  %v978_v34 = vadd.f32 %v977_v26, %v12986_v53  ;;  %v1092_v38 = vmul.f32 %v12986_v53, %v12986_v53  ;;  %v1198_v8 = vadd.f32 %v1197_v18, %v1091_v59  ;;  %v12993_v46 = vpop.f32.mrb[102].mxu0  ;;  %v13005_v53 = vpop.permute.xlu1 %2060 }
 0x209   :  { %20059 = vst [vmem:[#allocation163_spill] sm:$0xff] %v12993_v46  ;;  %v12995_v44 = vpop.f32.mrb[103].mxu0  ;;  %20062 = vst [vmem:[#allocation166_spill] sm:$0xff] %v13005_v53  ;;  %v1095_v59 = vmul.f32 %v12993_v46, %v12993_v46 }
 0x20a   :  { %20060 = vst [vmem:[#allocation164_spill] sm:$0xff] %v12995_v44  ;;  %v1199_v27 = vadd.f32 %v1198_v8, %v1092_v38  ;;  %v979_v28 = vadd.f32 %v978_v34, %v12995_v44  ;;  %v1093_v16 = vmul.f32 %v12995_v44, %v12995_v44 }
 0x20c   :  { %v980_v26 = vadd.f32 %v12983_v5, %v979_v28  ;;  %v1200_v19 = vadd.f32 %v1199_v27, %v1093_v16  ;;  %v13019_v27 = vpop.permute.xlu0 %1710 }
 0x20d   :  { %20066 = vst [vmem:[#allocation170_spill] sm:$0xff] %v13019_v27 }
 0x20e   :  { %v1201_v18 = vadd.f32 %v1200_v19, %v1094_v23  ;;  %v13009_v38 = vpop.f32.mrb[104].mxu0  ;;  %v981_v34 = vadd.f32 %v12993_v46, %v980_v26  ;;  %v13026_v26 = vpop.permute.xlu1 %1585 }
 0x20f   :  { %20063 = vst [vmem:[#allocation167_spill] sm:$0xff] %v13009_v38  ;;  %v13012_v8 = vpop.f32.mrb[105].mxu0  ;;  %20068 = vst [vmem:[#allocation172_spill] sm:$0xff] %v13026_v26 }
 0x210   :  { %20064 = vst [vmem:[#allocation168_spill] sm:$0xff] %v13012_v8  ;;  %v982_v22 = vadd.f32 %v981_v34, %v13012_v8  ;;  %v1096_v44 = vmul.f32 %v13012_v8, %v13012_v8  ;;  %v1202_v0 = vadd.f32 %v1201_v18, %v1095_v59  ;;  %v13017_v28 = vpop.f32.mrb[106].mxu0  ;;  %v1098_v34 = vmul.f32 %v13009_v38, %v13009_v38 }
 0x211   :  { %20065 = vst [vmem:[#allocation169_spill] sm:$0xff] %v13017_v28  ;;  %v13021_v16 = vpop.f32.mrb[107].mxu0  ;;  %v1099_v18 = vmul.f32 %v13017_v28, %v13017_v28 }
 0x212   :  { %20067 = vst [vmem:[#allocation171_spill] sm:$0xff] %v13021_v16  ;;  %v1203_v53 = vadd.f32 %v1202_v0, %v1096_v44  ;;  %v983_v19 = vadd.f32 %v982_v22, %v13021_v16  ;;  %v1097_v23 = vmul.f32 %v13021_v16, %v13021_v16  ;;  %v13034_v44 = vpop.permute.xlu0 %1725  ;;  %v13036_v5 = vpop.permute.xlu1 %1615  ;;  %v11080_v16 = vld [vmem:[#allocation5 + $0x68] sm:$0xff]  }
 0x213   :  { %20069 = vst [vmem:[#allocation173_spill] sm:$0xff] %v13034_v44  ;;  %20070 = vst [vmem:[#allocation174_spill] sm:$0xff] %v13036_v5  ;;  %v11083_v5 = vld [vmem:[#allocation5 + $0xb8] sm:$0xff]  }
 0x214   :  { %v984_v8 = vadd.f32 %v13009_v38, %v983_v19  ;;  %v1204_v59 = vadd.f32 %v1203_v53, %v1097_v23  ;;  %v11069_v19 = vld [vmem:[#allocation5 + $0x80] sm:$0xff]  }
 0x215   :  { %v11070_v53 = vld [vmem:[#allocation5 + $0x40] sm:$0xff]   ;;  %10521 = vmatprep.subr.bf16.mxu1 %v11069_v19 }
 0x216   :  { %v985_v27 = vadd.f32 %v13017_v28, %v984_v8  ;;  %v1205_v46 = vadd.f32 %v1204_v59, %v1098_v34  ;;  %v13038_v62 = vpop.permute.xlu0 %1740  ;;  %9641 = vmatprep.subr.bf16.mxu0 %v11070_v53  ;;  %v13040_v8 = vpop.permute.xlu1 %1645  ;;  %10529 = vmatpush3.bf16.msra.mxu1 %v11069_v19 }
 0x217   :  { %20071 = vst [vmem:[#allocation175_spill] sm:$0xff] %v13038_v62  ;;  %20072 = vst [vmem:[#allocation176_spill] sm:$0xff] %v13040_v8  ;;  %9642 = vmatpush3.bf16.msra.mxu0 %v11070_v53  ;;  %v11077_v53 = vld [vmem:[#allocation5 + $0xa0] sm:$0xff]   ;;  %v20092_v8 = vld [vmem:[#allocation80_spill] sm:$0xff] }
 0x218   :  { %v986_v0 = vrot.slane %v985_v27, 4  ;;  %v1206_v22 = vadd.f32 %v1205_v46, %v1099_v18  ;;  %v11071_v46 = vld [vmem:[#allocation5 + $0x88] sm:$0xff]  }
 0x219   :  { %v11072_v18 = vld [vmem:[#allocation5 + $0x48] sm:$0xff]   ;;  %10522 = vmatprep.subr.bf16.mxu1 %v11071_v46 }
 0x21a   :  { %v987_v12 = vadd.f32 %v986_v0, %v985_v27  ;;  %v1207_v26 = vrot.slane %v1206_v22, 4  ;;  %v13042_v44 = vpop.permute.xlu0 %1755  ;;  %9643 = vmatprep.subr.bf16.mxu0 %v11072_v18  ;;  %10530 = vmatpush3.bf16.msra.mxu1 %v11071_v46  ;;  %v13046_v62 = vpop.permute.xlu1 %1675  ;;  %v20134_v46 = vld [vmem:[#allocation148_spill] sm:$0xff] }
 0x21b   :  { %20073 = vst [vmem:[#allocation177_spill] sm:$0xff] %v13042_v44  ;;  %9644 = vmatpush3.bf16.msra.mxu0 %v11072_v18  ;;  %20075 = vst [vmem:[#allocation179_spill] sm:$0xff] %v13046_v62  ;;  %v11078_v18 = vld [vmem:[#allocation5 + $0x60] sm:$0xff]   ;;  %v11081_v44 = vld [vmem:[#allocation5 + $0xb0] sm:$0xff]  }
 0x21c   :  { %v988_v42 = vrot.slane %v987_v12, 2  ;;  %v1208_v36 = vadd.f32 %v1207_v26, %v1206_v22 }
 0x21e   :  { %v989_v23 = vadd.f32 %v988_v42, %v987_v12  ;;  %v1209_v38 = vrot.slane %v1208_v36, 2  ;;  %v11073_v12 = vld [vmem:[#allocation5 + $0x90] sm:$0xff]   ;;  %v13074_v19 = vpop.permute.xlu0 %1770 }
 0x21f   :  { %v11074_v42 = vld [vmem:[#allocation5 + $0x50] sm:$0xff]   ;;  %10523 = vmatprep.subr.bf16.mxu1 %v11073_v12  ;;  %20076 = vst [vmem:[#allocation180_spill] sm:$0xff] %v13074_v19 }
 0x220   :  { %v990_v34 = vrot.slane %v989_v23, 1  ;;  %v1210_v59 = vadd.f32 %v1209_v38, %v1208_v36  ;;  %9645 = vmatprep.subr.bf16.mxu0 %v11074_v42  ;;  %10531 = vmatpush3.bf16.msra.mxu1 %v11073_v12 }
 0x221   :  { %9646 = vmatpush3.bf16.msra.mxu0 %v11074_v42 }
 0x222   :  { %v991_v27 = vadd.f32 %v990_v34, %v989_v23  ;;  %v1211_v0 = vrot.slane %v1210_v59, 1  ;;  %v11076_v23 = vld [vmem:[#allocation5 + $0x58] sm:$0xff]   ;;  %v20145_v34 = vld [vmem:[#allocation160_spill] sm:$0xff] }
 0x223   :  { %9647 = vmatprep.subr.bf16.mxu0 %v11076_v23 }
 0x224   :  { %v1212_v26 = vadd.f32 %v1211_v0, %v1210_v59  ;;  %v13044_v22 = vmul.f32 0.001953125, %v991_v27  ;;  %v11075_v0 = vld [vmem:[#allocation5 + $0x98] sm:$0xff]   ;;  %v13122_v27 = vpop.permute.xlu0 %1785 }
 0x225   :  { %10524 = vmatprep.subr.bf16.mxu1 %v11075_v0  ;;  %9648 = vmatpush3.bf16.msra.mxu0 %v11076_v23  ;;  %20078 = vst [vmem:[#allocation182_spill] sm:$0xff] %v13122_v27  ;;  %v11079_v23 = vld [vmem:[#allocation5 + $0xa8] sm:$0xff]   ;;  %v20146_v27 = vld [vmem:[#allocation163_spill] sm:$0xff] }
 0x226   :  { %20074 = vst [vmem:[#allocation178_spill] sm:$0xff] %v13044_v22  ;;  %v13048_v36 = vmul.f32 0.001953125, %v1212_v26  ;;  %v13052_v38 = vmul.f32 %v13044_v22, %v13044_v22  ;;  %v13098_v26 = vpop.permute.xlu1 %1705  ;;  %10532 = vmatpush3.bf16.msra.mxu1 %v11075_v0  ;;  %9649 = vmatprep.subr.bf16.mxu0 %v11078_v18  ;;  %v20157_v59 = vsub.f32 %v20092_v8, %v13044_v22 }
 0x227   :  { %20077 = vst [vmem:[#allocation181_spill] sm:$0xff] %v13098_v26  ;;  %10525 = vmatprep.subr.bf16.mxu1 %v11077_v53  ;;  %v20162_v8 = vsub.f32 %v12378_v13, %v13044_v22  ;;  %v20166_v13 = vsub.f32 %v12407_v50, %v13044_v22 }
 0x228   :  { %v13174_v62 = vpop.permute.xlu0 %1830 }
 0x229   :  { %9650 = vmatpush3.bf16.msra.mxu0 %v11078_v18  ;;  %20091 = vst [vmem:[#allocation184_spill] sm:$0xff] %v13174_v62  ;;  %v11082_v18 = vld [vmem:[#allocation5 + $0x70] sm:$0xff]  }
 0x22a   :  { %10533 = vmatpush3.bf16.msra.mxu1 %v11077_v53  ;;  %v13148_v12 = vpop.permute.xlu1 %1735  ;;  %9651 = vmatprep.subr.bf16.mxu0 %v11080_v16  ;;  %v20097_v62 = vld [vmem:[#allocation89_spill] sm:$0xff] }
 0x22b   :  { %20079 = vst [vmem:[#allocation183_spill] sm:$0xff] %v13148_v12  ;;  %10526 = vmatprep.subr.bf16.mxu1 %v11079_v23 }
 0x22c   :  { %v13226_v0 = vpop.permute.xlu0 %1845 }
 0x22d   :  { %9652 = vmatpush3.bf16.msra.mxu0 %v11080_v16  ;;  %v11084_v16 = vld [vmem:[#allocation5 + $0x78] sm:$0xff]   ;;  %20117 = vst [vmem:[#allocation89_spill] sm:$0xff] %v13226_v0  ;;  %v20133_v0 = vld [vmem:[#allocation143_spill] sm:$0xff] }
 0x22e   :  { %10534 = vmatpush3.bf16.msra.mxu1 %v11079_v23  ;;  %v13200_v26 = vpop.permute.xlu1 %1765  ;;  %9653 = vmatprep.subr.bf16.mxu0 %v11082_v18  ;;  %v20141_v23 = vld [vmem:[#allocation156_spill] sm:$0xff] }
 0x22f   :  { %10527 = vmatprep.subr.bf16.mxu1 %v11081_v44  ;;  %20104 = vst [vmem:[#allocation80_spill] sm:$0xff] %v13200_v26  ;;  %v13244_v26 = vld [vmem:[#allocation5 + $0xc0] sm:$0xff]  }
 0x230   :  { %20126 = vst [vmem:[#allocation185_spill] sm:$0xff] %v13244_v26 }
 0x231   :  { %9654 = vmatpush3.bf16.msra.mxu0 %v11082_v18  ;;  %v20150_v18 = vsub.f32 %v13048_v36, %v13052_v38 }
 0x232   :  { %10535 = vmatpush3.bf16.msra.mxu1 %v11081_v44  ;;  %9655 = vmatprep.subr.bf16.mxu0 %v11084_v16  ;;  %v13254_v53 = vpop.permute.xlu1 %1795 }
 0x233   :  { %10528 = vmatprep.subr.bf16.mxu1 %v11083_v5  ;;  %20131 = vst [vmem:[#allocation186_spill] sm:$0xff] %v13254_v53 }
 0x235   :  { %9656 = vmatpush3.bf16.msra.mxu0 %v11084_v16 }
 0x236   :  { %10536 = vmatpush3.bf16.msra.mxu1 %v11083_v5  ;;  %v13281_v5 = vpop.permute.xlu0 %1860  ;;  %v13293_v19 = vpop.permute.xlu1 %1855 }
 0x237   :  { %9881 = vmatprep.subr.bf16.mxu1 %v13244_v26  ;;  %20144 = vst [vmem:[#allocation143_spill] sm:$0xff] %v13281_v5  ;;  %20149 = vst [vmem:[#allocation148_spill] sm:$0xff] %v13293_v19  ;;  %v1325_v5 = vadd.f32 1e-05, %v20150_v18 }
 0x239   :  { %11157 = vrsqrt.f32 %v1325_v5  ;;  %v20160_v5 = vsub.f32 %v12380_v3, %v13044_v22 }
 0x23a   :  { %v13298_v39 = vpop.permute.xlu0 %2055  ;;  %v13300_v53 = vpop.permute.xlu1 %2065 }
 0x23b   :  { %20151 = vst [vmem:[#allocation156_spill] sm:$0xff] %v13298_v39  ;;  %20152 = vst [vmem:[#allocation160_spill] sm:$0xff] %v13300_v53  ;;  %v20161_v39 = vsub.f32 %v12384_v49, %v13044_v22 }
 0x23e   :  { %v13302_v26 = vpop.permute.xlu0 %1570  ;;  %v13304_v12 = vpop.permute.xlu1 %1550 }
 0x23f   :  { %20153 = vst [vmem:[#allocation163_spill] sm:$0xff] %v13302_v26  ;;  %20154 = vst [vmem:[#allocation187_spill] sm:$0xff] %v13304_v12 }
 0x242   :  { %v13308_v16 = vpop.permute.xlu0 %1600  ;;  %v13314_v36 = vpop.permute.xlu1 %1800 }
 0x243   :  { %v13306_v44 = vpop.eup %11157  ;;  %20156 = vst [vmem:[#allocation189_spill] sm:$0xff] %v13308_v16  ;;  %20158 = vst [vmem:[#allocation190_spill] sm:$0xff] %v13314_v36  ;;  %v20204_v36 = vsub.f32 %v12578_v4, %v13044_v22 }
 0x244   :  { %20155 = vst [vmem:[#allocation188_spill] sm:$0xff] %v13306_v44  ;;  %v1381_v28 = vmul.f32 %v13306_v44, %v20157_v59  ;;  %v13322_v42 = vmul.f32 %v13306_v44, %v20160_v5  ;;  %v13328_v19 = vmul.f32 %v13306_v44, %v20161_v39  ;;  %v13334_v59 = vmul.f32 %v13306_v44, %v20162_v8 }
 0x245   :  { %v20164_v5 = vsub.f32 %v12400_v7, %v13044_v22  ;;  %v13354_v8 = vmul.f32 %v13306_v44, %v20166_v13  ;;  %v20168_v7 = vsub.f32 %v12405_v63, %v13044_v22  ;;  %v20171_v13 = vsub.f32 %v12418_v21, %v13044_v22 }
 0x246   :  { %v13316_v38 = vpop.permute.xlu0 %1630  ;;  %v1489_v18 = vmax.f32 %v1381_v28, 0.0  ;;  %v1816_v53 = vpop.permute.xlu1 %1815  ;;  %v20163_v28 = vsub.f32 %v12382_v33, %v13044_v22  ;;  %v20167_v33 = vsub.f32 %v12398_v41, %v13044_v22  ;;  %v20175_v21 = vsub.f32 %v12451_v40, %v13044_v22 }
 0x247   :  { %20159 = vst [vmem:[#allocation191_spill] sm:$0xff] %v13316_v38  ;;  %v13346_v49 = vmul.f32 %v13306_v44, %v20164_v5  ;;  %v13366_v5 = vmul.f32 %v13306_v44, %v20168_v7  ;;  %v13384_v63 = vmul.f32 %v13306_v44, %v20171_v13 }
 0x248   :  { %v13340_v3 = vmul.f32 %v13306_v44, %v20163_v28  ;;  %v13348_v39 = vmul.f32 %v1816_v53, %v1489_v18  ;;  %v13360_v28 = vmul.f32 %v13306_v44, %v20167_v33  ;;  %v20169_v53 = vsub.f32 %v12422_v54, %v13044_v22 }
 0x249   :  { %v20170_v18 = vsub.f32 %v12429_v2, %v13044_v22  ;;  %v20172_v33 = vsub.f32 %v12427_v24, %v13044_v22  ;;  %v20174_v2 = vsub.f32 %v12444_v61, %v13044_v22  ;;  %v20176_v24 = vsub.f32 %v12442_v14, %v13044_v22 }
 0x24a   :  { %20165 = vst [vmem:[#allocation192_spill] sm:$0xff] %v13348_v39  ;;  %v13372_v50 = vmul.f32 %v13306_v44, %v20169_v53  ;;  %v13392_v7 = vpop.permute.xlu0 %1660 }
 0x24b   :  { %v13378_v41 = vmul.f32 %v13306_v44, %v20170_v18  ;;  %v13390_v54 = vmul.f32 %v13306_v44, %v20172_v33  ;;  %20173 = vst [vmem:[#allocation193_spill] sm:$0xff] %v13392_v7  ;;  %v13398_v53 = vmul.f32 %v13306_v44, %v20174_v2  ;;  %v13404_v18 = vmul.f32 %v13306_v44, %v20175_v21 }
 0x24c   :  { %v13410_v13 = vmul.f32 %v13306_v44, %v20176_v24  ;;  %v20177_v33 = vsub.f32 %v12449_v32, %v13044_v22  ;;  %v20178_v2 = vsub.f32 %v12466_v58, %v13044_v22  ;;  %v20179_v21 = vsub.f32 %v12475_v1, %v13044_v22 }
 0x24d   :  { %v20180_v24 = vsub.f32 %v12464_v20, %v13044_v22  ;;  %v20182_v1 = vsub.f32 %v12490_v52, %v13044_v22  ;;  %v20183_v20 = vsub.f32 %v12497_v10, %v13044_v22 }
 0x24e   :  { %v13416_v61 = vmul.f32 %v13306_v44, %v20177_v33  ;;  %v13422_v40 = vmul.f32 %v13306_v44, %v20178_v2  ;;  %v13428_v14 = vmul.f32 %v13306_v44, %v20179_v21  ;;  %v20181_v33 = vsub.f32 %v12471_v11, %v13044_v22 }
 0x24f   :  { %v13434_v32 = vmul.f32 %v13306_v44, %v20180_v24  ;;  %v13447_v21 = vmul.f32 %v13306_v44, %v20182_v1  ;;  %v13453_v24 = vmul.f32 %v13306_v44, %v20183_v20  ;;  %v20185_v11 = vsub.f32 %v12486_v43, %v13044_v22 }
 0x250   :  { %v13440_v58 = vmul.f32 %v13306_v44, %v20181_v33  ;;  %v20186_v2 = vsub.f32 %v12495_v37, %v13044_v22  ;;  %v20187_v1 = vsub.f32 %v12512_v9, %v13044_v22  ;;  %v20188_v20 = vsub.f32 %v12519_v29, %v13044_v22 }
 0x251   :  { %20184 = vst [vmem:[#allocation194_spill] sm:$0xff] %v13453_v24  ;;  %v13459_v33 = vmul.f32 %v13306_v44, %v20185_v11  ;;  %v20189_v11 = vsub.f32 %v12510_v48, %v13044_v22 }
 0x252   :  { %v13465_v52 = vmul.f32 %v13306_v44, %v20186_v2  ;;  %v13471_v10 = vmul.f32 %v13306_v44, %v20187_v1  ;;  %v13477_v43 = vmul.f32 %v13306_v44, %v20188_v20  ;;  %v20190_v2 = vsub.f32 %v12517_v60, %v13044_v22 }
 0x253   :  { %v13483_v37 = vmul.f32 %v13306_v44, %v20189_v11  ;;  %v20191_v1 = vsub.f32 %v12534_v30, %v13044_v22  ;;  %v20192_v20 = vsub.f32 %v12543_v17, %v13044_v22  ;;  %v20193_v11 = vsub.f32 %v12532_v31, %v13044_v22 }
 0x254   :  { %v13489_v9 = vmul.f32 %v13306_v44, %v20190_v2  ;;  %v20194_v2 = vsub.f32 %v12539_v47, %v13044_v22 }
 0x255   :  { %v13495_v29 = vmul.f32 %v13306_v44, %v20191_v1  ;;  %v13501_v48 = vmul.f32 %v13306_v44, %v20192_v20  ;;  %v13507_v60 = vmul.f32 %v13306_v44, %v20193_v11  ;;  %v20195_v1 = vsub.f32 %v12558_v57, %v13044_v22 }
 0x256   :  { %v13513_v30 = vmul.f32 %v13306_v44, %v20194_v2  ;;  %v20196_v20 = vsub.f32 %v12565_v35, %v13044_v22  ;;  %v20197_v11 = vsub.f32 %v12554_v15, %v13044_v22  ;;  %v13533_v2 = vpop.permute.xlu0 %1690  ;;  %v20200_v57 = vsub.f32 %v12563_v51, %v13044_v22 }
 0x257   :  { %v13519_v17 = vmul.f32 %v13306_v44, %v20195_v1  ;;  %20199 = vst [vmem:[#allocation196_spill] sm:$0xff] %v13533_v2  ;;  %v20201_v35 = vsub.f32 %v12582_v45, %v13044_v22  ;;  %v20202_v15 = vsub.f32 %v12589_v55, %v13044_v22  ;;  %v13557_v51 = vmul.f32 %v13306_v44, %v20204_v36  ;;  %v20212_v36 = vld [vmem:[#allocation62_spill] sm:$0xff] }
 0x258   :  { %v13525_v31 = vmul.f32 %v13306_v44, %v20196_v20  ;;  %v13531_v47 = vmul.f32 %v13306_v44, %v20197_v11  ;;  %v13539_v1 = vmul.f32 %v13306_v44, %v20200_v57  ;;  %v20206_v57 = vsub.f32 %v12587_v6, %v13044_v22 }
 0x259   :  { %v13545_v20 = vmul.f32 %v13306_v44, %v20201_v35  ;;  %v13551_v11 = vmul.f32 %v13306_v44, %v20202_v15  ;;  %20205 = vst [vmem:[#allocation198_spill] sm:$0xff] %v13557_v51  ;;  %v20208_v35 = vsub.f32 %v12606_v25, %v13044_v22  ;;  %v20210_v15 = vsub.f32 %v12615_v56, %v13044_v22 }
 0x25a   :  { %20198 = vst [vmem:[#allocation195_spill] sm:$0xff] %v13531_v47  ;;  %v13563_v45 = vmul.f32 %v13306_v44, %v20206_v57  ;;  %v20213_v39 = vsub.f32 %v20212_v36, %v13044_v22  ;;  %v20215_v57 = vld [vmem:[#allocation64_spill] sm:$0xff] }
 0x25b   :  { %20203 = vst [vmem:[#allocation197_spill] sm:$0xff] %v13551_v11  ;;  %v13569_v55 = vmul.f32 %v13306_v44, %v20208_v35  ;;  %v13575_v4 = vmul.f32 %v13306_v44, %v20210_v15  ;;  %v20216_v2 = vsub.f32 %v20215_v57, %v13044_v22  ;;  %v20218_v35 = vld [vmem:[#allocation68_spill] sm:$0xff]  ;;  %v20220_v15 = vld [vmem:[#allocation71_spill] sm:$0xff] }
 0x25c   :  { %20207 = vst [vmem:[#allocation199_spill] sm:$0xff] %v13563_v45  ;;  %v13581_v6 = vmul.f32 %v13306_v44, %v20213_v39  ;;  %v20219_v7 = vsub.f32 %v20218_v35, %v13044_v22  ;;  %v20221_v38 = vsub.f32 %v20220_v15, %v13044_v22  ;;  %v20223_v39 = vld [vmem:[#allocation67_spill] sm:$0xff] }
 0x25d   :  { %20209 = vst [vmem:[#allocation200_spill] sm:$0xff] %v13569_v55  ;;  %20211 = vst [vmem:[#allocation201_spill] sm:$0xff] %v13575_v4  ;;  %v13587_v25 = vmul.f32 %v13306_v44, %v20216_v2  ;;  %v20224_v16 = vsub.f32 %v20223_v39, %v13044_v22  ;;  %v20226_v2 = vld [vmem:[#allocation69_spill] sm:$0xff] }
 0x25e   :  { %20214 = vst [vmem:[#allocation62_spill] sm:$0xff] %v13581_v6  ;;  %v13593_v56 = vmul.f32 %v13306_v44, %v20219_v7  ;;  %v13599_v36 = vmul.f32 %v13306_v44, %v20221_v38  ;;  %v20227_v26 = vsub.f32 %v20226_v2, %v13044_v22  ;;  %v20229_v7 = vld [vmem:[#allocation75_spill] sm:$0xff]  ;;  %v20232_v38 = vld [vmem:[#allocation77_spill] sm:$0xff] }
 0x25f   :  { %20217 = vst [vmem:[#allocation64_spill] sm:$0xff] %v13587_v25  ;;  %v13605_v57 = vmul.f32 %v13306_v44, %v20224_v16  ;;  %v20230_v12 = vsub.f32 %v20229_v7, %v13044_v22  ;;  %v20235_v16 = vld [vmem:[#allocation73_spill] sm:$0xff]  ;;  %v20443_v25 = vmax.f32 %v13334_v59, 0.0  ;;  %v20452_v59 = vld [vmem:[#allocation172_spill] sm:$0xff] }
 0x260   :  { %20222 = vst [vmem:[#allocation68_spill] sm:$0xff] %v13599_v36  ;;  %v13611_v35 = vmul.f32 %v13306_v44, %v20227_v26  ;;  %v20233_v36 = vsub.f32 %v20232_v38, %v13044_v22  ;;  %v20238_v26 = vld [vmem:[#allocation91_spill] sm:$0xff] }
 0x261   :  { %20225 = vst [vmem:[#allocation71_spill] sm:$0xff] %v13605_v57  ;;  %v13617_v15 = vmul.f32 %v13306_v44, %v20230_v12  ;;  %v20236_v57 = vsub.f32 %v20235_v16, %v13044_v22  ;;  %v20241_v12 = vld [vmem:[#allocation87_spill] sm:$0xff] }
 0x262   :  { %20228 = vst [vmem:[#allocation67_spill] sm:$0xff] %v13611_v35  ;;  %v13623_v39 = vmul.f32 %v13306_v44, %v20233_v36  ;;  %v20239_v35 = vsub.f32 %v20238_v26, %v13044_v22  ;;  %v20244_v36 = vsub.f32 %v20097_v62, %v13044_v22 }
 0x263   :  { %20231 = vst [vmem:[#allocation69_spill] sm:$0xff] %v13617_v15  ;;  %v13629_v2 = vmul.f32 %v13306_v44, %v20236_v57  ;;  %v20242_v15 = vsub.f32 %v20241_v12, %v13044_v22  ;;  %v20246_v57 = vld [vmem:[#allocation95_spill] sm:$0xff] }
 0x264   :  { %20234 = vst [vmem:[#allocation75_spill] sm:$0xff] %v13623_v39  ;;  %v13635_v7 = vmul.f32 %v13306_v44, %v20239_v35  ;;  %v13647_v16 = vmul.f32 %v13306_v44, %v20244_v36  ;;  %v20249_v35 = vld [vmem:[#allocation97_spill] sm:$0xff]  ;;  %v20255_v36 = vld [vmem:[#allocation96_spill] sm:$0xff] }
 0x265   :  { %20237 = vst [vmem:[#allocation77_spill] sm:$0xff] %v13629_v2  ;;  %v13641_v38 = vmul.f32 %v13306_v44, %v20242_v15  ;;  %v20247_v2 = vsub.f32 %v20246_v57, %v13044_v22  ;;  %v20252_v15 = vld [vmem:[#allocation93_spill] sm:$0xff] }
 0x266   :  { %20240 = vst [vmem:[#allocation73_spill] sm:$0xff] %v13635_v7  ;;  %20245 = vst [vmem:[#allocation87_spill] sm:$0xff] %v13647_v16  ;;  %v20250_v7 = vsub.f32 %v20249_v35, %v13044_v22  ;;  %v20256_v16 = vsub.f32 %v20255_v36, %v13044_v22 }
 0x267   :  { %20243 = vst [vmem:[#allocation91_spill] sm:$0xff] %v13641_v38  ;;  %v13653_v26 = vmul.f32 %v13306_v44, %v20247_v2  ;;  %v20253_v38 = vsub.f32 %v20252_v15, %v13044_v22  ;;  %v20258_v2 = vld [vmem:[#allocation101_spill] sm:$0xff] }
 0x268   :  { %v13659_v12 = vmul.f32 %v13306_v44, %v20250_v7  ;;  %v13671_v57 = vmul.f32 %v13306_v44, %v20256_v16  ;;  %v13679_v7 = vpop.permute.xlu0 %1720  ;;  %v20378_v47 = vld [vmem:[#allocation71_spill] sm:$0xff] }
 0x269   :  { %20248 = vst [vmem:[#allocation95_spill] sm:$0xff] %v13653_v26  ;;  %v13665_v62 = vmul.f32 %v13306_v44, %v20253_v38  ;;  %v20259_v26 = vsub.f32 %v20258_v2, %v13044_v22 }
 0x26a   :  { %20251 = vst [vmem:[#allocation97_spill] sm:$0xff] %v13659_v12  ;;  %20257 = vst [vmem:[#allocation96_spill] sm:$0xff] %v13671_v57  ;;  %v20261_v12 = vld [vmem:[#allocation104_spill] sm:$0xff]  ;;  %v20267_v57 = vld [vmem:[#allocation103_spill] sm:$0xff] }
 0x26b   :  { %20254 = vst [vmem:[#allocation93_spill] sm:$0xff] %v13665_v62  ;;  %v13677_v35 = vmul.f32 %v13306_v44, %v20259_v26  ;;  %v20262_v15 = vsub.f32 %v20261_v12, %v13044_v22  ;;  %v20264_v62 = vld [vmem:[#allocation100_spill] sm:$0xff]  ;;  %v20268_v2 = vsub.f32 %v20267_v57, %v13044_v22 }
 0x26c   :  { %v20265_v36 = vsub.f32 %v20264_v62, %v13044_v22 }
 0x26d   :  { %20260 = vst [vmem:[#allocation101_spill] sm:$0xff] %v13677_v35  ;;  %v13685_v38 = vmul.f32 %v13306_v44, %v20262_v15  ;;  %v13697_v26 = vmul.f32 %v13306_v44, %v20268_v2  ;;  %v20270_v35 = vld [vmem:[#allocation108_spill] sm:$0xff]  ;;  %v20273_v15 = vld [vmem:[#allocation111_spill] sm:$0xff]  ;;  %v20279_v2 = vld [vmem:[#allocation109_spill] sm:$0xff] }
 0x26e   :  { %v13691_v16 = vmul.f32 %v13306_v44, %v20265_v36  ;;  %v20271_v39 = vsub.f32 %v20270_v35, %v13044_v22  ;;  %v20276_v36 = vld [vmem:[#allocation107_spill] sm:$0xff] }
 0x26f   :  { %20263 = vst [vmem:[#allocation104_spill] sm:$0xff] %v13685_v38  ;;  %20269 = vst [vmem:[#allocation103_spill] sm:$0xff] %v13697_v26  ;;  %v20274_v38 = vsub.f32 %v20273_v15, %v13044_v22  ;;  %v20280_v26 = vsub.f32 %v20279_v2, %v13044_v22 }
 0x270   :  { %20266 = vst [vmem:[#allocation100_spill] sm:$0xff] %v13691_v16  ;;  %v13703_v12 = vmul.f32 %v13306_v44, %v20271_v39  ;;  %v20277_v16 = vsub.f32 %v20276_v36, %v13044_v22  ;;  %v20282_v39 = vld [vmem:[#allocation115_spill] sm:$0xff] }
 0x271   :  { %v13709_v62 = vmul.f32 %v13306_v44, %v20274_v38  ;;  %v13721_v35 = vmul.f32 %v13306_v44, %v20280_v26  ;;  %v20285_v38 = vld [vmem:[#allocation117_spill] sm:$0xff]  ;;  %v20291_v26 = vld [vmem:[#allocation116_spill] sm:$0xff] }
 0x272   :  { %20272 = vst [vmem:[#allocation108_spill] sm:$0xff] %v13703_v12  ;;  %v13715_v57 = vmul.f32 %v13306_v44, %v20277_v16  ;;  %v20283_v12 = vsub.f32 %v20282_v39, %v13044_v22  ;;  %v20288_v16 = vld [vmem:[#allocation113_spill] sm:$0xff] }
 0x273   :  { %20275 = vst [vmem:[#allocation111_spill] sm:$0xff] %v13709_v62  ;;  %20281 = vst [vmem:[#allocation109_spill] sm:$0xff] %v13721_v35  ;;  %v20286_v62 = vsub.f32 %v20285_v38, %v13044_v22  ;;  %v20292_v35 = vsub.f32 %v20291_v26, %v13044_v22 }
 0x274   :  { %20278 = vst [vmem:[#allocation107_spill] sm:$0xff] %v13715_v57  ;;  %v13727_v15 = vmul.f32 %v13306_v44, %v20283_v12  ;;  %v20289_v57 = vsub.f32 %v20288_v16, %v13044_v22  ;;  %v20294_v12 = vld [vmem:[#allocation121_spill] sm:$0xff] }
 0x275   :  { %v13733_v36 = vmul.f32 %v13306_v44, %v20286_v62  ;;  %v13745_v39 = vmul.f32 %v13306_v44, %v20292_v35  ;;  %v20297_v62 = vld [vmem:[#allocation124_spill] sm:$0xff]  ;;  %v20303_v35 = vld [vmem:[#allocation123_spill] sm:$0xff] }
 0x276   :  { %20284 = vst [vmem:[#allocation115_spill] sm:$0xff] %v13727_v15  ;;  %v13739_v2 = vmul.f32 %v13306_v44, %v20289_v57  ;;  %v20295_v15 = vsub.f32 %v20294_v12, %v13044_v22  ;;  %v20300_v57 = vld [vmem:[#allocation120_spill] sm:$0xff] }
 0x277   :  { %20287 = vst [vmem:[#allocation117_spill] sm:$0xff] %v13733_v36  ;;  %20293 = vst [vmem:[#allocation116_spill] sm:$0xff] %v13745_v39  ;;  %v20298_v36 = vsub.f32 %v20297_v62, %v13044_v22  ;;  %v20304_v39 = vsub.f32 %v20303_v35, %v13044_v22 }
 0x278   :  { %20290 = vst [vmem:[#allocation113_spill] sm:$0xff] %v13739_v2  ;;  %v13751_v38 = vmul.f32 %v13306_v44, %v20295_v15  ;;  %v20301_v2 = vsub.f32 %v20300_v57, %v13044_v22  ;;  %v20306_v15 = vld [vmem:[#allocation128_spill] sm:$0xff] }
 0x279   :  { %v13757_v16 = vmul.f32 %v13306_v44, %v20298_v36  ;;  %v13769_v12 = vmul.f32 %v13306_v44, %v20304_v39  ;;  %v20309_v36 = vld [vmem:[#allocation131_spill] sm:$0xff]  ;;  %v20315_v39 = vld [vmem:[#allocation129_spill] sm:$0xff] }
 0x27a   :  { %20296 = vst [vmem:[#allocation121_spill] sm:$0xff] %v13751_v38  ;;  %v13763_v26 = vmul.f32 %v13306_v44, %v20301_v2  ;;  %v20307_v38 = vsub.f32 %v20306_v15, %v13044_v22  ;;  %v20312_v2 = vld [vmem:[#allocation127_spill] sm:$0xff] }
 0x27b   :  { %20299 = vst [vmem:[#allocation124_spill] sm:$0xff] %v13757_v16  ;;  %20305 = vst [vmem:[#allocation123_spill] sm:$0xff] %v13769_v12  ;;  %v20310_v16 = vsub.f32 %v20309_v36, %v13044_v22  ;;  %v20316_v12 = vsub.f32 %v20315_v39, %v13044_v22 }
 0x27c   :  { %20302 = vst [vmem:[#allocation120_spill] sm:$0xff] %v13763_v26  ;;  %v13775_v62 = vmul.f32 %v13306_v44, %v20307_v38  ;;  %v20313_v26 = vsub.f32 %v20312_v2, %v13044_v22  ;;  %v20318_v38 = vld [vmem:[#allocation135_spill] sm:$0xff] }
 0x27d   :  { %v13781_v57 = vmul.f32 %v13306_v44, %v20310_v16  ;;  %v13793_v15 = vmul.f32 %v13306_v44, %v20316_v12  ;;  %v20321_v16 = vld [vmem:[#allocation137_spill] sm:$0xff]  ;;  %v20327_v12 = vld [vmem:[#allocation136_spill] sm:$0xff] }
 0x27e   :  { %20308 = vst [vmem:[#allocation128_spill] sm:$0xff] %v13775_v62  ;;  %v13787_v35 = vmul.f32 %v13306_v44, %v20313_v26  ;;  %v20319_v62 = vsub.f32 %v20318_v38, %v13044_v22  ;;  %v20324_v26 = vld [vmem:[#allocation133_spill] sm:$0xff] }
 0x27f   :  { %20311 = vst [vmem:[#allocation131_spill] sm:$0xff] %v13781_v57  ;;  %20317 = vst [vmem:[#allocation129_spill] sm:$0xff] %v13793_v15  ;;  %v20322_v57 = vsub.f32 %v20321_v16, %v13044_v22  ;;  %v20328_v15 = vsub.f32 %v20327_v12, %v13044_v22 }
 0x280   :  { %20314 = vst [vmem:[#allocation127_spill] sm:$0xff] %v13787_v35  ;;  %v13799_v36 = vmul.f32 %v13306_v44, %v20319_v62  ;;  %v20325_v35 = vsub.f32 %v20324_v26, %v13044_v22  ;;  %v20330_v62 = vld [vmem:[#allocation141_spill] sm:$0xff] }
 0x281   :  { %v13805_v2 = vmul.f32 %v13306_v44, %v20322_v57  ;;  %v13817_v38 = vmul.f32 %v13306_v44, %v20328_v15  ;;  %v13825_v57 = vpop.permute.xlu0 %1750 }
 0x282   :  { %20320 = vst [vmem:[#allocation135_spill] sm:$0xff] %v13799_v36  ;;  %v13811_v39 = vmul.f32 %v13306_v44, %v20325_v35  ;;  %v20331_v36 = vsub.f32 %v20330_v62, %v13044_v22  ;;  %20332 = vst [vmem:[#allocation141_spill] sm:$0xff] %v13825_v57  ;;  %v20339_v62 = vsub.f32 %v20133_v0, %v13044_v22 }
 0x283   :  { %20323 = vst [vmem:[#allocation137_spill] sm:$0xff] %v13805_v2  ;;  %20329 = vst [vmem:[#allocation136_spill] sm:$0xff] %v13817_v38  ;;  %v20333_v2 = vld [vmem:[#allocation144_spill] sm:$0xff]  ;;  %v20341_v57 = vsub.f32 %v20134_v46, %v13044_v22 }
 0x284   :  { %20326 = vst [vmem:[#allocation133_spill] sm:$0xff] %v13811_v39  ;;  %v13823_v16 = vmul.f32 %v13306_v44, %v20331_v36  ;;  %v20334_v26 = vsub.f32 %v20333_v2, %v13044_v22  ;;  %v20336_v39 = vld [vmem:[#allocation140_spill] sm:$0xff]  ;;  %v13843_v36 = vmul.f32 %v13306_v44, %v20339_v62  ;;  %v20349_v62 = vld [vmem:[#allocation149_spill] sm:$0xff] }
 0x285   :  { %v20337_v12 = vsub.f32 %v20336_v39, %v13044_v22  ;;  %v13849_v2 = vmul.f32 %v13306_v44, %v20341_v57  ;;  %v20352_v57 = vld [vmem:[#allocation155_spill] sm:$0xff] }
 0x286   :  { %v13831_v35 = vmul.f32 %v13306_v44, %v20334_v26  ;;  %20340 = vst [vmem:[#allocation202_spill] sm:$0xff] %v13843_v36  ;;  %v20343_v26 = vld [vmem:[#allocation151_spill] sm:$0xff]  ;;  %v20350_v36 = vsub.f32 %v20349_v62, %v13044_v22 }
 0x287   :  { %v13837_v15 = vmul.f32 %v13306_v44, %v20337_v12  ;;  %20342 = vst [vmem:[#allocation203_spill] sm:$0xff] %v13849_v2  ;;  %v20346_v12 = vld [vmem:[#allocation147_spill] sm:$0xff]  ;;  %v20353_v2 = vsub.f32 %v20352_v57, %v13044_v22 }
 0x288   :  { %20335 = vst [vmem:[#allocation144_spill] sm:$0xff] %v13831_v35  ;;  %v20344_v35 = vsub.f32 %v20343_v26, %v13044_v22  ;;  %v13867_v46 = vmul.f32 %v13306_v44, %v20350_v36  ;;  %v20361_v36 = vsub.f32 %v20141_v23, %v13044_v22 }
 0x289   :  { %20338 = vst [vmem:[#allocation140_spill] sm:$0xff] %v13837_v15  ;;  %v20347_v15 = vsub.f32 %v20346_v12, %v13044_v22  ;;  %v13873_v26 = vmul.f32 %v13306_v44, %v20353_v2  ;;  %v20363_v2 = vld [vmem:[#allocation161_spill] sm:$0xff] }
 0x28a   :  { %v13855_v39 = vmul.f32 %v13306_v44, %v20344_v35  ;;  %20351 = vst [vmem:[#allocation149_spill] sm:$0xff] %v13867_v46  ;;  %v20355_v35 = vld [vmem:[#allocation157_spill] sm:$0xff]  ;;  %v13891_v57 = vmul.f32 %v13306_v44, %v20361_v36  ;;  %v20371_v36 = vsub.f32 %v20146_v27, %v13044_v22  ;;  %v1479_v27 = vmax.f32 %v13593_v56, 0.0 }
 0x28b   :  { %v13861_v0 = vmul.f32 %v13306_v44, %v20347_v15  ;;  %20354 = vst [vmem:[#allocation155_spill] sm:$0xff] %v13873_v26  ;;  %v20358_v15 = vld [vmem:[#allocation153_spill] sm:$0xff]  ;;  %v20364_v26 = vsub.f32 %v20363_v2, %v13044_v22  ;;  %v20430_v56 = vmax.f32 %v13366_v5, 0.0 }
 0x28c   :  { %20345 = vst [vmem:[#allocation151_spill] sm:$0xff] %v13855_v39  ;;  %v20356_v39 = vsub.f32 %v20355_v35, %v13044_v22  ;;  %20362 = vst [vmem:[#allocation204_spill] sm:$0xff] %v13891_v57  ;;  %v13915_v2 = vmul.f32 %v13306_v44, %v20371_v36  ;;  %v20417_v11 = vld [vmem:[#allocation137_spill] sm:$0xff] }
 0x28d   :  { %20348 = vst [vmem:[#allocation147_spill] sm:$0xff] %v13861_v0  ;;  %v20359_v0 = vsub.f32 %v20358_v15, %v13044_v22  ;;  %v13897_v35 = vmul.f32 %v13306_v44, %v20364_v26  ;;  %v20373_v26 = vld [vmem:[#allocation168_spill] sm:$0xff] }
 0x28e   :  { %v13879_v12 = vmul.f32 %v13306_v44, %v20356_v39  ;;  %v20366_v39 = vld [vmem:[#allocation164_spill] sm:$0xff]  ;;  %20372 = vst [vmem:[#allocation206_spill] sm:$0xff] %v13915_v2  ;;  %v20446_v2 = vld [vmem:[#allocation119_spill] sm:$0xff] }
 0x28f   :  { %v13885_v62 = vmul.f32 %v13306_v44, %v20359_v0  ;;  %20365 = vst [vmem:[#allocation161_spill] sm:$0xff] %v13897_v35  ;;  %v20369_v0 = vsub.f32 %v20145_v34, %v13044_v22  ;;  %v20374_v35 = vsub.f32 %v20373_v26, %v13044_v22  ;;  %v13931_v26 = vpop.permute.xlu0 %1780  ;;  %v1470_v34 = vmax.f32 %v13539_v1, 0.0  ;;  %v20419_v51 = vld [vmem:[#allocation144_spill] sm:$0xff] }
 0x290   :  { %20357 = vst [vmem:[#allocation157_spill] sm:$0xff] %v13879_v12  ;;  %v20367_v12 = vsub.f32 %v20366_v39, %v13044_v22  ;;  %20375 = vst [vmem:[#allocation168_spill] sm:$0xff] %v13931_v26  ;;  %v20420_v45 = vld [vmem:[#allocation140_spill] sm:$0xff] }
 0x291   :  { %20360 = vst [vmem:[#allocation153_spill] sm:$0xff] %v13885_v62  ;;  %v13909_v23 = vmul.f32 %v13306_v44, %v20369_v0  ;;  %v13921_v39 = vmul.f32 %v13306_v44, %v20374_v35  ;;  %v13975_v35 = vmul.f32 %v13679_v7, %v1470_v34  ;;  %v1826_v62 = vpop.permute.xlu1 %1825 }
 0x292   :  { %v13903_v15 = vmul.f32 %v13306_v44, %v20367_v12 }
 0x293   :  { %20370 = vst [vmem:[#allocation205_spill] sm:$0xff] %v13909_v23  ;;  %v13957_v24 = vpop.permute.xlu0 %1840  ;;  %20379 = vst [vmem:[#allocation71_spill] sm:$0xff] %v13975_v35  ;;  %v20411_v35 = vld [vmem:[#allocation123_spill] sm:$0xff] }
 0x294   :  { %20368 = vst [vmem:[#allocation164_spill] sm:$0xff] %v13903_v15  ;;  %20376 = vst [vmem:[#allocation207_spill] sm:$0xff] %v13957_v24  ;;  %v20392_v15 = vld [vmem:[#allocation80_spill] sm:$0xff]  ;;  %v20423_v12 = vld [vmem:[#allocation151_spill] sm:$0xff] }
 0x295   :  { %v13991_v55 = vmul.f32 %v20392_v15, %v1479_v27  ;;  %v20409_v24 = vld [vmem:[#allocation88_spill] sm:$0xff]  ;;  %v20424_v36 = vld [vmem:[#allocation147_spill] sm:$0xff]  ;;  %v20428_v27 = vld [vmem:[#allocation125_spill] sm:$0xff] }
 0x296   :  { %v20410_v1 = vsub.f32 %v20409_v24, %v13044_v22  ;;  %v20427_v22 = vmax.f32 %v13360_v28, 0.0  ;;  %v20433_v6 = vld [vmem:[#allocation161_spill] sm:$0xff]  ;;  %v20491_v28 = vld [vmem:[#allocation150_spill] sm:$0xff] }
 0x297   :  { %v13985_v26 = vpop.permute.xlu0 %1870  ;;  %20393 = vst [vmem:[#allocation80_spill] sm:$0xff] %v13991_v55  ;;  %v20422_v55 = vld [vmem:[#allocation203_spill] sm:$0xff] }
 0x298   :  { %20388 = vst [vmem:[#allocation208_spill] sm:$0xff] %v13985_v26  ;;  %v20399_v26 = vld [vmem:[#allocation111_spill] sm:$0xff]  ;;  %v1383_v7 = vmul.f32 %v13306_v44, %v20410_v1  ;;  %v14036_v15 = vmul.f32 %v20428_v27, %v20427_v22  ;;  %v20438_v22 = vmax.f32 %v13322_v42, 0.0  ;;  %v20445_v1 = vmax.f32 %v13340_v3, 0.0 }
 0x299   :  { %v20441_v27 = vld [vmem:[#allocation187_spill] sm:$0xff]  ;;  %v20454_v3 = vmax.f32 %v13378_v41, 0.0  ;;  %v20465_v41 = vld [vmem:[#allocation134_spill] sm:$0xff] }
 0x29a   :  { %v1491_v4 = vmax.f32 %v1383_v7, 0.0  ;;  %20429 = vst [vmem:[#allocation111_spill] sm:$0xff] %v14036_v15  ;;  %v20431_v7 = vld [vmem:[#allocation78_spill] sm:$0xff]  ;;  %v20435_v34 = vld [vmem:[#allocation205_spill] sm:$0xff]  ;;  %v14066_v24 = vmul.f32 %v20446_v2, %v20445_v1 }
 0x29b   :  { %v1546_v23 = vpop.permute.xlu0 %1545  ;;  %v14041_v0 = vmul.f32 %v20431_v7, %v20430_v56  ;;  %v20434_v46 = vld [vmem:[#allocation164_spill] sm:$0xff]  ;;  %v20440_v56 = vmax.f32 %v13328_v19, 0.0  ;;  %v20450_v19 = vld [vmem:[#allocation163_spill] sm:$0xff]  ;;  %v20458_v1 = vld [vmem:[#allocation82_spill] sm:$0xff] }
 0x29c   :  { %v14048_v57 = vmul.f32 %v1826_v62, %v1491_v4  ;;  %v14052_v5 = vmul.f32 %v1546_v23, %v20438_v22  ;;  %v20447_v4 = vmax.f32 %v13346_v49, 0.0  ;;  %v20448_v62 = vld [vmem:[#allocation72_spill] sm:$0xff]  ;;  %v20449_v23 = vmax.f32 %v13354_v8, 0.0 }
 0x29d   :  { %20432 = vst [vmem:[#allocation88_spill] sm:$0xff] %v14041_v0  ;;  %v14057_v7 = vmul.f32 %v20441_v27, %v20440_v56  ;;  %v20451_v56 = vmax.f32 %v13372_v50, 0.0  ;;  %v20457_v49 = vmax.f32 %v13384_v63, 0.0  ;;  %v14095_v8 = vpack.c.bf16 %v14041_v0, %v14036_v15  ;;  %v20462_v50 = vld [vmem:[#allocation189_spill] sm:$0xff]  ;;  %v20468_v63 = vld [vmem:[#allocation86_spill] sm:$0xff] }
 0x29e   :  { %20437 = vst [vmem:[#allocation123_spill] sm:$0xff] %v14048_v57  ;;  %20439 = vst [vmem:[#allocation137_spill] sm:$0xff] %v14052_v5  ;;  %v14071_v42 = vmul.f32 %v20448_v62, %v20447_v4  ;;  %v14076_v22 = vmul.f32 %v20450_v19, %v20449_v23  ;;  %v20461_v4 = vmax.f32 %v13390_v54, 0.0  ;;  %v20464_v23 = vmax.f32 %v13398_v53, 0.0  ;;  %v20484_v54 = vld [vmem:[#allocation98_spill] sm:$0xff] }
 0x29f   :  { %v1556_v44 = vpop.permute.xlu0 %1555  ;;  %20442 = vst [vmem:[#allocation144_spill] sm:$0xff] %v14057_v7  ;;  %v14091_v27 = vmul.f32 %v20458_v1, %v20457_v49  ;;  %20460 = vst [vmem:[#allocation125_spill] sm:$0xff] %v14095_v8  ;;  %v20473_v1 = vmax.f32 %v13416_v61, 0.0  ;;  %v20475_v53 = vmax.f32 %v13422_v40, 0.0  ;;  %v20483_v61 = vmax.f32 %v13440_v58, 0.0  ;;  %v20531_v8 = vld [vmem:[#allocation122_spill] sm:$0xff] }
 0x2a0   :  { %v14061_v38 = vmul.f32 %v1556_v44, %v20443_v25  ;;  %v14081_v44 = vmul.f32 %v20452_v59, %v20451_v56  ;;  %v20455_v25 = vld [vmem:[#allocation130_spill] sm:$0xff]  ;;  %v14100_v62 = vmul.f32 %v20462_v50, %v20461_v4  ;;  %v14105_v19 = vmul.f32 %v20465_v41, %v20464_v23  ;;  %v20474_v4 = vld [vmem:[#allocation139_spill] sm:$0xff]  ;;  %v20476_v23 = vld [vmem:[#allocation92_spill] sm:$0xff] }
 0x2a1   :  { %v14086_v2 = vmul.f32 %v20455_v25, %v20454_v3  ;;  %20459 = vst [vmem:[#allocation147_spill] sm:$0xff] %v14091_v27  ;;  %v20467_v56 = vmax.f32 %v13404_v18, 0.0  ;;  %v20470_v3 = vmax.f32 %v13410_v13, 0.0  ;;  %v20471_v25 = vld [vmem:[#allocation174_spill] sm:$0xff]  ;;  %v14121_v50 = vmul.f32 %v20474_v4, %v20473_v1  ;;  %v20487_v4 = vld [vmem:[#allocation176_spill] sm:$0xff] }
 0x2a2   :  { %20444 = vst [vmem:[#allocation140_spill] sm:$0xff] %v14061_v38  ;;  %20453 = vst [vmem:[#allocation203_spill] sm:$0xff] %v14081_v44  ;;  %v14126_v41 = vmul.f32 %v20476_v23, %v20475_v53  ;;  %v20477_v18 = vmax.f32 %v13428_v14, 0.0  ;;  %v20480_v13 = vmax.f32 %v13434_v32, 0.0  ;;  %v14141_v1 = vmul.f32 %v20484_v54, %v20483_v61  ;;  %v20489_v23 = vld [vmem:[#allocation194_spill] sm:$0xff] }
 0x2a3   :  { %20456 = vst [vmem:[#allocation151_spill] sm:$0xff] %v14086_v2  ;;  %20463 = vst [vmem:[#allocation78_spill] sm:$0xff] %v14100_v62  ;;  %v14110_v59 = vmul.f32 %v20468_v63, %v20467_v56  ;;  %v14115_v49 = vmul.f32 %v20471_v25, %v20470_v3  ;;  %v20478_v56 = vld [vmem:[#allocation191_spill] sm:$0xff]  ;;  %v20481_v3 = vld [vmem:[#allocation145_spill] sm:$0xff]  ;;  %v20486_v40 = vmax.f32 %v13447_v21, 0.0  ;;  %v20490_v14 = vmax.f32 %v20489_v23, 0.0 }
 0x2a4   :  { %20466 = vst [vmem:[#allocation161_spill] sm:$0xff] %v14105_v19  ;;  %v14131_v63 = vmul.f32 %v20478_v56, %v20477_v18  ;;  %v14136_v25 = vmul.f32 %v20481_v3, %v20480_v13  ;;  %20485 = vst [vmem:[#allocation72_spill] sm:$0xff] %v14141_v1  ;;  %v20493_v32 = vmax.f32 %v13459_v33, 0.0  ;;  %v20494_v56 = vld [vmem:[#allocation102_spill] sm:$0xff]  ;;  %v20496_v58 = vmax.f32 %v13465_v52, 0.0  ;;  %v20497_v3 = vld [vmem:[#allocation193_spill] sm:$0xff] }
 0x2a5   :  { %20469 = vst [vmem:[#allocation164_spill] sm:$0xff] %v14110_v59  ;;  %20472 = vst [vmem:[#allocation205_spill] sm:$0xff] %v14115_v49  ;;  %v14146_v53 = vmul.f32 %v20487_v4, %v20486_v40  ;;  %v14151_v18 = vmul.f32 %v20491_v28, %v20490_v14  ;;  %v20499_v21 = vmax.f32 %v13471_v10, 0.0  ;;  %v20500_v61 = vld [vmem:[#allocation154_spill] sm:$0xff]  ;;  %v20502_v4 = vmax.f32 %v13477_v43, 0.0  ;;  %v20506_v14 = vld [vmem:[#allocation179_spill] sm:$0xff] }
 0x2a6   :  { %20479 = vst [vmem:[#allocation187_spill] sm:$0xff] %v14131_v63  ;;  %20482 = vst [vmem:[#allocation119_spill] sm:$0xff] %v14136_v25  ;;  %v14156_v13 = vmul.f32 %v20494_v56, %v20493_v32  ;;  %v14161_v54 = vmul.f32 %v20497_v3, %v20496_v58  ;;  %v20503_v23 = vld [vmem:[#allocation106_spill] sm:$0xff]  ;;  %v20505_v33 = vmax.f32 %v13483_v37, 0.0  ;;  %v20508_v52 = vmax.f32 %v13489_v9, 0.0  ;;  %v20509_v56 = vld [vmem:[#allocation159_spill] sm:$0xff] }
 0x2a7   :  { %20488 = vst [vmem:[#allocation163_spill] sm:$0xff] %v14146_v53  ;;  %20492 = vst [vmem:[#allocation172_spill] sm:$0xff] %v14151_v18  ;;  %v14166_v40 = vmul.f32 %v20500_v61, %v20499_v21  ;;  %v14171_v28 = vmul.f32 %v20503_v23, %v20502_v4  ;;  %v20511_v10 = vmax.f32 %v13495_v29, 0.0  ;;  %v20512_v3 = vld [vmem:[#allocation112_spill] sm:$0xff]  ;;  %v20514_v43 = vmax.f32 %v13501_v48, 0.0  ;;  %v20518_v23 = vld [vmem:[#allocation165_spill] sm:$0xff] }
 0x2a8   :  { %20495 = vst [vmem:[#allocation130_spill] sm:$0xff] %v14156_v13  ;;  %20498 = vst [vmem:[#allocation82_spill] sm:$0xff] %v14161_v54  ;;  %v14176_v32 = vmul.f32 %v20506_v14, %v20505_v33  ;;  %v14181_v58 = vmul.f32 %v20509_v56, %v20508_v52  ;;  %v20515_v61 = vld [vmem:[#allocation196_spill] sm:$0xff]  ;;  %v20517_v37 = vmax.f32 %v13507_v60, 0.0  ;;  %v20520_v9 = vmax.f32 %v13513_v30, 0.0  ;;  %v20521_v14 = vld [vmem:[#allocation118_spill] sm:$0xff] }
 0x2a9   :  { %20501 = vst [vmem:[#allocation189_spill] sm:$0xff] %v14166_v40  ;;  %20504 = vst [vmem:[#allocation134_spill] sm:$0xff] %v14171_v28  ;;  %v14186_v21 = vmul.f32 %v20512_v3, %v20511_v10  ;;  %v14191_v4 = vmul.f32 %v20515_v61, %v20514_v43  ;;  %v20523_v29 = vmax.f32 %v13519_v17, 0.0  ;;  %v20524_v56 = vld [vmem:[#allocation181_spill] sm:$0xff]  ;;  %v20526_v48 = vmax.f32 %v13525_v31, 0.0  ;;  %v20527_v3 = vld [vmem:[#allocation170_spill] sm:$0xff] }
 0x2aa   :  { %20507 = vst [vmem:[#allocation86_spill] sm:$0xff] %v14176_v32  ;;  %20510 = vst [vmem:[#allocation174_spill] sm:$0xff] %v14181_v58  ;;  %v14196_v33 = vmul.f32 %v20518_v23, %v20517_v37  ;;  %v14201_v52 = vmul.f32 %v20521_v14, %v20520_v9  ;;  %v20529_v61 = vld [vmem:[#allocation195_spill] sm:$0xff]  ;;  %v20533_v30 = vmax.f32 %v13545_v20, 0.0  ;;  %v20534_v23 = vld [vmem:[#allocation173_spill] sm:$0xff] }
 0x2ab   :  { %20513 = vst [vmem:[#allocation139_spill] sm:$0xff] %v14186_v21  ;;  %20516 = vst [vmem:[#allocation92_spill] sm:$0xff] %v14191_v4  ;;  %v14206_v10 = vmul.f32 %v20524_v56, %v20523_v29  ;;  %v14211_v43 = vmul.f32 %v20527_v3, %v20526_v48  ;;  %v20530_v60 = vmax.f32 %v20529_v61, 0.0  ;;  %v20536_v14 = vld [vmem:[#allocation197_spill] sm:$0xff]  ;;  %v20538_v57 = vld [vmem:[#allocation126_spill] sm:$0xff] }
 0x2ac   :  { %20519 = vst [vmem:[#allocation191_spill] sm:$0xff] %v14196_v33  ;;  %20522 = vst [vmem:[#allocation145_spill] sm:$0xff] %v14201_v52  ;;  %v14221_v9 = vmul.f32 %v20534_v23, %v20533_v30  ;;  %v20537_v17 = vmax.f32 %v20536_v14, 0.0  ;;  %v20540_v56 = vld [vmem:[#allocation198_spill] sm:$0xff]  ;;  %v20544_v3 = vld [vmem:[#allocation199_spill] sm:$0xff] }
 0x2ad   :  { %20525 = vst [vmem:[#allocation98_spill] sm:$0xff] %v14206_v10  ;;  %20528 = vst [vmem:[#allocation176_spill] sm:$0xff] %v14211_v43  ;;  %v14216_v37 = vmul.f32 %v20531_v8, %v20530_v60  ;;  %v20541_v31 = vmax.f32 %v20540_v56, 0.0  ;;  %v20542_v10 = vld [vmem:[#allocation183_spill] sm:$0xff]  ;;  %v20545_v61 = vmax.f32 %v20544_v3, 0.0  ;;  %v20548_v60 = vld [vmem:[#allocation200_spill] sm:$0xff] }
 0x2ae   :  { %20535 = vst [vmem:[#allocation150_spill] sm:$0xff] %v14221_v9  ;;  %v14226_v29 = vmul.f32 %v20538_v57, %v20537_v17  ;;  %v20546_v43 = vld [vmem:[#allocation175_spill] sm:$0xff]  ;;  %v20549_v20 = vmax.f32 %v20548_v60, 0.0  ;;  %v20552_v23 = vld [vmem:[#allocation201_spill] sm:$0xff]  ;;  %v20556_v17 = vld [vmem:[#allocation62_spill] sm:$0xff] }
 0x2af   :  { %20532 = vst [vmem:[#allocation194_spill] sm:$0xff] %v14216_v37  ;;  %v14231_v48 = vmul.f32 %v20542_v10, %v20541_v31  ;;  %v14236_v8 = vmul.f32 %v20546_v43, %v20545_v61  ;;  %v20550_v37 = vld [vmem:[#allocation132_spill] sm:$0xff]  ;;  %v20553_v14 = vmax.f32 %v20552_v23, 0.0  ;;  %v20554_v9 = vld [vmem:[#allocation141_spill] sm:$0xff]  ;;  %v20557_v56 = vmax.f32 %v20556_v17, 0.0  ;;  %v14253_v31 = vld [vmem:[#allocation5] sm:$0xff]  }
 0x2b0   :  { %20539 = vst [vmem:[#allocation102_spill] sm:$0xff] %v14226_v29  ;;  %v14241_v30 = vmul.f32 %v20550_v37, %v20549_v20  ;;  %v20558_v29 = vld [vmem:[#allocation177_spill] sm:$0xff]  ;;  %20560 = vst [vmem:[#allocation112_spill] sm:$0xff] %v14253_v31  ;;  %v20561_v3 = vld [vmem:[#allocation64_spill] sm:$0xff]  ;;  %9721 = vmatprep.subr.bf16.mxu0 %v14253_v31 }
 0x2b1   :  { %20543 = vst [vmem:[#allocation193_spill] sm:$0xff] %v14231_v48  ;;  %20547 = vst [vmem:[#allocation154_spill] sm:$0xff] %v14236_v8  ;;  %v14246_v57 = vmul.f32 %v20554_v9, %v20553_v14  ;;  %v14251_v10 = vmul.f32 %v20558_v29, %v20557_v56  ;;  %v20562_v43 = vmax.f32 %v20561_v3, 0.0  ;;  %v20563_v61 = vld [vmem:[#allocation138_spill] sm:$0xff]  ;;  %v20565_v60 = vld [vmem:[#allocation68_spill] sm:$0xff]  ;;  %v20569_v9 = vmax.f32 %v20378_v47, 0.0 }
 0x2b2   :  { %20551 = vst [vmem:[#allocation106_spill] sm:$0xff] %v14241_v30  ;;  %v20566_v37 = vmax.f32 %v20565_v60, 0.0  ;;  %v20567_v20 = vld [vmem:[#allocation180_spill] sm:$0xff]  ;;  %v20570_v23 = vld [vmem:[#allocation142_spill] sm:$0xff]  ;;  %v20572_v17 = vld [vmem:[#allocation67_spill] sm:$0xff] }
 0x2b3   :  { %20555 = vst [vmem:[#allocation179_spill] sm:$0xff] %v14246_v57  ;;  %20559 = vst [vmem:[#allocation159_spill] sm:$0xff] %v14251_v10  ;;  %v14258_v8 = vmul.f32 %v20563_v61, %v20562_v43  ;;  %v14268_v14 = vmul.f32 %v20570_v23, %v20569_v9  ;;  %v20573_v29 = vmax.f32 %v20572_v17, 0.0  ;;  %v20574_v56 = vld [vmem:[#allocation168_spill] sm:$0xff]  ;;  %v20576_v57 = vld [vmem:[#allocation69_spill] sm:$0xff] }
 0x2b4   :  { %v14263_v30 = vmul.f32 %v20567_v20, %v20566_v37  ;;  %v20577_v3 = vmax.f32 %v20576_v57, 0.0  ;;  %v20578_v48 = vld [vmem:[#allocation182_spill] sm:$0xff]  ;;  %v20580_v61 = vld [vmem:[#allocation75_spill] sm:$0xff]  ;;  %v20584_v20 = vld [vmem:[#allocation77_spill] sm:$0xff] }
 0x2b5   :  { %20564 = vst [vmem:[#allocation196_spill] sm:$0xff] %v14258_v8  ;;  %20571 = vst [vmem:[#allocation118_spill] sm:$0xff] %v14268_v14  ;;  %v14273_v10 = vmul.f32 %v20574_v56, %v20573_v29  ;;  %v20581_v60 = vmax.f32 %v20580_v61, 0.0  ;;  %v20582_v8 = vld [vmem:[#allocation146_spill] sm:$0xff]  ;;  %v20585_v47 = vmax.f32 %v20584_v20, 0.0  ;;  %v20588_v23 = vld [vmem:[#allocation73_spill] sm:$0xff] }
 0x2b6   :  { %20568 = vst [vmem:[#allocation165_spill] sm:$0xff] %v14263_v30  ;;  %v14278_v43 = vmul.f32 %v20578_v48, %v20577_v3  ;;  %v20586_v30 = vld [vmem:[#allocation186_spill] sm:$0xff]  ;;  %v20589_v17 = vmax.f32 %v20588_v23, 0.0  ;;  %v20590_v14 = vld [vmem:[#allocation184_spill] sm:$0xff]  ;;  %v20592_v57 = vld [vmem:[#allocation91_spill] sm:$0xff] }
 0x2b7   :  { %20575 = vst [vmem:[#allocation181_spill] sm:$0xff] %v14273_v10  ;;  %v14283_v37 = vmul.f32 %v20582_v8, %v20581_v60  ;;  %v14288_v9 = vmul.f32 %v20586_v30, %v20585_v47  ;;  %v20593_v48 = vmax.f32 %v20592_v57, 0.0  ;;  %v20594_v56 = vld [vmem:[#allocation152_spill] sm:$0xff]  ;;  %v20596_v61 = vld [vmem:[#allocation87_spill] sm:$0xff]  ;;  %v20602_v47 = vld [vmem:[#allocation89_spill] sm:$0xff] }
 0x2b8   :  { %20579 = vst [vmem:[#allocation170_spill] sm:$0xff] %v14278_v43  ;;  %v14293_v29 = vmul.f32 %v20590_v14, %v20589_v17  ;;  %v20597_v8 = vmax.f32 %v20596_v61, 0.0  ;;  %v20598_v60 = vld [vmem:[#allocation207_spill] sm:$0xff]  ;;  %v20604_v23 = vld [vmem:[#allocation97_spill] sm:$0xff]  ;;  %v20606_v17 = vld [vmem:[#allocation158_spill] sm:$0xff] }
 0x2b9   :  { %20583 = vst [vmem:[#allocation195_spill] sm:$0xff] %v14283_v37  ;;  %20587 = vst [vmem:[#allocation122_spill] sm:$0xff] %v14288_v9  ;;  %v14299_v3 = vmul.f32 %v20594_v56, %v20593_v48  ;;  %v20600_v20 = vld [vmem:[#allocation95_spill] sm:$0xff]  ;;  %v20605_v14 = vmax.f32 %v20604_v23, 0.0  ;;  %v20608_v31 = vld [vmem:[#allocation93_spill] sm:$0xff] }
 0x2ba   :  { %20591 = vst [vmem:[#allocation173_spill] sm:$0xff] %v14293_v29  ;;  %v14304_v37 = vmul.f32 %v20598_v60, %v20597_v8  ;;  %v20601_v30 = vmax.f32 %v20600_v20, 0.0  ;;  %v20609_v57 = vmax.f32 %v20608_v31, 0.0  ;;  %v20610_v29 = vld [vmem:[#allocation148_spill] sm:$0xff]  ;;  %v20616_v60 = vld [vmem:[#allocation101_spill] sm:$0xff]  ;;  %v20649_v10 = vld [vmem:[#allocation46_spill] sm:$0xff] }
 0x2bb   :  { %20595 = vst [vmem:[#allocation197_spill] sm:$0xff] %v14299_v3  ;;  %v14314_v43 = vmul.f32 %v20606_v17, %v20605_v14  ;;  %v20612_v56 = vld [vmem:[#allocation96_spill] sm:$0xff]  ;;  %v20614_v3 = vld [vmem:[#allocation143_spill] sm:$0xff]  ;;  %v20617_v20 = vmax.f32 %v20616_v60, 0.0  ;;  %v20765_v58 = vld [vmem:[#allocation194_spill] sm:$0xff] }
 0x2bc   :  { %20599 = vst [vmem:[#allocation126_spill] sm:$0xff] %v14304_v37  ;;  %v14309_v9 = vmul.f32 %v20602_v47, %v20601_v30  ;;  %v14319_v48 = vmul.f32 %v20610_v29, %v20609_v57  ;;  %v20613_v61 = vmax.f32 %v20612_v56, 0.0  ;;  %v20618_v37 = vld [vmem:[#allocation162_spill] sm:$0xff]  ;;  %v20620_v47 = vld [vmem:[#allocation104_spill] sm:$0xff]  ;;  %v20628_v57 = vld [vmem:[#allocation103_spill] sm:$0xff] }
 0x2bd   :  { %20607 = vst [vmem:[#allocation183_spill] sm:$0xff] %v14314_v43  ;;  %v14329_v30 = vmul.f32 %v20618_v37, %v20617_v20  ;;  %v20621_v23 = vmax.f32 %v20620_v47, 0.0  ;;  %v20624_v17 = vld [vmem:[#allocation100_spill] sm:$0xff]  ;;  %v20629_v56 = vmax.f32 %v20628_v57, 0.0  ;;  %v20636_v20 = vmax.f32 %v20399_v26, 0.0  ;;  %v20637_v47 = vld [vmem:[#allocation41_spill] sm:$0xff] }
 0x2be   :  { %20603 = vst [vmem:[#allocation198_spill] sm:$0xff] %v14309_v9  ;;  %20611 = vst [vmem:[#allocation199_spill] sm:$0xff] %v14319_v48  ;;  %v14324_v8 = vmul.f32 %v20614_v3, %v20613_v61  ;;  %v20622_v9 = vld [vmem:[#allocation208_spill] sm:$0xff]  ;;  %v20625_v31 = vmax.f32 %v20624_v17, 0.0  ;;  %v20630_v48 = vld [vmem:[#allocation42_spill] sm:$0xff] }
 0x2bf   :  { %20619 = vst [vmem:[#allocation200_spill] sm:$0xff] %v14329_v30  ;;  %v14334_v14 = vmul.f32 %v20622_v9, %v20621_v23  ;;  %v20626_v43 = vld [vmem:[#allocation40_spill] sm:$0xff]  ;;  %v14344_v3 = vmul.f32 %v20630_v48, %v20629_v56  ;;  %v14354_v9 = vmul.f32 %v20637_v47, %v20636_v20  ;;  %v20639_v23 = vld [vmem:[#allocation107_spill] sm:$0xff]  ;;  %v20655_v47 = vld [vmem:[#allocation113_spill] sm:$0xff] }
 0x2c0   :  { %20615 = vst [vmem:[#allocation175_spill] sm:$0xff] %v14324_v8  ;;  %v14339_v29 = vmul.f32 %v20626_v43, %v20625_v31  ;;  %v20632_v61 = vld [vmem:[#allocation108_spill] sm:$0xff]  ;;  %v20634_v8 = vld [vmem:[#allocation39_spill] sm:$0xff]  ;;  %v20640_v17 = vmax.f32 %v20639_v23, 0.0  ;;  %v20643_v31 = vld [vmem:[#allocation109_spill] sm:$0xff]  ;;  %v20656_v23 = vmax.f32 %v20655_v47, 0.0 }
 0x2c1   :  { %20623 = vst [vmem:[#allocation132_spill] sm:$0xff] %v14334_v14  ;;  %20631 = vst [vmem:[#allocation141_spill] sm:$0xff] %v14344_v3  ;;  %v20633_v60 = vmax.f32 %v20632_v61, 0.0  ;;  %v20641_v14 = vld [vmem:[#allocation44_spill] sm:$0xff]  ;;  %v20644_v57 = vmax.f32 %v20643_v31, 0.0  ;;  %v20645_v30 = vld [vmem:[#allocation43_spill] sm:$0xff] }
 0x2c2   :  { %20627 = vst [vmem:[#allocation201_spill] sm:$0xff] %v14339_v29  ;;  %20638 = vst [vmem:[#allocation177_spill] sm:$0xff] %v14354_v9  ;;  %v14359_v43 = vmul.f32 %v20641_v14, %v20640_v17  ;;  %v20647_v56 = vld [vmem:[#allocation115_spill] sm:$0xff]  ;;  %v20657_v9 = vld [vmem:[#allocation48_spill] sm:$0xff] }
 0x2c3   :  { %v14349_v37 = vmul.f32 %v20634_v8, %v20633_v60  ;;  %v14364_v48 = vmul.f32 %v20645_v30, %v20644_v57  ;;  %v20648_v61 = vmax.f32 %v20647_v56, 0.0  ;;  %v20651_v60 = vld [vmem:[#allocation117_spill] sm:$0xff]  ;;  %v14379_v14 = vmul.f32 %v20657_v9, %v20656_v23  ;;  %v20659_v17 = vld [vmem:[#allocation116_spill] sm:$0xff] }
 0x2c4   :  { %20642 = vst [vmem:[#allocation64_spill] sm:$0xff] %v14359_v43  ;;  %v20652_v26 = vmax.f32 %v20651_v60, 0.0  ;;  %v20660_v31 = vmax.f32 %v20659_v17, 0.0  ;;  %v20661_v43 = vld [vmem:[#allocation47_spill] sm:$0xff]  ;;  %v20663_v57 = vld [vmem:[#allocation121_spill] sm:$0xff]  ;;  %v20675_v23 = vmax.f32 %v20411_v35, 0.0 }
 0x2c5   :  { %20635 = vst [vmem:[#allocation62_spill] sm:$0xff] %v14349_v37  ;;  %20646 = vst [vmem:[#allocation138_spill] sm:$0xff] %v14364_v48  ;;  %v14369_v8 = vmul.f32 %v20649_v10, %v20648_v61  ;;  %v20653_v37 = vld [vmem:[#allocation45_spill] sm:$0xff]  ;;  %v20664_v56 = vmax.f32 %v20663_v57, 0.0  ;;  %v20665_v48 = vld [vmem:[#allocation59_spill] sm:$0xff] }
 0x2c6   :  { %v14374_v20 = vmul.f32 %v20653_v37, %v20652_v26  ;;  %20658 = vst [vmem:[#allocation142_spill] sm:$0xff] %v14379_v14  ;;  %v14384_v30 = vmul.f32 %v20661_v43, %v20660_v31  ;;  %v20667_v61 = vld [vmem:[#allocation124_spill] sm:$0xff]  ;;  %v20676_v17 = vld [vmem:[#allocation50_spill] sm:$0xff] }
 0x2c7   :  { %20650 = vst [vmem:[#allocation68_spill] sm:$0xff] %v14369_v8  ;;  %v14389_v10 = vmul.f32 %v20665_v48, %v20664_v56  ;;  %v20668_v60 = vmax.f32 %v20667_v61, 0.0  ;;  %v20669_v8 = vld [vmem:[#allocation49_spill] sm:$0xff]  ;;  %v20671_v26 = vld [vmem:[#allocation120_spill] sm:$0xff]  ;;  %v14404_v43 = vmul.f32 %v20676_v17, %v20675_v23  ;;  %v20682_v56 = vld [vmem:[#allocation131_spill] sm:$0xff] }
 0x2c8   :  { %20654 = vst [vmem:[#allocation180_spill] sm:$0xff] %v14374_v20  ;;  %20662 = vst [vmem:[#allocation67_spill] sm:$0xff] %v14384_v30  ;;  %v20672_v47 = vmax.f32 %v20671_v26, 0.0  ;;  %v20673_v20 = vld [vmem:[#allocation61_spill] sm:$0xff]  ;;  %v20678_v31 = vld [vmem:[#allocation128_spill] sm:$0xff]  ;;  %v20683_v61 = vmax.f32 %v20682_v56, 0.0 }
 0x2c9   :  { %20666 = vst [vmem:[#allocation168_spill] sm:$0xff] %v14389_v10  ;;  %v14394_v37 = vmul.f32 %v20669_v8, %v20668_v60  ;;  %20677 = vst [vmem:[#allocation75_spill] sm:$0xff] %v14404_v43  ;;  %v20679_v57 = vmax.f32 %v20678_v31, 0.0  ;;  %v20680_v30 = vld [vmem:[#allocation65_spill] sm:$0xff]  ;;  %v20684_v10 = vld [vmem:[#allocation51_spill] sm:$0xff] }
 0x2ca   :  { %v14399_v9 = vmul.f32 %v20673_v20, %v20672_v47  ;;  %v14414_v8 = vmul.f32 %v20684_v10, %v20683_v61  ;;  %v20686_v60 = vld [vmem:[#allocation127_spill] sm:$0xff]  ;;  %v20689_v47 = vld [vmem:[#allocation129_spill] sm:$0xff]  ;;  %v20695_v43 = vld [vmem:[#allocation74_spill] sm:$0xff] }
 0x2cb   :  { %20670 = vst [vmem:[#allocation69_spill] sm:$0xff] %v14394_v37  ;;  %v14409_v48 = vmul.f32 %v20680_v30, %v20679_v57  ;;  %v20687_v26 = vmax.f32 %v20686_v60, 0.0  ;;  %v20688_v37 = vld [vmem:[#allocation70_spill] sm:$0xff]  ;;  %v20690_v35 = vmax.f32 %v20689_v47, 0.0  ;;  %v20693_v17 = vld [vmem:[#allocation135_spill] sm:$0xff]  ;;  %v20700_v10 = vld [vmem:[#allocation188_spill] sm:$0xff] }
 0x2cc   :  { %20674 = vst [vmem:[#allocation182_spill] sm:$0xff] %v14399_v9  ;;  %20685 = vst [vmem:[#allocation77_spill] sm:$0xff] %v14414_v8  ;;  %v20691_v9 = vld [vmem:[#allocation52_spill] sm:$0xff]  ;;  %v20694_v31 = vmax.f32 %v20693_v17, 0.0  ;;  %v20697_v57 = vld [vmem:[#allocation83_spill] sm:$0xff]  ;;  %v14435_v8 = vpop.permute.xlu0 %1805 }
 0x2cd   :  { %20681 = vst [vmem:[#allocation146_spill] sm:$0xff] %v14409_v48  ;;  %v14419_v20 = vmul.f32 %v20688_v37, %v20687_v26  ;;  %v14424_v23 = vmul.f32 %v20691_v9, %v20690_v35  ;;  %v20698_v56 = vld [vmem:[#allocation178_spill] sm:$0xff]  ;;  %20701 = vst [vmem:[#allocation184_spill] sm:$0xff] %v14435_v8  ;;  %v20702_v37 = vmax.f32 %v20417_v11, 0.0  ;;  %v20703_v60 = vld [vmem:[#allocation53_spill] sm:$0xff]  ;;  %v20712_v11 = vmax.f32 %v20419_v51, 0.0 }
 0x2ce   :  { %v14429_v30 = vmul.f32 %v20695_v43, %v20694_v31  ;;  %v20699_v48 = vsub.f32 %v20697_v57, %v20698_v56  ;;  %v20704_v47 = vld [vmem:[#allocation133_spill] sm:$0xff]  ;;  %v20706_v35 = vld [vmem:[#allocation79_spill] sm:$0xff]  ;;  %v20707_v17 = vld [vmem:[#allocation136_spill] sm:$0xff]  ;;  %v20710_v57 = vmax.f32 %v13823_v16, 0.0  ;;  %v20722_v16 = vmax.f32 %v20422_v55, 0.0 }
 0x2cf   :  { %20692 = vst [vmem:[#allocation186_spill] sm:$0xff] %v14424_v23  ;;  %v14440_v26 = vmul.f32 %v20703_v60, %v20702_v37  ;;  %v20705_v9 = vmax.f32 %v20704_v47, 0.0  ;;  %v20708_v43 = vmax.f32 %v20707_v17, 0.0  ;;  %v20709_v31 = vld [vmem:[#allocation54_spill] sm:$0xff]  ;;  %v20713_v8 = vld [vmem:[#allocation55_spill] sm:$0xff]  ;;  %v20715_v60 = vmax.f32 %v20420_v45, 0.0 }
 0x2d0   :  { %20696 = vst [vmem:[#allocation73_spill] sm:$0xff] %v14429_v30  ;;  %v1382_v61 = vmul.f32 %v20700_v10, %v20699_v48  ;;  %v20711_v48 = vld [vmem:[#allocation85_spill] sm:$0xff]  ;;  %v14460_v37 = vmul.f32 %v20713_v8, %v20712_v11  ;;  %v20716_v47 = vld [vmem:[#allocation90_spill] sm:$0xff]  ;;  %v20720_v56 = vld [vmem:[#allocation56_spill] sm:$0xff]  ;;  %v20724_v51 = vmax.f32 %v20423_v12, 0.0  ;;  %v20727_v45 = vmax.f32 %v20424_v36, 0.0 }
 0x2d1   :  { %v14445_v23 = vmul.f32 %v20706_v35, %v20705_v9  ;;  %v14450_v30 = vmul.f32 %v20709_v31, %v20708_v43  ;;  %v14455_v10 = vmul.f32 %v20711_v48, %v20710_v57  ;;  %v14465_v9 = vmul.f32 %v20716_v47, %v20715_v60  ;;  %v20718_v35 = vld [vmem:[#allocation202_spill] sm:$0xff]  ;;  %v20725_v48 = vld [vmem:[#allocation57_spill] sm:$0xff]  ;;  %v20728_v11 = vld [vmem:[#allocation99_spill] sm:$0xff] }
 0x2d2   :  { %20714 = vst [vmem:[#allocation91_spill] sm:$0xff] %v14460_v37  ;;  %v20719_v17 = vmax.f32 %v20718_v35, 0.0  ;;  %v20723_v31 = vld [vmem:[#allocation94_spill] sm:$0xff]  ;;  %v14480_v8 = vmul.f32 %v20725_v48, %v20724_v51  ;;  %v14485_v60 = vmul.f32 %v20728_v11, %v20727_v45  ;;  %v20730_v47 = vld [vmem:[#allocation149_spill] sm:$0xff]  ;;  %v20739_v51 = vld [vmem:[#allocation60_spill] sm:$0xff] }
 0x2d3   :  { %20717 = vst [vmem:[#allocation152_spill] sm:$0xff] %v14465_v9  ;;  %v14475_v57 = vmul.f32 %v20723_v31, %v20722_v16  ;;  %v20731_v35 = vmax.f32 %v20730_v47, 0.0  ;;  %v20732_v9 = vld [vmem:[#allocation58_spill] sm:$0xff]  ;;  %v20737_v12 = vld [vmem:[#allocation157_spill] sm:$0xff]  ;;  %v20744_v47 = vld [vmem:[#allocation204_spill] sm:$0xff] }
 0x2d4   :  { %v14470_v43 = vmul.f32 %v20720_v56, %v20719_v17  ;;  %20726 = vst [vmem:[#allocation207_spill] sm:$0xff] %v14480_v8  ;;  %20729 = vst [vmem:[#allocation95_spill] sm:$0xff] %v14485_v60  ;;  %v20733_v17 = vld [vmem:[#allocation155_spill] sm:$0xff]  ;;  %v20738_v31 = vmax.f32 %v20737_v12, 0.0  ;;  %v20740_v36 = vld [vmem:[#allocation153_spill] sm:$0xff]  ;;  %v20745_v60 = vmax.f32 %v20744_v47, 0.0 }
 0x2d5   :  { %v14490_v56 = vmul.f32 %v20732_v9, %v20731_v35  ;;  %v20734_v55 = vmax.f32 %v20733_v17, 0.0  ;;  %v20741_v8 = vmax.f32 %v20740_v36, 0.0  ;;  %v20742_v45 = vld [vmem:[#allocation110_spill] sm:$0xff]  ;;  %v20746_v9 = vld [vmem:[#allocation63_spill] sm:$0xff]  ;;  %v1490_v17 = vmax.f32 %v1382_v61, 0.0  ;;  %v20759_v61 = vld [vmem:[#allocation160_spill] sm:$0xff] }
 0x2d6   :  { %20721 = vst [vmem:[#allocation87_spill] sm:$0xff] %v14470_v43  ;;  %v20735_v43 = vld [vmem:[#allocation105_spill] sm:$0xff]  ;;  %v14500_v48 = vmul.f32 %v20739_v51, %v20738_v31  ;;  %v14510_v35 = vmul.f32 %v20746_v9, %v20745_v60  ;;  %v20749_v12 = vmax.f32 %v20434_v46, 0.0  ;;  %v20750_v31 = vld [vmem:[#allocation66_spill] sm:$0xff]  ;;  %v20751_v36 = vmax.f32 %v20435_v34, 0.0  ;;  %v1821_v34 = vpop.permute.xlu0 %1820 }
 0x2d7   :  { %v14495_v16 = vmul.f32 %v20735_v43, %v20734_v55  ;;  %v14505_v11 = vmul.f32 %v20742_v45, %v20741_v8  ;;  %v20747_v43 = vmax.f32 %v20433_v6, 0.0  ;;  %v20748_v55 = vld [vmem:[#allocation114_spill] sm:$0xff]  ;;  %v20752_v8 = vld [vmem:[#allocation156_spill] sm:$0xff]  ;;  %v20758_v6 = vmax.f32 %v13921_v39, 0.0 }
 0x2d8   :  { %v14520_v51 = vmul.f32 %v20750_v31, %v20749_v12  ;;  %v14525_v45 = vmul.f32 %v20752_v8, %v20751_v36  ;;  %v20754_v47 = vld [vmem:[#allocation206_spill] sm:$0xff]  ;;  %v2336_v46 = vrot.slane %v14052_v5, 1  ;;  %v2339_v12 = vrot.slane %v14061_v38, 1 }
 0x2d9   :  { %20736 = vst [vmem:[#allocation89_spill] sm:$0xff] %v14495_v16  ;;  %20743 = vst [vmem:[#allocation97_spill] sm:$0xff] %v14505_v11  ;;  %v14515_v16 = vmul.f32 %v20748_v55, %v20747_v43  ;;  %v20755_v11 = vmax.f32 %v20754_v47, 0.0  ;;  %v20756_v60 = vld [vmem:[#allocation166_spill] sm:$0xff]  ;;  %v14535_v43 = vmul.f32 %v20759_v61, %v20758_v6  ;;  %v2337_v55 = vrot.slane %v14057_v7, 1 }
 0x2da   :  { %20753 = vst [vmem:[#allocation158_spill] sm:$0xff] %v14525_v45  ;;  %v2341_v31 = vrot.slane %v14066_v24, 1  ;;  %v2342_v36 = vrot.slane %v14071_v42, 1  ;;  %v2344_v8 = vrot.slane %v14076_v22, 1  ;;  %v14544_v47 = vmul.f32 %v1821_v34, %v1490_v17  ;;  %v20769_v45 = vld [vmem:[#allocation102_spill] sm:$0xff] }
 0x2db   :  { %v14530_v9 = vmul.f32 %v20756_v60, %v20755_v11  ;;  %20760 = vst [vmem:[#allocation148_spill] sm:$0xff] %v14535_v43  ;;  %v3289_v61 = vrot.slane %v14066_v24, 2  ;;  %v3290_v38 = vrot.slane %v14071_v42, 2  ;;  %v3292_v11 = vrot.slane %v14076_v22, 2 }
 0x2dc   :  { %20761 = vst [vmem:[#allocation96_spill] sm:$0xff] %v14544_v47  ;;  %v2343_v22 = vsel %vm2335_vm0, %v2341_v31, %v2342_v36  ;;  %v2345_v17 = vsel %vm2335_vm0, %v2342_v36, %v2344_v8  ;;  %v2338_v31 = vsel %vm2335_vm0, %v2336_v46, %v2337_v55  ;;  %v2340_v60 = vsel %vm2335_vm0, %v2337_v55, %v2339_v12  ;;  %v20774_v36 = vld [vmem:[#allocation62_spill] sm:$0xff]  ;;  %v20785_v12 = vld [vmem:[#allocation112_spill] sm:$0xff] }
 0x2dd   :  { %20757 = vst [vmem:[#allocation93_spill] sm:$0xff] %v14530_v9  ;;  %v3291_v34 = vsel %vm3283_vm1, %v3289_v61, %v3290_v38  ;;  %v3293_v39 = vsel %vm3283_vm1, %v3290_v38, %v3292_v11  ;;  %v14580_v47 = vpack.c.bf16 %v2345_v17, %v2343_v22  ;;  %v3384_v6 = vrot.slane %v14339_v29, 2  ;;  %v11098_v61 = vld [vmem:[#allocation5 + $0x8] sm:$0xff]   ;;  %v20777_v17 = vld [vmem:[#allocation177_spill] sm:$0xff] }
 0x2de   :  { %v14584_v4 = vpack.c.bf16 %v3293_v39, %v3291_v34  ;;  %v2560_v22 = vpack.c.bf16 %v2340_v60, %v2338_v31  ;;  %v3385_v7 = vrot.slane %v14344_v3, 2  ;;  %v3387_v43 = vrot.slane %v20774_v36, 2  ;;  %v20778_v31 = vld [vmem:[#allocation80_spill] sm:$0xff]  ;;  %v20787_v3 = vld [vmem:[#allocation138_spill] sm:$0xff] }
 0x2df   :  { %20763 = vst [vmem:[#allocation143_spill] sm:$0xff] %v14580_v47  ;;  %v3389_v60 = vrot.slane %v20777_v17, 2  ;;  %v20784_v29 = vld [vmem:[#allocation64_spill] sm:$0xff]  ;;  %v3392_v39 = vrot.slane %v20787_v3, 2  ;;  %v20789_v9 = vrot.slane %v14036_v15, 1  ;;  %v20790_v46 = vrot.slane %v14081_v44, 1 }
 0x2e0   :  { %20766 = vst [vmem:[#allocation101_spill] sm:$0xff] %v14584_v4  ;;  %9657 = vmatprep.mubr.bf16.mxu0 %v2560_v22  ;;  %v3386_v38 = vsel %vm3283_vm1, %v3384_v6, %v3385_v7  ;;  %v3388_v22 = vsel %vm3283_vm1, %v3385_v7, %v3387_v43  ;;  %v3390_v6 = vrot.slane %v20784_v29, 2  ;;  %v20788_v4 = vrot.slane %v14041_v0, 1  ;;  %v11099_v43 = vld [vmem:[#allocation5 + $0x10] sm:$0xff]   ;;  %v20794_v55 = vld [vmem:[#allocation180_spill] sm:$0xff] }
 0x2e1   :  { %9658 = vmatmul.mubr.bf16.vlgmr.msra.gmra.mrb[108].mxu0 %v14580_v47  ;;  %v14612_v17 = vpack.c.bf16 %v3388_v22, %v3386_v38  ;;  %v20793_v22 = vld [vmem:[#allocation68_spill] sm:$0xff]  ;;  %v3395_v34 = vrot.slane %v20794_v55, 2  ;;  %v20795_v11 = vrot.slane %v14091_v27, 1  ;;  %v20803_v3 = vld [vmem:[#allocation69_spill] sm:$0xff] }
 0x2e2   :  { %9722 = vmatpush3.bf16.msra.mxu0 %v20785_v12  ;;  %v2348_v47 = vsel %vm2335_vm0, %v20789_v9, %v20788_v4  ;;  %v20791_v8 = vmov %v20788_v4  ;;  %v3391_v12 = vsel %vm3283_vm1, %v3389_v60, %v3390_v6  ;;  %v3394_v36 = vrot.slane %v20793_v22, 2  ;;  %v20922_v0 = vld [vmem:[#allocation181_spill] sm:$0xff] }
 0x2e3   :  { %20786 = vst [vmem:[#allocation162_spill] sm:$0xff] %v14612_v17  ;;  %v2350_v7 = vsel %vm2335_vm0, %v20791_v8, %v20790_v46  ;;  %9723 = vmatprep.subr.bf16.mxu0 %v11098_v61  ;;  %9857 = vmatprep.mubr.bf16.mxu1 %v14612_v17  ;;  %v3393_v4 = vsel %vm3283_vm1, %v3390_v6, %v3392_v39  ;;  %v3397_v9 = vrot.slane %v14379_v14, 2  ;;  %v20796_v8 = vrot.slane %v14086_v2, 1  ;;  %v11086_v6 = vld [vmem:[#allocation5 + $0xc8] sm:$0xff]   ;;  %v20801_v14 = vld [vmem:[#allocation67_spill] sm:$0xff] }
 0x2e4   :  { %v14626_v38 = vpack.c.bf16 %v2350_v7, %v2348_v47  ;;  %v20797_v60 = vrot.slane %v14100_v62, 1  ;;  %v20798_v47 = vmov %v20795_v11  ;;  %v14643_v5 = vpack.c.bf16 %v3393_v4, %v3391_v12 }
 0x2e5   :  { %v2353_v46 = vsel %vm2335_vm0, %v20796_v8, %v20795_v11  ;;  %v3396_v39 = vsel %vm3283_vm1, %v3394_v36, %v3395_v34  ;;  %v3399_v55 = vrot.slane %v20801_v14, 2  ;;  %v3398_v11 = vsel %vm3283_vm1, %v3395_v34, %v3397_v9  ;;  %v20802_v8 = vld [vmem:[#allocation168_spill] sm:$0xff]  ;;  %v20809_v9 = vld [vmem:[#allocation182_spill] sm:$0xff] }
 0x2e6   :  { %20792 = vst [vmem:[#allocation104_spill] sm:$0xff] %v14626_v38  ;;  %v2355_v7 = vsel %vm2335_vm0, %v20798_v47, %v20797_v60  ;;  %20799 = vst [vmem:[#allocation208_spill] sm:$0xff] %v14643_v5  ;;  %9661 = vmatprep.mubr.bf16.mxu0 %v14626_v38  ;;  %9724 = vmatpush3.bf16.msra.mxu0 %v11098_v61  ;;  %v3400_v22 = vrot.slane %v20802_v8, 2  ;;  %v3402_v29 = vrot.slane %v20803_v3, 2  ;;  %v20804_v60 = vrot.slane %v14110_v59, 1  ;;  %v11100_v3 = vld [vmem:[#allocation5 + $0x18] sm:$0xff]  }
 0x2e7   :  { %v14647_v17 = vpack.c.bf16 %v2355_v7, %v2353_v46  ;;  %v20805_v12 = vrot.slane %v14105_v19, 1  ;;  %9725 = vmatprep.subr.bf16.mxu0 %v11099_v43  ;;  %9858 = vmatmul.mubr.bf16.vlgmr.msra.gmra.mrb[0].mxu1 %v14643_v5  ;;  %v14659_v36 = vpack.c.bf16 %v3398_v11, %v3396_v39  ;;  %v20807_v46 = vrot.slane %v14115_v49, 1  ;;  %v20810_v7 = vld [vmem:[#allocation75_spill] sm:$0xff]  ;;  %v20811_v8 = vld [vmem:[#allocation185_spill] sm:$0xff] }
 0x2e8   :  { %v20808_v61 = vmov %v20804_v60  ;;  %v3404_v47 = vrot.slane %v20809_v9, 2  ;;  %v3405_v38 = vrot.slane %v20810_v7, 2  ;;  %9882 = vmatpush3.bf16.msra.mxu1 %v20811_v8  ;;  %v3403_v39 = vsel %vm3283_vm1, %v3400_v22, %v3402_v29  ;;  %v11087_v7 = vld [vmem:[#allocation5 + $0xd0] sm:$0xff]  }
 0x2e9   :  { %20800 = vst [vmem:[#allocation100_spill] sm:$0xff] %v14647_v17  ;;  %v2358_v4 = vsel %vm2335_vm0, %v20805_v12, %v20804_v60  ;;  %20806 = vst [vmem:[#allocation40_spill] sm:$0xff] %v14659_v36  ;;  %v2360_v34 = vsel %vm2335_vm0, %v20808_v61, %v20807_v46  ;;  %9662 = vmatmul.mubr.bf16.gmra.mrb[112].mxu0 %v14647_v17  ;;  %v3401_v60 = vsel %vm3283_vm1, %v3399_v55, %v3400_v22  ;;  %v20813_v12 = vld [vmem:[#allocation146_spill] sm:$0xff]  ;;  %v20817_v9 = vld [vmem:[#allocation77_spill] sm:$0xff] }
 0x2ea   :  { %v14672_v11 = vpack.c.bf16 %v2360_v34, %v2358_v4  ;;  %v3407_v5 = vrot.slane %v20813_v12, 2  ;;  %9861 = vmatprep.mubr.bf16.mxu1 %v14659_v36  ;;  %9883 = vmatprep.subr.bf16.mxu1 %v11086_v6  ;;  %v14676_v46 = vpack.c.bf16 %v3403_v39, %v3401_v60  ;;  %v3406_v61 = vsel %vm3283_vm1, %v3404_v47, %v3405_v38  ;;  %v20820_v39 = vld [vmem:[#allocation186_spill] sm:$0xff] }
 0x2eb   :  { %v20815_v8 = vrot.slane %v14126_v41, 1  ;;  %v20816_v17 = vrot.slane %v14121_v50, 1  ;;  %v3409_v29 = vrot.slane %v20817_v9, 2  ;;  %v20818_v4 = vrot.slane %v14131_v63, 1  ;;  %9726 = vmatpush3.bf16.msra.mxu0 %v11099_v43  ;;  %v20889_v63 = vld [vmem:[#allocation179_spill] sm:$0xff] }
 0x2ec   :  { %20812 = vst [vmem:[#allocation103_spill] sm:$0xff] %v14672_v11  ;;  %20814 = vst [vmem:[#allocation42_spill] sm:$0xff] %v14676_v46  ;;  %9665 = vmatprep.mubr.bf16.mxu0 %v14672_v11  ;;  %v3408_v22 = vsel %vm3283_vm1, %v3405_v38, %v3407_v5  ;;  %v3410_v47 = vrot.slane %v14419_v20, 2  ;;  %v3412_v36 = vrot.slane %v20820_v39, 2  ;;  %v20824_v11 = vrot.slane %v14141_v1, 1  ;;  %9727 = vmatprep.subr.bf16.mxu0 %v11100_v3  ;;  %v11102_v1 = vld [vmem:[#allocation5 + $0x20] sm:$0xff]  }
 0x2ed   :  { %v2363_v55 = vsel %vm2335_vm0, %v20816_v17, %v20815_v8  ;;  %v20819_v34 = vmov %v20815_v8  ;;  %v14695_v17 = vpack.c.bf16 %v3408_v22, %v3406_v61  ;;  %v20825_v5 = vrot.slane %v14136_v25, 1  ;;  %9884 = vmatpush3.bf16.msra.mxu1 %v11086_v6  ;;  %v11088_v6 = vld [vmem:[#allocation5 + $0xd8] sm:$0xff]  }
 0x2ee   :  { %v2365_v60 = vsel %vm2335_vm0, %v20819_v34, %v20818_v4  ;;  %v3411_v4 = vsel %vm3283_vm1, %v3409_v29, %v3410_v47  ;;  %v3413_v34 = vsel %vm3283_vm1, %v3410_v47, %v3412_v36  ;;  %v20826_v43 = vrot.slane %v14146_v53, 1  ;;  %9885 = vmatprep.subr.bf16.mxu1 %v11087_v7 }
 0x2ef   :  { %20822 = vst [vmem:[#allocation108_spill] sm:$0xff] %v14695_v17  ;;  %v14697_v8 = vpack.c.bf16 %v2365_v60, %v2363_v55  ;;  %v2368_v38 = vsel %vm2335_vm0, %v20825_v5, %v20824_v11  ;;  %v20827_v14 = vmov %v20824_v11  ;;  %v20828_v55 = vld [vmem:[#allocation73_spill] sm:$0xff]  ;;  %v14712_v60 = vpack.c.bf16 %v3413_v34, %v3411_v4  ;;  %9728 = vmatpush3.bf16.msra.mxu0 %v11100_v3 }
 0x2f0   :  { %v2370_v61 = vsel %vm2335_vm0, %v20827_v14, %v20826_v43  ;;  %v3414_v22 = vrot.slane %v20828_v55, 2  ;;  %v3415_v25 = vrot.slane %v14440_v26, 2  ;;  %v3417_v11 = vrot.slane %v14445_v23, 2  ;;  %9862 = vmatmul.mubr.bf16.gmra.mrb[4].mxu1 %v14676_v46  ;;  %v11103_v46 = vld [vmem:[#allocation5 + $0x28] sm:$0xff]   ;;  %9729 = vmatprep.subr.bf16.mxu0 %v11102_v1 }
 0x2f1   :  { %20823 = vst [vmem:[#allocation39_spill] sm:$0xff] %v14697_v8  ;;  %20829 = vst [vmem:[#allocation41_spill] sm:$0xff] %v14712_v60  ;;  %v20830_v29 = vrot.slane %v14156_v13, 1  ;;  %v20831_v36 = vrot.slane %v14151_v18, 1  ;;  %v20832_v5 = vrot.slane %v14161_v54, 1  ;;  %v3419_v4 = vrot.slane %v14450_v30, 2  ;;  %9865 = vmatprep.mubr.bf16.mxu1 %v14695_v17  ;;  %9886 = vmatpush3.bf16.msra.mxu1 %v11087_v7 }
 0x2f2   :  { %v3420_v34 = vrot.slane %v14455_v10, 2  ;;  %v3422_v53 = vrot.slane %v14460_v37, 2  ;;  %v14730_v12 = vpack.c.bf16 %v2370_v61, %v2368_v38  ;;  %v20837_v13 = vld [vmem:[#allocation152_spill] sm:$0xff]  ;;  %9666 = vmatmul.mubr.bf16.gmra.mrb[116].mxu0 %v14697_v8  ;;  %9887 = vmatprep.subr.bf16.mxu1 %v11088_v6  ;;  %v3427_v7 = vrot.slane %v14475_v57, 2  ;;  %v20844_v17 = vld [vmem:[#allocation207_spill] sm:$0xff] }
 0x2f3   :  { %v2373_v47 = vsel %vm2335_vm0, %v20831_v36, %v20830_v29  ;;  %v20833_v14 = vmov %v20830_v29  ;;  %v3416_v29 = vsel %vm3283_vm1, %v3414_v22, %v3415_v25  ;;  %v3418_v36 = vsel %vm3283_vm1, %v3415_v25, %v3417_v11  ;;  %v11089_v25 = vld [vmem:[#allocation5 + $0xe0] sm:$0xff]   ;;  %9730 = vmatpush3.bf16.msra.mxu0 %v11102_v1 }
 0x2f4   :  { %v2375_v43 = vsel %vm2335_vm0, %v20833_v14, %v20832_v5  ;;  %20834 = vst [vmem:[#allocation107_spill] sm:$0xff] %v14730_v12  ;;  %v14737_v5 = vpack.c.bf16 %v3418_v36, %v3416_v29  ;;  %v3421_v14 = vsel %vm3283_vm1, %v3419_v4, %v3420_v34  ;;  %v3423_v3 = vsel %vm3283_vm1, %v3420_v34, %v3422_v53  ;;  %v20840_v11 = vld [vmem:[#allocation87_spill] sm:$0xff]  ;;  %v20852_v29 = vld [vmem:[#allocation89_spill] sm:$0xff] }
 0x2f5   :  { %v14734_v54 = vpack.c.bf16 %v2375_v43, %v2373_v47  ;;  %v3424_v37 = vrot.slane %v20837_v13, 2  ;;  %v14744_v22 = vpack.c.bf16 %v3423_v3, %v3421_v14  ;;  %v3425_v47 = vrot.slane %v20840_v11, 2  ;;  %v20841_v43 = vld [vmem:[#allocation183_spill] sm:$0xff]  ;;  %9669 = vmatprep.mubr.bf16.mxu0 %v14730_v12  ;;  %9888 = vmatpush3.bf16.msra.mxu1 %v11088_v6 }
 0x2f6   :  { %20836 = vst [vmem:[#allocation109_spill] sm:$0xff] %v14737_v5  ;;  %v20842_v4 = vld [vmem:[#allocation199_spill] sm:$0xff]  ;;  %v3429_v61 = vrot.slane %v20844_v17, 2  ;;  %v20847_v36 = vrot.slane %v14171_v28, 1  ;;  %v20848_v34 = vrot.slane %v14166_v40, 1  ;;  %v3432_v38 = vrot.slane %v14490_v56, 2  ;;  %9731 = vmatprep.subr.bf16.mxu0 %v11103_v46  ;;  %9889 = vmatprep.subr.bf16.mxu1 %v11089_v25 }
 0x2f7   :  { %20835 = vst [vmem:[#allocation44_spill] sm:$0xff] %v14734_v54  ;;  %20839 = vst [vmem:[#allocation43_spill] sm:$0xff] %v14744_v22  ;;  %v3426_v14 = vsel %vm3283_vm1, %v3424_v37, %v3425_v47  ;;  %v3428_v3 = vsel %vm3283_vm1, %v3425_v47, %v3427_v7  ;;  %v20846_v11 = vld [vmem:[#allocation95_spill] sm:$0xff]  ;;  %v20850_v37 = vrot.slane %v14176_v32, 1  ;;  %v11090_v7 = vld [vmem:[#allocation5 + $0xe8] sm:$0xff]   ;;  %v3434_v8 = vrot.slane %v20852_v29, 2  ;;  %9732 = vmatpush3.bf16.msra.mxu0 %v11103_v46 }
 0x2f8   :  { %v3430_v13 = vrot.slane %v20846_v11, 2  ;;  %v2378_v12 = vsel %vm2335_vm0, %v20848_v34, %v20847_v36  ;;  %v14763_v53 = vpack.c.bf16 %v3428_v3, %v3426_v14  ;;  %v20851_v47 = vmov %v20847_v36  ;;  %v20853_v3 = vld [vmem:[#allocation97_spill] sm:$0xff]  ;;  %9866 = vmatmul.mubr.bf16.gmra.mrb[8].mxu1 %v14712_v60 }
 0x2f9   :  { %v2380_v1 = vsel %vm2335_vm0, %v20851_v47, %v20850_v37  ;;  %v3435_v40 = vrot.slane %v14500_v48, 2  ;;  %v3437_v15 = vrot.slane %v20853_v3, 2  ;;  %v3439_v47 = vrot.slane %v14510_v35, 2  ;;  %v11104_v28 = vld [vmem:[#allocation5 + $0x30] sm:$0xff]   ;;  %9869 = vmatprep.mubr.bf16.mxu1 %v14737_v5  ;;  %9890 = vmatpush3.bf16.msra.mxu1 %v11089_v25 }
 0x2fa   :  { %20849 = vst [vmem:[#allocation115_spill] sm:$0xff] %v14763_v53  ;;  %v3431_v6 = vsel %vm3283_vm1, %v3429_v61, %v3430_v13  ;;  %v3433_v14 = vsel %vm3283_vm1, %v3430_v13, %v3432_v38  ;;  %v14785_v34 = vpack.c.bf16 %v2380_v1, %v2378_v12  ;;  %v3440_v38 = vrot.slane %v14515_v16, 2  ;;  %9670 = vmatmul.mubr.bf16.gmra.mrb[120].mxu0 %v14734_v54 }
 0x2fb   :  { %v14780_v37 = vpack.c.bf16 %v3433_v14, %v3431_v6  ;;  %v3436_v61 = vsel %vm3283_vm1, %v3434_v8, %v3435_v40  ;;  %v3438_v13 = vsel %vm3283_vm1, %v3435_v40, %v3437_v15  ;;  %v3442_v32 = vrot.slane %v14520_v51, 2  ;;  %9891 = vmatprep.subr.bf16.mxu1 %v11090_v7  ;;  %v11091_v8 = vld [vmem:[#allocation5 + $0xf0] sm:$0xff]   ;;  %9733 = vmatprep.subr.bf16.mxu0 %v11104_v28 }
 0x2fc   :  { %20855 = vst [vmem:[#allocation117_spill] sm:$0xff] %v14785_v34  ;;  %v14793_v46 = vpack.c.bf16 %v3438_v13, %v3436_v61  ;;  %v14797_v12 = vpack.c.bf16 %v14071_v42, %v14066_v24  ;;  %9673 = vmatprep.mubr.bf16.mxu0 %v14785_v34  ;;  %v3441_v25 = vsel %vm3283_vm1, %v3439_v47, %v3440_v38  ;;  %v20858_v61 = vrot.slane %v14186_v21, 1  ;;  %v20859_v13 = vld [vmem:[#allocation174_spill] sm:$0xff]  ;;  %v20861_v24 = vld [vmem:[#allocation92_spill] sm:$0xff]  ;;  %v20875_v21 = vld [vmem:[#allocation71_spill] sm:$0xff] }
 0x2fd   :  { %20854 = vst [vmem:[#allocation46_spill] sm:$0xff] %v14780_v37  ;;  %v3443_v1 = vsel %vm3283_vm1, %v3440_v38, %v3442_v32  ;;  %v20860_v6 = vrot.slane %v20859_v13, 1  ;;  %v20862_v42 = vrot.slane %v20861_v24, 1  ;;  %9892 = vmatpush3.bf16.msra.mxu1 %v11090_v7  ;;  %v14822_v14 = vpack.c.bf16 %v14091_v27, %v14086_v2  ;;  %v11092_v38 = vld [vmem:[#allocation5 + $0xf8] sm:$0xff]   ;;  %v20873_v34 = vld [vmem:[#allocation176_spill] sm:$0xff]  ;;  %9734 = vmatpush3.bf16.msra.mxu0 %v11104_v28  ;;  %v20882_v13 = vld [vmem:[#allocation193_spill] sm:$0xff] }
 0x2fe   :  { %20856 = vst [vmem:[#allocation45_spill] sm:$0xff] %v14793_v46  ;;  %20857 = vst [vmem:[#allocation113_spill] sm:$0xff] %v14797_v12  ;;  %v20863_v15 = vmov %v20858_v61  ;;  %v14815_v5 = vpack.c.bf16 %v3443_v1, %v3441_v25  ;;  %v20867_v25 = vrot.slane %v14196_v33, 1  ;;  %9893 = vmatprep.subr.bf16.mxu1 %v11091_v8  ;;  %v20874_v60 = vrot.slane %v20873_v34, 1  ;;  %v14909_v2 = vld [vmem:[#allocation5 + $0x80] sm:$0xff]   ;;  %v20921_v27 = vld [vmem:[#allocation168_spill] sm:$0xff] }
 0x2ff   :  { %v2383_v36 = vsel %vm2335_vm0, %v20860_v6, %v20858_v61  ;;  %v2385_v40 = vsel %vm2335_vm0, %v20863_v15, %v20862_v42  ;;  %v20865_v61 = vld [vmem:[#allocation170_spill] sm:$0xff]  ;;  %v20866_v15 = vrot.slane %v14201_v52, 1  ;;  %v20872_v6 = vrot.slane %v20765_v58, 1  ;;  %20914 = vst [vmem:[#allocation61_spill] sm:$0xff] %v14909_v2 }
 0x300   :  { %20864 = vst [vmem:[#allocation48_spill] sm:$0xff] %v14815_v5  ;;  %v20868_v42 = vld [vmem:[#allocation98_spill] sm:$0xff]  ;;  %v14836_v24 = vpack.c.bf16 %v2385_v40, %v2383_v36  ;;  %v20876_v33 = vrot.slane %v20875_v21, 1  ;;  %9870 = vmatmul.mubr.bf16.gmra.mrb[12].mxu1 %v14744_v22  ;;  %v20879_v36 = vrot.slane %v20769_v45, 1  ;;  %v20890_v22 = vrot.slane %v20889_v63, 1  ;;  %v20899_v63 = vld [vmem:[#allocation141_spill] sm:$0xff] }
 0x301   :  { %v2388_v1 = vsel %vm2335_vm0, %v20867_v25, %v20866_v15  ;;  %v20869_v47 = vrot.slane %v20868_v42, 1  ;;  %v20870_v32 = vmov %v20866_v15  ;;  %v2393_v54 = vsel %vm2335_vm0, %v20874_v60, %v20872_v6  ;;  %v20878_v42 = vld [vmem:[#allocation201_spill] sm:$0xff]  ;;  %v20880_v40 = vld [vmem:[#allocation150_spill] sm:$0xff]  ;;  %9873 = vmatprep.mubr.bf16.mxu1 %v14763_v53  ;;  %9894 = vmatpush3.bf16.msra.mxu1 %v11091_v8 }
 0x302   :  { %20871 = vst [vmem:[#allocation116_spill] sm:$0xff] %v14836_v24  ;;  %v20877_v15 = vmov %v20872_v6  ;;  %v2436_v52 = vrot.slane %v20878_v42, 1  ;;  %v20883_v60 = vrot.slane %v20882_v13, 1  ;;  %v20884_v6 = vmov %v20879_v36  ;;  %v20885_v58 = vld [vmem:[#allocation106_spill] sm:$0xff]  ;;  %9674 = vmatmul.mubr.bf16.gmra.mrb[124].mxu0 %v14836_v24  ;;  %9895 = vmatprep.subr.bf16.mxu1 %v11092_v38 }
 0x303   :  { %v2390_v7 = vsel %vm2335_vm0, %v20870_v32, %v20869_v47  ;;  %v2395_v25 = vsel %vm2335_vm0, %v20877_v15, %v20876_v33  ;;  %v11105_v47 = vld [vmem:[#allocation5 + $0x38] sm:$0xff]   ;;  %v20881_v32 = vrot.slane %v20880_v40, 1  ;;  %v20886_v33 = vrot.slane %v20885_v58, 1 }
 0x304   :  { %v2400_v21 = vsel %vm2335_vm0, %v20884_v6, %v20883_v60  ;;  %v20887_v15 = vld [vmem:[#allocation154_spill] sm:$0xff]  ;;  %v20895_v60 = vld [vmem:[#allocation159_spill] sm:$0xff]  ;;  %v2437_v58 = vrot.slane %v20899_v63, 1  ;;  %v14887_v8 = vpack.c.bf16 %v2395_v25, %v2393_v54  ;;  %9735 = vmatprep.subr.bf16.mxu0 %v11105_v47  ;;  %v20908_v25 = vld [vmem:[#allocation64_spill] sm:$0xff]  ;;  %v2452_v44 = vrot.slane %v20921_v27, 1 }
 0x305   :  { %v2398_v34 = vsel %vm2335_vm0, %v20881_v32, %v20879_v36  ;;  %v20888_v18 = vrot.slane %v20887_v15, 1  ;;  %v20891_v49 = vmov %v20886_v33  ;;  %v14871_v36 = vpack.c.bf16 %v2390_v7, %v2388_v1  ;;  %v20893_v32 = vld [vmem:[#allocation196_spill] sm:$0xff]  ;;  %v20901_v53 = vld [vmem:[#allocation122_spill] sm:$0xff]  ;;  %v14889_v7 = vld [vmem:[#allocation5 + $0x100] sm:$0xff]   ;;  %9736 = vmatpush3.bf16.msra.mxu0 %v11105_v47  ;;  %9896 = vmatpush3.bf16.msra.mxu1 %v11092_v38 }
 0x306   :  { %v2405_v40 = vsel %vm2335_vm0, %v20891_v49, %v20890_v22  ;;  %v20894_v13 = vrot.slane %v20893_v32, 1  ;;  %v20896_v6 = vrot.slane %v20895_v60, 1  ;;  %v20897_v15 = vrot.slane %v20778_v31, 1  ;;  %v20900_v49 = vld [vmem:[#allocation195_spill] sm:$0xff]  ;;  %20902 = vst [vmem:[#allocation121_spill] sm:$0xff] %v14887_v8  ;;  %v20906_v22 = vld [vmem:[#allocation177_spill] sm:$0xff]  ;;  %9801 = vmatprep.subr.bf16.mxu0 %v14909_v2  ;;  %9961 = vmatprep.subr.bf16.mxu1 %v14889_v7 }
 0x307   :  { %v2403_v28 = vsel %vm2335_vm0, %v20888_v18, %v20886_v33  ;;  %20892 = vst [vmem:[#allocation47_spill] sm:$0xff] %v14871_v36  ;;  %9677 = vmatprep.mubr.bf16.mxu0 %v14871_v36  ;;  %v14893_v31 = vpack.c.bf16 %v2400_v21, %v2398_v34  ;;  %v2441_v32 = vrot.slane %v20906_v22, 1  ;;  %v2442_v24 = vrot.slane %v20908_v25, 1  ;;  %v20909_v60 = vld [vmem:[#allocation138_spill] sm:$0xff]  ;;  %v20911_v21 = vld [vmem:[#allocation68_spill] sm:$0xff] }
 0x308   :  { %v2408_v45 = vsel %vm2335_vm0, %v20896_v6, %v20894_v13  ;;  %v20898_v18 = vmov %v20894_v13  ;;  %v20903_v13 = vld [vmem:[#allocation62_spill] sm:$0xff]  ;;  %v2444_v62 = vrot.slane %v20909_v60, 1  ;;  %v2446_v34 = vrot.slane %v20911_v21, 1  ;;  %9874 = vmatmul.mubr.bf16.gmra.mrb[16].mxu1 %v14780_v37 }
 0x309   :  { %v2410_v33 = vsel %vm2335_vm0, %v20898_v18, %v20897_v15  ;;  %v2439_v6 = vrot.slane %v20903_v13, 1  ;;  %20904 = vst [vmem:[#allocation59_spill] sm:$0xff] %v14893_v31  ;;  %v14895_v15 = vpack.c.bf16 %v2405_v40, %v2403_v28  ;;  %v2438_v18 = vsel %vm2335_vm0, %v2436_v52, %v2437_v58  ;;  %v20912_v40 = vld [vmem:[#allocation180_spill] sm:$0xff]  ;;  %v20913_v52 = vld [vmem:[#allocation142_spill] sm:$0xff]  ;;  %9877 = vmatprep.mubr.bf16.mxu1 %v14793_v46 }
 0x30a   :  { %v14899_v1 = vpack.c.bf16 %v2410_v33, %v2408_v45  ;;  %v2447_v28 = vrot.slane %v20912_v40, 1  ;;  %v2449_v36 = vrot.slane %v20913_v52, 1  ;;  %v20917_v33 = vld [vmem:[#allocation165_spill] sm:$0xff]  ;;  %v2443_v47 = vsel %vm2335_vm0, %v2441_v32, %v2442_v24  ;;  %9678 = vmatmul.mubr.bf16.gmra.mrb[128].mxu0 %v14887_v8 }
 0x30b   :  { %20905 = vst [vmem:[#allocation124_spill] sm:$0xff] %v14895_v15  ;;  %v2440_v54 = vsel %vm2335_vm0, %v2437_v58, %v2439_v6  ;;  %v20915_v58 = vld [vmem:[#allocation118_spill] sm:$0xff]  ;;  %v20918_v60 = vrot.slane %v20917_v33, 1  ;;  %v2445_v6 = vsel %vm2335_vm0, %v2442_v24, %v2444_v62  ;;  %v20923_v33 = vrot.slane %v20922_v0, 1  ;;  %v20925_v62 = vld [vmem:[#allocation69_spill] sm:$0xff]  ;;  %9681 = vmatprep.mubr.bf16.mxu0 %v14893_v31 }
 0x30c   :  { %20907 = vst [vmem:[#allocation49_spill] sm:$0xff] %v14899_v1  ;;  %v14904_v13 = vpack.c.bf16 %v2440_v54, %v2438_v18  ;;  %v20916_v45 = vrot.slane %v20915_v58, 1  ;;  %v20919_v18 = vld [vmem:[#allocation67_spill] sm:$0xff]  ;;  %v2448_v52 = vsel %vm2335_vm0, %v2446_v34, %v2447_v28  ;;  %v2450_v2 = vsel %vm2335_vm0, %v2447_v28, %v2449_v36  ;;  %v20929_v0 = vld [vmem:[#allocation146_spill] sm:$0xff] }
 0x30d   :  { %v2451_v54 = vrot.slane %v20919_v18, 1  ;;  %v2454_v24 = vrot.slane %v20925_v62, 1  ;;  %v14939_v36 = vpack.c.bf16 %v14110_v59, %v14105_v19  ;;  %v20928_v28 = vld [vmem:[#allocation75_spill] sm:$0xff]  ;;  %v2459_v58 = vrot.slane %v20929_v0, 1  ;;  %v20930_v62 = vld [vmem:[#allocation96_spill] sm:$0xff] }
 0x30e   :  { %20910 = vst [vmem:[#allocation120_spill] sm:$0xff] %v14904_v13  ;;  %v2413_v38 = vsel %vm2335_vm0, %v20918_v60, %v20916_v45  ;;  %v14921_v13 = vpack.c.bf16 %v2445_v6, %v2443_v47  ;;  %v2415_v32 = vsel %vm2335_vm0, %v20916_v45, %v20923_v33  ;;  %v14932_v60 = vpack.c.bf16 %v2450_v2, %v2448_v52  ;;  %v20926_v47 = vld [vmem:[#allocation182_spill] sm:$0xff]  ;;  %v20936_v19 = vld [vmem:[#allocation123_spill] sm:$0xff] }
 0x30f   :  { %v2456_v6 = vrot.slane %v20926_v47, 1  ;;  %20927 = vst [vmem:[#allocation65_spill] sm:$0xff] %v14939_v36  ;;  %v2453_v34 = vsel %vm2335_vm0, %v2451_v54, %v2452_v44  ;;  %v2457_v37 = vrot.slane %v20928_v28, 1  ;;  %v2455_v2 = vsel %vm2335_vm0, %v2452_v44, %v2454_v24 }
 0x310   :  { %20920 = vst [vmem:[#allocation50_spill] sm:$0xff] %v14921_v13  ;;  %20924 = vst [vmem:[#allocation128_spill] sm:$0xff] %v14932_v60  ;;  %v2461_v33 = vrot.slane %v20817_v9, 1  ;;  %v2462_v52 = vrot.slane %v14419_v20, 1  ;;  %v2464_v45 = vrot.slane %v20820_v39, 1  ;;  %v20931_v46 = vrot.slane %v20930_v62, 1  ;;  %9878 = vmatmul.mubr.bf16.gmra.mrb[20].mxu1 %v14815_v5 }
 0x311   :  { %v20932_v60 = vld [vmem:[#allocation192_spill] sm:$0xff]  ;;  %v14957_v0 = vpack.c.bf16 %v2455_v2, %v2453_v34  ;;  %v2458_v8 = vsel %vm2335_vm0, %v2456_v6, %v2457_v37  ;;  %v2460_v44 = vsel %vm2335_vm0, %v2457_v37, %v2459_v58  ;;  %v2466_v31 = vrot.slane %v20828_v55, 1  ;;  %v20940_v2 = vld [vmem:[#allocation91_spill] sm:$0xff]  ;;  %9897 = vmatprep.mubr.bf16.mxu1 %v14797_v12 }
 0x312   :  { %v20933_v54 = vrot.slane %v20932_v60, 1  ;;  %v14961_v24 = vpack.c.bf16 %v2460_v44, %v2458_v8  ;;  %v2463_v36 = vsel %vm2335_vm0, %v2461_v33, %v2462_v52  ;;  %v2465_v39 = vsel %vm2335_vm0, %v2462_v52, %v2464_v45  ;;  %9682 = vmatmul.mubr.bf16.gmra.mrb[132].mxu0 %v14895_v15  ;;  %v20952_v15 = vld [vmem:[#allocation126_spill] sm:$0xff] }
 0x313   :  { %20934 = vst [vmem:[#allocation131_spill] sm:$0xff] %v14957_v0  ;;  %v20937_v59 = vrot.slane %v20936_v19, 1  ;;  %v20938_v60 = vmov %v20931_v46  ;;  %v14973_v34 = vpack.c.bf16 %v2465_v39, %v2463_v36  ;;  %v2467_v6 = vrot.slane %v14440_v26, 1  ;;  %9685 = vmatprep.mubr.bf16.mxu0 %v14899_v1  ;;  %v11094_v1 = vld [vmem:[#allocation5 + $0x108] sm:$0xff]  }
 0x314   :  { %v14955_v13 = vsel %vm2335_vm0, %v20933_v54, %v20931_v46  ;;  %20935 = vst [vmem:[#allocation51_spill] sm:$0xff] %v14961_v24  ;;  %v2469_v37 = vrot.slane %v14445_v23, 1  ;;  %v2471_v8 = vrot.slane %v14450_v30, 1  ;;  %v2472_v58 = vrot.slane %v14455_v10, 1  ;;  %v20943_v54 = vld [vmem:[#allocation87_spill] sm:$0xff] }
 0x315   :  { %v14971_v46 = vsel %vm2335_vm0, %v20938_v60, %v20937_v59  ;;  %20939 = vst [vmem:[#allocation127_spill] sm:$0xff] %v14973_v34  ;;  %v2474_v33 = vrot.slane %v20940_v2, 1  ;;  %v14982_v52 = vpack.c.bf16 %v20900_v49, %v20865_v61  ;;  %v2468_v45 = vsel %vm2335_vm0, %v2466_v31, %v2467_v6  ;;  %v20942_v60 = vld [vmem:[#allocation152_spill] sm:$0xff] }
 0x316   :  { %v2470_v59 = vsel %vm2335_vm0, %v2467_v6, %v2469_v37  ;;  %v2476_v36 = vrot.slane %v20942_v60, 1  ;;  %v2477_v44 = vrot.slane %v20943_v54, 1  ;;  %v2473_v39 = vsel %vm2335_vm0, %v2471_v8, %v2472_v58 }
 0x317   :  { %20941 = vst [vmem:[#allocation70_spill] sm:$0xff] %v14982_v52  ;;  %v14989_v23 = vpack.c.bf16 %v2470_v59, %v2468_v45  ;;  %v2475_v2 = vsel %vm2335_vm0, %v2472_v58, %v2474_v33  ;;  %v2479_v19 = vrot.slane %v14475_v57, 1  ;;  %v14995_v62 = vpack.c.bf16 %v2415_v32, %v2413_v38 }
 0x318   :  { %v14997_v31 = vpack.c.bf16 %v2475_v2, %v2473_v39  ;;  %v2478_v6 = vsel %vm2335_vm0, %v2476_v36, %v2477_v44  ;;  %v2481_v37 = vrot.slane %v20844_v17, 1  ;;  %v2576_v45 = vpack.c.bf16 %v14971_v46, %v14955_v13  ;;  %v20947_v36 = vld [vmem:[#allocation197_spill] sm:$0xff] }
 0x319   :  { %20944 = vst [vmem:[#allocation129_spill] sm:$0xff] %v14989_v23  ;;  %20945 = vst [vmem:[#allocation52_spill] sm:$0xff] %v14995_v62  ;;  %v2480_v8 = vsel %vm2335_vm0, %v2477_v44, %v2479_v19  ;;  %v2482_v58 = vrot.slane %v20846_v11, 1  ;;  %v2484_v57 = vrot.slane %v14490_v56, 1  ;;  %v2486_v32 = vrot.slane %v20852_v29, 1  ;;  %v20949_v2 = vld [vmem:[#allocation173_spill] sm:$0xff] }
 0x31a   :  { %20946 = vst [vmem:[#allocation135_spill] sm:$0xff] %v14997_v31  ;;  %v15008_v38 = vpack.c.bf16 %v2480_v8, %v2478_v6  ;;  %v2487_v33 = vrot.slane %v14500_v48, 1  ;;  %v2489_v59 = vrot.slane %v20853_v3, 1  ;;  %v20948_v39 = vrot.slane %v20947_v36, 1  ;;  %9686 = vmatmul.mubr.bf16.gmra.mrb[136].mxu0 %v14995_v62 }
 0x31b   :  { %v20950_v13 = vrot.slane %v20949_v2, 1  ;;  %v2483_v46 = vsel %vm2335_vm0, %v2481_v37, %v2482_v58  ;;  %v2485_v56 = vsel %vm2335_vm0, %v2482_v58, %v2484_v57  ;;  %v2491_v44 = vrot.slane %v14510_v35, 1  ;;  %9689 = vmatprep.mubr.bf16.mxu0 %v2576_v45 }
 0x31c   :  { %v15021_v6 = vpack.c.bf16 %v2485_v56, %v2483_v46  ;;  %v2488_v8 = vsel %vm2335_vm0, %v2486_v32, %v2487_v33  ;;  %v2490_v5 = vsel %vm2335_vm0, %v2487_v33, %v2489_v59  ;;  %v2492_v3 = vrot.slane %v14515_v16, 1 }
 0x31d   :  { %v2423_v19 = vsel %vm2335_vm0, %v20950_v13, %v20948_v39  ;;  %v20953_v12 = vrot.slane %v20952_v15, 1  ;;  %v20954_v52 = vmov %v20948_v39  ;;  %v15031_v37 = vpack.c.bf16 %v2490_v5, %v2488_v8 }
 0x31e   :  { %20951 = vst [vmem:[#allocation74_spill] sm:$0xff] %v15021_v6  ;;  %v2494_v58 = vrot.slane %v14520_v51, 1  ;;  %v15036_v57 = vpack.c.bf16 %v20899_v63, %v20878_v42  ;;  %v2493_v32 = vsel %vm2335_vm0, %v2491_v44, %v2492_v3  ;;  %v15041_v33 = vpack.c.bf16 %v20908_v25, %v20906_v22  ;;  %v20956_v25 = vld [vmem:[#allocation130_spill] sm:$0xff] }
 0x31f   :  { %v2425_v39 = vsel %vm2335_vm0, %v20954_v52, %v20953_v12  ;;  %v15045_v59 = vpack.c.bf16 %v20912_v40, %v20911_v21  ;;  %v15049_v5 = vpack.c.bf16 %v20921_v27, %v20919_v18  ;;  %v20955_v12 = vld [vmem:[#allocation125_spill] sm:$0xff]  ;;  %v15055_v63 = vpack.c.bf16 %v20928_v28, %v20926_v47  ;;  %v20959_v47 = vld [vmem:[#allocation158_spill] sm:$0xff] }
 0x320   :  { %9898 = vmatmul.mubr.bf16.vlgmr.msra.gmra.mrb[24].mxu1 %v20955_v12  ;;  %v2495_v51 = vsel %vm2335_vm0, %v2492_v3, %v2494_v58  ;;  %v15059_v42 = vpack.c.bf16 %v14419_v20, %v20817_v9  ;;  %v15063_v22 = vpack.c.bf16 %v14440_v26, %v20828_v55  ;;  %v3320_v21 = vrot.slane %v20956_v25, 2  ;;  %v20958_v9 = vld [vmem:[#allocation82_spill] sm:$0xff]  ;;  %v11095_v26 = vld [vmem:[#allocation5 + $0x110] sm:$0xff]   ;;  %v20972_v3 = vld [vmem:[#allocation88_spill] sm:$0xff] }
 0x321   :  { %9962 = vmatpush3.bf16.msra.mxu1 %v14889_v7  ;;  %9901 = vmatprep.mubr.bf16.mxu1 %v14822_v14  ;;  %v15068_v27 = vpack.c.bf16 %v2495_v51, %v2493_v32  ;;  %v15072_v40 = vpack.c.bf16 %v14455_v10, %v14450_v30  ;;  %v15076_v20 = vpack.c.bf16 %v20943_v54, %v20942_v60  ;;  %v3322_v18 = vrot.slane %v20958_v9, 2  ;;  %v20960_v28 = vld [vmem:[#allocation93_spill] sm:$0xff]  ;;  %v20967_v54 = vld [vmem:[#allocation198_spill] sm:$0xff]  ;;  %v20974_v32 = vld [vmem:[#allocation111_spill] sm:$0xff] }
 0x322   :  { %9963 = vmatprep.subr.bf16.mxu1 %v11094_v1  ;;  %v15082_v55 = vpack.c.bf16 %v20846_v11, %v20844_v17  ;;  %v15086_v7 = vpack.c.bf16 %v14500_v48, %v20852_v29  ;;  %v15090_v30 = vpack.c.bf16 %v14515_v16, %v14510_v35  ;;  %v15094_v10 = vpack.c.bf16 %v14126_v41, %v14121_v50 }
 0x323   :  { %20957 = vst [vmem:[#allocation83_spill] sm:$0xff] %v15068_v27  ;;  %v15098_v52 = vpack.c.bf16 %v20960_v28, %v20959_v47  ;;  %v20962_v17 = vrot.slane %v20900_v49, 1  ;;  %v20963_v11 = vrot.slane %v20865_v61, 1  ;;  %v20964_v29 = vrot.slane %v20901_v53, 1 }
 0x324   :  { %v20966_v60 = vrot.slane %v20841_v43, 1  ;;  %v20968_v45 = vrot.slane %v20967_v54, 1  ;;  %v20969_v46 = vrot.slane %v20842_v4, 1  ;;  %v20973_v58 = vrot.slane %v20972_v3, 2  ;;  %v20987_v3 = vld [vmem:[#allocation164_spill] sm:$0xff] }
 0x325   :  { %20961 = vst [vmem:[#allocation53_spill] sm:$0xff] %v15098_v52  ;;  %v4386_v48 = vsel %vm2335_vm0, %v20963_v11, %v20962_v17  ;;  %v20965_v16 = vmov %v20962_v17  ;;  %v20975_v51 = vrot.slane %v20974_v32, 2  ;;  %v15127_v17 = vpack.c.bf16 %v2425_v39, %v2423_v19  ;;  %9964 = vmatpush3.bf16.msra.mxu1 %v11094_v1  ;;  %v20976_v11 = vld [vmem:[#allocation203_spill] sm:$0xff]  ;;  %v11096_v1 = vld [vmem:[#allocation5 + $0x118] sm:$0xff]  }
 0x326   :  { %v4388_v35 = vsel %vm2335_vm0, %v20965_v16, %v20964_v29  ;;  %v2428_v13 = vsel %vm2335_vm0, %v20968_v45, %v20966_v60  ;;  %v20970_v56 = vmov %v20966_v60  ;;  %v20977_v29 = vrot.slane %v20976_v11, 2  ;;  %v20979_v45 = vld [vmem:[#allocation147_spill] sm:$0xff]  ;;  %9965 = vmatprep.subr.bf16.mxu1 %v11095_v26  ;;  %v20989_v11 = vld [vmem:[#allocation161_spill] sm:$0xff] }
 0x327   :  { %v2430_v44 = vsel %vm2335_vm0, %v20970_v56, %v20969_v46  ;;  %v15120_v8 = vpack.c.bf16 %v4388_v35, %v4386_v48  ;;  %v3296_v9 = vsel %vm3283_vm1, %v20975_v51, %v20973_v58  ;;  %v20978_v16 = vmov %v20973_v58  ;;  %v20981_v46 = vld [vmem:[#allocation151_spill] sm:$0xff]  ;;  %v20983_v56 = vld [vmem:[#allocation78_spill] sm:$0xff]  ;;  %9690 = vmatmul.mubr.bf16.gmra.mrb[140].mxu0 %v15127_v17 }
 0x328   :  { %v3298_v60 = vsel %vm3283_vm1, %v20978_v16, %v20977_v29  ;;  %v20980_v4 = vrot.slane %v20979_v45, 2  ;;  %v20982_v48 = vrot.slane %v20981_v46, 2  ;;  %v20984_v15 = vrot.slane %v20983_v56, 2  ;;  %v20991_v46 = vld [vmem:[#allocation205_spill] sm:$0xff] }
 0x329   :  { %20971 = vst [vmem:[#allocation133_spill] sm:$0xff] %v15120_v8  ;;  %v15144_v39 = vpack.c.bf16 %v3298_v60, %v3296_v9  ;;  %v20988_v51 = vrot.slane %v20987_v3, 2  ;;  %v20990_v29 = vrot.slane %v20989_v11, 2  ;;  %v20996_v9 = vrot.slane %v14121_v50, 2  ;;  %9966 = vmatpush3.bf16.msra.mxu1 %v11095_v26 }
 0x32a   :  { %v3301_v35 = vsel %vm3283_vm1, %v20982_v48, %v20980_v4  ;;  %v20985_v32 = vmov %v20980_v4  ;;  %v20992_v4 = vrot.slane %v20991_v46, 2  ;;  %v4389_v11 = vrot.slane %v20959_v47, 1  ;;  %9967 = vmatprep.subr.bf16.mxu1 %v11096_v1 }
 0x32b   :  { %v3303_v19 = vsel %vm3283_vm1, %v20985_v32, %v20984_v15  ;;  %v3306_v16 = vsel %vm3283_vm1, %v20990_v29, %v20988_v51  ;;  %v20993_v48 = vmov %v20988_v51  ;;  %v20995_v15 = vrot.slane %v14126_v41, 2  ;;  %v21000_v29 = vld [vmem:[#allocation65_spill] sm:$0xff] }
 0x32c   :  { %v15146_v58 = vpack.c.bf16 %v3303_v19, %v3301_v35  ;;  %v3308_v45 = vsel %vm3283_vm1, %v20993_v48, %v20992_v4  ;;  %v20997_v35 = vld [vmem:[#allocation187_spill] sm:$0xff]  ;;  %9902 = vmatmul.mubr.bf16.gmra.mrb[28].mxu1 %v21000_v29  ;;  %v3323_v50 = vsel %vm3283_vm1, %v3320_v21, %v3322_v18  ;;  %v4390_v48 = vrot.slane %v20960_v28, 1  ;;  %v21008_v18 = vld [vmem:[#allocation200_spill] sm:$0xff] }
 0x32d   :  { %v15158_v56 = vpack.c.bf16 %v3308_v45, %v3306_v16  ;;  %v3311_v60 = vsel %vm3283_vm1, %v20996_v9, %v20995_v15  ;;  %v20998_v32 = vrot.slane %v20997_v35, 2  ;;  %v20999_v19 = vmov %v20995_v15  ;;  %v21002_v16 = vld [vmem:[#allocation172_spill] sm:$0xff]  ;;  %9905 = vmatprep.mubr.bf16.mxu1 %v15094_v10  ;;  %9968 = vmatpush3.bf16.msra.mxu1 %v11096_v1 }
 0x32e   :  { %20986 = vst [vmem:[#allocation79_spill] sm:$0xff] %v15146_v58  ;;  %v21003_v46 = vrot.slane %v21002_v16, 2  ;;  %v21004_v45 = vld [vmem:[#allocation132_spill] sm:$0xff]  ;;  %v15181_v41 = vpack.c.bf16 %v2430_v44, %v2428_v13  ;;  %v4821_v1 = vrot.slane %v20901_v53, 2 }
 0x32f   :  { %20994 = vst [vmem:[#allocation136_spill] sm:$0xff] %v15158_v56  ;;  %v3313_v51 = vsel %vm3283_vm1, %v20999_v19, %v20998_v32  ;;  %v2434_v15 = vrot.slane %v21004_v45, 1  ;;  %v21007_v35 = vld [vmem:[#allocation148_spill] sm:$0xff]  ;;  %v11101_v32 = vld [vmem:[#allocation5 + $0x120] sm:$0xff]   ;;  %v21009_v19 = vrot.slane %v21008_v18, 1  ;;  %v4818_v56 = vrot.slane %v20865_v61, 2 }
 0x330   :  { %v15172_v3 = vpack.c.bf16 %v3313_v51, %v3311_v60  ;;  %v3321_v4 = vsel %vm3283_vm1, %v21003_v46, %v3320_v21  ;;  %21005 = vst [vmem:[#allocation85_spill] sm:$0xff] %v15181_v41  ;;  %v4392_v60 = vrot.slane %v21007_v35, 1  ;;  %9693 = vmatprep.mubr.bf16.mxu0 %v15181_v41  ;;  %v4391_v21 = vsel %vm2335_vm0, %v4389_v11, %v4390_v48  ;;  %v21010_v51 = vld [vmem:[#allocation175_spill] sm:$0xff]  ;;  %v21014_v45 = vld [vmem:[#allocation72_spill] sm:$0xff]  ;;  %v11107_v61 = vld [vmem:[#allocation5 + $0x130] sm:$0xff]  }
 0x331   :  { %v15183_v9 = vpack.c.bf16 %v3323_v50, %v3321_v4  ;;  %v21011_v46 = vrot.slane %v21010_v51, 1  ;;  %v21012_v26 = vmov %v21009_v19  ;;  %v21013_v50 = vld [vmem:[#allocation119_spill] sm:$0xff]  ;;  %9969 = vmatprep.subr.bf16.mxu1 %v11101_v32 }
 0x332   :  { %21001 = vst [vmem:[#allocation54_spill] sm:$0xff] %v15172_v3  ;;  %v2435_v44 = vsel %vm2335_vm0, %v21012_v26, %v2434_v15  ;;  %v4393_v4 = vsel %vm2335_vm0, %v4390_v48, %v4392_v60  ;;  %v11106_v3 = vld [vmem:[#allocation5 + $0x128] sm:$0xff]   ;;  %v4823_v15 = vrot.slane %v20959_v47, 2  ;;  %9970 = vmatpush3.bf16.msra.mxu1 %v11101_v32  ;;  %v4824_v60 = vrot.slane %v20960_v28, 2  ;;  %v21019_v28 = vld [vmem:[#allocation189_spill] sm:$0xff] }
 0x333   :  { %21006 = vst [vmem:[#allocation55_spill] sm:$0xff] %v15183_v9  ;;  %v2433_v13 = vsel %vm2335_vm0, %v21011_v46, %v21009_v19  ;;  %v15200_v9 = vpack.c.bf16 %v21014_v45, %v21013_v50  ;;  %v15202_v11 = vpack.c.bf16 %v4393_v4, %v4391_v21  ;;  %v15207_v19 = vpack.c.bf16 %v20956_v25, %v21002_v16  ;;  %v21022_v4 = vld [vmem:[#allocation174_spill] sm:$0xff] }
 0x334   :  { %v4819_v46 = vrot.slane %v20900_v49, 2  ;;  %v15212_v48 = vpack.c.bf16 %v2435_v44, %v2433_v13  ;;  %9971 = vmatprep.subr.bf16.mxu1 %v11106_v3  ;;  %v4826_v25 = vrot.slane %v21007_v35, 2  ;;  %v21017_v49 = vld [vmem:[#allocation120_spill] sm:$0xff]  ;;  %v4825_v21 = vsel %vm3283_vm1, %v4823_v15, %v4824_v60  ;;  %v21020_v13 = vld [vmem:[#allocation134_spill] sm:$0xff]  ;;  %v21026_v15 = vld [vmem:[#allocation191_spill] sm:$0xff] }
 0x335   :  { %21015 = vst [vmem:[#allocation90_spill] sm:$0xff] %v15202_v11  ;;  %9906 = vmatmul.mubr.bf16.gmra.mrb[32].mxu1 %v15200_v9  ;;  %v15228_v26 = vpack.c.bf16 %v21020_v13, %v21019_v28  ;;  %v11108_v44 = vld [vmem:[#allocation5 + $0x138] sm:$0xff]   ;;  %v21023_v11 = vld [vmem:[#allocation139_spill] sm:$0xff] }
 0x336   :  { %21016 = vst [vmem:[#allocation202_spill] sm:$0xff] %v15212_v48  ;;  %9909 = vmatprep.mubr.bf16.mxu1 %v15207_v19  ;;  %9694 = vmatmul.mubr.bf16.gmra.mrb[144].mxu0 %v15212_v48  ;;  %v4820_v53 = vsel %vm3283_vm1, %v4818_v56, %v4819_v46  ;;  %v4822_v16 = vsel %vm3283_vm1, %v4819_v46, %v4821_v1  ;;  %v15239_v46 = vld [vmem:[#allocation5 + $0x140] sm:$0xff]   ;;  %v21025_v1 = vld [vmem:[#allocation128_spill] sm:$0xff] }
 0x337   :  { %9697 = vmatprep.mubr.bf16.mxu0 %v21017_v49  ;;  %9972 = vmatpush3.bf16.msra.mxu1 %v11106_v3  ;;  %v15223_v47 = vpack.c.bf16 %v4822_v16, %v4820_v53  ;;  %v4827_v32 = vsel %vm3283_vm1, %v4824_v60, %v4826_v25  ;;  %v15234_v56 = vpack.c.bf16 %v21023_v11, %v21022_v4  ;;  %v21024_v3 = vld [vmem:[#allocation50_spill] sm:$0xff]  ;;  %v21027_v60 = vld [vmem:[#allocation145_spill] sm:$0xff]  ;;  %v21029_v53 = vld [vmem:[#allocation176_spill] sm:$0xff] }
 0x338   :  { %9973 = vmatprep.subr.bf16.mxu1 %v11107_v61  ;;  %v15230_v35 = vpack.c.bf16 %v4827_v32, %v4825_v21  ;;  %v15244_v25 = vpack.c.bf16 %v21027_v60, %v21026_v15  ;;  %v21030_v16 = vld [vmem:[#allocation194_spill] sm:$0xff]  ;;  %v21040_v11 = vld [vmem:[#allocation165_spill] sm:$0xff] }
 0x339   :  { %21018 = vst [vmem:[#allocation56_spill] sm:$0xff] %v15223_v47  ;;  %v15249_v21 = vpack.c.bf16 %v21030_v16, %v21029_v53  ;;  %v21033_v32 = vld [vmem:[#allocation102_spill] sm:$0xff]  ;;  %v21037_v16 = vld [vmem:[#allocation159_spill] sm:$0xff]  ;;  %v21038_v53 = vld [vmem:[#allocation196_spill] sm:$0xff] }
 0x33a   :  { %21021 = vst [vmem:[#allocation94_spill] sm:$0xff] %v15230_v35  ;;  %21028 = vst [vmem:[#allocation57_spill] sm:$0xff] %v15244_v25  ;;  %v21034_v35 = vld [vmem:[#allocation154_spill] sm:$0xff]  ;;  %v15269_v15 = vpack.c.bf16 %v21038_v53, %v21037_v16 }
 0x33b   :  { %9974 = vmatpush3.bf16.msra.mxu1 %v11107_v61  ;;  %21031 = vst [vmem:[#allocation99_spill] sm:$0xff] %v15249_v21  ;;  %v21032_v61 = vld [vmem:[#allocation150_spill] sm:$0xff] }
 0x33c   :  { %9975 = vmatprep.subr.bf16.mxu1 %v11108_v44  ;;  %v21035_v47 = vld [vmem:[#allocation106_spill] sm:$0xff]  ;;  %21039 = vst [vmem:[#allocation58_spill] sm:$0xff] %v15269_v15 }
 0x33d   :  { %9910 = vmatmul.mubr.bf16.gmra.mrb[36].mxu1 %v15228_v26  ;;  %v15261_v60 = vpack.c.bf16 %v21035_v47, %v21034_v35  ;;  %v21041_v4 = vld [vmem:[#allocation118_spill] sm:$0xff]  ;;  %v15281_v47 = vpack.c.bf16 %v20947_v36, %v20949_v2  ;;  %v21043_v36 = vld [vmem:[#allocation137_spill] sm:$0xff] }
 0x33e   :  { %9913 = vmatprep.mubr.bf16.mxu1 %v15234_v56  ;;  %9698 = vmatmul.mubr.bf16.gmra.mrb[148].mxu0 %v21024_v3  ;;  %v21042_v35 = vld [vmem:[#allocation70_spill] sm:$0xff] }
 0x33f   :  { %9701 = vmatprep.mubr.bf16.mxu0 %v21025_v1  ;;  %9976 = vmatpush3.bf16.msra.mxu1 %v11108_v44  ;;  %v15257_v44 = vpack.c.bf16 %v21033_v32, %v21032_v61  ;;  %21036 = vst [vmem:[#allocation149_spill] sm:$0xff] %v15261_v60  ;;  %v15273_v32 = vpack.c.bf16 %v21041_v4, %v21040_v11 }
 0x340   :  { %10041 = vmatprep.subr.bf16.mxu1 %v15239_v46  ;;  %v15289_v4 = vpack.c.bf16 %v20841_v43, %v20967_v54  ;;  %v15293_v11 = vpack.c.bf16 %v21008_v18, %v21010_v51  ;;  %v21045_v43 = vld [vmem:[#allocation113_spill] sm:$0xff]  ;;  %v11166_v51 = vld [vmem:[#allocation5 + $0x88] sm:$0xff]  }
 0x341   :  { %v21046_v18 = vld [vmem:[#allocation61_spill] sm:$0xff] }
 0x342   :  { %v11167_v54 = vld [vmem:[#allocation5 + $0x90] sm:$0xff]  }
 0x345   :  { %9914 = vmatmul.mubr.bf16.gmra.mrb[40].mxu1 %v15244_v25 }
 0x346   :  { %9917 = vmatprep.mubr.bf16.mxu1 %v15249_v21  ;;  %9702 = vmatmul.mubr.bf16.gmra.mrb[152].mxu0 %v14957_v0 }
 0x347   :  { %9705 = vmatprep.mubr.bf16.mxu0 %v14961_v24 }
 0x34d   :  { %9918 = vmatmul.mubr.bf16.gmra.mrb[44].mxu1 %v15257_v44 }
 0x34e   :  { %9921 = vmatprep.mubr.bf16.mxu1 %v15261_v60  ;;  %9706 = vmatmul.mubr.bf16.gmra.mrb[156].mxu0 %v14973_v34 }
 0x34f   :  { %9709 = vmatprep.mubr.bf16.mxu0 %v14989_v23 }
 0x355   :  { %9922 = vmatmul.mubr.bf16.gmra.mrb[48].mxu1 %v15269_v15 }
 0x356   :  { %9925 = vmatprep.mubr.bf16.mxu1 %v15273_v32  ;;  %9710 = vmatmul.mubr.bf16.gmra.mrb[160].mxu0 %v14997_v31 }
 0x357   :  { %9713 = vmatprep.mubr.bf16.mxu0 %v15008_v38 }
 0x35d   :  { %9926 = vmatmul.mubr.bf16.gmra.mrb[52].mxu1 %v21042_v35  ;;  %v21044_v35 = vld [vmem:[#allocation144_spill] sm:$0xff] }
 0x35e   :  { %9929 = vmatprep.mubr.bf16.mxu1 %v15281_v47  ;;  %9714 = vmatmul.mubr.bf16.gmra.mrb[164].mxu0 %v15021_v6  ;;  %v2191_v2 = vpack.c.bf16 %v21044_v35, %v21043_v36 }
 0x35f   :  { %9717 = vmatprep.mubr.bf16.mxu0 %v15031_v37 }
 0x365   :  { %9930 = vmatmul.mubr.bf16.gmra.mrb[56].mxu1 %v15289_v4 }
 0x366   :  { %9933 = vmatprep.mubr.bf16.mxu1 %v15293_v11  ;;  %9718 = vmatmul.mubr.bf16.gmra.mrb[168].mxu0 %v15068_v27 }
 0x367   :  { %9737 = vmatprep.mubr.bf16.mxu0 %v2191_v2  ;;  %v11168_v2 = vld [vmem:[#allocation5 + $0x98] sm:$0xff]  }
 0x36d   :  { %9934 = vmatmul.mubr.bf16.gmra.mrb[60].mxu1 %v15036_v57 }
 0x36e   :  { %9937 = vmatprep.mubr.bf16.mxu1 %v15041_v33  ;;  %9738 = vmatmul.mubr.bf16.vlgmr.msra.gmra.mrb[108].mxu0 %v21045_v43  ;;  %v11169_v43 = vld [vmem:[#allocation5 + $0xa0] sm:$0xff]  }
 0x36f   :  { %9741 = vmatprep.mubr.bf16.mxu0 %v20955_v12  ;;  %9802 = vmatpush3.bf16.msra.mxu0 %v21046_v18  ;;  %v11170_v18 = vld [vmem:[#allocation5 + $0xa8] sm:$0xff]  }
 0x370   :  { %9803 = vmatprep.subr.bf16.mxu0 %v11166_v51 }
 0x373   :  { %9804 = vmatpush3.bf16.msra.mxu0 %v11166_v51  ;;  %v11172_v51 = vld [vmem:[#allocation5 + $0xb8] sm:$0xff]  }
 0x374   :  { %9805 = vmatprep.subr.bf16.mxu0 %v11167_v54 }
 0x375   :  { %9938 = vmatmul.mubr.bf16.gmra.mrb[0].mxu1 %v15045_v59 }
 0x376   :  { %9941 = vmatprep.mubr.bf16.mxu1 %v15049_v5  ;;  %9742 = vmatmul.mubr.bf16.gmra.mrb[112].mxu0 %v14822_v14 }
 0x377   :  { %9745 = vmatprep.mubr.bf16.mxu0 %v21000_v29  ;;  %9806 = vmatpush3.bf16.msra.mxu0 %v11167_v54  ;;  %v11171_v54 = vld [vmem:[#allocation5 + $0xb0] sm:$0xff]  }
 0x378   :  { %9807 = vmatprep.subr.bf16.mxu0 %v11168_v2 }
 0x37b   :  { %9808 = vmatpush3.bf16.msra.mxu0 %v11168_v2  ;;  %v21047_v2 = vld [vmem:[#allocation143_spill] sm:$0xff] }
 0x37c   :  { %9809 = vmatprep.subr.bf16.mxu0 %v11169_v43 }
 0x37d   :  { %9942 = vmatmul.mubr.bf16.gmra.mrb[4].mxu1 %v15055_v63 }
 0x37e   :  { %9945 = vmatprep.mubr.bf16.mxu1 %v15059_v42  ;;  %9746 = vmatmul.mubr.bf16.gmra.mrb[116].mxu0 %v15094_v10 }
 0x37f   :  { %9749 = vmatprep.mubr.bf16.mxu0 %v15200_v9  ;;  %9810 = vmatpush3.bf16.msra.mxu0 %v11169_v43  ;;  %v11110_v43 = vld [vmem:[#allocation5 + $0x148] sm:$0xff]  }
 0x380   :  { %9811 = vmatprep.subr.bf16.mxu0 %v11170_v18 }
 0x383   :  { %9812 = vmatpush3.bf16.msra.mxu0 %v11170_v18  ;;  %v21048_v18 = vld [vmem:[#allocation104_spill] sm:$0xff] }
 0x384   :  { %9813 = vmatprep.subr.bf16.mxu0 %v11171_v54 }
 0x385   :  { %9946 = vmatmul.mubr.bf16.gmra.mrb[8].mxu1 %v15063_v22 }
 0x386   :  { %9949 = vmatprep.mubr.bf16.mxu1 %v15072_v40  ;;  %9750 = vmatmul.mubr.bf16.gmra.mrb[120].mxu0 %v15207_v19 }
 0x387   :  { %9753 = vmatprep.mubr.bf16.mxu0 %v15228_v26  ;;  %9814 = vmatpush3.bf16.msra.mxu0 %v11171_v54  ;;  %v21049_v54 = vld [vmem:[#allocation100_spill] sm:$0xff] }
 0x388   :  { %9815 = vmatprep.subr.bf16.mxu0 %v11172_v51 }
 0x38b   :  { %9816 = vmatpush3.bf16.msra.mxu0 %v11172_v51  ;;  %v21050_v51 = vld [vmem:[#allocation192_spill] sm:$0xff] }
 0x38d   :  { %9950 = vmatmul.mubr.bf16.gmra.mrb[12].mxu1 %v15076_v20 }
 0x38e   :  { %9953 = vmatprep.mubr.bf16.mxu1 %v15082_v55  ;;  %9754 = vmatmul.mubr.bf16.gmra.mrb[124].mxu0 %v15234_v56 }
 0x38f   :  { %9757 = vmatprep.mubr.bf16.mxu0 %v15244_v25  ;;  %v21051_v25 = vld [vmem:[#allocation96_spill] sm:$0xff] }
 0x395   :  { %9954 = vmatmul.mubr.bf16.gmra.mrb[16].mxu1 %v15086_v7 }
 0x396   :  { %9957 = vmatprep.mubr.bf16.mxu1 %v15090_v30  ;;  %9758 = vmatmul.mubr.bf16.gmra.mrb[128].mxu0 %v15249_v21  ;;  %v2207_v21 = vpack.c.bf16 %v21051_v25, %v21050_v51 }
 0x397   :  { %9761 = vmatprep.mubr.bf16.mxu0 %v15257_v44 }
 0x39d   :  { %9958 = vmatmul.mubr.bf16.gmra.mrb[20].mxu1 %v15098_v52  ;;  %v11111_v52 = vld [vmem:[#allocation5 + $0x150] sm:$0xff]  }
 0x39e   :  { %9977 = vmatprep.mubr.bf16.mxu1 %v21047_v2  ;;  %9762 = vmatmul.mubr.bf16.gmra.mrb[132].mxu0 %v15261_v60  ;;  %v11112_v2 = vld [vmem:[#allocation5 + $0x158] sm:$0xff]   ;;  %v21052_v60 = vld [vmem:[#allocation103_spill] sm:$0xff] }
 0x39f   :  { %9765 = vmatprep.mubr.bf16.mxu0 %v15269_v15  ;;  %v21053_v15 = vld [vmem:[#allocation39_spill] sm:$0xff] }
 0x3a5   :  { %9978 = vmatmul.mubr.bf16.vlgmr.msra.gmra.mrb[24].mxu1 %v21048_v18  ;;  %v21054_v18 = vld [vmem:[#allocation107_spill] sm:$0xff] }
 0x3a6   :  { %10042 = vmatpush3.bf16.msra.mxu1 %v15239_v46  ;;  %9981 = vmatprep.mubr.bf16.mxu1 %v21049_v54  ;;  %v11113_v46 = vld [vmem:[#allocation5 + $0x160] sm:$0xff]   ;;  %v11114_v54 = vld [vmem:[#allocation5 + $0x168] sm:$0xff]  }
 0x3a7   :  { %9766 = vmatmul.mubr.bf16.gmra.mrb[136].mxu0 %v15273_v32  ;;  %10043 = vmatprep.subr.bf16.mxu1 %v11110_v43 }
 0x3a8   :  { %9769 = vmatprep.mubr.bf16.mxu0 %v2207_v21  ;;  %v21055_v21 = vld [vmem:[#allocation44_spill] sm:$0xff] }
 0x3aa   :  { %10044 = vmatpush3.bf16.msra.mxu1 %v11110_v43  ;;  %v11115_v43 = vld [vmem:[#allocation5 + $0x170] sm:$0xff]  }
 0x3ab   :  { %10045 = vmatprep.subr.bf16.mxu1 %v11111_v52 }
 0x3ad   :  { %9982 = vmatmul.mubr.bf16.gmra.mrb[28].mxu1 %v21052_v60 }
 0x3ae   :  { %9985 = vmatprep.mubr.bf16.mxu1 %v21053_v15  ;;  %10046 = vmatpush3.bf16.msra.mxu1 %v11111_v52  ;;  %v11116_v52 = vld [vmem:[#allocation5 + $0x178] sm:$0xff]   ;;  %v21057_v15 = vld [vmem:[#allocation116_spill] sm:$0xff] }
 0x3af   :  { %9770 = vmatmul.mubr.bf16.gmra.mrb[140].mxu0 %v15281_v47  ;;  %10047 = vmatprep.subr.bf16.mxu1 %v11112_v2  ;;  %v21056_v47 = vld [vmem:[#allocation117_spill] sm:$0xff] }
 0x3b0   :  { %9773 = vmatprep.mubr.bf16.mxu0 %v15289_v4 }
 0x3b2   :  { %10048 = vmatpush3.bf16.msra.mxu1 %v11112_v2  ;;  %v15346_v2 = vld [vmem:[#allocation5 + $0x180] sm:$0xff]  }
 0x3b3   :  { %10049 = vmatprep.subr.bf16.mxu1 %v11113_v46 }
 0x3b5   :  { %9986 = vmatmul.mubr.bf16.gmra.mrb[32].mxu1 %v21054_v18 }
 0x3b6   :  { %9989 = vmatprep.mubr.bf16.mxu1 %v21055_v21  ;;  %10050 = vmatpush3.bf16.msra.mxu1 %v11113_v46  ;;  %v21058_v46 = vld [vmem:[#allocation47_spill] sm:$0xff] }
 0x3b7   :  { %9774 = vmatmul.mubr.bf16.gmra.mrb[144].mxu0 %v15293_v11  ;;  %10051 = vmatprep.subr.bf16.mxu1 %v11114_v54 }
 0x3b8   :  { %9777 = vmatprep.mubr.bf16.mxu0 %v15036_v57 }
 0x3ba   :  { %10052 = vmatpush3.bf16.msra.mxu1 %v11114_v54  ;;  %v21059_v54 = vld [vmem:[#allocation121_spill] sm:$0xff] }
 0x3bb   :  { %10053 = vmatprep.subr.bf16.mxu1 %v11115_v43 }
 0x3bd   :  { %9990 = vmatmul.mubr.bf16.gmra.mrb[36].mxu1 %v21056_v47  ;;  %v21062_v47 = vld [vmem:[#allocation49_spill] sm:$0xff] }
 0x3be   :  { %9993 = vmatprep.mubr.bf16.mxu1 %v21057_v15  ;;  %10054 = vmatpush3.bf16.msra.mxu1 %v11115_v43  ;;  %v21060_v15 = vld [vmem:[#allocation59_spill] sm:$0xff]  ;;  %v21061_v43 = vld [vmem:[#allocation124_spill] sm:$0xff] }
 0x3bf   :  { %9778 = vmatmul.mubr.bf16.gmra.mrb[148].mxu0 %v15041_v33  ;;  %10055 = vmatprep.subr.bf16.mxu1 %v11116_v52 }
 0x3c0   :  { %9781 = vmatprep.mubr.bf16.mxu0 %v15045_v59 }
 0x3c2   :  { %10056 = vmatpush3.bf16.msra.mxu1 %v11116_v52  ;;  %v3284_v52 = vrot.slane %v21043_v36, 2  ;;  %v21064_v36 = vld [vmem:[#allocation101_spill] sm:$0xff] }
 0x3c3   :  { %10121 = vmatprep.subr.bf16.mxu1 %v15346_v2 }
 0x3c5   :  { %9994 = vmatmul.mubr.bf16.gmra.mrb[40].mxu1 %v21058_v46 }
 0x3c6   :  { %9997 = vmatprep.mubr.bf16.mxu1 %v21059_v54 }
 0x3c7   :  { %9782 = vmatmul.mubr.bf16.gmra.mrb[152].mxu0 %v15049_v5 }
 0x3c8   :  { %9785 = vmatprep.mubr.bf16.mxu0 %v15055_v63 }
 0x3cd   :  { %9998 = vmatmul.mubr.bf16.gmra.mrb[44].mxu1 %v21060_v15  ;;  %v21063_v15 = vld [vmem:[#allocation140_spill] sm:$0xff] }
 0x3ce   :  { %10001 = vmatprep.mubr.bf16.mxu1 %v21061_v43  ;;  %v3285_v43 = vrot.slane %v21044_v35, 2  ;;  %v3287_v54 = vrot.slane %v21063_v15, 2  ;;  %v3315_v35 = vrot.slane %v21014_v45, 2  ;;  %v3325_v45 = vrot.slane %v21020_v13, 2 }
 0x3cf   :  { %9786 = vmatmul.mubr.bf16.gmra.mrb[156].mxu0 %v15059_v42 }
 0x3d0   :  { %9789 = vmatprep.mubr.bf16.mxu0 %v15063_v22 }
 0x3d5   :  { %10002 = vmatmul.mubr.bf16.gmra.mrb[48].mxu1 %v21062_v47  ;;  %v3288_v47 = vsel %vm3283_vm1, %v3285_v43, %v3287_v54 }
 0x3d6   :  { %10005 = vmatprep.mubr.bf16.mxu1 %v14995_v62  ;;  %v3286_v62 = vsel %vm3283_vm1, %v3284_v52, %v3285_v43  ;;  %v21067_v52 = vld [vmem:[#allocation86_spill] sm:$0xff] }
 0x3d7   :  { %9790 = vmatmul.mubr.bf16.gmra.mrb[160].mxu0 %v15072_v40 }
 0x3d8   :  { %9793 = vmatprep.mubr.bf16.mxu0 %v15076_v20 }
 0x3dd   :  { %10006 = vmatmul.mubr.bf16.gmra.mrb[52].mxu1 %v15120_v8  ;;  %v3508_v8 = vpack.c.bf16 %v3288_v47, %v3286_v62  ;;  %v21065_v62 = vld [vmem:[#allocation163_spill] sm:$0xff] }
 0x3de   :  { %10009 = vmatprep.mubr.bf16.mxu1 %v15127_v17  ;;  %v3314_v17 = vrot.slane %v21013_v50, 2  ;;  %v3317_v15 = vrot.slane %v21065_v62, 2  ;;  %v3324_v50 = vrot.slane %v21019_v28, 2  ;;  %v3327_v62 = vrot.slane %v21067_v52, 2  ;;  %v21072_v52 = vld [vmem:[#allocation191_spill] sm:$0xff] }
 0x3df   :  { %9794 = vmatmul.mubr.bf16.gmra.mrb[164].mxu0 %v15082_v55 }
 0x3e0   :  { %9797 = vmatprep.mubr.bf16.mxu0 %v15086_v7  ;;  %v3316_v47 = vsel %vm3283_vm1, %v3314_v17, %v3315_v35  ;;  %v3318_v54 = vsel %vm3283_vm1, %v3315_v35, %v3317_v15  ;;  %v3326_v17 = vsel %vm3283_vm1, %v3324_v50, %v3325_v45  ;;  %v3328_v35 = vsel %vm3283_vm1, %v3325_v45, %v3327_v62  ;;  %v21069_v15 = vld [vmem:[#allocation174_spill] sm:$0xff] }
 0x3e1   :  { %v15389_v43 = vpack.c.bf16 %v3318_v54, %v3316_v47  ;;  %v21070_v47 = vld [vmem:[#allocation139_spill] sm:$0xff]  ;;  %v15403_v13 = vpack.c.bf16 %v3328_v35, %v3326_v17  ;;  %v21076_v35 = vld [vmem:[#allocation176_spill] sm:$0xff] }
 0x3e2   :  { %v3330_v54 = vrot.slane %v21070_v47, 2  ;;  %v21077_v47 = vld [vmem:[#allocation194_spill] sm:$0xff] }
 0x3e5   :  { %10010 = vmatmul.mubr.bf16.gmra.mrb[56].mxu1 %v15181_v41  ;;  %v21075_v41 = vld [vmem:[#allocation55_spill] sm:$0xff] }
 0x3e6   :  { %10013 = vmatprep.mubr.bf16.mxu1 %v15212_v48  ;;  %v21074_v48 = vld [vmem:[#allocation98_spill] sm:$0xff] }
 0x3e7   :  { %9798 = vmatmul.mubr.bf16.gmra.mrb[168].mxu0 %v15090_v30  ;;  %v3337_v50 = vrot.slane %v21074_v48, 2  ;;  %v3340_v48 = vrot.slane %v21077_v47, 2  ;;  %v21082_v47 = vld [vmem:[#allocation106_spill] sm:$0xff] }
 0x3e8   :  { %9817 = vmatprep.mubr.bf16.mxu0 %v3508_v8  ;;  %v21066_v8 = vld [vmem:[#allocation136_spill] sm:$0xff] }
 0x3ed   :  { %10014 = vmatmul.mubr.bf16.gmra.mrb[60].mxu1 %v21017_v49 }
 0x3ee   :  { %10017 = vmatprep.mubr.bf16.mxu1 %v21024_v3  ;;  %v21073_v3 = vld [vmem:[#allocation145_spill] sm:$0xff] }
 0x3ef   :  { %9818 = vmatmul.mubr.bf16.vlgmr.msra.gmra.mrb[108].mxu0 %v21064_v36  ;;  %v3335_v49 = vrot.slane %v21073_v3, 2  ;;  %v3339_v3 = vrot.slane %v21076_v35, 2 }
 0x3f0   :  { %9821 = vmatprep.mubr.bf16.mxu0 %v15144_v39 }
 0x3f5   :  { %10018 = vmatmul.mubr.bf16.gmra.mrb[0].mxu1 %v21025_v1  ;;  %v3334_v1 = vrot.slane %v21072_v52, 2  ;;  %v21078_v52 = vld [vmem:[#allocation71_spill] sm:$0xff] }
 0x3f6   :  { %10021 = vmatprep.mubr.bf16.mxu1 %v14957_v0  ;;  %v21068_v0 = vld [vmem:[#allocation54_spill] sm:$0xff] }
 0x3f7   :  { %9822 = vmatmul.mubr.bf16.gmra.mrb[112].mxu0 %v15146_v58 }
 0x3f8   :  { %9825 = vmatprep.mubr.bf16.mxu0 %v21066_v8 }
 0x3fd   :  { %10022 = vmatmul.mubr.bf16.gmra.mrb[4].mxu1 %v14961_v24  ;;  %v21071_v24 = vld [vmem:[#allocation92_spill] sm:$0xff] }
 0x3fe   :  { %10025 = vmatprep.mubr.bf16.mxu1 %v14973_v34  ;;  %v3329_v34 = vrot.slane %v21069_v15, 2  ;;  %v3332_v28 = vrot.slane %v21071_v24, 2  ;;  %v3336_v24 = vsel %vm3283_vm1, %v3334_v1, %v3335_v49  ;;  %v3338_v15 = vsel %vm3283_vm1, %v3335_v49, %v3337_v50 }
 0x3ff   :  { %9826 = vmatmul.mubr.bf16.gmra.mrb[116].mxu0 %v21068_v0  ;;  %v3341_v50 = vsel %vm3283_vm1, %v3339_v3, %v3340_v48  ;;  %v3355_v3 = vrot.slane %v21038_v53, 2 }
 0x400   :  { %9829 = vmatprep.mubr.bf16.mxu0 %v15389_v43  ;;  %v3331_v45 = vsel %vm3283_vm1, %v3329_v34, %v3330_v54  ;;  %v3333_v62 = vsel %vm3283_vm1, %v3330_v54, %v3332_v28  ;;  %v3344_v34 = vrot.slane %v21032_v61, 2  ;;  %v21079_v54 = vld [vmem:[#allocation102_spill] sm:$0xff]  ;;  %v21080_v28 = vld [vmem:[#allocation193_spill] sm:$0xff] }
 0x401   :  { %v15415_v17 = vpack.c.bf16 %v3333_v62, %v3331_v45  ;;  %v3345_v1 = vrot.slane %v21079_v54, 2  ;;  %v3347_v49 = vrot.slane %v21080_v28, 2  ;;  %v21081_v61 = vld [vmem:[#allocation154_spill] sm:$0xff]  ;;  %v21083_v54 = vld [vmem:[#allocation179_spill] sm:$0xff] }
 0x402   :  { %v3352_v28 = vrot.slane %v21083_v54, 2  ;;  %v21088_v54 = vld [vmem:[#allocation181_spill] sm:$0xff] }
 0x403   :  { %v3346_v62 = vsel %vm3283_vm1, %v3344_v34, %v3345_v1  ;;  %v3348_v35 = vsel %vm3283_vm1, %v3345_v1, %v3347_v49 }
 0x405   :  { %10026 = vmatmul.mubr.bf16.gmra.mrb[8].mxu1 %v14989_v23  ;;  %v15421_v23 = vpack.c.bf16 %v3338_v15, %v3336_v24  ;;  %v3349_v15 = vrot.slane %v21081_v61, 2  ;;  %v21087_v61 = vld [vmem:[#allocation118_spill] sm:$0xff] }
 0x406   :  { %10029 = vmatprep.mubr.bf16.mxu1 %v14997_v31  ;;  %v3342_v31 = vrot.slane %v21078_v52, 2  ;;  %v3350_v52 = vrot.slane %v21082_v47, 2  ;;  %v3360_v47 = vrot.slane %v21087_v61, 2  ;;  %v21092_v61 = vld [vmem:[#allocation126_spill] sm:$0xff] }
 0x407   :  { %9830 = vmatmul.mubr.bf16.gmra.mrb[120].mxu0 %v21075_v41 }
 0x408   :  { %9833 = vmatprep.mubr.bf16.mxu0 %v15403_v13  ;;  %v3343_v45 = vsel %vm3283_vm1, %v3340_v48, %v3342_v31  ;;  %v3354_v31 = vrot.slane %v21037_v16, 2  ;;  %v21084_v48 = vld [vmem:[#allocation80_spill] sm:$0xff]  ;;  %v3351_v1 = vsel %vm3283_vm1, %v3349_v15, %v3350_v52  ;;  %v3353_v49 = vsel %vm3283_vm1, %v3350_v52, %v3352_v28  ;;  %v21086_v16 = vld [vmem:[#allocation165_spill] sm:$0xff]  ;;  %v21089_v52 = vld [vmem:[#allocation123_spill] sm:$0xff] }
 0x409   :  { %v15433_v24 = vpack.c.bf16 %v3343_v45, %v3341_v50  ;;  %v3357_v34 = vrot.slane %v21084_v48, 2  ;;  %v3359_v53 = vrot.slane %v21086_v16, 2  ;;  %v3362_v48 = vrot.slane %v21088_v54, 2 }
 0x40a   :  { %v3356_v50 = vsel %vm3283_vm1, %v3354_v31, %v3355_v3  ;;  %v3364_v15 = vrot.slane %v21050_v51, 2  ;;  %v3367_v28 = vrot.slane %v21089_v52, 2  ;;  %v3365_v31 = vrot.slane %v21051_v25, 2  ;;  %v21091_v25 = vld [vmem:[#allocation197_spill] sm:$0xff] }
 0x40b   :  { %v3358_v45 = vsel %vm3283_vm1, %v3355_v3, %v3357_v34  ;;  %v3361_v3 = vsel %vm3283_vm1, %v3359_v53, %v3360_v47  ;;  %v3363_v34 = vsel %vm3283_vm1, %v3360_v47, %v3362_v48  ;;  %v3370_v16 = vrot.slane %v21091_v25, 2  ;;  %v21093_v47 = vld [vmem:[#allocation198_spill] sm:$0xff] }
 0x40c   :  { %v15469_v51 = vpack.c.bf16 %v3363_v34, %v3361_v3  ;;  %v3372_v54 = vrot.slane %v21092_v61, 2  ;;  %v3374_v48 = vrot.slane %v21093_v47, 2  ;;  %v11119_v3 = vld [vmem:[#allocation5 + $0x190] sm:$0xff]   ;;  %v21096_v61 = vld [vmem:[#allocation175_spill] sm:$0xff] }
 0x40d   :  { %10030 = vmatmul.mubr.bf16.gmra.mrb[12].mxu1 %v15008_v38  ;;  %v3379_v47 = vrot.slane %v21096_v61, 2  ;;  %v21104_v61 = vld [vmem:[#allocation108_spill] sm:$0xff] }
 0x40e   :  { %10033 = vmatprep.mubr.bf16.mxu1 %v15021_v6  ;;  %v15439_v6 = vpack.c.bf16 %v3348_v35, %v3346_v62  ;;  %v21085_v62 = vld [vmem:[#allocation90_spill] sm:$0xff]  ;;  %v15451_v35 = vpack.c.bf16 %v3353_v49, %v3351_v1  ;;  %v3366_v1 = vsel %vm3283_vm1, %v3364_v15, %v3365_v31  ;;  %v11118_v49 = vld [vmem:[#allocation5 + $0x188] sm:$0xff]   ;;  %v21094_v15 = vld [vmem:[#allocation183_spill] sm:$0xff] }
 0x40f   :  { %9834 = vmatmul.mubr.bf16.gmra.mrb[124].mxu0 %v15415_v17  ;;  %v3375_v52 = vrot.slane %v21094_v15, 2  ;;  %v21097_v15 = vld [vmem:[#allocation200_spill] sm:$0xff] }
 0x410   :  { %9837 = vmatprep.mubr.bf16.mxu0 %v15421_v23 }
 0x415   :  { %10034 = vmatmul.mubr.bf16.gmra.mrb[16].mxu1 %v15031_v37 }
 0x416   :  { %10037 = vmatprep.mubr.bf16.mxu1 %v15068_v27  ;;  %v15457_v27 = vpack.c.bf16 %v3358_v45, %v3356_v50  ;;  %v21090_v50 = vld [vmem:[#allocation173_spill] sm:$0xff] }
 0x417   :  { %9838 = vmatmul.mubr.bf16.gmra.mrb[128].mxu0 %v15433_v24  ;;  %v3369_v45 = vrot.slane %v21090_v50, 2  ;;  %v3373_v50 = vsel %vm3283_vm1, %v3370_v16, %v3372_v54 }
 0x418   :  { %9841 = vmatprep.mubr.bf16.mxu0 %v15439_v6 }
 0x419   :  { %v3371_v34 = vsel %vm3283_vm1, %v3369_v45, %v3370_v16 }
 0x41a   :  { %v3525_v25 = vpack.c.bf16 %v3373_v50, %v3371_v34  ;;  %v21099_v34 = vld [vmem:[#allocation56_spill] sm:$0xff]  ;;  %v21100_v50 = vld [vmem:[#allocation162_spill] sm:$0xff] }
 0x41d   :  { %10038 = vmatmul.mubr.bf16.gmra.mrb[20].mxu1 %v21085_v62 }
 0x41e   :  { %10057 = vmatprep.mubr.bf16.mxu1 %v21064_v36  ;;  %v3368_v36 = vsel %vm3283_vm1, %v3365_v31, %v3367_v28  ;;  %v21095_v28 = vld [vmem:[#allocation199_spill] sm:$0xff] }
 0x41f   :  { %9842 = vmatmul.mubr.bf16.gmra.mrb[132].mxu0 %v15451_v35  ;;  %v3524_v53 = vpack.c.bf16 %v3368_v36, %v3366_v1  ;;  %v3377_v31 = vrot.slane %v21095_v28, 2  ;;  %v11120_v36 = vld [vmem:[#allocation5 + $0x198] sm:$0xff]   ;;  %v3380_v28 = vrot.slane %v21097_v15, 2  ;;  %v21106_v15 = vld [vmem:[#allocation109_spill] sm:$0xff] }
 0x420   :  { %9845 = vmatprep.mubr.bf16.mxu0 %v15457_v27 }
 0x421   :  { %v3378_v1 = vsel %vm3283_vm1, %v3375_v52, %v3377_v31  ;;  %v3381_v16 = vsel %vm3283_vm1, %v3379_v47, %v3380_v28  ;;  %v11124_v31 = vld [vmem:[#allocation5 + $0x1b8] sm:$0xff]   ;;  %v21105_v47 = vld [vmem:[#allocation41_spill] sm:$0xff] }
 0x425   :  { %10058 = vmatmul.mubr.bf16.vlgmr.msra.gmra.mrb[24].mxu1 %v15144_v39 }
 0x426   :  { %10122 = vmatpush3.bf16.msra.mxu1 %v15346_v2  ;;  %10061 = vmatprep.mubr.bf16.mxu1 %v15146_v58  ;;  %v3376_v2 = vsel %vm3283_vm1, %v3374_v48, %v3375_v52  ;;  %v21098_v58 = vld [vmem:[#allocation132_spill] sm:$0xff]  ;;  %v11123_v52 = vld [vmem:[#allocation5 + $0x1b0] sm:$0xff]  }
 0x427   :  { %9846 = vmatmul.mubr.bf16.gmra.mrb[136].mxu0 %v15469_v51  ;;  %10123 = vmatprep.subr.bf16.mxu1 %v11118_v49  ;;  %v15489_v45 = vpack.c.bf16 %v3378_v1, %v3376_v2  ;;  %v11122_v48 = vld [vmem:[#allocation5 + $0x1a8] sm:$0xff]  }
 0x428   :  { %9849 = vmatprep.mubr.bf16.mxu0 %v3524_v53  ;;  %v3382_v53 = vrot.slane %v21098_v58, 2  ;;  %v21101_v2 = vld [vmem:[#allocation208_spill] sm:$0xff] }
 0x429   :  { %v21102_v1 = vld [vmem:[#allocation40_spill] sm:$0xff] }
 0x42a   :  { %10124 = vmatpush3.bf16.msra.mxu1 %v11118_v49  ;;  %v11121_v49 = vld [vmem:[#allocation5 + $0x1a0] sm:$0xff]   ;;  %v3383_v54 = vsel %vm3283_vm1, %v3380_v28, %v3382_v53  ;;  %v21109_v53 = vld [vmem:[#allocation46_spill] sm:$0xff] }
 0x42b   :  { %10125 = vmatprep.subr.bf16.mxu1 %v11119_v3  ;;  %v15495_v58 = vpack.c.bf16 %v3383_v54, %v3381_v16  ;;  %v21107_v28 = vld [vmem:[#allocation43_spill] sm:$0xff] }
 0x42d   :  { %10062 = vmatmul.mubr.bf16.gmra.mrb[28].mxu1 %v21066_v8 }
 0x42e   :  { %10065 = vmatprep.mubr.bf16.mxu1 %v21068_v0  ;;  %10126 = vmatpush3.bf16.msra.mxu1 %v11119_v3  ;;  %v11125_v3 = vld [vmem:[#allocation5 + $0x1c0] sm:$0xff]  }
 0x42f   :  { %9850 = vmatmul.mubr.bf16.gmra.mrb[140].mxu0 %v3525_v25  ;;  %10127 = vmatprep.subr.bf16.mxu1 %v11120_v36 }
 0x430   :  { %9853 = vmatprep.mubr.bf16.mxu0 %v15489_v45 }
 0x432   :  { %10128 = vmatpush3.bf16.msra.mxu1 %v11120_v36  ;;  %v21103_v36 = vld [vmem:[#allocation42_spill] sm:$0xff] }
 0x433   :  { %10129 = vmatprep.subr.bf16.mxu1 %v11121_v49 }
 0x435   :  { %10066 = vmatmul.mubr.bf16.gmra.mrb[32].mxu1 %v15389_v43 }
 0x436   :  { %10069 = vmatprep.mubr.bf16.mxu1 %v21075_v41  ;;  %10130 = vmatpush3.bf16.msra.mxu1 %v11121_v49 }
 0x437   :  { %9854 = vmatmul.mubr.bf16.gmra.mrb[144].mxu0 %v15495_v58  ;;  %10131 = vmatprep.subr.bf16.mxu1 %v11122_v48 }
 0x43a   :  { %10132 = vmatpush3.bf16.msra.mxu1 %v11122_v48  ;;  %v21113_v48 = vld [vmem:[#allocation45_spill] sm:$0xff] }
 0x43b   :  { %10133 = vmatprep.subr.bf16.mxu1 %v11123_v52 }
 0x43d   :  { %10070 = vmatmul.mubr.bf16.gmra.mrb[36].mxu1 %v15403_v13 }
 0x43e   :  { %10073 = vmatprep.mubr.bf16.mxu1 %v15415_v17  ;;  %10134 = vmatpush3.bf16.msra.mxu1 %v11123_v52 }
 0x43f   :  { %10135 = vmatprep.subr.bf16.mxu1 %v11124_v31 }
 0x442   :  { %10136 = vmatpush3.bf16.msra.mxu1 %v11124_v31  ;;  %v21115_v31 = vld [vmem:[#allocation48_spill] sm:$0xff] }
 0x443   :  { %10201 = vmatprep.subr.bf16.mxu1 %v11125_v3 }
 0x445   :  { %10074 = vmatmul.mubr.bf16.gmra.mrb[40].mxu1 %v15421_v23 }
 0x446   :  { %10077 = vmatprep.mubr.bf16.mxu1 %v15433_v24 }
 0x44d   :  { %10078 = vmatmul.mubr.bf16.gmra.mrb[44].mxu1 %v15439_v6 }
 0x44e   :  { %10081 = vmatprep.mubr.bf16.mxu1 %v15451_v35 }
 0x455   :  { %10082 = vmatmul.mubr.bf16.gmra.mrb[48].mxu1 %v15457_v27 }
 0x456   :  { %10085 = vmatprep.mubr.bf16.mxu1 %v15469_v51 }
 0x45d   :  { %10086 = vmatmul.mubr.bf16.gmra.mrb[52].mxu1 %v21099_v34 }
 0x45e   :  { %10089 = vmatprep.mubr.bf16.mxu1 %v3525_v25  ;;  %v21108_v25 = vld [vmem:[#allocation115_spill] sm:$0xff] }
 0x465   :  { %10090 = vmatmul.mubr.bf16.gmra.mrb[56].mxu1 %v15489_v45 }
 0x466   :  { %10093 = vmatprep.mubr.bf16.mxu1 %v15495_v58 }
 0x46d   :  { %10094 = vmatmul.mubr.bf16.gmra.mrb[60].mxu1 %v21100_v50 }
 0x46e   :  { %10097 = vmatprep.mubr.bf16.mxu1 %v21101_v2 }
 0x475   :  { %10098 = vmatmul.mubr.bf16.gmra.mrb[0].mxu1 %v21102_v1 }
 0x476   :  { %10101 = vmatprep.mubr.bf16.mxu1 %v21103_v36 }
 0x47d   :  { %10102 = vmatmul.mubr.bf16.gmra.mrb[4].mxu1 %v21104_v61 }
 0x47e   :  { %10105 = vmatprep.mubr.bf16.mxu1 %v21105_v47 }
 0x485   :  { %10106 = vmatmul.mubr.bf16.gmra.mrb[8].mxu1 %v21106_v15 }
 0x486   :  { %10109 = vmatprep.mubr.bf16.mxu1 %v21107_v28 }
 0x48d   :  { %10110 = vmatmul.mubr.bf16.gmra.mrb[12].mxu1 %v21108_v25  ;;  %v21119_v25 = vld [vmem:[#allocation94_spill] sm:$0xff] }
 0x48e   :  { %10113 = vmatprep.mubr.bf16.mxu1 %v21109_v53 }
 0x492   :  { %v15520_v49 = vpop.f32.mrb[148].mxu0 }
 0x493   :  { %21110 = vst [vmem:[#allocation155_spill] sm:$0xff] %v15520_v49  ;;  %v15522_v16 = vpop.f32.mrb[149].mxu0  ;;  %v11126_v49 = vld [vmem:[#allocation5 + $0x1c8] sm:$0xff]  }
 0x494   :  { %21111 = vst [vmem:[#allocation105_spill] sm:$0xff] %v15522_v16  ;;  %v15524_v54 = vpop.f32.mrb[150].mxu0 }
 0x495   :  { %21112 = vst [vmem:[#allocation157_spill] sm:$0xff] %v15524_v54  ;;  %10114 = vmatmul.mubr.bf16.gmra.mrb[16].mxu1 %v21113_v48  ;;  %v15527_v52 = vpop.f32.mrb[151].mxu0 }
 0x496   :  { %21114 = vst [vmem:[#allocation60_spill] sm:$0xff] %v15527_v52  ;;  %10117 = vmatprep.mubr.bf16.mxu1 %v21115_v31 }
 0x49a   :  { %v15530_v47 = vpop.f32.mrb[152].mxu0 }
 0x49b   :  { %21116 = vst [vmem:[#allocation153_spill] sm:$0xff] %v15530_v47  ;;  %v15532_v15 = vpop.f32.mrb[153].mxu0 }
 0x49c   :  { %21117 = vst [vmem:[#allocation110_spill] sm:$0xff] %v15532_v15  ;;  %v15534_v28 = vpop.f32.mrb[154].mxu0 }
 0x49d   :  { %21118 = vst [vmem:[#allocation204_spill] sm:$0xff] %v15534_v28  ;;  %10118 = vmatmul.mubr.bf16.gmra.mrb[20].mxu1 %v21119_v25  ;;  %v15537_v53 = vpop.f32.mrb[155].mxu0  ;;  %v11127_v28 = vld [vmem:[#allocation5 + $0x1d0] sm:$0xff]  }
 0x49e   :  { %21120 = vst [vmem:[#allocation63_spill] sm:$0xff] %v15537_v53  ;;  %10137 = vmatprep.mubr.bf16.mxu1 %v20955_v12  ;;  %v21152_v53 = vld [vmem:[#allocation81_spill] sm:$0xff] }
 0x4a2   :  { %v15540_v16 = vpop.f32.mrb[156].mxu0 }
 0x4a3   :  { %21121 = vst [vmem:[#allocation114_spill] sm:$0xff] %v15540_v16  ;;  %v15542_v54 = vpop.f32.mrb[157].mxu0  ;;  %v11128_v16 = vld [vmem:[#allocation5 + $0x1d8] sm:$0xff]  }
 0x4a4   :  { %21122 = vst [vmem:[#allocation66_spill] sm:$0xff] %v15542_v54  ;;  %v15544_v52 = vpop.f32.mrb[158].mxu0 }
 0x4a5   :  { %21123 = vst [vmem:[#allocation156_spill] sm:$0xff] %v15544_v52  ;;  %10138 = vmatmul.mubr.bf16.vlgmr.msra.gmra.mrb[24].mxu1 %v14822_v14  ;;  %v15547_v47 = vpop.f32.mrb[159].mxu0  ;;  %v11129_v14 = vld [vmem:[#allocation5 + $0x1e0] sm:$0xff]  }
 0x4a6   :  { %21124 = vst [vmem:[#allocation206_spill] sm:$0xff] %v15547_v47  ;;  %10202 = vmatpush3.bf16.msra.mxu1 %v11125_v3  ;;  %10141 = vmatprep.mubr.bf16.mxu1 %v21000_v29 }
 0x4a7   :  { %10203 = vmatprep.subr.bf16.mxu1 %v11126_v49 }
 0x4aa   :  { %v15550_v15 = vpop.f32.mrb[160].mxu0  ;;  %10204 = vmatpush3.bf16.msra.mxu1 %v11126_v49  ;;  %v11130_v49 = vld [vmem:[#allocation5 + $0x1e8] sm:$0xff]  }
 0x4ab   :  { %21125 = vst [vmem:[#allocation166_spill] sm:$0xff] %v15550_v15  ;;  %v15552_v12 = vpop.f32.mrb[161].mxu0  ;;  %10205 = vmatprep.subr.bf16.mxu1 %v11127_v28 }
 0x4ac   :  { %21126 = vst [vmem:[#allocation160_spill] sm:$0xff] %v15552_v12  ;;  %v15554_v54 = vpop.f32.mrb[162].mxu0 }
 0x4ad   :  { %21127 = vst [vmem:[#allocation112_spill] sm:$0xff] %v15554_v54  ;;  %10142 = vmatmul.mubr.bf16.gmra.mrb[28].mxu1 %v15094_v10  ;;  %v15557_v52 = vpop.f32.mrb[163].mxu0  ;;  %v11131_v10 = vld [vmem:[#allocation5 + $0x1f0] sm:$0xff]  }
 0x4ae   :  { %21128 = vst [vmem:[#allocation185_spill] sm:$0xff] %v15557_v52  ;;  %10145 = vmatprep.mubr.bf16.mxu1 %v15200_v9  ;;  %10206 = vmatpush3.bf16.msra.mxu1 %v11127_v28  ;;  %v21149_v52 = vld [vmem:[#allocation178_spill] sm:$0xff] }
 0x4af   :  { %10207 = vmatprep.subr.bf16.mxu1 %v11128_v16 }
 0x4b2   :  { %v15560_v29 = vpop.f32.mrb[164].mxu0  ;;  %10208 = vmatpush3.bf16.msra.mxu1 %v11128_v16  ;;  %v11132_v16 = vld [vmem:[#allocation5 + $0x1f8] sm:$0xff]  }
 0x4b3   :  { %21129 = vst [vmem:[#allocation77_spill] sm:$0xff] %v15560_v29  ;;  %v15562_v3 = vpop.f32.mrb[165].mxu0  ;;  %10209 = vmatprep.subr.bf16.mxu1 %v11129_v14  ;;  %v21148_v29 = vld [vmem:[#allocation76_spill] sm:$0xff] }
 0x4b4   :  { %21130 = vst [vmem:[#allocation186_spill] sm:$0xff] %v15562_v3  ;;  %v15564_v12 = vpop.f32.mrb[166].mxu0  ;;  %v21150_v15 = vsub.f32 %v21148_v29, %v21149_v52  ;;  %v21155_v29 = vld [vmem:[#allocation70_spill] sm:$0xff] }
 0x4b5   :  { %21131 = vst [vmem:[#allocation73_spill] sm:$0xff] %v15564_v12  ;;  %10146 = vmatmul.mubr.bf16.gmra.mrb[32].mxu1 %v15207_v19  ;;  %v15567_v54 = vpop.f32.mrb[167].mxu0  ;;  %v21137_v19 = vld [vmem:[#allocation57_spill] sm:$0xff] }
 0x4b6   :  { %21132 = vst [vmem:[#allocation207_spill] sm:$0xff] %v15567_v54  ;;  %10149 = vmatprep.mubr.bf16.mxu1 %v15228_v26  ;;  %10210 = vmatpush3.bf16.msra.mxu1 %v11129_v14  ;;  %v15580_v26 = vld [vmem:[#allocation5 + $0x200] sm:$0xff]   ;;  %v21147_v54 = vld [vmem:[#allocation58_spill] sm:$0xff] }
 0x4b7   :  { %10211 = vmatprep.subr.bf16.mxu1 %v11130_v49 }
 0x4ba   :  { %v15570_v9 = vpop.f32.mrb[168].mxu0  ;;  %10212 = vmatpush3.bf16.msra.mxu1 %v11130_v49 }
 0x4bb   :  { %21133 = vst [vmem:[#allocation95_spill] sm:$0xff] %v15570_v9  ;;  %v15572_v28 = vpop.f32.mrb[169].mxu0  ;;  %10213 = vmatprep.subr.bf16.mxu1 %v11131_v10  ;;  %v21145_v9 = vld [vmem:[#allocation149_spill] sm:$0xff] }
 0x4bc   :  { %21134 = vst [vmem:[#allocation89_spill] sm:$0xff] %v15572_v28  ;;  %v15574_v3 = vpop.f32.mrb[170].mxu0 }
 0x4bd   :  { %21135 = vst [vmem:[#allocation97_spill] sm:$0xff] %v15574_v3  ;;  %10150 = vmatmul.mubr.bf16.gmra.mrb[36].mxu1 %v15234_v56  ;;  %v15577_v12 = vpop.f32.mrb[171].mxu0  ;;  %v21140_v3 = vld [vmem:[#allocation99_spill] sm:$0xff] }
 0x4be   :  { %21136 = vst [vmem:[#allocation170_spill] sm:$0xff] %v15577_v12  ;;  %10153 = vmatprep.mubr.bf16.mxu1 %v21137_v19  ;;  %10214 = vmatpush3.bf16.msra.mxu1 %v11131_v10 }
 0x4bf   :  { %10215 = vmatprep.subr.bf16.mxu1 %v11132_v16 }
 0x4c2   :  { %v15582_v14 = vpop.f32.mrb[108].mxu0  ;;  %10216 = vmatpush3.bf16.msra.mxu1 %v11132_v16 }
 0x4c3   :  { %v15584_v49 = vpop.f32.mrb[109].mxu0  ;;  %10281 = vmatprep.subr.bf16.mxu1 %v15580_v26 }
 0x4c4   :  { %21138 = vst [vmem:[#allocation201_spill] sm:$0xff] %v15584_v49  ;;  %v15587_v28 = vpop.f32.mrb[110].mxu0 }
 0x4c5   :  { %21139 = vst [vmem:[#allocation141_spill] sm:$0xff] %v15587_v28  ;;  %10154 = vmatmul.mubr.bf16.gmra.mrb[40].mxu1 %v21140_v3  ;;  %v15590_v56 = vpop.f32.mrb[111].mxu0  ;;  %v21151_v3 = vld [vmem:[#allocation188_spill] sm:$0xff] }
 0x4c6   :  { %21141 = vst [vmem:[#allocation195_spill] sm:$0xff] %v15590_v56  ;;  %10157 = vmatprep.mubr.bf16.mxu1 %v15257_v44  ;;  %v1378_v47 = vmul.f32 %v21151_v3, %v21150_v15  ;;  %v21153_v44 = vsub.f32 %v21152_v53, %v21149_v52  ;;  %v21156_v15 = vld [vmem:[#allocation184_spill] sm:$0xff]  ;;  %v21157_v53 = vld [vmem:[#allocation190_spill] sm:$0xff] }
 0x4ca   :  { %v15593_v19 = vpop.f32.mrb[112].mxu0 }
 0x4cb   :  { %21142 = vst [vmem:[#allocation122_spill] sm:$0xff] %v15593_v19  ;;  %v15595_v10 = vpop.f32.mrb[113].mxu0  ;;  %v1379_v19 = vmul.f32 %v21151_v3, %v21153_v44 }
 0x4cc   :  { %21143 = vst [vmem:[#allocation62_spill] sm:$0xff] %v15595_v10  ;;  %v15597_v12 = vpop.f32.mrb[114].mxu0 }
 0x4cd   :  { %21144 = vst [vmem:[#allocation177_spill] sm:$0xff] %v15597_v12  ;;  %10158 = vmatmul.mubr.bf16.gmra.mrb[44].mxu1 %v21145_v9  ;;  %v15600_v16 = vpop.f32.mrb[115].mxu0  ;;  %v1487_v10 = vmax.f32 %v1379_v19, 0.0  ;;  %v1486_v12 = vmax.f32 %v1378_v47, 0.0 }
 0x4ce   :  { %21146 = vst [vmem:[#allocation64_spill] sm:$0xff] %v15600_v16  ;;  %10161 = vmatprep.mubr.bf16.mxu1 %v21147_v54 }
 0x4cf   :  { %v15622_v16 = vmul.f32 %v21156_v15, %v1487_v10  ;;  %v15625_v49 = vmul.f32 %v21157_v53, %v1486_v12 }
 0x4d1   :  { %v5252_v47 = vpack.c.bf16 %v15622_v16, %v15625_v49 }
 0x4d2   :  { %v15611_v56 = vpop.f32.mrb[116].mxu0 }
 0x4d3   :  { %v15613_v28 = vpop.f32.mrb[117].mxu0 }
 0x4d4   :  { %v15615_v9 = vpop.f32.mrb[118].mxu0 }
 0x4d5   :  { %21154 = vst [vmem:[#allocation138_spill] sm:$0xff] %v15615_v9  ;;  %10162 = vmatmul.mubr.bf16.gmra.mrb[48].mxu1 %v15273_v32  ;;  %v15618_v54 = vpop.f32.mrb[119].mxu0 }
 0x4d6   :  { %10165 = vmatprep.mubr.bf16.mxu1 %v21155_v29 }
 0x4da   :  { %v15627_v44 = vpop.f32.mrb[120].mxu0 }
 0x4db   :  { %v15631_v19 = vpop.f32.mrb[121].mxu0 }
 0x4dc   :  { %v15633_v9 = vpop.f32.mrb[122].mxu0 }
 0x4dd   :  { %21158 = vst [vmem:[#allocation68_spill] sm:$0xff] %v15633_v9  ;;  %10166 = vmatmul.mubr.bf16.gmra.mrb[52].mxu1 %v5252_v47  ;;  %v15635_v32 = vpop.f32.mrb[123].mxu0 }
 0x4de   :  { %10169 = vmatprep.mubr.bf16.mxu1 %v15289_v4 }
 0x4e2   :  { %v15638_v29 = vpop.f32.mrb[124].mxu0 }
 0x4e3   :  { %v15640_v10 = vpop.f32.mrb[125].mxu0 }
 0x4e4   :  { %21159 = vst [vmem:[#allocation180_spill] sm:$0xff] %v15640_v10  ;;  %v15642_v12 = vpop.f32.mrb[126].mxu0 }
 0x4e5   :  { %21160 = vst [vmem:[#allocation142_spill] sm:$0xff] %v15642_v12  ;;  %10170 = vmatmul.mubr.bf16.gmra.mrb[56].mxu1 %v15293_v11  ;;  %v15645_v15 = vpop.f32.mrb[127].mxu0 }
 0x4e6   :  { %10173 = vmatprep.mubr.bf16.mxu1 %v15036_v57 }
 0x4ea   :  { %v15648_v53 = vpop.f32.mrb[128].mxu0 }
 0x4eb   :  { %v15650_v9 = vpop.f32.mrb[129].mxu0 }
 0x4ec   :  { %21161 = vst [vmem:[#allocation67_spill] sm:$0xff] %v15650_v9  ;;  %v15652_v47 = vpop.f32.mrb[130].mxu0 }
 0x4ed   :  { %21162 = vst [vmem:[#allocation168_spill] sm:$0xff] %v15652_v47  ;;  %10174 = vmatmul.mubr.bf16.gmra.mrb[60].mxu1 %v15041_v33  ;;  %v15655_v4 = vpop.f32.mrb[131].mxu0 }
 0x4ee   :  { %10177 = vmatprep.mubr.bf16.mxu1 %v15045_v59 }
 0x4f2   :  { %v15658_v10 = vpop.f32.mrb[132].mxu0 }
 0x4f3   :  { %v15660_v12 = vpop.f32.mrb[133].mxu0 }
 0x4f4   :  { %21163 = vst [vmem:[#allocation69_spill] sm:$0xff] %v15660_v12  ;;  %v15662_v11 = vpop.f32.mrb[134].mxu0 }
 0x4f5   :  { %21164 = vst [vmem:[#allocation182_spill] sm:$0xff] %v15662_v11  ;;  %10178 = vmatmul.mubr.bf16.gmra.mrb[0].mxu1 %v15049_v5  ;;  %v15665_v57 = vpop.f32.mrb[135].mxu0 }
 0x4f6   :  { %10181 = vmatprep.mubr.bf16.mxu1 %v15055_v63 }
 0x4fa   :  { %v15668_v9 = vpop.f32.mrb[136].mxu0 }
 0x4fb   :  { %v15670_v47 = vpop.f32.mrb[137].mxu0 }
 0x4fc   :  { %21165 = vst [vmem:[#allocation75_spill] sm:$0xff] %v15670_v47  ;;  %v15672_v33 = vpop.f32.mrb[138].mxu0 }
 0x4fd   :  { %21166 = vst [vmem:[#allocation146_spill] sm:$0xff] %v15672_v33  ;;  %10182 = vmatmul.mubr.bf16.gmra.mrb[4].mxu1 %v15059_v42  ;;  %v15675_v59 = vpop.f32.mrb[139].mxu0 }
 0x4fe   :  { %21167 = vst [vmem:[#allocation91_spill] sm:$0xff] %v15675_v59  ;;  %10185 = vmatprep.mubr.bf16.mxu1 %v15063_v22  ;;  %v21180_v59 = vld [vmem:[#allocation53_spill] sm:$0xff] }
 0x502   :  { %v15678_v12 = vpop.f32.mrb[140].mxu0 }
 0x503   :  { %21168 = vst [vmem:[#allocation152_spill] sm:$0xff] %v15678_v12  ;;  %v15680_v11 = vpop.f32.mrb[141].mxu0 }
 0x504   :  { %21169 = vst [vmem:[#allocation87_spill] sm:$0xff] %v15680_v11  ;;  %v15682_v5 = vpop.f32.mrb[142].mxu0  ;;  %v21176_v11 = vld [vmem:[#allocation167_spill] sm:$0xff] }
 0x505   :  { %21170 = vst [vmem:[#allocation125_spill] sm:$0xff] %v15682_v5  ;;  %10186 = vmatmul.mubr.bf16.gmra.mrb[8].mxu1 %v15072_v40  ;;  %v15685_v63 = vpop.f32.mrb[143].mxu0  ;;  %v21177_v5 = vsub.f32 %v21176_v11, %v21149_v52 }
 0x506   :  { %21171 = vst [vmem:[#allocation130_spill] sm:$0xff] %v15685_v63  ;;  %10189 = vmatprep.mubr.bf16.mxu1 %v15076_v20  ;;  %v21178_v63 = vld [vmem:[#allocation171_spill] sm:$0xff] }
 0x507   :  { %v1433_v40 = vmul.f32 %v21151_v3, %v21177_v5  ;;  %v21179_v20 = vsub.f32 %v21178_v63, %v21149_v52  ;;  %v21181_v5 = vld [vmem:[#allocation104_spill] sm:$0xff] }
 0x508   :  { %v11134_v63 = vld [vmem:[#allocation5 + $0x208] sm:$0xff]  }
 0x509   :  { %v1541_v12 = vmax.f32 %v1433_v40, 0.0  ;;  %v21185_v40 = vld [vmem:[#allocation116_spill] sm:$0xff] }
 0x50a   :  { %v15688_v47 = vpop.f32.mrb[144].mxu0 }
 0x50b   :  { %21172 = vst [vmem:[#allocation82_spill] sm:$0xff] %v15688_v47  ;;  %v15690_v33 = vpop.f32.mrb[145].mxu0  ;;  %v1432_v47 = vmul.f32 %v21151_v3, %v21179_v20  ;;  %v21182_v20 = vld [vmem:[#allocation100_spill] sm:$0xff] }
 0x50c   :  { %21173 = vst [vmem:[#allocation158_spill] sm:$0xff] %v15690_v33  ;;  %v15692_v42 = vpop.f32.mrb[146].mxu0 }
 0x50d   :  { %21174 = vst [vmem:[#allocation93_spill] sm:$0xff] %v15692_v42  ;;  %10190 = vmatmul.mubr.bf16.gmra.mrb[12].mxu1 %v15082_v55  ;;  %v15695_v22 = vpop.f32.mrb[147].mxu0  ;;  %v1540_v33 = vmax.f32 %v1432_v47, 0.0  ;;  %v2076_v42 = vpop.permute.xlu1 %2075  ;;  %v21183_v47 = vld [vmem:[#allocation39_spill] sm:$0xff] }
 0x50e   :  { %21175 = vst [vmem:[#allocation88_spill] sm:$0xff] %v15695_v22  ;;  %10193 = vmatprep.mubr.bf16.mxu1 %v15086_v7  ;;  %v2071_v55 = vpop.permute.xlu0 %2070  ;;  %v15708_v22 = vmul.f32 %v2076_v42, %v1541_v12  ;;  %v11136_v12 = vld [vmem:[#allocation5 + $0x218] sm:$0xff]  }
 0x50f   :  { %v15710_v7 = vmul.f32 %v2071_v55, %v1540_v33  ;;  %v11137_v33 = vld [vmem:[#allocation5 + $0x220] sm:$0xff]   ;;  %v11140_v42 = vld [vmem:[#allocation5 + $0x238] sm:$0xff]  }
 0x510   :  { %v21187_v55 = vld [vmem:[#allocation59_spill] sm:$0xff] }
 0x511   :  { %v5253_v11 = vpack.c.bf16 %v15708_v22, %v15710_v7 }
 0x515   :  { %10194 = vmatmul.mubr.bf16.gmra.mrb[16].mxu1 %v15090_v30  ;;  %v11135_v30 = vld [vmem:[#allocation5 + $0x210] sm:$0xff]  }
 0x516   :  { %10197 = vmatprep.mubr.bf16.mxu1 %v21180_v59  ;;  %v11138_v59 = vld [vmem:[#allocation5 + $0x228] sm:$0xff]  }
 0x51d   :  { %10198 = vmatmul.mubr.bf16.gmra.mrb[20].mxu1 %v5253_v11 }
 0x51e   :  { %10217 = vmatprep.mubr.bf16.mxu1 %v21181_v5 }
 0x525   :  { %10218 = vmatmul.mubr.bf16.vlgmr.msra.gmra.mrb[24].mxu1 %v21182_v20  ;;  %v21190_v20 = vld [vmem:[#allocation124_spill] sm:$0xff] }
 0x526   :  { %10282 = vmatpush3.bf16.msra.mxu1 %v15580_v26  ;;  %10221 = vmatprep.mubr.bf16.mxu1 %v21052_v60  ;;  %v21184_v26 = vld [vmem:[#allocation117_spill] sm:$0xff] }
 0x527   :  { %10283 = vmatprep.subr.bf16.mxu1 %v11134_v63  ;;  %v11139_v60 = vld [vmem:[#allocation5 + $0x230] sm:$0xff]  }
 0x52a   :  { %10284 = vmatpush3.bf16.msra.mxu1 %v11134_v63 }
 0x52b   :  { %10285 = vmatprep.subr.bf16.mxu1 %v11135_v30 }
 0x52d   :  { %10222 = vmatmul.mubr.bf16.gmra.mrb[28].mxu1 %v21183_v47 }
 0x52e   :  { %10225 = vmatprep.mubr.bf16.mxu1 %v21054_v18  ;;  %10286 = vmatpush3.bf16.msra.mxu1 %v11135_v30  ;;  %v21186_v18 = vld [vmem:[#allocation121_spill] sm:$0xff] }
 0x52f   :  { %10287 = vmatprep.subr.bf16.mxu1 %v11136_v12  ;;  %v21191_v30 = vld [vmem:[#allocation49_spill] sm:$0xff] }
 0x532   :  { %10288 = vmatpush3.bf16.msra.mxu1 %v11136_v12  ;;  %v1811_v12 = vpop.permute.xlu0 %1810 }
 0x533   :  { %10289 = vmatprep.subr.bf16.mxu1 %v11137_v33 }
 0x535   :  { %10226 = vmatmul.mubr.bf16.gmra.mrb[32].mxu1 %v21055_v21  ;;  %v21188_v21 = vld [vmem:[#allocation84_spill] sm:$0xff] }
 0x536   :  { %10229 = vmatprep.mubr.bf16.mxu1 %v21184_v26  ;;  %10290 = vmatpush3.bf16.msra.mxu1 %v11137_v33  ;;  %v21189_v11 = vsub.f32 %v21188_v21, %v21149_v52  ;;  %v5678_v33 = vrot.slane %v15625_v49, 1  ;;  %v21192_v26 = vld [vmem:[#allocation52_spill] sm:$0xff]  ;;  %v21195_v21 = vld [vmem:[#allocation202_spill] sm:$0xff] }
 0x537   :  { %10291 = vmatprep.subr.bf16.mxu1 %v11138_v59 }
 0x538   :  { %v1380_v5 = vmul.f32 %v21151_v3, %v21189_v11  ;;  %v21196_v11 = vld [vmem:[#allocation120_spill] sm:$0xff] }
 0x53a   :  { %10292 = vmatpush3.bf16.msra.mxu1 %v11138_v59  ;;  %v1488_v63 = vmax.f32 %v1380_v5, 0.0  ;;  %v21197_v5 = vld [vmem:[#allocation50_spill] sm:$0xff] }
 0x53b   :  { %10293 = vmatprep.subr.bf16.mxu1 %v11139_v60 }
 0x53c   :  { %v2136_v47 = vmul.f32 %v1811_v12, %v1488_v63  ;;  %v21198_v63 = vld [vmem:[#allocation128_spill] sm:$0xff]  ;;  %v21201_v12 = vld [vmem:[#allocation127_spill] sm:$0xff] }
 0x53d   :  { %10230 = vmatmul.mubr.bf16.gmra.mrb[36].mxu1 %v21185_v40 }
 0x53e   :  { %10233 = vmatprep.mubr.bf16.mxu1 %v21058_v46  ;;  %10294 = vmatpush3.bf16.msra.mxu1 %v11139_v60  ;;  %v5679_v46 = vrot.slane %v15622_v16, 1  ;;  %v5681_v59 = vrot.slane %v2136_v47, 1  ;;  %v21193_v60 = vld [vmem:[#allocation133_spill] sm:$0xff] }
 0x53f   :  { %10295 = vmatprep.subr.bf16.mxu1 %v11140_v42 }
 0x540   :  { %v5682_v40 = vsel %vm2335_vm0, %v5679_v46, %v5681_v59  ;;  %v21204_v59 = vld [vmem:[#allocation169_spill] sm:$0xff] }
 0x542   :  { %10296 = vmatpush3.bf16.msra.mxu1 %v11140_v42  ;;  %v5680_v42 = vsel %vm2335_vm0, %v5678_v33, %v5679_v46  ;;  %v21202_v33 = vld [vmem:[#allocation129_spill] sm:$0xff]  ;;  %v21203_v46 = vld [vmem:[#allocation135_spill] sm:$0xff] }
 0x545   :  { %10234 = vmatmul.mubr.bf16.gmra.mrb[40].mxu1 %v21186_v18  ;;  %v5692_v18 = vpack.c.bf16 %v5682_v40, %v5680_v42  ;;  %v21206_v40 = vld [vmem:[#allocation74_spill] sm:$0xff] }
 0x546   :  { %10237 = vmatprep.mubr.bf16.mxu1 %v21187_v55  ;;  %v21194_v55 = vld [vmem:[#allocation85_spill] sm:$0xff] }
 0x54d   :  { %10238 = vmatmul.mubr.bf16.gmra.mrb[44].mxu1 %v21190_v20  ;;  %v21199_v20 = vld [vmem:[#allocation131_spill] sm:$0xff] }
 0x54e   :  { %10241 = vmatprep.mubr.bf16.mxu1 %v21191_v30  ;;  %v21200_v30 = vld [vmem:[#allocation51_spill] sm:$0xff] }
 0x555   :  { %10242 = vmatmul.mubr.bf16.gmra.mrb[48].mxu1 %v21192_v26  ;;  %v21205_v26 = vsub.f32 %v21204_v59, %v21149_v52 }
 0x556   :  { %10245 = vmatprep.mubr.bf16.mxu1 %v21193_v60 }
 0x557   :  { %v1434_v60 = vmul.f32 %v21151_v3, %v21205_v26 }
 0x559   :  { %v1542_v42 = vmax.f32 %v1434_v60, 0.0 }
 0x55d   :  { %10246 = vmatmul.mubr.bf16.gmra.mrb[52].mxu1 %v5692_v18  ;;  %v2081_v18 = vpop.permute.xlu1 %2080 }
 0x55e   :  { %10249 = vmatprep.mubr.bf16.mxu1 %v21194_v55  ;;  %v2190_v55 = vmul.f32 %v2081_v18, %v1542_v42  ;;  %v21217_v42 = vld [vmem:[#allocation122_spill] sm:$0xff] }
 0x565   :  { %10250 = vmatmul.mubr.bf16.gmra.mrb[56].mxu1 %v21195_v21  ;;  %v5684_v21 = vrot.slane %v15708_v22, 1 }
 0x566   :  { %10253 = vmatprep.mubr.bf16.mxu1 %v21196_v11  ;;  %v5683_v11 = vrot.slane %v15710_v7, 1 }
 0x56d   :  { %10254 = vmatmul.mubr.bf16.gmra.mrb[60].mxu1 %v21197_v5  ;;  %v5686_v5 = vrot.slane %v2190_v55, 1 }
 0x56e   :  { %10257 = vmatprep.mubr.bf16.mxu1 %v21198_v63  ;;  %v21207_v63 = vld [vmem:[#allocation83_spill] sm:$0xff] }
 0x56f   :  { %v5687_v52 = vsel %vm2335_vm0, %v5684_v21, %v5686_v5 }
 0x575   :  { %10258 = vmatmul.mubr.bf16.gmra.mrb[0].mxu1 %v21199_v20  ;;  %v21216_v20 = vld [vmem:[#allocation195_spill] sm:$0xff] }
 0x576   :  { %10261 = vmatprep.mubr.bf16.mxu1 %v21200_v30 }
 0x57d   :  { %10262 = vmatmul.mubr.bf16.gmra.mrb[4].mxu1 %v21201_v12 }
 0x57e   :  { %10265 = vmatprep.mubr.bf16.mxu1 %v21202_v33 }
 0x585   :  { %10266 = vmatmul.mubr.bf16.gmra.mrb[8].mxu1 %v21203_v46 }
 0x586   :  { %10269 = vmatprep.mubr.bf16.mxu1 %v15008_v38  ;;  %v5685_v38 = vsel %vm2335_vm0, %v5683_v11, %v5684_v21  ;;  %v21218_v11 = vld [vmem:[#allocation62_spill] sm:$0xff] }
 0x587   :  { %v5693_v3 = vpack.c.bf16 %v5687_v52, %v5685_v38  ;;  %v21219_v52 = vld [vmem:[#allocation177_spill] sm:$0xff] }
 0x58d   :  { %10270 = vmatmul.mubr.bf16.gmra.mrb[12].mxu1 %v21206_v40 }
 0x58e   :  { %10273 = vmatprep.mubr.bf16.mxu1 %v15031_v37  ;;  %v21208_v37 = vld [vmem:[#allocation79_spill] sm:$0xff] }
 0x595   :  { %10274 = vmatmul.mubr.bf16.gmra.mrb[16].mxu1 %v21207_v63 }
 0x596   :  { %10277 = vmatprep.mubr.bf16.mxu1 %v21085_v62  ;;  %v6118_v62 = vrot.slane %v15708_v22, 2  ;;  %v21215_v22 = vld [vmem:[#allocation141_spill] sm:$0xff] }
 0x59d   :  { %10278 = vmatmul.mubr.bf16.gmra.mrb[20].mxu1 %v5693_v3 }
 0x59e   :  { %10297 = vmatprep.mubr.bf16.mxu1 %v15144_v39  ;;  %v6112_v39 = vrot.slane %v15625_v49, 2 }
 0x5a5   :  { %10298 = vmatmul.mubr.bf16.vlgmr.msra.gmra.mrb[24].mxu1 %v21208_v37 }
 0x5a6   :  { %10301 = vmatprep.mubr.bf16.mxu1 %v21066_v8  ;;  %v6115_v8 = vrot.slane %v2136_v47, 2 }
 0x5ad   :  { %10302 = vmatmul.mubr.bf16.gmra.mrb[28].mxu1 %v21068_v0  ;;  %v6113_v0 = vrot.slane %v15622_v16, 2 }
 0x5ae   :  { %10305 = vmatprep.mubr.bf16.mxu1 %v15389_v43 }
 0x5b5   :  { %10306 = vmatmul.mubr.bf16.gmra.mrb[32].mxu1 %v21075_v41  ;;  %v6114_v41 = vsel %vm3283_vm1, %v6112_v39, %v6113_v0 }
 0x5b6   :  { %10309 = vmatprep.mubr.bf16.mxu1 %v15403_v13  ;;  %v21211_v13 = vld [vmem:[#allocation43_spill] sm:$0xff] }
 0x5bd   :  { %10310 = vmatmul.mubr.bf16.gmra.mrb[36].mxu1 %v15415_v17  ;;  %v21212_v17 = vld [vmem:[#allocation115_spill] sm:$0xff] }
 0x5be   :  { %10313 = vmatprep.mubr.bf16.mxu1 %v15421_v23  ;;  %v6116_v23 = vsel %vm3283_vm1, %v6113_v0, %v6115_v8 }
 0x5bf   :  { %v6126_v43 = vpack.c.bf16 %v6116_v23, %v6114_v41  ;;  %v21220_v41 = vld [vmem:[#allocation64_spill] sm:$0xff] }
 0x5c5   :  { %10314 = vmatmul.mubr.bf16.gmra.mrb[40].mxu1 %v15433_v24  ;;  %v21213_v24 = vld [vmem:[#allocation46_spill] sm:$0xff] }
 0x5c6   :  { %10317 = vmatprep.mubr.bf16.mxu1 %v15439_v6  ;;  %v21209_v6 = vld [vmem:[#allocation41_spill] sm:$0xff] }
 0x5cd   :  { %10318 = vmatmul.mubr.bf16.gmra.mrb[44].mxu1 %v15451_v35  ;;  %v6117_v35 = vrot.slane %v15710_v7, 2 }
 0x5ce   :  { %10321 = vmatprep.mubr.bf16.mxu1 %v15457_v27  ;;  %v21210_v27 = vld [vmem:[#allocation109_spill] sm:$0xff] }
 0x5d5   :  { %10322 = vmatmul.mubr.bf16.gmra.mrb[48].mxu1 %v15469_v51  ;;  %v6120_v51 = vrot.slane %v2190_v55, 2 }
 0x5d6   :  { %10325 = vmatprep.mubr.bf16.mxu1 %v21099_v34 }
 0x5dd   :  { %10326 = vmatmul.mubr.bf16.gmra.mrb[52].mxu1 %v6126_v43 }
 0x5de   :  { %10329 = vmatprep.mubr.bf16.mxu1 %v15489_v45  ;;  %v6119_v45 = vsel %vm3283_vm1, %v6117_v35, %v6118_v62 }
 0x5e5   :  { %10330 = vmatmul.mubr.bf16.gmra.mrb[56].mxu1 %v15495_v58  ;;  %v6121_v58 = vsel %vm3283_vm1, %v6118_v62, %v6120_v51 }
 0x5e6   :  { %10333 = vmatprep.mubr.bf16.mxu1 %v21100_v50  ;;  %v6127_v34 = vpack.c.bf16 %v6121_v58, %v6119_v45  ;;  %v11141_v50 = vld [vmem:[#allocation7] sm:$0xff]  }
 0x5e7   :  { %10361 = vmatprep.subr.bf16.mxu0 %v11141_v50 }
 0x5e8   :  { %10362 = vmatpush3.bf16.msra.mxu0 %v11141_v50 }
 0x5ed   :  { %10334 = vmatmul.mubr.bf16.gmra.mrb[60].mxu1 %v21101_v2  ;;  %v11142_v2 = vld [vmem:[#allocation7 + $0x8] sm:$0xff]  }
 0x5ee   :  { %10337 = vmatprep.mubr.bf16.mxu1 %v21102_v1  ;;  %10363 = vmatprep.subr.bf16.mxu0 %v11142_v2  ;;  %v11143_v1 = vld [vmem:[#allocation7 + $0x10] sm:$0xff]  }
 0x5ef   :  { %10364 = vmatpush3.bf16.msra.mxu0 %v11142_v2 }
 0x5f0   :  { %10365 = vmatprep.subr.bf16.mxu0 %v11143_v1 }
 0x5f3   :  { %10366 = vmatpush3.bf16.msra.mxu0 %v11143_v1  ;;  %v21221_v1 = vld [vmem:[#allocation138_spill] sm:$0xff] }
 0x5f5   :  { %10338 = vmatmul.mubr.bf16.gmra.mrb[0].mxu1 %v21103_v36  ;;  %v11144_v36 = vld [vmem:[#allocation7 + $0x18] sm:$0xff]  }
 0x5f6   :  { %10341 = vmatprep.mubr.bf16.mxu1 %v21104_v61  ;;  %10367 = vmatprep.subr.bf16.mxu0 %v11144_v36 }
 0x5f7   :  { %10368 = vmatpush3.bf16.msra.mxu0 %v11144_v36 }
 0x5fd   :  { %10342 = vmatmul.mubr.bf16.gmra.mrb[4].mxu1 %v21209_v6 }
 0x5fe   :  { %10345 = vmatprep.mubr.bf16.mxu1 %v21210_v27 }
 0x605   :  { %10346 = vmatmul.mubr.bf16.gmra.mrb[8].mxu1 %v21211_v13 }
 0x606   :  { %10349 = vmatprep.mubr.bf16.mxu1 %v21212_v17 }
 0x60d   :  { %10350 = vmatmul.mubr.bf16.gmra.mrb[12].mxu1 %v21213_v24 }
 0x60e   :  { %10353 = vmatprep.mubr.bf16.mxu1 %v21113_v48 }
 0x615   :  { %10354 = vmatmul.mubr.bf16.gmra.mrb[16].mxu1 %v21115_v31  ;;  %v21214_v31 = vld [vmem:[#allocation201_spill] sm:$0xff] }
 0x616   :  { %10357 = vmatprep.mubr.bf16.mxu1 %v21119_v25 }
 0x61d   :  { %10358 = vmatmul.mubr.bf16.gmra.mrb[20].mxu1 %v6127_v34 }
 0x678   :  { %v10299_v61 = vpop.f32.mrb[24].mxu1 }
 0x679   :  { %v15800_v25 = vadd.f32 %v10299_v61, %v15582_v14  ;;  %v6227_v48 = vpop.f32.mrb[25].mxu1 }
 0x67a   :  { %v15803_v49 = vadd.f32 %v6227_v48, %v21214_v31  ;;  %v10300_v16 = vpop.f32.mrb[26].mxu1 }
 0x67b   :  { %v15806_v7 = vadd.f32 %v10300_v16, %v21215_v22  ;;  %v6230_v47 = vpop.f32.mrb[27].mxu1  ;;  %v6617_v46 = vmul.f32 %v15800_v25, %v15800_v25 }
 0x67c   :  { %v15809_v30 = vadd.f32 %v6230_v47, %v21216_v20  ;;  %v6615_v12 = vmul.f32 %v15803_v49, %v15803_v49 }
 0x67d   :  { %v6618_v55 = vmul.f32 %v15806_v7, %v15806_v7 }
 0x67e   :  { %v6546_v33 = vadd.f32 %v15809_v30, %v15803_v49  ;;  %v6616_v14 = vmul.f32 %v15809_v30, %v15809_v30 }
 0x680   :  { %v6547_v59 = vadd.f32 %v15800_v25, %v6546_v33  ;;  %v6679_v26 = vadd.f32 %v6616_v14, %v6615_v12  ;;  %v10303_v60 = vpop.f32.mrb[28].mxu1 }
 0x681   :  { %v15821_v40 = vadd.f32 %v10303_v60, %v21217_v42  ;;  %v6243_v18 = vpop.f32.mrb[29].mxu1 }
 0x682   :  { %v6680_v21 = vadd.f32 %v6679_v26, %v6617_v46  ;;  %v15826_v5 = vadd.f32 %v6243_v18, %v21218_v11  ;;  %v6548_v63 = vadd.f32 %v15806_v7, %v6547_v59  ;;  %v10304_v38 = vpop.f32.mrb[30].mxu1 }
 0x683   :  { %v15830_v3 = vadd.f32 %v10304_v38, %v21219_v52  ;;  %v6246_v37 = vpop.f32.mrb[31].mxu1  ;;  %v6621_v13 = vmul.f32 %v15821_v40, %v15821_v40 }
 0x684   :  { %v6549_v0 = vadd.f32 %v15826_v5, %v6548_v63  ;;  %v6619_v39 = vmul.f32 %v15826_v5, %v15826_v5  ;;  %v6681_v8 = vadd.f32 %v6680_v21, %v6618_v55  ;;  %v15836_v23 = vadd.f32 %v6246_v37, %v21220_v41  ;;  %v21222_v55 = vld [vmem:[#allocation68_spill] sm:$0xff] }
 0x685   :  { %v6622_v45 = vmul.f32 %v15830_v3, %v15830_v3 }
 0x686   :  { %v6682_v43 = vadd.f32 %v6681_v8, %v6619_v39  ;;  %v6550_v6 = vadd.f32 %v15836_v23, %v6549_v0  ;;  %v6620_v27 = vmul.f32 %v15836_v23, %v15836_v23 }
 0x688   :  { %v6551_v17 = vadd.f32 %v15821_v40, %v6550_v6  ;;  %v6683_v24 = vadd.f32 %v6682_v43, %v6620_v27  ;;  %v10307_v62 = vpop.f32.mrb[32].mxu1 }
 0x689   :  { %v15845_v35 = vadd.f32 %v10307_v62, %v15611_v56  ;;  %v6259_v51 = vpop.f32.mrb[33].mxu1 }
 0x68a   :  { %v6684_v58 = vadd.f32 %v6683_v24, %v6621_v13  ;;  %v15850_v34 = vadd.f32 %v6259_v51, %v15613_v28  ;;  %v6552_v50 = vadd.f32 %v15830_v3, %v6551_v17  ;;  %v10308_v2 = vpop.f32.mrb[34].mxu1  ;;  %v21223_v17 = vld [vmem:[#allocation180_spill] sm:$0xff] }
 0x68b   :  { %v15854_v36 = vadd.f32 %v10308_v2, %v21221_v1  ;;  %v6262_v61 = vpop.f32.mrb[35].mxu1  ;;  %v6625_v20 = vmul.f32 %v15845_v35, %v15845_v35 }
 0x68c   :  { %v6553_v48 = vadd.f32 %v15850_v34, %v6552_v50  ;;  %v6623_v56 = vmul.f32 %v15850_v34, %v15850_v34  ;;  %v6685_v31 = vadd.f32 %v6684_v58, %v6622_v45  ;;  %v15860_v16 = vadd.f32 %v6262_v61, %v15618_v54  ;;  %v21224_v45 = vld [vmem:[#allocation142_spill] sm:$0xff] }
 0x68d   :  { %v6626_v54 = vmul.f32 %v15854_v36, %v15854_v36 }
 0x68e   :  { %v6686_v22 = vadd.f32 %v6685_v31, %v6623_v56  ;;  %v6554_v28 = vadd.f32 %v15860_v16, %v6553_v48  ;;  %v6624_v47 = vmul.f32 %v15860_v16, %v15860_v16 }
 0x690   :  { %v6555_v12 = vadd.f32 %v15845_v35, %v6554_v28  ;;  %v6687_v33 = vadd.f32 %v6686_v22, %v6624_v47  ;;  %v10311_v14 = vpop.f32.mrb[36].mxu1  ;;  %v11145_v22 = vld [vmem:[#allocation7 + $0x20] sm:$0xff]   ;;  %v11146_v28 = vld [vmem:[#allocation7 + $0x28] sm:$0xff]  }
 0x691   :  { %v15869_v46 = vadd.f32 %v10311_v14, %v15627_v44  ;;  %v6275_v59 = vpop.f32.mrb[37].mxu1  ;;  %10369 = vmatprep.subr.bf16.mxu0 %v11145_v22 }
 0x692   :  { %v6688_v26 = vadd.f32 %v6687_v33, %v6625_v20  ;;  %v15874_v60 = vadd.f32 %v6275_v59, %v15631_v19  ;;  %v6556_v42 = vadd.f32 %v15854_v36, %v6555_v12  ;;  %v10312_v18 = vpop.f32.mrb[38].mxu1  ;;  %10370 = vmatpush3.bf16.msra.mxu0 %v11145_v22  ;;  %v15952_v22 = vld [vmem:[#allocation8] sm:$0xff]  }
 0x693   :  { %v15878_v21 = vadd.f32 %v10312_v18, %v21222_v55  ;;  %v6278_v11 = vpop.f32.mrb[39].mxu1  ;;  %v6629_v39 = vmul.f32 %v15869_v46, %v15869_v46  ;;  %10371 = vmatprep.subr.bf16.mxu0 %v11146_v28  ;;  %21229 = vst [vmem:[#allocation111_spill] sm:$0xff] %v15952_v22 }
 0x694   :  { %v6557_v63 = vadd.f32 %v15874_v60, %v6556_v42  ;;  %v6627_v44 = vmul.f32 %v15874_v60, %v15874_v60  ;;  %v6689_v38 = vadd.f32 %v6688_v26, %v6626_v54  ;;  %v15884_v52 = vadd.f32 %v6278_v11, %v15635_v32  ;;  %v21225_v26 = vld [vmem:[#allocation67_spill] sm:$0xff]  ;;  %v21226_v11 = vld [vmem:[#allocation168_spill] sm:$0xff] }
 0x695   :  { %v6630_v32 = vmul.f32 %v15878_v21, %v15878_v21 }
 0x696   :  { %v6690_v37 = vadd.f32 %v6689_v38, %v6627_v44  ;;  %v6558_v19 = vadd.f32 %v15884_v52, %v6557_v63  ;;  %v6628_v0 = vmul.f32 %v15884_v52, %v15884_v52  ;;  %10372 = vmatpush3.bf16.msra.mxu0 %v11146_v28 }
 0x698   :  { %v6559_v8 = vadd.f32 %v15869_v46, %v6558_v19  ;;  %v6691_v41 = vadd.f32 %v6690_v37, %v6628_v0  ;;  %v10315_v43 = vpop.f32.mrb[40].mxu1 }
 0x699   :  { %v15893_v6 = vadd.f32 %v10315_v43, %v15638_v29  ;;  %v6291_v27 = vpop.f32.mrb[41].mxu1  ;;  %v11148_v43 = vld [vmem:[#allocation7 + $0x38] sm:$0xff]  }
 0x69a   :  { %v6692_v13 = vadd.f32 %v6691_v41, %v6629_v39  ;;  %v15898_v24 = vadd.f32 %v6291_v27, %v21223_v17  ;;  %v6560_v62 = vadd.f32 %v15878_v21, %v6559_v8  ;;  %v10316_v51 = vpop.f32.mrb[42].mxu1 }
 0x69b   :  { %v15902_v58 = vadd.f32 %v10316_v51, %v21224_v45  ;;  %v6294_v50 = vpop.f32.mrb[43].mxu1  ;;  %v6633_v47 = vmul.f32 %v15893_v6, %v15893_v6 }
 0x69c   :  { %v6561_v2 = vadd.f32 %v15898_v24, %v6560_v62  ;;  %v6631_v29 = vmul.f32 %v15898_v24, %v15898_v24  ;;  %v6693_v1 = vadd.f32 %v6692_v13, %v6630_v32  ;;  %v15908_v61 = vadd.f32 %v6294_v50, %v15645_v15  ;;  %v21227_v50 = vld [vmem:[#allocation69_spill] sm:$0xff] }
 0x69d   :  { %v6634_v59 = vmul.f32 %v15902_v58, %v15902_v58 }
 0x69e   :  { %v6694_v48 = vadd.f32 %v6693_v1, %v6631_v29  ;;  %v6562_v56 = vadd.f32 %v15908_v61, %v6561_v2  ;;  %v6632_v31 = vmul.f32 %v15908_v61, %v15908_v61 }
 0x6a0   :  { %v6563_v20 = vadd.f32 %v15893_v6, %v6562_v56  ;;  %v6695_v12 = vadd.f32 %v6694_v48, %v6632_v31  ;;  %v10319_v33 = vpop.f32.mrb[44].mxu1  ;;  %v21228_v48 = vld [vmem:[#allocation182_spill] sm:$0xff] }
 0x6a1   :  { %v15917_v14 = vadd.f32 %v10319_v33, %v15648_v53  ;;  %v6307_v15 = vpop.f32.mrb[45].mxu1  ;;  %v11147_v53 = vld [vmem:[#allocation7 + $0x30] sm:$0xff]  }
 0x6a2   :  { %v6696_v54 = vadd.f32 %v6695_v12, %v6633_v47  ;;  %v15922_v42 = vadd.f32 %v6307_v15, %v21225_v26  ;;  %v6564_v18 = vadd.f32 %v15902_v58, %v6563_v20  ;;  %v10320_v55 = vpop.f32.mrb[46].mxu1  ;;  %10373 = vmatprep.subr.bf16.mxu0 %v11147_v53 }
 0x6a3   :  { %v15926_v63 = vadd.f32 %v10320_v55, %v21226_v11  ;;  %v6310_v44 = vpop.f32.mrb[47].mxu1  ;;  %v6637_v27 = vmul.f32 %v15917_v14, %v15917_v14  ;;  %10374 = vmatpush3.bf16.msra.mxu0 %v11147_v53  ;;  %v21230_v53 = vld [vmem:[#allocation75_spill] sm:$0xff] }
 0x6a4   :  { %v6565_v38 = vadd.f32 %v15922_v42, %v6564_v18  ;;  %v6635_v37 = vmul.f32 %v15922_v42, %v15922_v42  ;;  %v6697_v19 = vadd.f32 %v6696_v54, %v6634_v59  ;;  %v15932_v0 = vadd.f32 %v6310_v44, %v15655_v4  ;;  %10375 = vmatprep.subr.bf16.mxu0 %v11148_v43 }
 0x6a5   :  { %v6638_v51 = vmul.f32 %v15926_v63, %v15926_v63 }
 0x6a6   :  { %v6698_v39 = vadd.f32 %v6697_v19, %v6635_v37  ;;  %v6566_v8 = vadd.f32 %v15932_v0, %v6565_v38  ;;  %v6636_v41 = vmul.f32 %v15932_v0, %v15932_v0 }
 0x6a7   :  { %10376 = vmatpush3.bf16.msra.mxu0 %v11148_v43 }
 0x6a8   :  { %v6567_v32 = vadd.f32 %v15917_v14, %v6566_v8  ;;  %v6699_v13 = vadd.f32 %v6698_v39, %v6636_v41  ;;  %v10323_v17 = vpop.f32.mrb[48].mxu1  ;;  %10441 = vmatprep.subr.bf16.mxu0 %v15952_v22  ;;  %v21231_v39 = vld [vmem:[#allocation146_spill] sm:$0xff] }
 0x6a9   :  { %v15941_v62 = vadd.f32 %v10323_v17, %v15658_v10  ;;  %v6323_v4 = vpop.f32.mrb[49].mxu1 }
 0x6aa   :  { %v6700_v45 = vadd.f32 %v6699_v13, %v6637_v27  ;;  %v15946_v2 = vadd.f32 %v6323_v4, %v21227_v50  ;;  %v6568_v29 = vadd.f32 %v15926_v63, %v6567_v32  ;;  %v10324_v1 = vpop.f32.mrb[50].mxu1  ;;  %v21232_v32 = vld [vmem:[#allocation91_spill] sm:$0xff] }
 0x6ab   :  { %v15950_v56 = vadd.f32 %v10324_v1, %v21228_v48  ;;  %v6326_v31 = vpop.f32.mrb[51].mxu1  ;;  %v6641_v59 = vmul.f32 %v15941_v62, %v15941_v62  ;;  %v21233_v48 = vld [vmem:[#allocation152_spill] sm:$0xff] }
 0x6ac   :  { %v6569_v10 = vadd.f32 %v15946_v2, %v6568_v29  ;;  %v6639_v28 = vmul.f32 %v15946_v2, %v15946_v2  ;;  %v6701_v47 = vadd.f32 %v6700_v45, %v6638_v51  ;;  %v15958_v20 = vadd.f32 %v6326_v31, %v15665_v57 }
 0x6ad   :  { %v6642_v11 = vmul.f32 %v15950_v56, %v15950_v56 }
 0x6ae   :  { %v6702_v12 = vadd.f32 %v6701_v47, %v6639_v28  ;;  %v6570_v33 = vadd.f32 %v15958_v20, %v6569_v10  ;;  %v6640_v15 = vmul.f32 %v15958_v20, %v15958_v20 }
 0x6b0   :  { %v6571_v54 = vadd.f32 %v15941_v62, %v6570_v33  ;;  %v6703_v26 = vadd.f32 %v6702_v12, %v6640_v15  ;;  %v10327_v18 = vpop.f32.mrb[52].mxu1  ;;  %v21234_v12 = vld [vmem:[#allocation87_spill] sm:$0xff] }
 0x6b1   :  { %v15968_v55 = vadd.f32 %v10327_v18, %v15668_v9  ;;  %v6339_v57 = vpop.f32.mrb[53].mxu1 }
 0x6b2   :  { %v6704_v44 = vadd.f32 %v6703_v26, %v6641_v59  ;;  %v15973_v38 = vadd.f32 %v6339_v57, %v21230_v53  ;;  %v6572_v37 = vadd.f32 %v15950_v56, %v6571_v54  ;;  %v10328_v19 = vpop.f32.mrb[54].mxu1  ;;  %v21235_v54 = vld [vmem:[#allocation125_spill] sm:$0xff]  ;;  %v21236_v53 = vld [vmem:[#allocation130_spill] sm:$0xff] }
 0x6b3   :  { %v15977_v8 = vadd.f32 %v10328_v19, %v21231_v39  ;;  %v6342_v41 = vpop.f32.mrb[55].mxu1  ;;  %v6645_v45 = vmul.f32 %v15968_v55, %v15968_v55 }
 0x6b4   :  { %v6573_v43 = vadd.f32 %v15973_v38, %v6572_v37  ;;  %v6643_v9 = vmul.f32 %v15973_v38, %v15973_v38  ;;  %v6705_v27 = vadd.f32 %v6704_v44, %v6642_v11  ;;  %v15983_v13 = vadd.f32 %v6342_v41, %v21232_v32 }
 0x6b5   :  { %v6646_v28 = vmul.f32 %v15977_v8, %v15977_v8 }
 0x6b6   :  { %v6706_v17 = vadd.f32 %v6705_v27, %v6643_v9  ;;  %v6574_v4 = vadd.f32 %v15983_v13, %v6573_v43  ;;  %v6644_v51 = vmul.f32 %v15983_v13, %v15983_v13 }
 0x6b8   :  { %v6575_v50 = vadd.f32 %v15968_v55, %v6574_v4  ;;  %v6707_v29 = vadd.f32 %v6706_v17, %v6644_v51  ;;  %v10331_v1 = vpop.f32.mrb[56].mxu1  ;;  %v21237_v17 = vld [vmem:[#allocation82_spill] sm:$0xff] }
 0x6b9   :  { %v15992_v31 = vadd.f32 %v10331_v1, %v21233_v48  ;;  %v6355_v10 = vpop.f32.mrb[57].mxu1 }
 0x6ba   :  { %v6708_v47 = vadd.f32 %v6707_v29, %v6645_v45  ;;  %v15997_v33 = vadd.f32 %v6355_v10, %v21234_v12  ;;  %v6576_v15 = vadd.f32 %v15977_v8, %v6575_v50  ;;  %v10332_v59 = vpop.f32.mrb[58].mxu1  ;;  %v21238_v29 = vld [vmem:[#allocation158_spill] sm:$0xff] }
 0x6bb   :  { %v16001_v26 = vadd.f32 %v10332_v59, %v21235_v54  ;;  %v6358_v18 = vpop.f32.mrb[59].mxu1  ;;  %v6649_v43 = vmul.f32 %v15992_v31, %v15992_v31 }
 0x6bc   :  { %v6577_v57 = vadd.f32 %v15997_v33, %v6576_v15  ;;  %v6647_v11 = vmul.f32 %v15997_v33, %v15997_v33  ;;  %v6709_v44 = vadd.f32 %v6708_v47, %v6646_v28  ;;  %v16007_v37 = vadd.f32 %v6358_v18, %v21236_v53  ;;  %v21239_v28 = vld [vmem:[#allocation93_spill] sm:$0xff]  ;;  %v21240_v18 = vld [vmem:[#allocation88_spill] sm:$0xff] }
 0x6bd   :  { %v6650_v45 = vmul.f32 %v16001_v26, %v16001_v26 }
 0x6be   :  { %v6710_v19 = vadd.f32 %v6709_v44, %v6647_v11  ;;  %v6578_v39 = vadd.f32 %v16007_v37, %v6577_v57  ;;  %v6648_v41 = vmul.f32 %v16007_v37, %v16007_v37 }
 0x6c0   :  { %v6579_v9 = vadd.f32 %v15992_v31, %v6578_v39  ;;  %v6711_v27 = vadd.f32 %v6710_v19, %v6648_v41  ;;  %v10335_v32 = vpop.f32.mrb[60].mxu1 }
 0x6c1   :  { %v16016_v4 = vadd.f32 %v10335_v32, %v21237_v17  ;;  %v6371_v51 = vpop.f32.mrb[61].mxu1 }
 0x6c2   :  { %v6712_v50 = vadd.f32 %v6711_v27, %v6649_v43  ;;  %v16021_v1 = vadd.f32 %v6371_v51, %v21238_v29  ;;  %v6580_v48 = vadd.f32 %v16001_v26, %v6579_v9  ;;  %v10336_v10 = vpop.f32.mrb[62].mxu1  ;;  %v21241_v9 = vld [vmem:[#allocation155_spill] sm:$0xff] }
 0x6c3   :  { %v16025_v47 = vadd.f32 %v10336_v10, %v21239_v28  ;;  %v6374_v12 = vpop.f32.mrb[63].mxu1  ;;  %v6653_v19 = vmul.f32 %v16016_v4, %v16016_v4  ;;  %v21243_v10 = vld [vmem:[#allocation157_spill] sm:$0xff] }
 0x6c4   :  { %v6581_v15 = vadd.f32 %v16021_v1, %v6580_v48  ;;  %v6651_v59 = vmul.f32 %v16021_v1, %v16021_v1  ;;  %v6713_v54 = vadd.f32 %v6712_v50, %v6650_v45  ;;  %v16031_v57 = vadd.f32 %v6374_v12, %v21240_v18  ;;  %v21242_v45 = vld [vmem:[#allocation105_spill] sm:$0xff]  ;;  %v21244_v18 = vld [vmem:[#allocation60_spill] sm:$0xff] }
 0x6c5   :  { %v6654_v17 = vmul.f32 %v16025_v47, %v16025_v47 }
 0x6c6   :  { %v6714_v11 = vadd.f32 %v6713_v54, %v6651_v59  ;;  %v6582_v44 = vadd.f32 %v16031_v57, %v6581_v15  ;;  %v6652_v53 = vmul.f32 %v16031_v57, %v16031_v57 }
 0x6c8   :  { %v6583_v39 = vadd.f32 %v16016_v4, %v6582_v44  ;;  %v6715_v41 = vadd.f32 %v6714_v11, %v6652_v53  ;;  %v10339_v43 = vpop.f32.mrb[0].mxu1 }
 0x6c9   :  { %v16040_v27 = vadd.f32 %v10339_v43, %v21241_v9  ;;  %v6387_v32 = vpop.f32.mrb[1].mxu1 }
 0x6ca   :  { %v6716_v51 = vadd.f32 %v6715_v41, %v6653_v19  ;;  %v16045_v50 = vadd.f32 %v6387_v32, %v21242_v45  ;;  %v6584_v29 = vadd.f32 %v16025_v47, %v6583_v39  ;;  %v10340_v48 = vpop.f32.mrb[2].mxu1  ;;  %v21245_v32 = vld [vmem:[#allocation153_spill] sm:$0xff] }
 0x6cb   :  { %v16049_v28 = vadd.f32 %v10340_v48, %v21243_v10  ;;  %v6390_v12 = vpop.f32.mrb[3].mxu1  ;;  %v6657_v39 = vmul.f32 %v16040_v27, %v16040_v27  ;;  %v21247_v48 = vld [vmem:[#allocation110_spill] sm:$0xff] }
 0x6cc   :  { %v6585_v15 = vadd.f32 %v16045_v50, %v6584_v29  ;;  %v6655_v59 = vmul.f32 %v16045_v50, %v16045_v50  ;;  %v6717_v54 = vadd.f32 %v6716_v51, %v6654_v17  ;;  %v16055_v11 = vadd.f32 %v6390_v12, %v21244_v18 }
 0x6cd   :  { %v6658_v51 = vmul.f32 %v16049_v28, %v16049_v28 }
 0x6ce   :  { %v6718_v44 = vadd.f32 %v6717_v54, %v6655_v59  ;;  %v6586_v53 = vadd.f32 %v16055_v11, %v6585_v15  ;;  %v6656_v19 = vmul.f32 %v16055_v11, %v16055_v11  ;;  %v21249_v59 = vld [vmem:[#allocation204_spill] sm:$0xff] }
 0x6d0   :  { %v6587_v41 = vadd.f32 %v16040_v27, %v6586_v53  ;;  %v6719_v43 = vadd.f32 %v6718_v44, %v6656_v19  ;;  %v10343_v9 = vpop.f32.mrb[4].mxu1 }
 0x6d1   :  { %v16064_v45 = vadd.f32 %v10343_v9, %v21245_v32  ;;  %v6403_v17 = vpop.f32.mrb[5].mxu1  ;;  %v21251_v9 = vld [vmem:[#allocation63_spill] sm:$0xff] }
 0x6d2   :  { %v6720_v29 = vadd.f32 %v6719_v43, %v6657_v39  ;;  %v16069_v10 = vadd.f32 %v6403_v17, %v21247_v48  ;;  %v6588_v12 = vadd.f32 %v16049_v28, %v6587_v41  ;;  %v10344_v15 = vpop.f32.mrb[6].mxu1 }
 0x6d3   :  { %21246 = vst [vmem:[#allocation203_spill] sm:$0xff] %v16064_v45  ;;  %v16073_v54 = vadd.f32 %v10344_v15, %v21249_v59  ;;  %v6406_v18 = vpop.f32.mrb[7].mxu1  ;;  %v6661_v17 = vmul.f32 %v16064_v45, %v16064_v45  ;;  %v21253_v59 = vld [vmem:[#allocation114_spill] sm:$0xff] }
 0x6d4   :  { %21248 = vst [vmem:[#allocation147_spill] sm:$0xff] %v16069_v10  ;;  %v6589_v44 = vadd.f32 %v16069_v10, %v6588_v12  ;;  %v6659_v53 = vmul.f32 %v16069_v10, %v16069_v10  ;;  %v6721_v19 = vadd.f32 %v6720_v29, %v6658_v51  ;;  %v16079_v32 = vadd.f32 %v6406_v18, %v21251_v9 }
 0x6d5   :  { %21250 = vst [vmem:[#allocation151_spill] sm:$0xff] %v16073_v54  ;;  %v6662_v29 = vmul.f32 %v16073_v54, %v16073_v54 }
 0x6d6   :  { %21252 = vst [vmem:[#allocation78_spill] sm:$0xff] %v16079_v32  ;;  %v6722_v39 = vadd.f32 %v6721_v19, %v6659_v53  ;;  %v6590_v43 = vadd.f32 %v16079_v32, %v6589_v44  ;;  %v6660_v41 = vmul.f32 %v16079_v32, %v16079_v32  ;;  %v21255_v53 = vld [vmem:[#allocation66_spill] sm:$0xff]  ;;  %v21257_v32 = vld [vmem:[#allocation156_spill] sm:$0xff] }
 0x6d8   :  { %v6591_v48 = vadd.f32 %v16064_v45, %v6590_v43  ;;  %v6723_v15 = vadd.f32 %v6722_v39, %v6660_v41  ;;  %v10347_v12 = vpop.f32.mrb[8].mxu1 }
 0x6d9   :  { %v16088_v22 = vadd.f32 %v10347_v12, %v21253_v59  ;;  %v6419_v51 = vpop.f32.mrb[9].mxu1  ;;  %v21259_v59 = vld [vmem:[#allocation206_spill] sm:$0xff] }
 0x6da   :  { %v6724_v18 = vadd.f32 %v6723_v15, %v6661_v17  ;;  %v16093_v44 = vadd.f32 %v6419_v51, %v21255_v53  ;;  %v6592_v19 = vadd.f32 %v16073_v54, %v6591_v48  ;;  %v10348_v9 = vpop.f32.mrb[10].mxu1 }
 0x6db   :  { %21254 = vst [vmem:[#allocation164_spill] sm:$0xff] %v16088_v22  ;;  %v16097_v10 = vadd.f32 %v10348_v9, %v21257_v32  ;;  %v6422_v43 = vpop.f32.mrb[11].mxu1  ;;  %v6665_v32 = vmul.f32 %v16088_v22, %v16088_v22  ;;  %v21261_v9 = vld [vmem:[#allocation166_spill] sm:$0xff] }
 0x6dc   :  { %21256 = vst [vmem:[#allocation161_spill] sm:$0xff] %v16093_v44  ;;  %v6593_v39 = vadd.f32 %v16093_v44, %v6592_v19  ;;  %v6663_v41 = vmul.f32 %v16093_v44, %v16093_v44  ;;  %v6725_v12 = vadd.f32 %v6724_v18, %v6662_v29  ;;  %v16103_v45 = vadd.f32 %v6422_v43, %v21259_v59 }
 0x6dd   :  { %21258 = vst [vmem:[#allocation205_spill] sm:$0xff] %v16097_v10  ;;  %v6666_v18 = vmul.f32 %v16097_v10, %v16097_v10 }
 0x6de   :  { %21260 = vst [vmem:[#allocation187_spill] sm:$0xff] %v16103_v45  ;;  %v6726_v17 = vadd.f32 %v6725_v12, %v6663_v41  ;;  %v6594_v15 = vadd.f32 %v16103_v45, %v6593_v39  ;;  %v6664_v48 = vmul.f32 %v16103_v45, %v16103_v45  ;;  %v21263_v41 = vld [vmem:[#allocation160_spill] sm:$0xff] }
 0x6df   :  { %v21265_v45 = vld [vmem:[#allocation112_spill] sm:$0xff] }
 0x6e0   :  { %v6595_v51 = vadd.f32 %v16088_v22, %v6594_v15  ;;  %v6727_v53 = vadd.f32 %v6726_v17, %v6664_v48  ;;  %v10351_v19 = vpop.f32.mrb[12].mxu1 }
 0x6e1   :  { %v16112_v54 = vadd.f32 %v10351_v19, %v21261_v9  ;;  %v6435_v29 = vpop.f32.mrb[13].mxu1  ;;  %v21267_v9 = vld [vmem:[#allocation185_spill] sm:$0xff] }
 0x6e2   :  { %v6728_v43 = vadd.f32 %v6727_v53, %v6665_v32  ;;  %v16117_v39 = vadd.f32 %v6435_v29, %v21263_v41  ;;  %v6596_v12 = vadd.f32 %v16097_v10, %v6595_v51  ;;  %v10352_v59 = vpop.f32.mrb[14].mxu1 }
 0x6e3   :  { %21262 = vst [vmem:[#allocation65_spill] sm:$0xff] %v16112_v54  ;;  %v16121_v44 = vadd.f32 %v10352_v59, %v21265_v45  ;;  %v6438_v15 = vpop.f32.mrb[15].mxu1  ;;  %v6669_v45 = vmul.f32 %v16112_v54, %v16112_v54  ;;  %v21269_v59 = vld [vmem:[#allocation77_spill] sm:$0xff] }
 0x6e4   :  { %21264 = vst [vmem:[#allocation172_spill] sm:$0xff] %v16117_v39  ;;  %v6597_v17 = vadd.f32 %v16117_v39, %v6596_v12  ;;  %v6667_v48 = vmul.f32 %v16117_v39, %v16117_v39  ;;  %v6729_v19 = vadd.f32 %v6728_v43, %v6666_v18  ;;  %v16127_v22 = vadd.f32 %v6438_v15, %v21267_v9 }
 0x6e5   :  { %21266 = vst [vmem:[#allocation148_spill] sm:$0xff] %v16121_v44  ;;  %v6670_v43 = vmul.f32 %v16121_v44, %v16121_v44 }
 0x6e6   :  { %21268 = vst [vmem:[#allocation119_spill] sm:$0xff] %v16127_v22  ;;  %v6730_v32 = vadd.f32 %v6729_v19, %v6667_v48  ;;  %v6598_v53 = vadd.f32 %v16127_v22, %v6597_v17  ;;  %v6668_v51 = vmul.f32 %v16127_v22, %v16127_v22  ;;  %v21271_v48 = vld [vmem:[#allocation186_spill] sm:$0xff]  ;;  %v21273_v22 = vld [vmem:[#allocation73_spill] sm:$0xff] }
 0x6e8   :  { %v6599_v29 = vadd.f32 %v16112_v54, %v6598_v53  ;;  %v6731_v41 = vadd.f32 %v6730_v32, %v6668_v51  ;;  %v10355_v12 = vpop.f32.mrb[16].mxu1 }
 0x6e9   :  { %v16136_v10 = vadd.f32 %v10355_v12, %v21269_v59  ;;  %v6451_v18 = vpop.f32.mrb[17].mxu1  ;;  %v21275_v59 = vld [vmem:[#allocation207_spill] sm:$0xff] }
 0x6ea   :  { %v6732_v15 = vadd.f32 %v6731_v41, %v6669_v45  ;;  %v16141_v17 = vadd.f32 %v6451_v18, %v21271_v48  ;;  %v6600_v19 = vadd.f32 %v16121_v44, %v6599_v29  ;;  %v10356_v9 = vpop.f32.mrb[18].mxu1 }
 0x6eb   :  { %21270 = vst [vmem:[#allocation72_spill] sm:$0xff] %v16136_v10  ;;  %v16145_v39 = vadd.f32 %v10356_v9, %v21273_v22  ;;  %v6454_v53 = vpop.f32.mrb[19].mxu1  ;;  %v6673_v22 = vmul.f32 %v16136_v10, %v16136_v10  ;;  %v21277_v9 = vld [vmem:[#allocation95_spill] sm:$0xff] }
 0x6ec   :  { %21272 = vst [vmem:[#allocation189_spill] sm:$0xff] %v16141_v17  ;;  %v6601_v32 = vadd.f32 %v16141_v17, %v6600_v19  ;;  %v6671_v51 = vmul.f32 %v16141_v17, %v16141_v17  ;;  %v6733_v12 = vadd.f32 %v6732_v15, %v6670_v43  ;;  %v16151_v54 = vadd.f32 %v6454_v53, %v21275_v59 }
 0x6ed   :  { %21274 = vst [vmem:[#allocation134_spill] sm:$0xff] %v16145_v39  ;;  %v6674_v15 = vmul.f32 %v16145_v39, %v16145_v39 }
 0x6ee   :  { %21276 = vst [vmem:[#allocation150_spill] sm:$0xff] %v16151_v54  ;;  %v6734_v45 = vadd.f32 %v6733_v12, %v6671_v51  ;;  %v6602_v41 = vadd.f32 %v16151_v54, %v6601_v32  ;;  %v6672_v29 = vmul.f32 %v16151_v54, %v16151_v54  ;;  %v21279_v51 = vld [vmem:[#allocation89_spill] sm:$0xff] }
 0x6ef   :  { %v21281_v54 = vld [vmem:[#allocation97_spill] sm:$0xff] }
 0x6f0   :  { %v6603_v18 = vadd.f32 %v16136_v10, %v6602_v41  ;;  %v6735_v48 = vadd.f32 %v6734_v45, %v6672_v29  ;;  %v10359_v19 = vpop.f32.mrb[20].mxu1 }
 0x6f1   :  { %v16160_v44 = vadd.f32 %v10359_v19, %v21277_v9  ;;  %v6467_v43 = vpop.f32.mrb[21].mxu1  ;;  %v21283_v9 = vld [vmem:[#allocation170_spill] sm:$0xff] }
 0x6f2   :  { %v6736_v53 = vadd.f32 %v6735_v48, %v6673_v22  ;;  %v16165_v32 = vadd.f32 %v6467_v43, %v21279_v51  ;;  %v6604_v12 = vadd.f32 %v16145_v39, %v6603_v18  ;;  %v10360_v59 = vpop.f32.mrb[22].mxu1 }
 0x6f3   :  { %21278 = vst [vmem:[#allocation159_spill] sm:$0xff] %v16160_v44  ;;  %v16169_v17 = vadd.f32 %v10360_v59, %v21281_v54  ;;  %v6470_v41 = vpop.f32.mrb[23].mxu1  ;;  %v6677_v54 = vmul.f32 %v16160_v44, %v16160_v44 }
 0x6f4   :  { %21280 = vst [vmem:[#allocation196_spill] sm:$0xff] %v16165_v32  ;;  %v6605_v45 = vadd.f32 %v16165_v32, %v6604_v12  ;;  %v6675_v29 = vmul.f32 %v16165_v32, %v16165_v32  ;;  %v6737_v19 = vadd.f32 %v6736_v53, %v6674_v15  ;;  %v16175_v10 = vadd.f32 %v6470_v41, %v21283_v9  ;;  %v16255_v9 = vld [vmem:[%s19292_s0 + $0x88] sm:$0xff] }
 0x6f5   :  { %21282 = vst [vmem:[#allocation137_spill] sm:$0xff] %v16169_v17  ;;  %v6678_v12 = vmul.f32 %v16169_v17, %v16169_v17  ;;  %21296 = vst [vmem:[#allocation163_spill] sm:$0xff] %v16255_v9  ;;  %v16279_v9 = vld [vmem:[%s19292_s0 + $0xa8] sm:$0xff] }
 0x6f6   :  { %21284 = vst [vmem:[#allocation144_spill] sm:$0xff] %v16175_v10  ;;  %v6738_v22 = vadd.f32 %v6737_v19, %v6675_v29  ;;  %v6606_v48 = vadd.f32 %v16175_v10, %v6605_v45  ;;  %v6676_v18 = vmul.f32 %v16175_v10, %v16175_v10  ;;  %v16189_v45 = vld [vmem:[%s19292_s0 + $0x18] sm:$0xff]  ;;  %21300 = vst [vmem:[#allocation174_spill] sm:$0xff] %v16279_v9  ;;  %v16333_v9 = vld [vmem:[%s19292_s0 + $0xf0] sm:$0xff] }
 0x6f7   :  { %21285 = vst [vmem:[#allocation113_spill] sm:$0xff] %v16189_v45  ;;  %21309 = vst [vmem:[#allocation71_spill] sm:$0xff] %v16333_v9  ;;  %v16357_v9 = vld [vmem:[%s19292_s0 + $0x110] sm:$0xff] }
 0x6f8   :  { %v6607_v43 = vadd.f32 %v16160_v44, %v6606_v48  ;;  %v6739_v51 = vadd.f32 %v6738_v22, %v6676_v18  ;;  %v16195_v22 = vld [vmem:[%s19292_s0 + $0x20] sm:$0xff]  ;;  %v16201_v18 = vld [vmem:[%s19292_s0 + $0x28] sm:$0xff]  ;;  %v16261_v48 = vld [vmem:[%s19292_s0 + $0x90] sm:$0xff]  ;;  %21313 = vst [vmem:[#allocation106_spill] sm:$0xff] %v16357_v9 }
 0x6f9   :  { %21286 = vst [vmem:[#allocation61_spill] sm:$0xff] %v16195_v22  ;;  %21287 = vst [vmem:[#allocation143_spill] sm:$0xff] %v16201_v18 }
 0x6fa   :  { %v6608_v15 = vadd.f32 %v16169_v17, %v6607_v43  ;;  %v6740_v53 = vadd.f32 %v6739_v51, %v6677_v54  ;;  %v16207_v43 = vld [vmem:[%s19292_s0 + $0x48] sm:$0xff]  ;;  %v16219_v54 = vld [vmem:[%s19292_s0 + $0x58] sm:$0xff]  ;;  %v16225_v51 = vld [vmem:[%s19292_s0 + $0x60] sm:$0xff]  ;;  %21297 = vst [vmem:[#allocation136_spill] sm:$0xff] %v16261_v48 }
 0x6fb   :  { %21288 = vst [vmem:[#allocation192_spill] sm:$0xff] %v16207_v43  ;;  %21290 = vst [vmem:[#allocation103_spill] sm:$0xff] %v16219_v54  ;;  %v16243_v54 = vld [vmem:[%s19292_s0 + $0x78] sm:$0xff]  ;;  %v16285_v48 = vld [vmem:[%s19292_s0 + $0xb0] sm:$0xff] }
 0x6fc   :  { %v6609_v59 = vrot.slane %v6608_v15, 4  ;;  %v6741_v41 = vadd.f32 %v6740_v53, %v6678_v12  ;;  %v16213_v12 = vld [vmem:[%s19292_s0 + $0x50] sm:$0xff]  ;;  %21291 = vst [vmem:[#allocation107_spill] sm:$0xff] %v16225_v51  ;;  %21294 = vst [vmem:[#allocation140_spill] sm:$0xff] %v16243_v54  ;;  %v16249_v51 = vld [vmem:[%s19292_s0 + $0x80] sm:$0xff] }
 0x6fd   :  { %21289 = vst [vmem:[#allocation96_spill] sm:$0xff] %v16213_v12  ;;  %21295 = vst [vmem:[#allocation101_spill] sm:$0xff] %v16249_v51  ;;  %v16297_v54 = vld [vmem:[%s19292_s0 + $0xc0] sm:$0xff]  ;;  %v21328_v12 = vld [vmem:[#allocation65_spill] sm:$0xff] }
 0x6fe   :  { %v6610_v29 = vadd.f32 %v6609_v59, %v6608_v15  ;;  %v6742_v19 = vrot.slane %v6741_v41, 4  ;;  %v16231_v15 = vld [vmem:[%s19292_s0 + $0x68] sm:$0xff]  ;;  %21301 = vst [vmem:[#allocation139_spill] sm:$0xff] %v16285_v48  ;;  %21303 = vst [vmem:[#allocation191_spill] sm:$0xff] %v16297_v54  ;;  %v16321_v54 = vld [vmem:[%s19292_s0 + $0xe0] sm:$0xff] }
 0x6ff   :  { %21292 = vst [vmem:[#allocation44_spill] sm:$0xff] %v16231_v15  ;;  %21307 = vst [vmem:[#allocation176_spill] sm:$0xff] %v16321_v54 }
 0x700   :  { %v6611_v53 = vrot.slane %v6610_v29, 2  ;;  %v6743_v59 = vadd.f32 %v6742_v19, %v6741_v41  ;;  %v16237_v19 = vld [vmem:[%s19292_s0 + $0x70] sm:$0xff]  ;;  %v16267_v41 = vld [vmem:[%s19292_s0 + $0x98] sm:$0xff] }
 0x701   :  { %21293 = vst [vmem:[#allocation47_spill] sm:$0xff] %v16237_v19  ;;  %21298 = vst [vmem:[#allocation86_spill] sm:$0xff] %v16267_v41  ;;  %v16291_v19 = vld [vmem:[%s19292_s0 + $0xb8] sm:$0xff] }
 0x702   :  { %v6612_v15 = vadd.f32 %v6611_v53, %v6610_v29  ;;  %v6744_v43 = vrot.slane %v6743_v59, 2  ;;  %v16273_v53 = vld [vmem:[%s19292_s0 + $0xa0] sm:$0xff]  ;;  %21302 = vst [vmem:[#allocation92_spill] sm:$0xff] %v16291_v19  ;;  %v16303_v29 = vld [vmem:[%s19292_s0 + $0xc8] sm:$0xff]  ;;  %v16315_v19 = vld [vmem:[%s19292_s0 + $0xd8] sm:$0xff] }
 0x703   :  { %21299 = vst [vmem:[#allocation54_spill] sm:$0xff] %v16273_v53  ;;  %21304 = vst [vmem:[#allocation145_spill] sm:$0xff] %v16303_v29  ;;  %v16327_v53 = vld [vmem:[%s19292_s0 + $0xe8] sm:$0xff] }
 0x704   :  { %v6613_v41 = vrot.slane %v6612_v15, 1  ;;  %v6745_v51 = vadd.f32 %v6744_v43, %v6743_v59  ;;  %v16309_v59 = vld [vmem:[%s19292_s0 + $0xd0] sm:$0xff]  ;;  %21306 = vst [vmem:[#allocation55_spill] sm:$0xff] %v16315_v19  ;;  %21308 = vst [vmem:[#allocation194_spill] sm:$0xff] %v16327_v53  ;;  %v16339_v43 = vld [vmem:[%s19292_s0 + $0xf8] sm:$0xff] }
 0x705   :  { %21305 = vst [vmem:[#allocation98_spill] sm:$0xff] %v16309_v59  ;;  %21310 = vst [vmem:[#allocation102_spill] sm:$0xff] %v16339_v43  ;;  %v16351_v53 = vld [vmem:[%s19292_s0 + $0x108] sm:$0xff]  ;;  %v16365_v59 = vld [vmem:[%s19292_s0 + $0x118] sm:$0xff] }
 0x706   :  { %v6614_v29 = vadd.f32 %v6613_v41, %v6612_v15  ;;  %v6746_v48 = vrot.slane %v6745_v51, 1  ;;  %v16345_v41 = vld [vmem:[%s19292_s0 + $0x100] sm:$0xff]  ;;  %21312 = vst [vmem:[#allocation154_spill] sm:$0xff] %v16351_v53  ;;  %21314 = vst [vmem:[#allocation179_spill] sm:$0xff] %v16365_v59  ;;  %v16371_v19 = vld [vmem:[%s19292_s0 + $0x138] sm:$0xff] }
 0x707   :  { %21311 = vst [vmem:[#allocation193_spill] sm:$0xff] %v16345_v41  ;;  %21315 = vst [vmem:[#allocation80_spill] sm:$0xff] %v16371_v19 }
 0x708   :  { %v6747_v43 = vadd.f32 %v6746_v48, %v6745_v51  ;;  %v16360_v54 = vmul.f32 0.001953125, %v6614_v29  ;;  %v16377_v48 = vld [vmem:[%s19292_s0 + $0x140] sm:$0xff]  ;;  %v16383_v29 = vld [vmem:[%s19292_s0 + $0x148] sm:$0xff] }
 0x709   :  { %21316 = vst [vmem:[#allocation90_spill] sm:$0xff] %v16377_v48  ;;  %21317 = vst [vmem:[#allocation165_spill] sm:$0xff] %v16383_v29 }
 0x70a   :  { %v6749_v15 = vmul.f32 0.001953125, %v6747_v43  ;;  %v6750_v59 = vmul.f32 %v16360_v54, %v16360_v54  ;;  %v21327_v43 = vld [vmem:[#allocation119_spill] sm:$0xff]  ;;  %v21333_v51 = vsub.f32 %v15800_v25, %v16360_v54  ;;  %v21334_v9 = vsub.f32 %v15806_v7, %v16360_v54 }
 0x70b   :  { %v21336_v53 = vsub.f32 %v15809_v30, %v16360_v54  ;;  %v21337_v25 = vsub.f32 %v15826_v5, %v16360_v54  ;;  %v21338_v7 = vsub.f32 %v15836_v23, %v16360_v54 }
 0x70c   :  { %v6751_v41 = vsub.f32 %v6749_v15, %v6750_v59  ;;  %v21326_v59 = vld [vmem:[#allocation172_spill] sm:$0xff] }
 0x70e   :  { %v6816_v15 = vadd.f32 1e-05, %v6751_v41  ;;  %v21325_v41 = vld [vmem:[#allocation205_spill] sm:$0xff] }
 0x710   :  { %11159 = vrsqrt.f32 %v6816_v15  ;;  %v21335_v15 = vsub.f32 %v15803_v49, %v16360_v54  ;;  %v21339_v49 = vsub.f32 %v15821_v40, %v16360_v54 }
 0x71a   :  { %v16506_v48 = vpop.eup %11159 }
 0x71b   :  { %v6820_v22 = vmul.f32 %v16506_v48, %v21333_v51  ;;  %v6821_v10 = vmul.f32 %v16506_v48, %v21334_v9  ;;  %v6818_v29 = vmul.f32 %v16506_v48, %v21335_v15  ;;  %v6819_v19 = vmul.f32 %v16506_v48, %v21336_v53 }
 0x71c   :  { %v6822_v51 = vmul.f32 %v16506_v48, %v21337_v25  ;;  %v6823_v9 = vmul.f32 %v16506_v48, %v21338_v7  ;;  %v6824_v15 = vmul.f32 %v16506_v48, %v21339_v49  ;;  %v21340_v53 = vsub.f32 %v15830_v3, %v16360_v54 }
 0x71d   :  { %v6884_v17 = vmax.f32 %v6820_v22, 0.0  ;;  %v6885_v44 = vmax.f32 %v6821_v10, 0.0  ;;  %v6882_v30 = vmax.f32 %v6818_v29, 0.0  ;;  %v6883_v32 = vmax.f32 %v6819_v19, 0.0 }
 0x71e   :  { %v6825_v5 = vmul.f32 %v16506_v48, %v21340_v53  ;;  %v6886_v25 = vmax.f32 %v6822_v51, 0.0  ;;  %v6887_v39 = vmax.f32 %v6823_v9, 0.0  ;;  %v6888_v45 = vmax.f32 %v6824_v15, 0.0  ;;  %v11150_v15 = vld [vmem:[#allocation8 + $0x8] sm:$0xff]  }
 0x71f   :  { %v6947_v23 = vpack.c.bf16 %v6885_v44, %v6884_v17  ;;  %v21341_v7 = vsub.f32 %v15850_v34, %v16360_v54  ;;  %v21342_v10 = vsub.f32 %v15860_v16, %v16360_v54  ;;  %v6946_v29 = vpack.c.bf16 %v6883_v32, %v6882_v30 }
 0x720   :  { %v6889_v18 = vmax.f32 %v6825_v5, 0.0  ;;  %v6948_v3 = vpack.c.bf16 %v6887_v39, %v6886_v25  ;;  %v21343_v19 = vsub.f32 %v15845_v35, %v16360_v54  ;;  %v21344_v44 = vsub.f32 %v15854_v36, %v16360_v54 }
 0x721   :  { %v6826_v40 = vmul.f32 %v16506_v48, %v21341_v7  ;;  %v6827_v22 = vmul.f32 %v16506_v48, %v21342_v10  ;;  %v21345_v16 = vsub.f32 %v15874_v60, %v16360_v54  ;;  %10377 = vmatprep.mubr.bf16.mxu0 %v6946_v29  ;;  %v21346_v35 = vsub.f32 %v15884_v52, %v16360_v54 }
 0x722   :  { %v6828_v51 = vmul.f32 %v16506_v48, %v21343_v19  ;;  %v6829_v17 = vmul.f32 %v16506_v48, %v21344_v44  ;;  %v6949_v34 = vpack.c.bf16 %v6889_v18, %v6888_v45  ;;  %v21347_v36 = vsub.f32 %v15869_v46, %v16360_v54  ;;  %10378 = vmatmul.mubr.bf16.vlgmr.msra.gmra.mrb[172].mxu0 %v6947_v23 }
 0x723   :  { %v6890_v9 = vmax.f32 %v6826_v40, 0.0  ;;  %v6891_v49 = vmax.f32 %v6827_v22, 0.0  ;;  %v6830_v32 = vmul.f32 %v16506_v48, %v21345_v16  ;;  %v6831_v53 = vmul.f32 %v16506_v48, %v21346_v35  ;;  %v21350_v40 = vld [vmem:[#allocation111_spill] sm:$0xff]  ;;  %10381 = vmatprep.mubr.bf16.mxu0 %v6948_v3 }
 0x724   :  { %v6892_v39 = vmax.f32 %v6828_v51, 0.0  ;;  %v6893_v30 = vmax.f32 %v6829_v17, 0.0  ;;  %v6832_v45 = vmul.f32 %v16506_v48, %v21347_v36  ;;  %v21348_v60 = vsub.f32 %v15878_v21, %v16360_v54  ;;  %10442 = vmatpush3.bf16.msra.mxu0 %v21350_v40  ;;  %v11151_v51 = vld [vmem:[#allocation8 + $0x10] sm:$0xff]   ;;  %v11152_v40 = vld [vmem:[#allocation8 + $0x18] sm:$0xff]  }
 0x725   :  { %v6950_v18 = vpack.c.bf16 %v6891_v49, %v6890_v9  ;;  %v6894_v5 = vmax.f32 %v6830_v32, 0.0  ;;  %v21349_v7 = vsub.f32 %v15898_v24, %v16360_v54  ;;  %v6895_v46 = vmax.f32 %v6831_v53, 0.0  ;;  %10443 = vmatprep.subr.bf16.mxu0 %v11150_v15 }
 0x726   :  { %v6833_v25 = vmul.f32 %v16506_v48, %v21348_v60  ;;  %v16587_v10 = vpack.c.bf16 %v6893_v30, %v6892_v39  ;;  %v6896_v22 = vmax.f32 %v6832_v45, 0.0  ;;  %v21351_v23 = vsub.f32 %v15908_v61, %v16360_v54 }
 0x727   :  { %v6834_v52 = vmul.f32 %v16506_v48, %v21349_v7  ;;  %v21352_v24 = vsub.f32 %v15893_v6, %v16360_v54  ;;  %v21353_v3 = vsub.f32 %v15902_v58, %v16360_v54  ;;  %v16601_v9 = vpack.c.bf16 %v6895_v46, %v6894_v5 }
 0x728   :  { %v6835_v29 = vmul.f32 %v16506_v48, %v21351_v23  ;;  %v6897_v21 = vmax.f32 %v6833_v25, 0.0  ;;  %v21354_v61 = vsub.f32 %v15922_v42, %v16360_v54  ;;  %v21355_v32 = vsub.f32 %v15932_v0, %v16360_v54  ;;  %10444 = vmatpush3.bf16.msra.mxu0 %v11150_v15 }
 0x729   :  { %v6898_v19 = vmax.f32 %v6834_v52, 0.0  ;;  %v6836_v44 = vmul.f32 %v16506_v48, %v21352_v24  ;;  %v6837_v17 = vmul.f32 %v16506_v48, %v21353_v3  ;;  %v21356_v58 = vsub.f32 %v15917_v14, %v16360_v54  ;;  %10445 = vmatprep.subr.bf16.mxu0 %v11151_v51 }
 0x72a   :  { %v6899_v49 = vmax.f32 %v6835_v29, 0.0  ;;  %v6838_v16 = vmul.f32 %v16506_v48, %v21354_v61  ;;  %v6839_v6 = vmul.f32 %v16506_v48, %v21355_v32  ;;  %v16611_v39 = vpack.c.bf16 %v6897_v21, %v6896_v22  ;;  %10382 = vmatmul.mubr.bf16.gmra.mrb[176].mxu0 %v6949_v34 }
 0x72b   :  { %v6900_v30 = vmax.f32 %v6836_v44, 0.0  ;;  %v6901_v35 = vmax.f32 %v6837_v17, 0.0  ;;  %v6840_v53 = vmul.f32 %v16506_v48, %v21356_v58  ;;  %v21357_v5 = vsub.f32 %v15926_v63, %v16360_v54  ;;  %10385 = vmatprep.mubr.bf16.mxu0 %v6950_v18 }
 0x72c   :  { %v16617_v36 = vpack.c.bf16 %v6899_v49, %v6898_v19  ;;  %v6902_v42 = vmax.f32 %v6838_v16, 0.0  ;;  %v6903_v45 = vmax.f32 %v6839_v6, 0.0  ;;  %v21358_v7 = vsub.f32 %v15946_v2, %v16360_v54  ;;  %10446 = vmatpush3.bf16.msra.mxu0 %v11151_v51  ;;  %v11153_v51 = vld [vmem:[#allocation8 + $0x20] sm:$0xff]  }
 0x72d   :  { %v6841_v0 = vmul.f32 %v16506_v48, %v21357_v5  ;;  %v16623_v60 = vpack.c.bf16 %v6901_v35, %v6900_v30  ;;  %v6904_v25 = vmax.f32 %v6840_v53, 0.0  ;;  %v21359_v15 = vsub.f32 %v15958_v20, %v16360_v54  ;;  %10447 = vmatprep.subr.bf16.mxu0 %v11152_v40 }
 0x72e   :  { %v6842_v14 = vmul.f32 %v16506_v48, %v21358_v7  ;;  %v16633_v46 = vpack.c.bf16 %v6903_v45, %v6902_v42  ;;  %v21360_v22 = vsub.f32 %v15941_v62, %v16360_v54  ;;  %v21361_v29 = vsub.f32 %v15950_v56, %v16360_v54 }
 0x72f   :  { %v6843_v52 = vmul.f32 %v16506_v48, %v21359_v15  ;;  %v6905_v63 = vmax.f32 %v6841_v0, 0.0  ;;  %v21362_v20 = vsub.f32 %v15973_v38, %v16360_v54  ;;  %v21363_v44 = vsub.f32 %v15983_v13, %v16360_v54 }
 0x730   :  { %v6844_v23 = vmul.f32 %v16506_v48, %v21360_v22  ;;  %v6845_v2 = vmul.f32 %v16506_v48, %v21361_v29  ;;  %v6906_v21 = vmax.f32 %v6842_v14, 0.0  ;;  %v21364_v34 = vsub.f32 %v15968_v55, %v16360_v54  ;;  %10448 = vmatpush3.bf16.msra.mxu0 %v11152_v40  ;;  %v11154_v22 = vld [vmem:[#allocation8 + $0x28] sm:$0xff]  }
 0x731   :  { %v6907_v19 = vmax.f32 %v6843_v52, 0.0  ;;  %v6846_v24 = vmul.f32 %v16506_v48, %v21362_v20  ;;  %v6847_v62 = vmul.f32 %v16506_v48, %v21363_v44  ;;  %v16651_v3 = vpack.c.bf16 %v6905_v63, %v6904_v25  ;;  %10449 = vmatprep.subr.bf16.mxu0 %v11153_v51 }
 0x732   :  { %v6908_v56 = vmax.f32 %v6844_v23, 0.0  ;;  %v6909_v17 = vmax.f32 %v6845_v2, 0.0  ;;  %v6848_v49 = vmul.f32 %v16506_v48, %v21364_v34  ;;  %v21365_v13 = vsub.f32 %v15977_v8, %v16360_v54  ;;  %10386 = vmatmul.mubr.bf16.gmra.mrb[180].mxu0 %v16587_v10 }
 0x733   :  { %v16657_v61 = vpack.c.bf16 %v6907_v19, %v6906_v21  ;;  %v6910_v38 = vmax.f32 %v6846_v24, 0.0  ;;  %v6911_v16 = vmax.f32 %v6847_v62, 0.0  ;;  %v21366_v30 = vsub.f32 %v15997_v33, %v16360_v54  ;;  %10389 = vmatprep.mubr.bf16.mxu0 %v16601_v9 }
 0x734   :  { %v6849_v18 = vmul.f32 %v16506_v48, %v21365_v13  ;;  %v16663_v32 = vpack.c.bf16 %v6909_v17, %v6908_v56  ;;  %v6912_v6 = vmax.f32 %v6848_v49, 0.0  ;;  %v21367_v35 = vsub.f32 %v16007_v37, %v16360_v54  ;;  %10450 = vmatpush3.bf16.msra.mxu0 %v11153_v51  ;;  %v21378_v49 = vld [vmem:[#allocation147_spill] sm:$0xff] }
 0x735   :  { %v6850_v55 = vmul.f32 %v16506_v48, %v21366_v30  ;;  %v16673_v53 = vpack.c.bf16 %v6911_v16, %v6910_v38  ;;  %v21368_v8 = vsub.f32 %v15992_v31, %v16360_v54  ;;  %v21369_v5 = vsub.f32 %v16001_v26, %v16360_v54  ;;  %10451 = vmatprep.subr.bf16.mxu0 %v11154_v22  ;;  %v21380_v16 = vld [vmem:[#allocation78_spill] sm:$0xff]  ;;  %v21382_v30 = vld [vmem:[#allocation203_spill] sm:$0xff] }
 0x736   :  { %v6851_v58 = vmul.f32 %v16506_v48, %v21367_v35  ;;  %v6913_v42 = vmax.f32 %v6849_v18, 0.0  ;;  %v21370_v37 = vsub.f32 %v16021_v1, %v16360_v54  ;;  %v21371_v14 = vsub.f32 %v16031_v57, %v16360_v54  ;;  %v11155_v18 = vld [vmem:[#allocation8 + $0x30] sm:$0xff]  }
 0x737   :  { %v6852_v45 = vmul.f32 %v16506_v48, %v21368_v8  ;;  %v6853_v33 = vmul.f32 %v16506_v48, %v21369_v5  ;;  %v6914_v0 = vmax.f32 %v6850_v55, 0.0  ;;  %v21372_v40 = vsub.f32 %v16016_v4, %v16360_v54 }
 0x738   :  { %v6915_v25 = vmax.f32 %v6851_v58, 0.0  ;;  %v6854_v7 = vmul.f32 %v16506_v48, %v21370_v37  ;;  %v6855_v31 = vmul.f32 %v16506_v48, %v21371_v14  ;;  %v16691_v15 = vpack.c.bf16 %v6913_v42, %v6912_v6  ;;  %10452 = vmatpush3.bf16.msra.mxu0 %v11154_v22  ;;  %v21386_v37 = vld [vmem:[#allocation161_spill] sm:$0xff] }
 0x739   :  { %v6916_v52 = vmax.f32 %v6852_v45, 0.0  ;;  %v6917_v26 = vmax.f32 %v6853_v33, 0.0  ;;  %v6856_v63 = vmul.f32 %v16506_v48, %v21372_v40  ;;  %v21373_v57 = vsub.f32 %v16025_v47, %v16360_v54  ;;  %v21384_v45 = vld [vmem:[#allocation151_spill] sm:$0xff]  ;;  %10453 = vmatprep.subr.bf16.mxu0 %v11155_v18 }
 0x73a   :  { %v16697_v23 = vpack.c.bf16 %v6915_v25, %v6914_v0  ;;  %v6918_v1 = vmax.f32 %v6854_v7, 0.0  ;;  %v6919_v29 = vmax.f32 %v6855_v31, 0.0  ;;  %v21374_v4 = vsub.f32 %v16045_v50, %v16360_v54  ;;  %v21388_v31 = vld [vmem:[#allocation187_spill] sm:$0xff]  ;;  %10390 = vmatmul.mubr.bf16.gmra.mrb[184].mxu0 %v16611_v39 }
 0x73b   :  { %v6857_v2 = vmul.f32 %v16506_v48, %v21373_v57  ;;  %v16704_v21 = vpack.c.bf16 %v6917_v26, %v6916_v52  ;;  %v6920_v19 = vmax.f32 %v6856_v63, 0.0  ;;  %v21375_v24 = vsub.f32 %v16055_v11, %v16360_v54  ;;  %10393 = vmatprep.mubr.bf16.mxu0 %v16617_v36 }
 0x73c   :  { %v6858_v20 = vmul.f32 %v16506_v48, %v21374_v4  ;;  %v16715_v47 = vpack.c.bf16 %v6919_v29, %v6918_v1  ;;  %v21376_v10 = vsub.f32 %v16040_v27, %v16360_v54  ;;  %v21377_v50 = vsub.f32 %v16049_v28, %v16360_v54  ;;  %v21390_v1 = vld [vmem:[#allocation164_spill] sm:$0xff]  ;;  %10454 = vmatpush3.bf16.msra.mxu0 %v11155_v18 }
 0x73d   :  { %v6859_v44 = vmul.f32 %v16506_v48, %v21375_v24  ;;  %v6921_v62 = vmax.f32 %v6857_v2, 0.0  ;;  %v21379_v9 = vsub.f32 %v21378_v49, %v16360_v54  ;;  %v21381_v13 = vsub.f32 %v21380_v16, %v16360_v54  ;;  %v21396_v49 = vld [vmem:[#allocation148_spill] sm:$0xff] }
 0x73e   :  { %v6860_v56 = vmul.f32 %v16506_v48, %v21376_v10  ;;  %v6861_v17 = vmul.f32 %v16506_v48, %v21377_v50  ;;  %v6922_v34 = vmax.f32 %v6858_v20, 0.0  ;;  %v21383_v55 = vsub.f32 %v21382_v30, %v16360_v54 }
 0x73f   :  { %v6923_v11 = vmax.f32 %v6859_v44, 0.0  ;;  %v6862_v38 = vmul.f32 %v16506_v48, %v21379_v9  ;;  %v6863_v27 = vmul.f32 %v16506_v48, %v21381_v13  ;;  %v16733_v51 = vpack.c.bf16 %v6921_v62, %v6920_v19  ;;  %v11156_v19 = vld [vmem:[#allocation8 + $0x38] sm:$0xff]   ;;  %v21398_v13 = vld [vmem:[#allocation189_spill] sm:$0xff] }
 0x740   :  { %v6924_v6 = vmax.f32 %v6860_v56, 0.0  ;;  %v6925_v28 = vmax.f32 %v6861_v17, 0.0  ;;  %v6864_v35 = vmul.f32 %v16506_v48, %v21383_v55  ;;  %v21385_v5 = vsub.f32 %v21384_v45, %v16360_v54  ;;  %10455 = vmatprep.subr.bf16.mxu0 %v11156_v19  ;;  %v21402_v55 = vld [vmem:[#allocation72_spill] sm:$0xff] }
 0x741   :  { %v16739_v58 = vpack.c.bf16 %v6923_v11, %v6922_v34  ;;  %v6926_v42 = vmax.f32 %v6862_v38, 0.0  ;;  %v6927_v8 = vmax.f32 %v6863_v27, 0.0  ;;  %v21387_v7 = vsub.f32 %v21386_v37, %v16360_v54  ;;  %v21406_v37 = vld [vmem:[#allocation196_spill] sm:$0xff]  ;;  %10456 = vmatpush3.bf16.msra.mxu0 %v11156_v19  ;;  %v21416_v19 = vld [vmem:[#allocation113_spill] sm:$0xff] }
 0x742   :  { %v6865_v33 = vmul.f32 %v16506_v48, %v21385_v5  ;;  %v16745_v0 = vpack.c.bf16 %v6925_v28, %v6924_v6  ;;  %v6928_v25 = vmax.f32 %v6864_v35, 0.0  ;;  %v21389_v52 = vsub.f32 %v21388_v31, %v16360_v54  ;;  %v21400_v6 = vld [vmem:[#allocation150_spill] sm:$0xff]  ;;  %v21408_v31 = vld [vmem:[#allocation144_spill] sm:$0xff]  ;;  %10394 = vmatmul.mubr.bf16.gmra.mrb[188].mxu0 %v16623_v60 }
 0x743   :  { %v6866_v14 = vmul.f32 %v16506_v48, %v21387_v7  ;;  %v16755_v40 = vpack.c.bf16 %v6927_v8, %v6926_v42  ;;  %v21391_v29 = vsub.f32 %v21390_v1, %v16360_v54  ;;  %v21392_v57 = vsub.f32 %v21325_v41, %v16360_v54  ;;  %v21404_v8 = vld [vmem:[#allocation134_spill] sm:$0xff]  ;;  %10397 = vmatprep.mubr.bf16.mxu0 %v16633_v46 }
 0x744   :  { %v6867_v26 = vmul.f32 %v16506_v48, %v21389_v52  ;;  %v6929_v63 = vmax.f32 %v6865_v33, 0.0  ;;  %v21393_v24 = vsub.f32 %v21326_v59, %v16360_v54  ;;  %v21394_v62 = vsub.f32 %v21327_v43, %v16360_v54 }
 0x745   :  { %v6868_v22 = vmul.f32 %v16506_v48, %v21391_v29  ;;  %v6869_v2 = vmul.f32 %v16506_v48, %v21392_v57  ;;  %v6930_v4 = vmax.f32 %v6866_v14, 0.0  ;;  %v21395_v17 = vsub.f32 %v21328_v12, %v16360_v54 }
 0x746   :  { %v6931_v20 = vmax.f32 %v6867_v26, 0.0  ;;  %v6870_v44 = vmul.f32 %v16506_v48, %v21393_v24  ;;  %v6871_v10 = vmul.f32 %v16506_v48, %v21394_v62  ;;  %v16774_v56 = vpack.c.bf16 %v6929_v63, %v6928_v25 }
 0x747   :  { %v6932_v41 = vmax.f32 %v6868_v22, 0.0  ;;  %v6933_v50 = vmax.f32 %v6869_v2, 0.0  ;;  %v6872_v34 = vmul.f32 %v16506_v48, %v21395_v17  ;;  %v21397_v9 = vsub.f32 %v21396_v49, %v16360_v54  ;;  %v21410_v22 = vld [vmem:[#allocation159_spill] sm:$0xff]  ;;  %v21414_v17 = vld [vmem:[#allocation61_spill] sm:$0xff] }
 0x748   :  { %v16781_v59 = vpack.c.bf16 %v6931_v20, %v6930_v4  ;;  %v6934_v11 = vmax.f32 %v6870_v44, 0.0  ;;  %v6935_v43 = vmax.f32 %v6871_v10, 0.0  ;;  %v21399_v12 = vsub.f32 %v21398_v13, %v16360_v54  ;;  %v21412_v44 = vld [vmem:[#allocation137_spill] sm:$0xff]  ;;  %v21418_v49 = vld [vmem:[#allocation143_spill] sm:$0xff] }
 0x749   :  { %v6873_v39 = vmul.f32 %v16506_v48, %v21397_v9  ;;  %v16787_v38 = vpack.c.bf16 %v6933_v50, %v6932_v41  ;;  %v6936_v16 = vmax.f32 %v6872_v34, 0.0  ;;  %v21401_v36 = vsub.f32 %v21400_v6, %v16360_v54  ;;  %v21423_v6 = vld [vmem:[#allocation192_spill] sm:$0xff] }
 0x74a   :  { %v6874_v27 = vmul.f32 %v16506_v48, %v21399_v12  ;;  %v16797_v28 = vpack.c.bf16 %v6935_v43, %v6934_v11  ;;  %v21403_v35 = vsub.f32 %v21402_v55, %v16360_v54  ;;  %v21405_v45 = vsub.f32 %v21404_v8, %v16360_v54  ;;  %v21421_v12 = vld [vmem:[#allocation96_spill] sm:$0xff]  ;;  %10398 = vmatmul.mubr.bf16.gmra.mrb[192].mxu0 %v16651_v3 }
 0x74b   :  { %v6875_v18 = vmul.f32 %v16506_v48, %v21401_v36  ;;  %v6937_v30 = vmax.f32 %v6873_v39, 0.0  ;;  %v21407_v7 = vsub.f32 %v21406_v37, %v16360_v54  ;;  %v21409_v52 = vsub.f32 %v21408_v31, %v16360_v54  ;;  %10401 = vmatprep.mubr.bf16.mxu0 %v16657_v61 }
 0x74c   :  { %v6876_v42 = vmul.f32 %v16506_v48, %v21403_v35  ;;  %v6877_v5 = vmul.f32 %v16506_v48, %v21405_v45  ;;  %v6938_v33 = vmax.f32 %v6874_v27, 0.0  ;;  %v21411_v57 = vsub.f32 %v21410_v22, %v16360_v54  ;;  %v21430_v45 = vld [vmem:[#allocation107_spill] sm:$0xff] }
 0x74d   :  { %v6939_v25 = vmax.f32 %v6875_v18, 0.0  ;;  %v6878_v14 = vmul.f32 %v16506_v48, %v21407_v7  ;;  %v6879_v26 = vmul.f32 %v16506_v48, %v21409_v52  ;;  %v16815_v63 = vpack.c.bf16 %v6937_v30, %v6936_v16  ;;  %v21425_v30 = vld [vmem:[#allocation103_spill] sm:$0xff]  ;;  %v21437_v52 = vld [vmem:[#allocation140_spill] sm:$0xff] }
 0x74e   :  { %v6940_v1 = vmax.f32 %v6876_v42, 0.0  ;;  %v6941_v29 = vmax.f32 %v6877_v5, 0.0  ;;  %v6880_v2 = vmul.f32 %v16506_v48, %v21411_v57  ;;  %v21413_v62 = vsub.f32 %v21412_v44, %v16360_v54  ;;  %v21428_v42 = vld [vmem:[#allocation44_spill] sm:$0xff] }
 0x74f   :  { %v16821_v4 = vpack.c.bf16 %v6939_v25, %v6938_v33  ;;  %v6942_v20 = vmax.f32 %v6878_v14, 0.0  ;;  %v6943_v24 = vmax.f32 %v6879_v26, 0.0  ;;  %v21415_v34 = vrot.slane %v21414_v17, 1  ;;  %v21432_v25 = vld [vmem:[#allocation47_spill] sm:$0xff]  ;;  %v21435_v14 = vld [vmem:[#allocation101_spill] sm:$0xff] }
 0x750   :  { %v6881_v10 = vmul.f32 %v16506_v48, %v21413_v62  ;;  %v16827_v41 = vpack.c.bf16 %v6941_v29, %v6940_v1  ;;  %v6944_v50 = vmax.f32 %v6880_v2, 0.0  ;;  %v21417_v11 = vrot.slane %v21416_v19, 1  ;;  %v21439_v2 = vld [vmem:[#allocation163_spill] sm:$0xff] }
 0x751   :  { %v21419_v9 = vrot.slane %v21418_v49, 1  ;;  %v21420_v39 = vmov %v21415_v34  ;;  %v16844_v54 = vpack.c.bf16 %v6943_v24, %v6942_v20  ;;  %v21422_v27 = vrot.slane %v21421_v12, 1 }
 0x752   :  { %v16834_v43 = vsel %vm2335_vm0, %v21417_v11, %v21415_v34  ;;  %v6945_v48 = vmax.f32 %v6881_v10, 0.0  ;;  %v21424_v36 = vrot.slane %v21423_v6, 1  ;;  %v21426_v55 = vrot.slane %v21425_v30, 1  ;;  %v21442_v10 = vld [vmem:[#allocation86_spill] sm:$0xff]  ;;  %10402 = vmatmul.mubr.bf16.gmra.mrb[196].mxu0 %v16663_v32  ;;  %v11210_v32 = vld [vmem:[%s19292_s0 + $0x1d0] sm:$0xff] }
 0x753   :  { %v16841_v16 = vsel %vm2335_vm0, %v21420_v39, %v21419_v9  ;;  %v21427_v35 = vmov %v21422_v27  ;;  %v21429_v8 = vrot.slane %v21428_v42, 1  ;;  %v21431_v5 = vrot.slane %v21430_v45, 1  ;;  %v21446_v11 = vld [vmem:[#allocation54_spill] sm:$0xff]  ;;  %v21456_v45 = vld [vmem:[#allocation145_spill] sm:$0xff]  ;;  %10405 = vmatprep.mubr.bf16.mxu0 %v16673_v53 }
 0x754   :  { %v7987_v13 = vpack.c.bf16 %v16841_v16, %v16834_v43  ;;  %v16853_v18 = vsel %vm2335_vm0, %v21424_v36, %v21422_v27  ;;  %v16861_v60 = vsel %vm2335_vm0, %v21427_v35, %v21426_v55  ;;  %v21433_v37 = vrot.slane %v21432_v25, 1  ;;  %v21451_v27 = vld [vmem:[#allocation174_spill] sm:$0xff]  ;;  %v21453_v55 = vld [vmem:[#allocation92_spill] sm:$0xff]  ;;  %v21458_v25 = vld [vmem:[#allocation191_spill] sm:$0xff] }
 0x755   :  { %v16868_v33 = vsel %vm2335_vm0, %v21431_v5, %v21429_v8  ;;  %v21434_v7 = vmov %v21429_v8  ;;  %v21436_v31 = vrot.slane %v21435_v14, 1  ;;  %v21438_v26 = vrot.slane %v21437_v52, 1  ;;  %v21460_v14 = vld [vmem:[#allocation98_spill] sm:$0xff]  ;;  %v21495_v16 = vld [vmem:[#allocation17_spill] sm:$0xff] }
 0x756   :  { %v16875_v46 = vsel %vm2335_vm0, %v21434_v7, %v21433_v37  ;;  %v16884_v29 = vpack.c.bf16 %v6945_v48, %v6944_v50  ;;  %v7989_v22 = vpack.c.bf16 %v16861_v60, %v16853_v18  ;;  %v21440_v20 = vrot.slane %v21439_v2, 1  ;;  %v21444_v50 = vld [vmem:[#allocation136_spill] sm:$0xff]  ;;  %v21449_v48 = vld [vmem:[#allocation139_spill] sm:$0xff]  ;;  %v21494_v43 = vld [vmem:[#allocation18_spill] sm:$0xff] }
 0x757   :  { %v16882_v1 = vsel %vm2335_vm0, %v21438_v26, %v21436_v31  ;;  %v7990_v57 = vpack.c.bf16 %v16875_v46, %v16868_v33  ;;  %v21441_v24 = vmov %v21436_v31  ;;  %v21443_v17 = vrot.slane %v21442_v10, 1  ;;  %v21497_v18 = vld [vmem:[#allocation20_spill] sm:$0xff]  ;;  %v21498_v60 = vld [vmem:[#allocation19_spill] sm:$0xff]  ;;  %v21500_v46 = vld [vmem:[#allocation22_spill] sm:$0xff] }
 0x758   :  { %v16895_v44 = vsel %vm2335_vm0, %v21441_v24, %v21440_v20  ;;  %v21445_v34 = vrot.slane %v21444_v50, 1  ;;  %v21447_v49 = vrot.slane %v21446_v11, 1  ;;  %v21450_v12 = vrot.slane %v21449_v48, 1  ;;  %v21463_v24 = vld [vmem:[#allocation176_spill] sm:$0xff]  ;;  %v21467_v11 = vld [vmem:[#allocation194_spill] sm:$0xff] }
 0x759   :  { %v7991_v62 = vpack.c.bf16 %v16895_v44, %v16882_v1  ;;  %v21448_v9 = vmov %v21443_v17  ;;  %v21452_v6 = vrot.slane %v21451_v27, 1  ;;  %v21454_v35 = vrot.slane %v21453_v55, 1  ;;  %v21470_v27 = vld [vmem:[#allocation102_spill] sm:$0xff]  ;;  %v21472_v55 = vld [vmem:[#allocation71_spill] sm:$0xff]  ;;  %v21501_v1 = vld [vmem:[#allocation21_spill] sm:$0xff] }
 0x75a   :  { %v16904_v19 = vsel %vm2335_vm0, %v21445_v34, %v21443_v17  ;;  %v16911_v39 = vsel %vm2335_vm0, %v21448_v9, %v21447_v49  ;;  %v21455_v42 = vmov %v21450_v12  ;;  %v21457_v5 = vrot.slane %v21456_v45, 1  ;;  %v21465_v17 = vld [vmem:[#allocation55_spill] sm:$0xff]  ;;  %v21474_v45 = vld [vmem:[#allocation193_spill] sm:$0xff]  ;;  %10406 = vmatmul.mubr.bf16.gmra.mrb[200].mxu0 %v16691_v15 }
 0x75b   :  { %v16918_v36 = vsel %vm2335_vm0, %v21452_v6, %v21450_v12  ;;  %v7992_v30 = vpack.c.bf16 %v16911_v39, %v16904_v19  ;;  %v16927_v8 = vsel %vm2335_vm0, %v21455_v42, %v21454_v35  ;;  %v21459_v37 = vrot.slane %v21458_v25, 1  ;;  %10409 = vmatprep.mubr.bf16.mxu0 %v16697_v23  ;;  %v11213_v15 = vld [vmem:[%s19292_s0 + $0x200] sm:$0xff]  ;;  %v21507_v19 = vld [vmem:[#allocation25_spill] sm:$0xff] }
 0x75c   :  { %v21461_v31 = vrot.slane %v21460_v14, 1  ;;  %v21462_v52 = vmov %v21457_v5  ;;  %v7993_v2 = vpack.c.bf16 %v16927_v8, %v16918_v36  ;;  %v21464_v10 = vrot.slane %v21463_v24, 1  ;;  %v21477_v14 = vld [vmem:[#allocation106_spill] sm:$0xff]  ;;  %v21509_v36 = vld [vmem:[#allocation28_spill] sm:$0xff] }
 0x75d   :  { %v16934_v7 = vsel %vm2335_vm0, %v21459_v37, %v21457_v5  ;;  %v21466_v50 = vrot.slane %v21465_v17, 1  ;;  %v21468_v49 = vrot.slane %v21467_v11, 1  ;;  %v21471_v6 = vrot.slane %v21470_v27, 1 }
 0x75e   :  { %v16941_v26 = vsel %vm2335_vm0, %v21462_v52, %v21461_v31  ;;  %v21469_v9 = vmov %v21464_v10  ;;  %v21473_v35 = vrot.slane %v21472_v55, 1  ;;  %v21475_v5 = vrot.slane %v21474_v45, 1  ;;  %v21479_v52 = vld [vmem:[#allocation154_spill] sm:$0xff] }
 0x75f   :  { %v7994_v20 = vpack.c.bf16 %v16941_v26, %v16934_v7  ;;  %v16952_v34 = vsel %vm2335_vm0, %v21466_v50, %v21464_v10  ;;  %v16959_v48 = vsel %vm2335_vm0, %v21469_v9, %v21468_v49  ;;  %v21476_v25 = vmov %v21471_v6  ;;  %v21481_v50 = vld [vmem:[#allocation179_spill] sm:$0xff] }
 0x760   :  { %v7995_v12 = vpack.c.bf16 %v16959_v48, %v16952_v34  ;;  %v16968_v42 = vsel %vm2335_vm0, %v21473_v35, %v21471_v6  ;;  %v16975_v37 = vsel %vm2335_vm0, %v21476_v25, %v21475_v5  ;;  %v21478_v31 = vrot.slane %v21477_v14, 1  ;;  %v21484_v6 = vld [vmem:[#allocation90_spill] sm:$0xff]  ;;  %v21486_v35 = vld [vmem:[#allocation80_spill] sm:$0xff]  ;;  %v21488_v25 = vld [vmem:[#allocation165_spill] sm:$0xff] }
 0x761   :  { %v21480_v24 = vrot.slane %v21479_v52, 1  ;;  %v7996_v17 = vpack.c.bf16 %v16975_v37, %v16968_v42  ;;  %v21482_v11 = vrot.slane %v21481_v50, 1  ;;  %v21485_v55 = vrot.slane %v21484_v6, 1  ;;  %v11208_v6 = vld [vmem:[%s19292_s0 + $0x178] sm:$0xff] }
 0x762   :  { %v21483_v49 = vmov %v21478_v31  ;;  %v21487_v45 = vrot.slane %v21486_v35, 1  ;;  %10410 = vmatmul.mubr.bf16.gmra.mrb[204].mxu0 %v16704_v21  ;;  %v11216_v21 = vld [vmem:[%s19292_s0 + $0x230] sm:$0xff]  ;;  %v21499_v33 = vpack.c.bf16 %v21497_v18, %v21498_v60  ;;  %v21513_v37 = vld [vmem:[#allocation30_spill] sm:$0xff] }
 0x763   :  { %v16982_v10 = vsel %vm2335_vm0, %v21480_v24, %v21478_v31  ;;  %v16991_v9 = vsel %vm2335_vm0, %v21483_v49, %v21482_v11  ;;  %v21489_v31 = vrot.slane %v21488_v25, 1  ;;  %v21490_v52 = vmov %v21485_v55  ;;  %v11206_v24 = vld [vmem:[%s19292_s0 + $0x168] sm:$0xff]  ;;  %v11207_v11 = vld [vmem:[%s19292_s0 + $0x170] sm:$0xff]  ;;  %10413 = vmatprep.mubr.bf16.mxu0 %v16715_v47 }
 0x764   :  { %v7997_v27 = vpack.c.bf16 %v16991_v9, %v16982_v10  ;;  %v17001_v5 = vsel %vm2335_vm0, %v21487_v45, %v21485_v55  ;;  %v7833_v50 = vrot.slane %v11206_v24, 1  ;;  %v7834_v49 = vrot.slane %v11207_v11, 1  ;;  %v11209_v25 = vld [vmem:[%s19292_s0 + $0x1c8] sm:$0xff]  ;;  %v11211_v24 = vld [vmem:[%s19292_s0 + $0x1d8] sm:$0xff]  ;;  %v21514_v10 = vld [vmem:[#allocation29_spill] sm:$0xff] }
 0x765   :  { %v17008_v14 = vsel %vm2335_vm0, %v21490_v52, %v21489_v31  ;;  %v7836_v55 = vrot.slane %v11208_v6, 1  ;;  %v7843_v31 = vrot.slane %v11209_v25, 1  ;;  %v7844_v52 = vrot.slane %v11210_v32, 1  ;;  %v11212_v6 = vld [vmem:[%s19292_s0 + $0x1f8] sm:$0xff] }
 0x766   :  { %v7999_v3 = vpack.c.bf16 %v17008_v14, %v17001_v5  ;;  %v17024_v61 = vsel %vm2335_vm0, %v7833_v50, %v7834_v49  ;;  %v7846_v50 = vrot.slane %v11211_v24, 1  ;;  %v7854_v25 = vrot.slane %v11213_v15, 1 }
 0x767   :  { %v17027_v35 = vsel %vm2335_vm0, %v7834_v49, %v7836_v55  ;;  %v17043_v53 = vsel %vm2335_vm0, %v7843_v31, %v7844_v52  ;;  %v7853_v55 = vrot.slane %v11212_v6, 1  ;;  %v11214_v31 = vld [vmem:[%s19292_s0 + $0x208] sm:$0xff]  ;;  %v7864_v15 = vrot.slane %v11216_v21, 1 }
 0x768   :  { %v8001_v45 = vpack.c.bf16 %v17027_v35, %v17024_v61  ;;  %v17046_v11 = vsel %vm2335_vm0, %v7844_v52, %v7846_v50  ;;  %v7856_v32 = vrot.slane %v11214_v31, 1  ;;  %v11215_v50 = vld [vmem:[%s19292_s0 + $0x228] sm:$0xff] }
 0x769   :  { %v8003_v49 = vpack.c.bf16 %v17046_v11, %v17043_v53  ;;  %v17062_v23 = vsel %vm2335_vm0, %v7853_v55, %v7854_v25  ;;  %v7863_v6 = vrot.slane %v11215_v50, 1  ;;  %v11217_v55 = vld [vmem:[%s19292_s0 + $0x238] sm:$0xff] }
 0x76a   :  { %v17065_v52 = vsel %vm2335_vm0, %v7854_v25, %v7856_v32  ;;  %v7866_v25 = vrot.slane %v11217_v55, 1  ;;  %10414 = vmatmul.mubr.bf16.gmra.mrb[208].mxu0 %v16733_v51  ;;  %v11218_v50 = vld [vmem:[%s19292_s0 + $0x258] sm:$0xff] }
 0x76b   :  { %v8005_v24 = vpack.c.bf16 %v17065_v52, %v17062_v23  ;;  %v17081_v47 = vsel %vm2335_vm0, %v7863_v6, %v7864_v15  ;;  %10417 = vmatprep.mubr.bf16.mxu0 %v16739_v58  ;;  %v7873_v51 = vrot.slane %v11218_v50, 1  ;;  %v11219_v6 = vld [vmem:[%s19292_s0 + $0x260] sm:$0xff]  ;;  %v11220_v58 = vld [vmem:[%s19292_s0 + $0x268] sm:$0xff] }
 0x76c   :  { %v17084_v31 = vsel %vm2335_vm0, %v7864_v15, %v7866_v25  ;;  %v7874_v21 = vrot.slane %v11219_v6, 1  ;;  %v7876_v15 = vrot.slane %v11220_v58, 1  ;;  %v11221_v25 = vld [vmem:[%s19292_s0 + $0x288] sm:$0xff] }
 0x76d   :  { %v8007_v32 = vpack.c.bf16 %v17084_v31, %v17081_v47  ;;  %v7883_v50 = vrot.slane %v11221_v25, 1  ;;  %v11224_v25 = vld [vmem:[%s19292_s0 + $0x2b8] sm:$0xff] }
 0x772   :  { %10418 = vmatmul.mubr.bf16.gmra.mrb[212].mxu0 %v16745_v0  ;;  %v17103_v0 = vsel %vm2335_vm0, %v7873_v51, %v7874_v21 }
 0x773   :  { %10421 = vmatprep.mubr.bf16.mxu0 %v16755_v40  ;;  %v17106_v40 = vsel %vm2335_vm0, %v7874_v21, %v7876_v15 }
 0x774   :  { %v21512_v7 = vpack.c.bf16 %v17106_v40, %v17103_v0  ;;  %v21517_v0 = vld [vmem:[#allocation32_spill] sm:$0xff]  ;;  %v21518_v40 = vld [vmem:[#allocation31_spill] sm:$0xff] }
 0x77a   :  { %10422 = vmatmul.mubr.bf16.gmra.mrb[216].mxu0 %v16774_v56  ;;  %v11222_v56 = vld [vmem:[%s19292_s0 + $0x290] sm:$0xff] }
 0x77b   :  { %10425 = vmatprep.mubr.bf16.mxu0 %v16781_v59  ;;  %v7884_v6 = vrot.slane %v11222_v56, 1  ;;  %v11223_v59 = vld [vmem:[%s19292_s0 + $0x298] sm:$0xff]  ;;  %v7893_v56 = vrot.slane %v11224_v25, 1 }
 0x77c   :  { %v7886_v51 = vrot.slane %v11223_v59, 1 }
 0x77d   :  { %v17122_v21 = vsel %vm2335_vm0, %v7883_v50, %v7884_v6 }
 0x77e   :  { %v17125_v58 = vsel %vm2335_vm0, %v7884_v6, %v7886_v51 }
 0x77f   :  { %v21516_v14 = vpack.c.bf16 %v17125_v58, %v17122_v21 }
 0x782   :  { %10426 = vmatmul.mubr.bf16.gmra.mrb[220].mxu0 %v16787_v38  ;;  %v11225_v38 = vld [vmem:[%s19292_s0 + $0x2c0] sm:$0xff] }
 0x783   :  { %10429 = vmatprep.mubr.bf16.mxu0 %v16797_v28  ;;  %v7894_v59 = vrot.slane %v11225_v38, 1  ;;  %v11226_v28 = vld [vmem:[%s19292_s0 + $0x2c8] sm:$0xff] }
 0x784   :  { %v7896_v50 = vrot.slane %v11226_v28, 1  ;;  %v11227_v38 = vld [vmem:[%s19292_s0 + $0x2e8] sm:$0xff] }
 0x785   :  { %v17141_v6 = vsel %vm2335_vm0, %v7893_v56, %v7894_v59  ;;  %v7903_v15 = vrot.slane %v11227_v38, 1  ;;  %v21492_v38 = vld [vmem:[#allocation15_spill] sm:$0xff] }
 0x786   :  { %v17144_v51 = vsel %vm2335_vm0, %v7894_v59, %v7896_v50 }
 0x78a   :  { %10430 = vmatmul.mubr.bf16.gmra.mrb[224].mxu0 %v16815_v63  ;;  %v11228_v63 = vld [vmem:[%s19292_s0 + $0x2f0] sm:$0xff] }
 0x78b   :  { %10433 = vmatprep.mubr.bf16.mxu0 %v16821_v4  ;;  %v7904_v28 = vrot.slane %v11228_v63, 1  ;;  %v11229_v4 = vld [vmem:[%s19292_s0 + $0x2f8] sm:$0xff] }
 0x78c   :  { %v7906_v56 = vrot.slane %v11229_v4, 1  ;;  %v11230_v63 = vld [vmem:[%s19292_s0 + $0x318] sm:$0xff] }
 0x78d   :  { %v17160_v59 = vsel %vm2335_vm0, %v7903_v15, %v7904_v28  ;;  %v7913_v25 = vrot.slane %v11230_v63, 1 }
 0x78e   :  { %v17163_v50 = vsel %vm2335_vm0, %v7904_v28, %v7906_v56 }
 0x792   :  { %10434 = vmatmul.mubr.bf16.gmra.mrb[228].mxu0 %v16827_v41  ;;  %v11231_v41 = vld [vmem:[%s19292_s0 + $0x320] sm:$0xff] }
 0x793   :  { %10437 = vmatprep.mubr.bf16.mxu0 %v16844_v54  ;;  %v7914_v4 = vrot.slane %v11231_v41, 1  ;;  %v11232_v54 = vld [vmem:[%s19292_s0 + $0x328] sm:$0xff]  ;;  %s11358_s0 = smov [#allocation10]  }
 0x794   :  { %v7916_v15 = vrot.slane %v11232_v54, 1  ;;  %v21491_v41 = vld [vmem:[#allocation16_spill] sm:$0xff]  ;;  %s8905_s2 = sshll.u32 %s11358_s0, 4  ;;  %s8906_s2 = int_to_ptr.vmem [resolvable:$true] %s8905_s2 }
 0x795   :  { %v17181_v28 = vsel %vm2335_vm0, %v7913_v25, %v7914_v4  ;;  %v21493_v55 = vpack.c.bf16 %v21491_v41, %v21492_v38  ;;  %v21520_v38 = vpack.c.bf16 %v17144_v51, %v17141_v6  ;;  %s11321_s24 = scalar_lea.vmem %s8906_s2, 8192  ;;  %p11326_p5 = scmp.lt.s32.totalorder %s8906_s2, %s8906_s2 }
 0x796   :  { %v17184_v56 = vsel %vm2335_vm0, %v7914_v4, %v7916_v15  ;;  %p11322_p4 = scmp.ne.s32.totalorder %s8906_s2, %s11321_s24  ;;  %p11327_p6 = scmp.lt.s32.totalorder %s11321_s24, %s11321_s24 }
 0x797   :  { %v8017_v63 = vpack.c.bf16 %v17184_v56, %v17181_v28 }
 0x798   :  { %p11328_p7 = por %p11327_p6, %p11326_p5 }
 0x79a   :  { %10438 = vmatmul.mubr.bf16.gmra.mrb[232].mxu0 %v16884_v29  ;;  %v21502_v29 = vpack.c.bf16 %v21500_v46, %v21501_v1  ;;  %v21521_v1 = vld [vmem:[#allocation34_spill] sm:$0xff]  ;;  %p11329_p8 = pnand %p11328_p7, %p11322_p4 }
 0x79b   :  { %10457 = vmatprep.mubr.bf16.mxu0 %v7987_v13  ;;  %v21496_v13 = vpack.c.bf16 %v21494_v43, %v21495_v16 }
 0x7a2   :  { %10458 = vmatmul.mubr.bf16.vlgmr.msra.gmra.mrb[236].mxu0 %v21493_v55  ;;  %v21519_v55 = vpack.c.bf16 %v21517_v0, %v21518_v40 }
 0x7a3   :  { %10461 = vmatprep.mubr.bf16.mxu0 %v7989_v22  ;;  %v21503_v22 = vld [vmem:[#allocation24_spill] sm:$0xff] }
 0x7aa   :  { %10462 = vmatmul.mubr.bf16.gmra.mrb[240].mxu0 %v7990_v57  ;;  %v21504_v57 = vld [vmem:[#allocation23_spill] sm:$0xff] }
 0x7ab   :  { %10465 = vmatprep.mubr.bf16.mxu0 %v7991_v62  ;;  %v21505_v44 = vpack.c.bf16 %v21503_v22, %v21504_v57  ;;  %v21506_v62 = vld [vmem:[#allocation26_spill] sm:$0xff] }
 0x7ac   :  { %v21508_v39 = vpack.c.bf16 %v21506_v62, %v21507_v19  ;;  %v21524_v19 = vpack.c.bf16 %v17163_v50, %v17160_v59 }
 0x7b2   :  { %10466 = vmatmul.mubr.bf16.gmra.mrb[244].mxu0 %v7992_v30  ;;  %v21510_v30 = vld [vmem:[#allocation27_spill] sm:$0xff] }
 0x7b3   :  { %10469 = vmatprep.mubr.bf16.mxu0 %v7993_v2  ;;  %v21511_v8 = vpack.c.bf16 %v21509_v36, %v21510_v30 }
 0x7ba   :  { %10470 = vmatmul.mubr.bf16.gmra.mrb[248].mxu0 %v7994_v20 }
 0x7bb   :  { %10473 = vmatprep.mubr.bf16.mxu0 %v7995_v12 }
 0x7c2   :  { %10474 = vmatmul.mubr.bf16.gmra.mrb[252].mxu0 %v7996_v17  ;;  %v21515_v17 = vpack.c.bf16 %v21513_v37, %v21514_v10 }
 0x7c3   :  { %10477 = vmatprep.mubr.bf16.mxu0 %v7997_v27 }
 0x7ca   :  { %10478 = vmatmul.mubr.bf16.gmra.mrb[0].mxu0 %v21496_v13 }
 0x7cb   :  { %10481 = vmatprep.mubr.bf16.mxu0 %v7999_v3 }
 0x7d2   :  { %10482 = vmatmul.mubr.bf16.gmra.mrb[4].mxu0 %v21499_v33 }
 0x7d3   :  { %10485 = vmatprep.mubr.bf16.mxu0 %v8001_v45 }
 0x7da   :  { %10486 = vmatmul.mubr.bf16.gmra.mrb[8].mxu0 %v21502_v29  ;;  %v21522_v29 = vld [vmem:[#allocation33_spill] sm:$0xff] }
 0x7db   :  { %10489 = vmatprep.mubr.bf16.mxu0 %v8003_v49  ;;  %v21523_v22 = vpack.c.bf16 %v21521_v1, %v21522_v29 }
 0x7e2   :  { %10490 = vmatmul.mubr.bf16.gmra.mrb[12].mxu0 %v21505_v44 }
 0x7e3   :  { %10493 = vmatprep.mubr.bf16.mxu0 %v8005_v24 }
 0x7ea   :  { %10494 = vmatmul.mubr.bf16.gmra.mrb[16].mxu0 %v21508_v39 }
 0x7eb   :  { %10497 = vmatprep.mubr.bf16.mxu0 %v8007_v32 }
 0x7f2   :  { %10498 = vmatmul.mubr.bf16.gmra.mrb[20].mxu0 %v21511_v8 }
 0x7f3   :  { %10501 = vmatprep.mubr.bf16.mxu0 %v21512_v7 }
 0x7f5   :  { %v17254_v26 = vpop.f32.mrb[172].mxu0 }
 0x7f6   :  { %v17256_v2 = vpop.f32.mrb[173].mxu0  ;;  %v7402_v9 = vmul.f32 %v17254_v26, %v17254_v26 }
 0x7f7   :  { %v17258_v20 = vpop.f32.mrb[174].mxu0  ;;  %v7400_v48 = vmul.f32 %v17256_v2, %v17256_v2 }
 0x7f8   :  { %v17260_v34 = vpop.f32.mrb[175].mxu0  ;;  %v7403_v3 = vmul.f32 %v17258_v20, %v17258_v20 }
 0x7f9   :  { %v7331_v12 = vadd.f32 %v17260_v34, %v17256_v2  ;;  %v7401_v42 = vmul.f32 %v17260_v34, %v17260_v34 }
 0x7fa   :  { %10502 = vmatmul.mubr.bf16.gmra.mrb[24].mxu0 %v21515_v17 }
 0x7fb   :  { %v7332_v27 = vadd.f32 %v17254_v26, %v7331_v12  ;;  %v7464_v5 = vadd.f32 %v7401_v42, %v7400_v48  ;;  %10505 = vmatprep.mubr.bf16.mxu0 %v21516_v14 }
 0x7fd   :  { %v7465_v61 = vadd.f32 %v7464_v5, %v7402_v9  ;;  %v17279_v35 = vpop.f32.mrb[176].mxu0  ;;  %v7333_v45 = vadd.f32 %v17258_v20, %v7332_v27  ;;  %v21525_v9 = vld [vmem:[#allocation36_spill] sm:$0xff]  ;;  %v21526_v27 = vld [vmem:[#allocation35_spill] sm:$0xff] }
 0x7fe   :  { %v17282_v53 = vpop.f32.mrb[177].mxu0  ;;  %v7406_v21 = vmul.f32 %v17279_v35, %v17279_v35  ;;  %v21527_v5 = vpack.c.bf16 %v21525_v9, %v21526_v27 }
 0x7ff   :  { %v7334_v11 = vadd.f32 %v7333_v45, %v17282_v53  ;;  %v7404_v49 = vmul.f32 %v17282_v53, %v17282_v53  ;;  %v7466_v23 = vadd.f32 %v7465_v61, %v7403_v3  ;;  %v17287_v52 = vpop.f32.mrb[178].mxu0 }
 0x800   :  { %v17289_v24 = vpop.f32.mrb[179].mxu0  ;;  %v7407_v4 = vmul.f32 %v17287_v52, %v17287_v52 }
 0x801   :  { %v7467_v47 = vadd.f32 %v7466_v23, %v7404_v49  ;;  %v7335_v31 = vadd.f32 %v7334_v11, %v17289_v24  ;;  %v7405_v32 = vmul.f32 %v17289_v24, %v17289_v24 }
 0x802   :  { %10506 = vmatmul.mubr.bf16.gmra.mrb[28].mxu0 %v21519_v55 }
 0x803   :  { %v7336_v58 = vadd.f32 %v17279_v35, %v7335_v31  ;;  %v7468_v25 = vadd.f32 %v7467_v47, %v7405_v32  ;;  %10509 = vmatprep.mubr.bf16.mxu0 %v21520_v38 }
 0x805   :  { %v7469_v54 = vadd.f32 %v7468_v25, %v7406_v21  ;;  %v17305_v15 = vpop.f32.mrb[180].mxu0  ;;  %v7337_v41 = vadd.f32 %v17287_v52, %v7336_v58  ;;  %v21528_v21 = vld [vmem:[#allocation38_spill] sm:$0xff]  ;;  %v21529_v58 = vld [vmem:[#allocation37_spill] sm:$0xff] }
 0x806   :  { %v17308_v43 = vpop.f32.mrb[181].mxu0  ;;  %v7410_v57 = vmul.f32 %v17305_v15, %v17305_v15  ;;  %v21530_v25 = vpack.c.bf16 %v21528_v21, %v21529_v58 }
 0x807   :  { %v7338_v16 = vadd.f32 %v7337_v41, %v17308_v43  ;;  %v7408_v13 = vmul.f32 %v17308_v43, %v17308_v43  ;;  %v7470_v18 = vadd.f32 %v7469_v54, %v7407_v4  ;;  %v17313_v60 = vpop.f32.mrb[182].mxu0 }
 0x808   :  { %v17315_v6 = vpop.f32.mrb[183].mxu0  ;;  %v7411_v39 = vmul.f32 %v17313_v60, %v17313_v60 }
 0x809   :  { %v7471_v51 = vadd.f32 %v7470_v18, %v7408_v13  ;;  %v7339_v33 = vadd.f32 %v7338_v16, %v17315_v6  ;;  %v7409_v46 = vmul.f32 %v17315_v6, %v17315_v6 }
 0x80a   :  { %10510 = vmatmul.mubr.bf16.gmra.mrb[32].mxu0 %v21523_v22 }
 0x80b   :  { %v7340_v44 = vadd.f32 %v17305_v15, %v7339_v33  ;;  %v7472_v62 = vadd.f32 %v7471_v51, %v7409_v46  ;;  %10513 = vmatprep.mubr.bf16.mxu0 %v21524_v19 }
 0x80d   :  { %v7473_v36 = vadd.f32 %v7472_v62, %v7410_v57  ;;  %v17331_v30 = vpop.f32.mrb[184].mxu0  ;;  %v7341_v8 = vadd.f32 %v17313_v60, %v7340_v44 }
 0x80e   :  { %v17334_v7 = vpop.f32.mrb[185].mxu0  ;;  %v7414_v14 = vmul.f32 %v17331_v30, %v17331_v30 }
 0x80f   :  { %v7342_v48 = vadd.f32 %v7341_v8, %v17334_v7  ;;  %v7412_v12 = vmul.f32 %v17334_v7, %v17334_v7  ;;  %v7474_v42 = vadd.f32 %v7473_v36, %v7411_v39  ;;  %v17339_v37 = vpop.f32.mrb[186].mxu0 }
 0x810   :  { %v17341_v59 = vpop.f32.mrb[187].mxu0  ;;  %v7415_v45 = vmul.f32 %v17339_v37, %v17339_v37 }
 0x811   :  { %v7475_v50 = vadd.f32 %v7474_v42, %v7412_v12  ;;  %v7343_v10 = vadd.f32 %v7342_v48, %v17341_v59  ;;  %v7413_v17 = vmul.f32 %v17341_v59, %v17341_v59 }
 0x812   :  { %10514 = vmatmul.mubr.bf16.gmra.mrb[36].mxu0 %v21527_v5 }
 0x813   :  { %v7344_v3 = vadd.f32 %v17331_v30, %v7343_v10  ;;  %v7476_v61 = vadd.f32 %v7475_v50, %v7413_v17  ;;  %10517 = vmatprep.mubr.bf16.mxu0 %v8017_v63 }
 0x815   :  { %v7477_v11 = vadd.f32 %v7476_v61, %v7414_v14  ;;  %v17357_v49 = vpop.f32.mrb[188].mxu0  ;;  %v7345_v23 = vadd.f32 %v17339_v37, %v7344_v3 }
 0x816   :  { %v17360_v47 = vpop.f32.mrb[189].mxu0  ;;  %v7418_v38 = vmul.f32 %v17357_v49, %v17357_v49 }
 0x817   :  { %v7346_v31 = vadd.f32 %v7345_v23, %v17360_v47  ;;  %v7416_v32 = vmul.f32 %v17360_v47, %v17360_v47  ;;  %v7478_v0 = vadd.f32 %v7477_v11, %v7415_v45  ;;  %v17365_v40 = vpop.f32.mrb[190].mxu0 }
 0x818   :  { %v17367_v28 = vpop.f32.mrb[191].mxu0  ;;  %v7419_v41 = vmul.f32 %v17365_v40, %v17365_v40 }
 0x819   :  { %v7479_v56 = vadd.f32 %v7478_v0, %v7416_v32  ;;  %v7347_v63 = vadd.f32 %v7346_v31, %v17367_v28  ;;  %v7417_v55 = vmul.f32 %v17367_v28, %v17367_v28 }
 0x81a   :  { %10518 = vmatmul.mubr.bf16.gmra.mrb[40].mxu0 %v21530_v25 }
 0x81b   :  { %v7348_v4 = vadd.f32 %v17357_v49, %v7347_v63  ;;  %v7480_v54 = vadd.f32 %v7479_v56, %v7417_v55 }
 0x81d   :  { %v7481_v16 = vadd.f32 %v7480_v54, %v7418_v38  ;;  %v17380_v13 = vpop.f32.mrb[192].mxu0  ;;  %v7349_v18 = vadd.f32 %v17365_v40, %v7348_v4 }
 0x81e   :  { %v17383_v51 = vpop.f32.mrb[193].mxu0  ;;  %v7422_v19 = vmul.f32 %v17380_v13, %v17380_v13 }
 0x81f   :  { %v7350_v33 = vadd.f32 %v7349_v18, %v17383_v51  ;;  %v7420_v46 = vmul.f32 %v17383_v51, %v17383_v51  ;;  %v7482_v1 = vadd.f32 %v7481_v16, %v7419_v41  ;;  %v17388_v29 = vpop.f32.mrb[194].mxu0 }
 0x820   :  { %v17390_v22 = vpop.f32.mrb[195].mxu0  ;;  %v7423_v8 = vmul.f32 %v17388_v29, %v17388_v29 }
 0x821   :  { %v7483_v57 = vadd.f32 %v7482_v1, %v7420_v46  ;;  %v7351_v44 = vadd.f32 %v7350_v33, %v17390_v22  ;;  %v7421_v62 = vmul.f32 %v17390_v22, %v17390_v22 }
 0x823   :  { %v7352_v39 = vadd.f32 %v17380_v13, %v7351_v44  ;;  %v7484_v36 = vadd.f32 %v7483_v57, %v7421_v62 }
 0x825   :  { %v7485_v48 = vadd.f32 %v7484_v36, %v7422_v19  ;;  %v17400_v12 = vpop.f32.mrb[196].mxu0  ;;  %v7353_v42 = vadd.f32 %v17388_v29, %v7352_v39 }
 0x826   :  { %v17403_v50 = vpop.f32.mrb[197].mxu0  ;;  %v7426_v45 = vmul.f32 %v17400_v12, %v17400_v12 }
 0x827   :  { %v7354_v10 = vadd.f32 %v7353_v42, %v17403_v50  ;;  %v7424_v17 = vmul.f32 %v17403_v50, %v17403_v50  ;;  %v7486_v9 = vadd.f32 %v7485_v48, %v7423_v8  ;;  %v17408_v27 = vpop.f32.mrb[198].mxu0 }
 0x828   :  { %v17410_v5 = vpop.f32.mrb[199].mxu0  ;;  %v7427_v31 = vmul.f32 %v17408_v27, %v17408_v27 }
 0x829   :  { %v7487_v14 = vadd.f32 %v7486_v9, %v7424_v17  ;;  %v7355_v3 = vadd.f32 %v7354_v10, %v17410_v5  ;;  %v7425_v61 = vmul.f32 %v17410_v5, %v17410_v5 }
 0x82b   :  { %v7356_v11 = vadd.f32 %v17400_v12, %v7355_v3  ;;  %v7488_v23 = vadd.f32 %v7487_v14, %v7425_v61 }
 0x82d   :  { %v7489_v32 = vadd.f32 %v7488_v23, %v7426_v45  ;;  %v17420_v0 = vpop.f32.mrb[200].mxu0  ;;  %v7357_v56 = vadd.f32 %v17408_v27, %v7356_v11 }
 0x82e   :  { %v17423_v63 = vpop.f32.mrb[201].mxu0  ;;  %v7430_v16 = vmul.f32 %v17420_v0, %v17420_v0 }
 0x82f   :  { %v7358_v55 = vadd.f32 %v7357_v56, %v17423_v63  ;;  %v7428_v21 = vmul.f32 %v17423_v63, %v17423_v63  ;;  %v7490_v58 = vadd.f32 %v7489_v32, %v7427_v31  ;;  %v17428_v25 = vpop.f32.mrb[202].mxu0 }
 0x830   :  { %v17430_v38 = vpop.f32.mrb[203].mxu0  ;;  %v7431_v46 = vmul.f32 %v17428_v25, %v17428_v25 }
 0x831   :  { %v7491_v4 = vadd.f32 %v7490_v58, %v7428_v21  ;;  %v7359_v54 = vadd.f32 %v7358_v55, %v17430_v38  ;;  %v7429_v41 = vmul.f32 %v17430_v38, %v17430_v38 }
 0x833   :  { %v7360_v18 = vadd.f32 %v17420_v0, %v7359_v54  ;;  %v7492_v33 = vadd.f32 %v7491_v4, %v7429_v41 }
 0x835   :  { %v7493_v1 = vadd.f32 %v7492_v33, %v7430_v16  ;;  %v17440_v57 = vpop.f32.mrb[204].mxu0  ;;  %v7361_v44 = vadd.f32 %v17428_v25, %v7360_v18 }
 0x836   :  { %v17443_v62 = vpop.f32.mrb[205].mxu0  ;;  %v7434_v9 = vmul.f32 %v17440_v57, %v17440_v57 }
 0x837   :  { %v7362_v19 = vadd.f32 %v7361_v44, %v17443_v62  ;;  %v7432_v39 = vmul.f32 %v17443_v62, %v17443_v62  ;;  %v7494_v36 = vadd.f32 %v7493_v1, %v7431_v46  ;;  %v17448_v8 = vpop.f32.mrb[206].mxu0 }
 0x838   :  { %v17450_v48 = vpop.f32.mrb[207].mxu0  ;;  %v7435_v61 = vmul.f32 %v17448_v8, %v17448_v8 }
 0x839   :  { %v7495_v42 = vadd.f32 %v7494_v36, %v7432_v39  ;;  %v7363_v10 = vadd.f32 %v7362_v19, %v17450_v48  ;;  %v7433_v17 = vmul.f32 %v17450_v48, %v17450_v48 }
 0x83b   :  { %v7364_v14 = vadd.f32 %v17440_v57, %v7363_v10  ;;  %v7496_v3 = vadd.f32 %v7495_v42, %v7433_v17 }
 0x83d   :  { %v7497_v45 = vadd.f32 %v7496_v3, %v7434_v9  ;;  %v17460_v11 = vpop.f32.mrb[208].mxu0  ;;  %v7365_v23 = vadd.f32 %v17448_v8, %v7364_v14 }
 0x83e   :  { %v17463_v31 = vpop.f32.mrb[209].mxu0  ;;  %v7438_v16 = vmul.f32 %v17460_v11, %v17460_v11 }
 0x83f   :  { %v7366_v32 = vadd.f32 %v7365_v23, %v17463_v31  ;;  %v7436_v56 = vmul.f32 %v17463_v31, %v17463_v31  ;;  %v7498_v55 = vadd.f32 %v7497_v45, %v7435_v61  ;;  %v17468_v21 = vpop.f32.mrb[210].mxu0 }
 0x840   :  { %v17470_v58 = vpop.f32.mrb[211].mxu0  ;;  %v7439_v46 = vmul.f32 %v17468_v21, %v17468_v21 }
 0x841   :  { %v7499_v4 = vadd.f32 %v7498_v55, %v7436_v56  ;;  %v7367_v54 = vadd.f32 %v7366_v32, %v17470_v58  ;;  %v7437_v41 = vmul.f32 %v17470_v58, %v17470_v58 }
 0x843   :  { %v7368_v18 = vadd.f32 %v17460_v11, %v7367_v54  ;;  %v7500_v33 = vadd.f32 %v7499_v4, %v7437_v41 }
 0x845   :  { %v7501_v1 = vadd.f32 %v7500_v33, %v7438_v16  ;;  %v17480_v44 = vpop.f32.mrb[212].mxu0  ;;  %v7369_v19 = vadd.f32 %v17468_v21, %v7368_v18 }
 0x846   :  { %21531 = vst [vmem:[#allocation118_spill] sm:$0xff] %v17480_v44  ;;  %v17483_v39 = vpop.f32.mrb[213].mxu0  ;;  %v7442_v45 = vmul.f32 %v17480_v44, %v17480_v44 }
 0x847   :  { %21532 = vst [vmem:[#allocation181_spill] sm:$0xff] %v17483_v39  ;;  %v7370_v36 = vadd.f32 %v7369_v19, %v17483_v39  ;;  %v7440_v42 = vmul.f32 %v17483_v39, %v17483_v39  ;;  %v7502_v10 = vadd.f32 %v7501_v1, %v7439_v46  ;;  %v17488_v17 = vpop.f32.mrb[214].mxu0 }
 0x848   :  { %21533 = vst [vmem:[#allocation123_spill] sm:$0xff] %v17488_v17  ;;  %v17490_v9 = vpop.f32.mrb[215].mxu0  ;;  %v7443_v56 = vmul.f32 %v17488_v17, %v17488_v17 }
 0x849   :  { %21534 = vst [vmem:[#allocation173_spill] sm:$0xff] %v17490_v9  ;;  %v7503_v14 = vadd.f32 %v7502_v10, %v7440_v42  ;;  %v7371_v3 = vadd.f32 %v7370_v36, %v17490_v9  ;;  %v7441_v61 = vmul.f32 %v17490_v9, %v17490_v9 }
 0x84b   :  { %v7372_v23 = vadd.f32 %v17480_v44, %v7371_v3  ;;  %v7504_v32 = vadd.f32 %v7503_v14, %v7441_v61 }
 0x84d   :  { %v7505_v55 = vadd.f32 %v7504_v32, %v7442_v45  ;;  %v17500_v4 = vpop.f32.mrb[216].mxu0  ;;  %v7373_v54 = vadd.f32 %v17488_v17, %v7372_v23 }
 0x84e   :  { %21535 = vst [vmem:[#allocation197_spill] sm:$0xff] %v17500_v4  ;;  %v17503_v41 = vpop.f32.mrb[217].mxu0  ;;  %v7446_v10 = vmul.f32 %v17500_v4, %v17500_v4 }
 0x84f   :  { %21536 = vst [vmem:[#allocation126_spill] sm:$0xff] %v17503_v41  ;;  %v7374_v16 = vadd.f32 %v7373_v54, %v17503_v41  ;;  %v7444_v18 = vmul.f32 %v17503_v41, %v17503_v41  ;;  %v7506_v33 = vadd.f32 %v7505_v55, %v7443_v56  ;;  %v17508_v46 = vpop.f32.mrb[218].mxu0 }
 0x850   :  { %21537 = vst [vmem:[#allocation198_spill] sm:$0xff] %v17508_v46  ;;  %v17510_v1 = vpop.f32.mrb[219].mxu0  ;;  %v7447_v61 = vmul.f32 %v17508_v46, %v17508_v46 }
 0x851   :  { %21538 = vst [vmem:[#allocation183_spill] sm:$0xff] %v17510_v1  ;;  %v7507_v19 = vadd.f32 %v7506_v33, %v7444_v18  ;;  %v7375_v36 = vadd.f32 %v7374_v16, %v17510_v1  ;;  %v7445_v42 = vmul.f32 %v17510_v1, %v17510_v1 }
 0x853   :  { %v7376_v14 = vadd.f32 %v17500_v4, %v7375_v36  ;;  %v7508_v3 = vadd.f32 %v7507_v19, %v7445_v42 }
 0x855   :  { %v7509_v45 = vadd.f32 %v7508_v3, %v7446_v10  ;;  %v17520_v23 = vpop.f32.mrb[220].mxu0  ;;  %v7377_v32 = vadd.f32 %v17508_v46, %v7376_v14 }
 0x856   :  { %21539 = vst [vmem:[#allocation199_spill] sm:$0xff] %v17520_v23  ;;  %v17523_v56 = vpop.f32.mrb[221].mxu0  ;;  %v7450_v10 = vmul.f32 %v17520_v23, %v17520_v23 }
 0x857   :  { %21540 = vst [vmem:[#allocation175_spill] sm:$0xff] %v17523_v56  ;;  %v7378_v55 = vadd.f32 %v7377_v32, %v17523_v56  ;;  %v7448_v54 = vmul.f32 %v17523_v56, %v17523_v56  ;;  %v7510_v16 = vadd.f32 %v7509_v45, %v7447_v61  ;;  %v17528_v18 = vpop.f32.mrb[222].mxu0 }
 0x858   :  { %21541 = vst [vmem:[#allocation200_spill] sm:$0xff] %v17528_v18  ;;  %v17530_v33 = vpop.f32.mrb[223].mxu0  ;;  %v7451_v32 = vmul.f32 %v17528_v18, %v17528_v18 }
 0x859   :  { %21542 = vst [vmem:[#allocation132_spill] sm:$0xff] %v17530_v33  ;;  %v7511_v19 = vadd.f32 %v7510_v16, %v7448_v54  ;;  %v7379_v36 = vadd.f32 %v7378_v55, %v17530_v33  ;;  %v7449_v42 = vmul.f32 %v17530_v33, %v17530_v33 }
 0x85b   :  { %v7380_v14 = vadd.f32 %v17520_v23, %v7379_v36  ;;  %v7512_v3 = vadd.f32 %v7511_v19, %v7449_v42 }
 0x85d   :  { %v7513_v61 = vadd.f32 %v7512_v3, %v7450_v10  ;;  %v17540_v45 = vpop.f32.mrb[224].mxu0  ;;  %v7381_v56 = vadd.f32 %v17528_v18, %v7380_v14 }
 0x85e   :  { %21543 = vst [vmem:[#allocation56_spill] sm:$0xff] %v17540_v45  ;;  %v17543_v54 = vpop.f32.mrb[225].mxu0  ;;  %v7454_v14 = vmul.f32 %v17540_v45, %v17540_v45 }
 0x85f   :  { %21544 = vst [vmem:[#allocation162_spill] sm:$0xff] %v17543_v54  ;;  %v7382_v55 = vadd.f32 %v7381_v56, %v17543_v54  ;;  %v7452_v16 = vmul.f32 %v17543_v54, %v17543_v54  ;;  %v7514_v33 = vadd.f32 %v7513_v61, %v7451_v32  ;;  %v17548_v46 = vpop.f32.mrb[226].mxu0 }
 0x860   :  { %21545 = vst [vmem:[#allocation208_spill] sm:$0xff] %v17548_v46  ;;  %v17550_v36 = vpop.f32.mrb[227].mxu0  ;;  %v7455_v54 = vmul.f32 %v17548_v46, %v17548_v46 }
 0x861   :  { %21546 = vst [vmem:[#allocation40_spill] sm:$0xff] %v17550_v36  ;;  %v7515_v19 = vadd.f32 %v7514_v33, %v7452_v16  ;;  %v7383_v42 = vadd.f32 %v7382_v55, %v17550_v36  ;;  %v7453_v10 = vmul.f32 %v17550_v36, %v17550_v36 }
 0x863   :  { %v7384_v3 = vadd.f32 %v17540_v45, %v7383_v42  ;;  %v7516_v56 = vadd.f32 %v7515_v19, %v7453_v10 }
 0x865   :  { %v7517_v32 = vadd.f32 %v7516_v56, %v7454_v14  ;;  %v17560_v61 = vpop.f32.mrb[228].mxu0  ;;  %v7385_v18 = vadd.f32 %v17548_v46, %v7384_v3 }
 0x866   :  { %21547 = vst [vmem:[#allocation42_spill] sm:$0xff] %v17560_v61  ;;  %v17563_v33 = vpop.f32.mrb[229].mxu0  ;;  %v7458_v3 = vmul.f32 %v17560_v61, %v17560_v61 }
 0x867   :  { %21548 = vst [vmem:[#allocation108_spill] sm:$0xff] %v17563_v33  ;;  %v7386_v55 = vadd.f32 %v7385_v18, %v17563_v33  ;;  %v7456_v16 = vmul.f32 %v17563_v33, %v17563_v33  ;;  %v7518_v36 = vadd.f32 %v7517_v32, %v7455_v54  ;;  %v17568_v23 = vpop.f32.mrb[230].mxu0 }
 0x868   :  { %21549 = vst [vmem:[#allocation45_spill] sm:$0xff] %v17568_v23  ;;  %v17570_v42 = vpop.f32.mrb[231].mxu0  ;;  %v7459_v33 = vmul.f32 %v17568_v23, %v17568_v23 }
 0x869   :  { %21550 = vst [vmem:[#allocation48_spill] sm:$0xff] %v17570_v42  ;;  %v7519_v19 = vadd.f32 %v7518_v36, %v7456_v16  ;;  %v7387_v10 = vadd.f32 %v7386_v55, %v17570_v42  ;;  %v7457_v14 = vmul.f32 %v17570_v42, %v17570_v42 }
 0x86b   :  { %v7388_v56 = vadd.f32 %v17560_v61, %v7387_v10  ;;  %v7520_v18 = vadd.f32 %v7519_v19, %v7457_v14 }
 0x86d   :  { %v7521_v54 = vadd.f32 %v7520_v18, %v7458_v3  ;;  %v17580_v32 = vpop.f32.mrb[232].mxu0  ;;  %v7389_v46 = vadd.f32 %v17568_v23, %v7388_v56 }
 0x86e   :  { %21551 = vst [vmem:[#allocation94_spill] sm:$0xff] %v17580_v32  ;;  %v17583_v36 = vpop.f32.mrb[233].mxu0  ;;  %v7462_v56 = vmul.f32 %v17580_v32, %v17580_v32 }
 0x86f   :  { %21552 = vst [vmem:[#allocation57_spill] sm:$0xff] %v17583_v36  ;;  %v7390_v55 = vadd.f32 %v7389_v46, %v17583_v36  ;;  %v7460_v16 = vmul.f32 %v17583_v36, %v17583_v36  ;;  %v7522_v42 = vadd.f32 %v7521_v54, %v7459_v33  ;;  %v17588_v45 = vpop.f32.mrb[234].mxu0 }
 0x870   :  { %21553 = vst [vmem:[#allocation99_spill] sm:$0xff] %v17588_v45  ;;  %v17590_v10 = vpop.f32.mrb[235].mxu0  ;;  %v7463_v36 = vmul.f32 %v17588_v45, %v17588_v45 }
 0x871   :  { %v7523_v19 = vadd.f32 %v7522_v42, %v7460_v16  ;;  %v7391_v14 = vadd.f32 %v7390_v55, %v17590_v10  ;;  %v7461_v3 = vmul.f32 %v17590_v10, %v17590_v10 }
 0x873   :  { %v7392_v18 = vadd.f32 %v17580_v32, %v7391_v14  ;;  %v7524_v46 = vadd.f32 %v7523_v19, %v7461_v3 }
 0x875   :  { %v7393_v33 = vadd.f32 %v17588_v45, %v7392_v18  ;;  %v7525_v54 = vadd.f32 %v7524_v46, %v7462_v56  ;;  %v17601_v23 = vpop.f32.mrb[236].mxu0 }
 0x876   :  { %21554 = vst [vmem:[#allocation149_spill] sm:$0xff] %v17601_v23  ;;  %v17603_v42 = vpop.f32.mrb[237].mxu0  ;;  %v8443_v18 = vmul.f32 %v17601_v23, %v17601_v23 }
 0x877   :  { %21555 = vst [vmem:[#allocation58_spill] sm:$0xff] %v17603_v42  ;;  %v7394_v55 = vrot.slane %v7393_v33, 4  ;;  %v7526_v16 = vadd.f32 %v7525_v54, %v7463_v36  ;;  %v17605_v61 = vpop.f32.mrb[238].mxu0  ;;  %v8441_v4 = vmul.f32 %v17603_v42, %v17603_v42 }
 0x878   :  { %21556 = vst [vmem:[#allocation76_spill] sm:$0xff] %v17605_v61  ;;  %v17609_v1 = vpop.f32.mrb[239].mxu0 }
 0x879   :  { %21557 = vst [vmem:[#allocation178_spill] sm:$0xff] %v17609_v1  ;;  %v7395_v19 = vadd.f32 %v7394_v55, %v7393_v33  ;;  %v7527_v14 = vrot.slane %v7526_v16, 4  ;;  %v8372_v3 = vadd.f32 %v17609_v1, %v17603_v42  ;;  %v8442_v56 = vmul.f32 %v17609_v1, %v17609_v1 }
 0x87a   :  { %v8444_v55 = vmul.f32 %v17605_v61, %v17605_v61 }
 0x87b   :  { %v7396_v46 = vrot.slane %v7395_v19, 2  ;;  %v7528_v36 = vadd.f32 %v7527_v14, %v7526_v16  ;;  %v8373_v54 = vadd.f32 %v17601_v23, %v8372_v3  ;;  %v8505_v45 = vadd.f32 %v8442_v56, %v8441_v4 }
 0x87d   :  { %v7397_v32 = vadd.f32 %v7396_v46, %v7395_v19  ;;  %v7529_v41 = vrot.slane %v7528_v36, 2  ;;  %v8506_v17 = vadd.f32 %v8505_v45, %v8443_v18  ;;  %v17618_v44 = vpop.f32.mrb[240].mxu0  ;;  %v8374_v33 = vadd.f32 %v17605_v61, %v8373_v54 }
 0x87e   :  { %21558 = vst [vmem:[#allocation188_spill] sm:$0xff] %v17618_v44  ;;  %v17623_v42 = vpop.f32.mrb[241].mxu0 }
 0x87f   :  { %21559 = vst [vmem:[#allocation81_spill] sm:$0xff] %v17623_v42  ;;  %v7398_v1 = vrot.slane %v7397_v32, 1  ;;  %v7530_v9 = vadd.f32 %v7529_v41, %v7528_v36  ;;  %v8375_v39 = vadd.f32 %v8374_v33, %v17623_v42  ;;  %v8445_v16 = vmul.f32 %v17623_v42, %v17623_v42  ;;  %v17628_v4 = vpop.f32.mrb[242].mxu0 }
 0x880   :  { %21560 = vst [vmem:[#allocation70_spill] sm:$0xff] %v17628_v4  ;;  %v8507_v19 = vadd.f32 %v8506_v17, %v8444_v55  ;;  %v17630_v45 = vpop.f32.mrb[243].mxu0  ;;  %v17642_v33 = vmul.f32 %v17618_v44, %v17618_v44 }
 0x881   :  { %21561 = vst [vmem:[#allocation184_spill] sm:$0xff] %v17630_v45  ;;  %v7399_v14 = vadd.f32 %v7398_v1, %v7397_v32  ;;  %v7531_v3 = vrot.slane %v7530_v9, 1  ;;  %v8376_v56 = vadd.f32 %v8375_v39, %v17630_v45  ;;  %v8446_v18 = vmul.f32 %v17630_v45, %v17630_v45  ;;  %v21573_v45 = vld [vmem:[#allocation173_spill] sm:$0xff] }
 0x882   :  { %v8508_v46 = vadd.f32 %v8507_v19, %v8445_v16  ;;  %21563 = vst [vmem:[#allocation167_spill] sm:$0xff] %v17642_v33  ;;  %v21584_v16 = vld [vmem:[#allocation200_spill] sm:$0xff] }
 0x883   :  { %v7532_v54 = vadd.f32 %v7531_v3, %v7530_v9  ;;  %v17635_v41 = vmul.f32 0.001953125, %v7399_v14  ;;  %v17638_v36 = vadd.f32 %v17618_v44, %v8376_v56  ;;  %v21572_v44 = vld [vmem:[#allocation181_spill] sm:$0xff]  ;;  %v21594_v3 = vld [vmem:[#allocation94_spill] sm:$0xff] }
 0x884   :  { %v17644_v17 = vadd.f32 %v8508_v46, %v8446_v18  ;;  %v21593_v14 = vld [vmem:[#allocation57_spill] sm:$0xff] }
 0x885   :  { %21562 = vst [vmem:[#allocation190_spill] sm:$0xff] %v17638_v36  ;;  %v7534_v1 = vmul.f32 0.001953125, %v7532_v54  ;;  %v7535_v39 = vmul.f32 %v17635_v41, %v17635_v41  ;;  %v17652_v55 = vpop.f32.mrb[244].mxu0  ;;  %v21591_v36 = vld [vmem:[#allocation42_spill] sm:$0xff]  ;;  %v21596_v61 = vsub.f32 %v17590_v10, %v17635_v41  ;;  %v21599_v33 = vsub.f32 %v17256_v2, %v17635_v41 }
 0x886   :  { %21564 = vst [vmem:[#allocation171_spill] sm:$0xff] %v17644_v17  ;;  %21565 = vst [vmem:[#allocation53_spill] sm:$0xff] %v17652_v55  ;;  %v17662_v56 = vpop.f32.mrb[245].mxu0  ;;  %v21605_v2 = vsub.f32 %v17258_v20, %v17635_v41  ;;  %v21609_v17 = vsub.f32 %v17289_v24, %v17635_v41  ;;  %v21611_v20 = vsub.f32 %v17279_v35, %v17635_v41 }
 0x887   :  { %21566 = vst [vmem:[#allocation104_spill] sm:$0xff] %v17662_v56  ;;  %v7536_v18 = vsub.f32 %v7534_v1, %v7535_v39  ;;  %v17670_v9 = vpop.f32.mrb[246].mxu0  ;;  %v21575_v39 = vld [vmem:[#allocation118_spill] sm:$0xff]  ;;  %v21598_v56 = vld [vmem:[#allocation99_spill] sm:$0xff]  ;;  %v21615_v24 = vsub.f32 %v17308_v43, %v17635_v41  ;;  %v21621_v43 = vsub.f32 %v17313_v60, %v17635_v41 }
 0x888   :  { %21567 = vst [vmem:[#allocation100_spill] sm:$0xff] %v17670_v9  ;;  %v17680_v46 = vpop.f32.mrb[247].mxu0 }
 0x889   :  { %21568 = vst [vmem:[#allocation39_spill] sm:$0xff] %v17680_v46  ;;  %v7601_v54 = vadd.f32 1e-05, %v7536_v18  ;;  %v21589_v46 = vld [vmem:[#allocation108_spill] sm:$0xff] }
 0x88b   :  { %11161 = vrsqrt.f32 %v7601_v54  ;;  %v21576_v54 = vld [vmem:[#allocation123_spill] sm:$0xff] }
 0x88d   :  { %v17718_v18 = vpop.f32.mrb[248].mxu0 }
 0x88e   :  { %21569 = vst [vmem:[#allocation117_spill] sm:$0xff] %v17718_v18  ;;  %v17728_v1 = vpop.f32.mrb[249].mxu0  ;;  %v21578_v18 = vld [vmem:[#allocation183_spill] sm:$0xff] }
 0x88f   :  { %21570 = vst [vmem:[#allocation116_spill] sm:$0xff] %v17728_v1  ;;  %v17738_v32 = vpop.f32.mrb[250].mxu0  ;;  %v21579_v1 = vld [vmem:[#allocation197_spill] sm:$0xff] }
 0x890   :  { %21571 = vst [vmem:[#allocation121_spill] sm:$0xff] %v17738_v32  ;;  %v17748_v42 = vpop.f32.mrb[251].mxu0  ;;  %v21577_v32 = vld [vmem:[#allocation126_spill] sm:$0xff] }
 0x891   :  { %21574 = vst [vmem:[#allocation59_spill] sm:$0xff] %v17748_v42  ;;  %v21601_v42 = vsub.f32 %v17260_v34, %v17635_v41  ;;  %v21607_v34 = vsub.f32 %v17282_v53, %v17635_v41  ;;  %v21613_v53 = vsub.f32 %v17287_v52, %v17635_v41  ;;  %v21619_v52 = vsub.f32 %v17305_v15, %v17635_v41 }
 0x895   :  { %v17782_v9 = vpop.eup %11161  ;;  %v17792_v55 = vpop.f32.mrb[252].mxu0 }
 0x896   :  { %21595 = vst [vmem:[#allocation84_spill] sm:$0xff] %v17792_v55  ;;  %v17798_v23 = vmul.f32 %v17782_v9, %v21596_v61  ;;  %v17806_v19 = vmul.f32 %v17782_v9, %v21599_v33  ;;  %v17812_v4 = vmul.f32 %v17782_v9, %v21601_v42  ;;  %v17814_v55 = vpop.f32.mrb[253].mxu0  ;;  %v21603_v61 = vsub.f32 %v17254_v26, %v17635_v41 }
 0x897   :  { %v17826_v33 = vmul.f32 %v17782_v9, %v21605_v2  ;;  %v17832_v42 = vmul.f32 %v17782_v9, %v21607_v34  ;;  %v17838_v26 = vmul.f32 %v17782_v9, %v21609_v17  ;;  %v17846_v2 = vmul.f32 %v17782_v9, %v21611_v20 }
 0x898   :  { %21597 = vst [vmem:[#allocation124_spill] sm:$0xff] %v17798_v23  ;;  %21600 = vst [vmem:[#allocation49_spill] sm:$0xff] %v17806_v19  ;;  %v17820_v10 = vmul.f32 %v17782_v9, %v21603_v61  ;;  %v17840_v61 = vpop.f32.mrb[254].mxu0  ;;  %v17852_v34 = vmul.f32 %v17782_v9, %v21613_v53  ;;  %v17858_v17 = vmul.f32 %v17782_v9, %v21615_v24 }
 0x899   :  { %21602 = vst [vmem:[#allocation52_spill] sm:$0xff] %v17812_v4  ;;  %21606 = vst [vmem:[#allocation85_spill] sm:$0xff] %v17826_v33  ;;  %v17866_v20 = vpop.f32.mrb[255].mxu0  ;;  %v17872_v53 = vmul.f32 %v17782_v9, %v21619_v52  ;;  %v17878_v24 = vmul.f32 %v17782_v9, %v21621_v43  ;;  %v21627_v52 = vsub.f32 %v17331_v30, %v17635_v41 }
 0x89a   :  { %21604 = vst [vmem:[#allocation133_spill] sm:$0xff] %v17820_v10  ;;  %21608 = vst [vmem:[#allocation202_spill] sm:$0xff] %v17832_v42  ;;  %v21629_v43 = vsub.f32 %v17339_v37, %v17635_v41 }
 0x89b   :  { %21610 = vst [vmem:[#allocation120_spill] sm:$0xff] %v17838_v26  ;;  %21612 = vst [vmem:[#allocation50_spill] sm:$0xff] %v17846_v2  ;;  %v21617_v26 = vsub.f32 %v17315_v6, %v17635_v41  ;;  %v21623_v6 = vsub.f32 %v17334_v7, %v17635_v41  ;;  %v17896_v60 = vmul.f32 %v17782_v9, %v21627_v52 }
 0x89c   :  { %21614 = vst [vmem:[#allocation128_spill] sm:$0xff] %v17852_v34  ;;  %21616 = vst [vmem:[#allocation131_spill] sm:$0xff] %v17858_v17  ;;  %v17902_v7 = vmul.f32 %v17782_v9, %v21629_v43  ;;  %v21635_v52 = vsub.f32 %v17357_v49, %v17635_v41  ;;  %v21637_v43 = vsub.f32 %v17365_v40, %v17635_v41 }
 0x89d   :  { %v17864_v35 = vmul.f32 %v17782_v9, %v21617_v26  ;;  %21620 = vst [vmem:[#allocation127_spill] sm:$0xff] %v17872_v53  ;;  %21622 = vst [vmem:[#allocation129_spill] sm:$0xff] %v17878_v24  ;;  %v17884_v26 = vmul.f32 %v17782_v9, %v21623_v6  ;;  %v21631_v6 = vsub.f32 %v17360_v47, %v17635_v41 }
 0x89e   :  { %21628 = vst [vmem:[#allocation74_spill] sm:$0xff] %v17896_v60  ;;  %21630 = vst [vmem:[#allocation83_spill] sm:$0xff] %v17902_v7  ;;  %v17920_v37 = vmul.f32 %v17782_v9, %v21635_v52  ;;  %v17926_v47 = vmul.f32 %v17782_v9, %v21637_v43  ;;  %v21643_v52 = vsub.f32 %v17380_v13, %v17635_v41 }
 0x89f   :  { %21618 = vst [vmem:[#allocation51_spill] sm:$0xff] %v17864_v35  ;;  %21624 = vst [vmem:[#allocation135_spill] sm:$0xff] %v17884_v26  ;;  %v21625_v35 = vsub.f32 %v17341_v59, %v17635_v41  ;;  %v17908_v59 = vmul.f32 %v17782_v9, %v21631_v6  ;;  %v21639_v6 = vsub.f32 %v17383_v51, %v17635_v41 }
 0x8a0   :  { %21636 = vst [vmem:[#allocation109_spill] sm:$0xff] %v17920_v37  ;;  %21638 = vst [vmem:[#allocation43_spill] sm:$0xff] %v17926_v47  ;;  %v17944_v40 = vmul.f32 %v17782_v9, %v21643_v52  ;;  %v21645_v43 = vsub.f32 %v17388_v29, %v17635_v41  ;;  %v21651_v52 = vsub.f32 %v17400_v12, %v17635_v41 }
 0x8a1   :  { %v17890_v15 = vmul.f32 %v17782_v9, %v21625_v35  ;;  %21632 = vst [vmem:[#allocation79_spill] sm:$0xff] %v17908_v59  ;;  %v21633_v35 = vsub.f32 %v17367_v28, %v17635_v41  ;;  %v17932_v28 = vmul.f32 %v17782_v9, %v21639_v6  ;;  %v21647_v6 = vsub.f32 %v17403_v50, %v17635_v41 }
 0x8a2   :  { %21644 = vst [vmem:[#allocation201_spill] sm:$0xff] %v17944_v40  ;;  %v17950_v51 = vmul.f32 %v17782_v9, %v21645_v43  ;;  %v17968_v29 = vmul.f32 %v17782_v9, %v21651_v52  ;;  %v21653_v43 = vsub.f32 %v17408_v27, %v17635_v41  ;;  %v17988_v52 = vpop.f32.mrb[0].mxu0  ;;  %v21659_v27 = vsub.f32 %v17420_v0, %v17635_v41 }
 0x8a3   :  { %21626 = vst [vmem:[#allocation169_spill] sm:$0xff] %v17890_v15  ;;  %v17914_v30 = vmul.f32 %v17782_v9, %v21633_v35  ;;  %21640 = vst [vmem:[#allocation115_spill] sm:$0xff] %v17932_v28  ;;  %v21641_v35 = vsub.f32 %v17390_v22, %v17635_v41  ;;  %v17956_v22 = vmul.f32 %v17782_v9, %v21647_v6 }
 0x8a4   :  { %21646 = vst [vmem:[#allocation141_spill] sm:$0xff] %v17950_v51  ;;  %21652 = vst [vmem:[#allocation62_spill] sm:$0xff] %v17968_v29  ;;  %v17974_v50 = vmul.f32 %v17782_v9, %v21653_v43  ;;  %v21655_v6 = vsub.f32 %v17423_v63, %v17635_v41  ;;  %v17994_v43 = vmul.f32 %v17782_v9, %v21659_v27  ;;  %v18014_v27 = vpop.f32.mrb[1].mxu0 }
 0x8a5   :  { %21634 = vst [vmem:[#allocation41_spill] sm:$0xff] %v17914_v30  ;;  %v17938_v49 = vmul.f32 %v17782_v9, %v21641_v35  ;;  %21648 = vst [vmem:[#allocation195_spill] sm:$0xff] %v17956_v22  ;;  %v21649_v35 = vsub.f32 %v17410_v5, %v17635_v41  ;;  %v21661_v63 = vsub.f32 %v17428_v25, %v17635_v41 }
 0x8a6   :  { %21654 = vst [vmem:[#allocation177_spill] sm:$0xff] %v17974_v50  ;;  %v17980_v5 = vmul.f32 %v17782_v9, %v21655_v6  ;;  %21660 = vst [vmem:[#allocation68_spill] sm:$0xff] %v17994_v43  ;;  %v21667_v25 = vsub.f32 %v17440_v57, %v17635_v41  ;;  %v8457_v50 = vmul.f32 %v17814_v55, %v17814_v55 }
 0x8a7   :  { %21642 = vst [vmem:[#allocation46_spill] sm:$0xff] %v17938_v49  ;;  %v17962_v13 = vmul.f32 %v17782_v9, %v21649_v35  ;;  %v21657_v35 = vsub.f32 %v17430_v38, %v17635_v41  ;;  %v18000_v6 = vmul.f32 %v17782_v9, %v21661_v63  ;;  %v21663_v38 = vsub.f32 %v17443_v62, %v17635_v41 }
 0x8a8   :  { %21656 = vst [vmem:[#allocation64_spill] sm:$0xff] %v17980_v5  ;;  %v18020_v63 = vmul.f32 %v17782_v9, %v21667_v25  ;;  %v21669_v62 = vsub.f32 %v17448_v8, %v17635_v41  ;;  %v18040_v25 = vpop.f32.mrb[2].mxu0  ;;  %v21675_v8 = vsub.f32 %v17460_v11, %v17635_v41  ;;  %v21746_v5 = vld [vmem:[#allocation121_spill] sm:$0xff]  ;;  %v8461_v40 = vmul.f32 %v18014_v27, %v18014_v27 }
 0x8a9   :  { %21650 = vst [vmem:[#allocation122_spill] sm:$0xff] %v17962_v13  ;;  %v17986_v12 = vmul.f32 %v17782_v9, %v21657_v35  ;;  %21662 = vst [vmem:[#allocation180_spill] sm:$0xff] %v18000_v6  ;;  %v18006_v35 = vmul.f32 %v17782_v9, %v21663_v38 }
 0x8aa   :  { %21668 = vst [vmem:[#allocation168_spill] sm:$0xff] %v18020_v63  ;;  %v18026_v38 = vmul.f32 %v17782_v9, %v21669_v62  ;;  %v18046_v62 = vmul.f32 %v17782_v9, %v21675_v8  ;;  %v18066_v8 = vpop.f32.mrb[3].mxu0 }
 0x8ab   :  { %21658 = vst [vmem:[#allocation138_spill] sm:$0xff] %v17986_v12  ;;  %21664 = vst [vmem:[#allocation142_spill] sm:$0xff] %v18006_v35  ;;  %v21665_v12 = vsub.f32 %v17450_v48, %v17635_v41  ;;  %v21671_v48 = vsub.f32 %v17463_v31, %v17635_v41  ;;  %v21677_v31 = vsub.f32 %v17468_v21, %v17635_v41 }
 0x8ac   :  { %21670 = vst [vmem:[#allocation69_spill] sm:$0xff] %v18026_v38  ;;  %21676 = vst [vmem:[#allocation146_spill] sm:$0xff] %v18046_v62  ;;  %v21683_v21 = vsub.f32 %v21575_v39, %v17635_v41  ;;  %v21743_v62 = vld [vmem:[#allocation116_spill] sm:$0xff] }
 0x8ad   :  { %v18012_v0 = vmul.f32 %v17782_v9, %v21665_v12  ;;  %v18032_v12 = vmul.f32 %v17782_v9, %v21671_v48  ;;  %v18052_v48 = vmul.f32 %v17782_v9, %v21677_v31 }
 0x8ae   :  { %v18072_v31 = vmul.f32 %v17782_v9, %v21683_v21  ;;  %v21691_v21 = vsub.f32 %v21579_v1, %v17635_v41 }
 0x8af   :  { %21666 = vst [vmem:[#allocation67_spill] sm:$0xff] %v18012_v0  ;;  %21672 = vst [vmem:[#allocation182_spill] sm:$0xff] %v18032_v12  ;;  %v21673_v0 = vsub.f32 %v17470_v58, %v17635_v41  ;;  %v21679_v58 = vsub.f32 %v21572_v44, %v17635_v41  ;;  %v21685_v44 = vsub.f32 %v21576_v54, %v17635_v41 }
 0x8b0   :  { %21678 = vst [vmem:[#allocation91_spill] sm:$0xff] %v18052_v48  ;;  %21684 = vst [vmem:[#allocation125_spill] sm:$0xff] %v18072_v31  ;;  %v18096_v54 = vmul.f32 %v17782_v9, %v21691_v21  ;;  %v21702_v21 = vld [vmem:[#allocation199_spill] sm:$0xff]  ;;  %v21742_v48 = vld [vmem:[#allocation100_spill] sm:$0xff]  ;;  %v8453_v12 = vmul.f32 %v21743_v62, %v21743_v62 }
 0x8b1   :  { %v18038_v57 = vmul.f32 %v17782_v9, %v21673_v0  ;;  %v18058_v0 = vmul.f32 %v17782_v9, %v21679_v58  ;;  %v18078_v58 = vmul.f32 %v17782_v9, %v21685_v44  ;;  %v21693_v44 = vld [vmem:[#allocation198_spill] sm:$0xff] }
 0x8b2   :  { %21692 = vst [vmem:[#allocation93_spill] sm:$0xff] %v18096_v54  ;;  %v21703_v54 = vsub.f32 %v21702_v21, %v17635_v41 }
 0x8b3   :  { %21674 = vst [vmem:[#allocation75_spill] sm:$0xff] %v18038_v57  ;;  %21680 = vst [vmem:[#allocation152_spill] sm:$0xff] %v18058_v0  ;;  %v21681_v57 = vsub.f32 %v21573_v45, %v17635_v41  ;;  %v21687_v45 = vsub.f32 %v21577_v32, %v17635_v41 }
 0x8b4   :  { %21686 = vst [vmem:[#allocation130_spill] sm:$0xff] %v18078_v58  ;;  %v21694_v58 = vsub.f32 %v21693_v44, %v17635_v41  ;;  %v18120_v44 = vmul.f32 %v17782_v9, %v21703_v54  ;;  %v21713_v54 = vld [vmem:[#allocation56_spill] sm:$0xff] }
 0x8b5   :  { %v18064_v11 = vmul.f32 %v17782_v9, %v21681_v57  ;;  %v18084_v57 = vmul.f32 %v17782_v9, %v21687_v45  ;;  %v21696_v45 = vld [vmem:[#allocation175_spill] sm:$0xff] }
 0x8b6   :  { %v18102_v32 = vmul.f32 %v17782_v9, %v21694_v58  ;;  %21704 = vst [vmem:[#allocation157_spill] sm:$0xff] %v18120_v44  ;;  %v21705_v58 = vsub.f32 %v21584_v16, %v17635_v41  ;;  %v21714_v44 = vsub.f32 %v21713_v54, %v17635_v41 }
 0x8b7   :  { %21682 = vst [vmem:[#allocation87_spill] sm:$0xff] %v18064_v11  ;;  %21688 = vst [vmem:[#allocation82_spill] sm:$0xff] %v18084_v57  ;;  %v21689_v11 = vsub.f32 %v21578_v18, %v17635_v41  ;;  %v21697_v57 = vsub.f32 %v21696_v45, %v17635_v41 }
 0x8b8   :  { %21695 = vst [vmem:[#allocation88_spill] sm:$0xff] %v18102_v32  ;;  %v18126_v45 = vmul.f32 %v17782_v9, %v21705_v58  ;;  %v18144_v16 = vmul.f32 %v17782_v9, %v21714_v44  ;;  %v21716_v58 = vld [vmem:[#allocation208_spill] sm:$0xff]  ;;  %v21724_v44 = vsub.f32 %v21591_v36, %v17635_v41 }
 0x8b9   :  { %v18090_v39 = vmul.f32 %v17782_v9, %v21689_v11  ;;  %v18108_v18 = vmul.f32 %v17782_v9, %v21697_v57  ;;  %v21699_v11 = vld [vmem:[#allocation132_spill] sm:$0xff]  ;;  %v21707_v57 = vld [vmem:[#allocation162_spill] sm:$0xff] }
 0x8ba   :  { %21706 = vst [vmem:[#allocation60_spill] sm:$0xff] %v18126_v45  ;;  %21715 = vst [vmem:[#allocation204_spill] sm:$0xff] %v18144_v16  ;;  %v21717_v45 = vsub.f32 %v21716_v58, %v17635_v41  ;;  %v18168_v58 = vmul.f32 %v17782_v9, %v21724_v44  ;;  %v18188_v44 = vpop.f32.mrb[4].mxu0 }
 0x8bb   :  { %21690 = vst [vmem:[#allocation158_spill] sm:$0xff] %v18090_v39  ;;  %21698 = vst [vmem:[#allocation155_spill] sm:$0xff] %v18108_v18  ;;  %v21700_v39 = vsub.f32 %v21699_v11, %v17635_v41  ;;  %v21708_v18 = vsub.f32 %v21707_v57, %v17635_v41 }
 0x8bc   :  { %v18150_v57 = vmul.f32 %v17782_v9, %v21717_v45  ;;  %21725 = vst [vmem:[#allocation156_spill] sm:$0xff] %v18168_v58  ;;  %v21726_v45 = vld [vmem:[#allocation45_spill] sm:$0xff]  ;;  %v21736_v58 = vld [vmem:[#allocation167_spill] sm:$0xff] }
 0x8bd   :  { %v18114_v1 = vmul.f32 %v17782_v9, %v21700_v39  ;;  %v18132_v11 = vmul.f32 %v17782_v9, %v21708_v18  ;;  %v21710_v39 = vld [vmem:[#allocation40_spill] sm:$0xff]  ;;  %v21719_v18 = vsub.f32 %v21589_v46, %v17635_v41 }
 0x8be   :  { %21718 = vst [vmem:[#allocation63_spill] sm:$0xff] %v18150_v57  ;;  %v21727_v57 = vsub.f32 %v21726_v45, %v17635_v41  ;;  %v21733_v45 = vsub.f32 %v21598_v56, %v17635_v41  ;;  %v21740_v56 = vld [vmem:[#allocation39_spill] sm:$0xff] }
 0x8bf   :  { %21701 = vst [vmem:[#allocation105_spill] sm:$0xff] %v18114_v1  ;;  %21709 = vst [vmem:[#allocation153_spill] sm:$0xff] %v18132_v11  ;;  %v21711_v1 = vsub.f32 %v21710_v39, %v17635_v41  ;;  %v18156_v39 = vmul.f32 %v17782_v9, %v21719_v18  ;;  %v21729_v18 = vsub.f32 %v21593_v14, %v17635_v41 }
 0x8c0   :  { %v18174_v46 = vmul.f32 %v17782_v9, %v21727_v57  ;;  %v18194_v57 = vmul.f32 %v17782_v9, %v21733_v45  ;;  %v8450_v45 = vmul.f32 %v21740_v56, %v21740_v56 }
 0x8c1   :  { %v18138_v21 = vmul.f32 %v17782_v9, %v21711_v1  ;;  %21720 = vst [vmem:[#allocation114_spill] sm:$0xff] %v18156_v39  ;;  %v21721_v1 = vld [vmem:[#allocation48_spill] sm:$0xff]  ;;  %v18202_v39 = vpop.f32.mrb[5].mxu0 }
 0x8c2   :  { %21728 = vst [vmem:[#allocation206_spill] sm:$0xff] %v18174_v46  ;;  %21734 = vst [vmem:[#allocation112_spill] sm:$0xff] %v18194_v57  ;;  %v21735_v46 = vld [vmem:[#allocation70_spill] sm:$0xff]  ;;  %v18206_v16 = vpop.f32.mrb[6].mxu0  ;;  %v8465_v37 = vmul.f32 %v18202_v39, %v18202_v39 }
 0x8c3   :  { %21712 = vst [vmem:[#allocation110_spill] sm:$0xff] %v18138_v21  ;;  %v21722_v21 = vsub.f32 %v21721_v1, %v17635_v41  ;;  %v18180_v1 = vmul.f32 %v17782_v9, %v21729_v18  ;;  %v8448_v14 = vmul.f32 %v21735_v46, %v21735_v46  ;;  %v21737_v18 = vld [vmem:[#allocation171_spill] sm:$0xff]  ;;  %v18211_v57 = vpop.f32.mrb[7].mxu0 }
 0x8c4   :  { %v18217_v0 = vpop.f32.mrb[8].mxu0 }
 0x8c5   :  { %v18162_v54 = vmul.f32 %v17782_v9, %v21722_v21  ;;  %21730 = vst [vmem:[#allocation166_spill] sm:$0xff] %v18180_v1  ;;  %v21731_v21 = vsub.f32 %v21594_v3, %v17635_v41  ;;  %v8510_v1 = vadd.f32 %v21737_v18, %v21736_v58  ;;  %v21741_v18 = vld [vmem:[#allocation53_spill] sm:$0xff] }
 0x8c7   :  { %21723 = vst [vmem:[#allocation66_spill] sm:$0xff] %v18162_v54  ;;  %v18186_v36 = vmul.f32 %v17782_v9, %v21731_v21  ;;  %v21738_v54 = vld [vmem:[#allocation190_spill] sm:$0xff]  ;;  %v21739_v21 = vld [vmem:[#allocation104_spill] sm:$0xff]  ;;  %v8511_v9 = vadd.f32 %v8510_v1, %v8448_v14 }
 0x8c8   :  { %v8378_v3 = vadd.f32 %v21735_v46, %v21738_v54  ;;  %v8451_v54 = vmul.f32 %v21741_v18, %v21741_v18 }
 0x8c9   :  { %21732 = vst [vmem:[#allocation160_spill] sm:$0xff] %v18186_v36  ;;  %v8449_v36 = vmul.f32 %v21739_v21, %v21739_v21 }
 0x8ca   :  { %v8379_v41 = vadd.f32 %v8378_v3, %v21739_v21  ;;  %v8452_v3 = vmul.f32 %v21742_v48, %v21742_v48 }
 0x8cb   :  { %v8512_v11 = vadd.f32 %v8511_v9, %v8449_v36  ;;  %v18224_v36 = vpop.f32.mrb[9].mxu0 }
 0x8cc   :  { %v8380_v58 = vadd.f32 %v8379_v41, %v21740_v56  ;;  %v18226_v41 = vpop.f32.mrb[10].mxu0  ;;  %v8469_v60 = vmul.f32 %v18224_v36, %v18224_v36 }
 0x8cd   :  { %v8513_v31 = vadd.f32 %v8512_v11, %v8450_v45  ;;  %v18231_v45 = vpop.f32.mrb[11].mxu0 }
 0x8ce   :  { %v8381_v32 = vadd.f32 %v21741_v18, %v8380_v58  ;;  %v21744_v58 = vld [vmem:[#allocation59_spill] sm:$0xff]  ;;  %v18237_v43 = vpop.f32.mrb[12].mxu0 }
 0x8cf   :  { %v8514_v1 = vadd.f32 %v8513_v31, %v8451_v54  ;;  %v8454_v11 = vmul.f32 %v21744_v58, %v21744_v58  ;;  %v21745_v54 = vld [vmem:[#allocation117_spill] sm:$0xff] }
 0x8d0   :  { %v8382_v14 = vadd.f32 %v21742_v48, %v8381_v32  ;;  %v8455_v32 = vmul.f32 %v21745_v54, %v21745_v54 }
 0x8d1   :  { %v8515_v38 = vadd.f32 %v8514_v1, %v8452_v3 }
 0x8d2   :  { %v8383_v9 = vadd.f32 %v8382_v14, %v21743_v62  ;;  %v8456_v14 = vmul.f32 %v21746_v5, %v21746_v5 }
 0x8d3   :  { %v8516_v63 = vadd.f32 %v8515_v38, %v8453_v12  ;;  %v18244_v38 = vpop.f32.mrb[13].mxu0 }
 0x8d4   :  { %v8384_v31 = vadd.f32 %v8383_v9, %v21744_v58  ;;  %v18246_v12 = vpop.f32.mrb[14].mxu0  ;;  %v8473_v53 = vmul.f32 %v18244_v38, %v18244_v38 }
 0x8d5   :  { %v8517_v6 = vadd.f32 %v8516_v63, %v8454_v11  ;;  %v8458_v63 = vmul.f32 %v17866_v20, %v17866_v20  ;;  %v18251_v11 = vpop.f32.mrb[15].mxu0 }
 0x8d6   :  { %v8385_v35 = vadd.f32 %v21745_v54, %v8384_v31  ;;  %v18257_v51 = vpop.f32.mrb[16].mxu0 }
 0x8d7   :  { %v8518_v3 = vadd.f32 %v8517_v6, %v8455_v32  ;;  %v21747_v32 = vld [vmem:[#allocation84_spill] sm:$0xff]  ;;  %21748 = vst [vmem:[#allocation185_spill] sm:$0xff] %v18257_v51 }
 0x8d8   :  { %v8386_v1 = vadd.f32 %v21746_v5, %v8385_v35  ;;  %v8459_v35 = vmul.f32 %v21747_v32, %v21747_v32 }
 0x8d9   :  { %v8519_v29 = vadd.f32 %v8518_v3, %v8456_v14 }
 0x8da   :  { %v8387_v9 = vadd.f32 %v8386_v1, %v17814_v55  ;;  %v8460_v1 = vmul.f32 %v17840_v61, %v17840_v61 }
 0x8db   :  { %v8520_v31 = vadd.f32 %v8519_v29, %v8457_v50  ;;  %v18264_v29 = vpop.f32.mrb[17].mxu0 }
 0x8dc   :  { %v8388_v6 = vadd.f32 %v8387_v9, %v17866_v20  ;;  %21749 = vst [vmem:[#allocation77_spill] sm:$0xff] %v18264_v29  ;;  %v18266_v50 = vpop.f32.mrb[18].mxu0  ;;  %v8477_v42 = vmul.f32 %v18264_v29, %v18264_v29 }
 0x8dd   :  { %v8521_v22 = vadd.f32 %v8520_v31, %v8458_v63  ;;  %21750 = vst [vmem:[#allocation186_spill] sm:$0xff] %v18266_v50  ;;  %v8462_v63 = vmul.f32 %v18066_v8, %v18066_v8  ;;  %v18271_v31 = vpop.f32.mrb[19].mxu0 }
 0x8de   :  { %v8389_v13 = vadd.f32 %v21747_v32, %v8388_v6  ;;  %21751 = vst [vmem:[#allocation73_spill] sm:$0xff] %v18271_v31  ;;  %v18277_v47 = vpop.f32.mrb[20].mxu0 }
 0x8df   :  { %v8522_v14 = vadd.f32 %v8521_v22, %v8459_v35  ;;  %21752 = vst [vmem:[#allocation207_spill] sm:$0xff] %v18277_v47 }
 0x8e0   :  { %v8390_v3 = vadd.f32 %v17840_v61, %v8389_v13  ;;  %v8463_v13 = vmul.f32 %v17988_v52, %v17988_v52 }
 0x8e1   :  { %v8523_v49 = vadd.f32 %v8522_v14, %v8460_v1 }
 0x8e2   :  { %v8391_v9 = vadd.f32 %v8390_v3, %v18014_v27  ;;  %v8464_v3 = vmul.f32 %v18040_v25, %v18040_v25 }
 0x8e3   :  { %v8524_v6 = vadd.f32 %v8523_v49, %v8461_v40  ;;  %v18284_v49 = vpop.f32.mrb[21].mxu0 }
 0x8e4   :  { %v8392_v22 = vadd.f32 %v8391_v9, %v18066_v8  ;;  %21753 = vst [vmem:[#allocation95_spill] sm:$0xff] %v18284_v49  ;;  %v18286_v40 = vpop.f32.mrb[22].mxu0  ;;  %v8481_v19 = vmul.f32 %v18284_v49, %v18284_v49 }
 0x8e5   :  { %v8525_v28 = vadd.f32 %v8524_v6, %v8462_v63  ;;  %21754 = vst [vmem:[#allocation89_spill] sm:$0xff] %v18286_v40  ;;  %v8466_v63 = vmul.f32 %v18211_v57, %v18211_v57  ;;  %v18291_v6 = vpop.f32.mrb[23].mxu0 }
 0x8e6   :  { %v8393_v35 = vadd.f32 %v17988_v52, %v8392_v22  ;;  %21755 = vst [vmem:[#allocation97_spill] sm:$0xff] %v18291_v6  ;;  %v18297_v7 = vpop.f32.mrb[24].mxu0 }
 0x8e7   :  { %v8526_v1 = vadd.f32 %v8525_v28, %v8463_v13  ;;  %v8467_v13 = vmul.f32 %v18188_v44, %v18188_v44 }
 0x8e8   :  { %v8394_v14 = vadd.f32 %v18040_v25, %v8393_v35 }
 0x8e9   :  { %v8527_v30 = vadd.f32 %v8526_v1, %v8464_v3 }
 0x8ea   :  { %v8395_v9 = vadd.f32 %v8394_v14, %v18202_v39  ;;  %v8468_v14 = vmul.f32 %v18206_v16, %v18206_v16 }
 0x8eb   :  { %v8528_v22 = vadd.f32 %v8527_v30, %v8465_v37  ;;  %v18304_v30 = vpop.f32.mrb[25].mxu0 }
 0x8ec   :  { %v8396_v28 = vadd.f32 %v8395_v9, %v18211_v57  ;;  %v18306_v37 = vpop.f32.mrb[26].mxu0 }
 0x8ed   :  { %v8529_v59 = vadd.f32 %v8528_v22, %v8466_v63  ;;  %21756 = vst [vmem:[#allocation170_spill] sm:$0xff] %v18306_v37  ;;  %v8470_v63 = vmul.f32 %v18231_v45, %v18231_v45  ;;  %v18311_v22 = vpop.f32.mrb[27].mxu0 }
 0x8ee   :  { %v8397_v35 = vadd.f32 %v18188_v44, %v8396_v28  ;;  %21757 = vst [vmem:[#allocation205_spill] sm:$0xff] %v18311_v22  ;;  %v18317_v24 = vpop.f32.mrb[28].mxu0 }
 0x8ef   :  { %v8530_v3 = vadd.f32 %v8529_v59, %v8467_v13  ;;  %v8471_v13 = vmul.f32 %v18217_v0, %v18217_v0  ;;  %21758 = vst [vmem:[#allocation172_spill] sm:$0xff] %v18317_v24 }
 0x8f0   :  { %v8398_v1 = vadd.f32 %v18206_v16, %v8397_v35 }
 0x8f1   :  { %v8531_v15 = vadd.f32 %v8530_v3, %v8468_v14 }
 0x8f2   :  { %v8399_v9 = vadd.f32 %v8398_v1, %v18224_v36  ;;  %v8472_v1 = vmul.f32 %v18226_v41, %v18226_v41 }
 0x8f3   :  { %v8532_v28 = vadd.f32 %v8531_v15, %v8469_v60  ;;  %v18324_v15 = vpop.f32.mrb[29].mxu0 }
 0x8f4   :  { %v8400_v59 = vadd.f32 %v8399_v9, %v18231_v45  ;;  %21759 = vst [vmem:[#allocation119_spill] sm:$0xff] %v18324_v15  ;;  %v18326_v60 = vpop.f32.mrb[30].mxu0 }
 0x8f5   :  { %v8533_v26 = vadd.f32 %v8532_v28, %v8470_v63  ;;  %v8474_v63 = vmul.f32 %v18251_v11, %v18251_v11  ;;  %v18331_v28 = vpop.f32.mrb[31].mxu0 }
 0x8f6   :  { %v8401_v35 = vadd.f32 %v18217_v0, %v8400_v59  ;;  %21760 = vst [vmem:[#allocation65_spill] sm:$0xff] %v18331_v28  ;;  %v18337_v2 = vpop.f32.mrb[32].mxu0 }
 0x8f7   :  { %v8534_v14 = vadd.f32 %v8533_v26, %v8471_v13  ;;  %v8475_v13 = vmul.f32 %v18237_v43, %v18237_v43 }
 0x8f8   :  { %v8402_v3 = vadd.f32 %v18226_v41, %v8401_v35 }
 0x8f9   :  { %v8535_v17 = vadd.f32 %v8534_v14, %v8472_v1 }
 0x8fa   :  { %v8403_v9 = vadd.f32 %v8402_v3, %v18244_v38  ;;  %v8476_v3 = vmul.f32 %v18246_v12, %v18246_v12 }
 0x8fb   :  { %v8536_v59 = vadd.f32 %v8535_v17, %v8473_v53  ;;  %v18344_v17 = vpop.f32.mrb[33].mxu0 }
 0x8fc   :  { %v8404_v26 = vadd.f32 %v8403_v9, %v18251_v11  ;;  %21761 = vst [vmem:[#allocation111_spill] sm:$0xff] %v18344_v17  ;;  %v18346_v53 = vpop.f32.mrb[34].mxu0 }
 0x8fd   :  { %v8537_v34 = vadd.f32 %v8536_v59, %v8474_v63  ;;  %21762 = vst [vmem:[#allocation147_spill] sm:$0xff] %v18346_v53  ;;  %v8478_v63 = vmul.f32 %v18271_v31, %v18271_v31  ;;  %v18351_v59 = vpop.f32.mrb[35].mxu0 }
 0x8fe   :  { %v8405_v35 = vadd.f32 %v18237_v43, %v8404_v26  ;;  %21763 = vst [vmem:[#allocation78_spill] sm:$0xff] %v18351_v59  ;;  %v18357_v4 = vpop.f32.mrb[36].mxu0 }
 0x8ff   :  { %v8538_v1 = vadd.f32 %v8537_v34, %v8475_v13  ;;  %v8479_v13 = vmul.f32 %v18257_v51, %v18257_v51  ;;  %21764 = vst [vmem:[#allocation203_spill] sm:$0xff] %v18357_v4 }
 0x900   :  { %v8406_v14 = vadd.f32 %v18246_v12, %v8405_v35 }
 0x901   :  { %v8539_v33 = vadd.f32 %v8538_v1, %v8476_v3 }
 0x902   :  { %v8407_v9 = vadd.f32 %v8406_v14, %v18264_v29  ;;  %v8480_v14 = vmul.f32 %v18266_v50, %v18266_v50 }
 0x903   :  { %v8540_v26 = vadd.f32 %v8539_v33, %v8477_v42  ;;  %v18364_v33 = vpop.f32.mrb[37].mxu0 }
 0x904   :  { %v8408_v34 = vadd.f32 %v8407_v9, %v18271_v31  ;;  %21765 = vst [vmem:[#allocation151_spill] sm:$0xff] %v18364_v33  ;;  %v18366_v42 = vpop.f32.mrb[38].mxu0 }
 0x905   :  { %v8541_v10 = vadd.f32 %v8540_v26, %v8478_v63  ;;  %21766 = vst [vmem:[#allocation161_spill] sm:$0xff] %v18366_v42  ;;  %v8482_v63 = vmul.f32 %v18291_v6, %v18291_v6  ;;  %v18371_v26 = vpop.f32.mrb[39].mxu0 }
 0x906   :  { %v8409_v35 = vadd.f32 %v18257_v51, %v8408_v34  ;;  %21767 = vst [vmem:[#allocation187_spill] sm:$0xff] %v18371_v26  ;;  %v18377_v51 = vpop.f32.mrb[40].mxu0 }
 0x907   :  { %v8542_v3 = vadd.f32 %v8541_v10, %v8479_v13  ;;  %v8483_v13 = vmul.f32 %v18277_v47, %v18277_v47 }
 0x908   :  { %v8410_v1 = vadd.f32 %v18266_v50, %v8409_v35 }
 0x909   :  { %v8543_v23 = vadd.f32 %v8542_v3, %v8480_v14 }
 0x90a   :  { %v8411_v9 = vadd.f32 %v8410_v1, %v18284_v49  ;;  %v8484_v1 = vmul.f32 %v18286_v40, %v18286_v40  ;;  %v8485_v49 = vmul.f32 %v18304_v30, %v18304_v30 }
 0x90b   :  { %v8544_v34 = vadd.f32 %v8543_v23, %v8481_v19  ;;  %v18384_v23 = vpop.f32.mrb[41].mxu0 }
 0x90c   :  { %v8412_v10 = vadd.f32 %v8411_v9, %v18291_v6  ;;  %21768 = vst [vmem:[#allocation164_spill] sm:$0xff] %v18384_v23  ;;  %v18386_v19 = vpop.f32.mrb[42].mxu0 }
 0x90d   :  { %v8545_v50 = vadd.f32 %v8544_v34, %v8482_v63  ;;  %v8486_v63 = vmul.f32 %v18311_v22, %v18311_v22  ;;  %v18391_v34 = vpop.f32.mrb[43].mxu0  ;;  %v21786_v29 = vld [vmem:[#allocation187_spill] sm:$0xff] }
 0x90e   :  { %v8413_v35 = vadd.f32 %v18277_v47, %v8412_v10  ;;  %v8488_v47 = vmul.f32 %v18306_v37, %v18306_v37 }
 0x90f   :  { %v8546_v14 = vadd.f32 %v8545_v50, %v8483_v13  ;;  %v8487_v13 = vmul.f32 %v18297_v7, %v18297_v7 }
 0x910   :  { %v8414_v3 = vadd.f32 %v18286_v40, %v8413_v35 }
 0x911   :  { %v8547_v6 = vadd.f32 %v8546_v14, %v8484_v1  ;;  %v8489_v14 = vmul.f32 %v18324_v15, %v18324_v15 }
 0x912   :  { %v8415_v9 = vadd.f32 %v8414_v3, %v18304_v30 }
 0x913   :  { %v8548_v10 = vadd.f32 %v8547_v6, %v8485_v49  ;;  %v8490_v6 = vmul.f32 %v18331_v28, %v18331_v28 }
 0x914   :  { %v8416_v50 = vadd.f32 %v8415_v9, %v18311_v22 }
 0x915   :  { %v8549_v40 = vadd.f32 %v8548_v10, %v8486_v63  ;;  %v8491_v63 = vmul.f32 %v18317_v24, %v18317_v24 }
 0x916   :  { %v8417_v35 = vadd.f32 %v18297_v7, %v8416_v50  ;;  %v8492_v50 = vmul.f32 %v18326_v60, %v18326_v60 }
 0x917   :  { %v8550_v31 = vadd.f32 %v8549_v40, %v8487_v13 }
 0x918   :  { %v8418_v1 = vadd.f32 %v18306_v37, %v8417_v35 }
 0x919   :  { %v8551_v49 = vadd.f32 %v8550_v31, %v8488_v47  ;;  %v8493_v47 = vmul.f32 %v18344_v17, %v18344_v17 }
 0x91a   :  { %v8419_v3 = vadd.f32 %v8418_v1, %v18324_v15 }
 0x91b   :  { %v8552_v9 = vadd.f32 %v8551_v49, %v8489_v14  ;;  %v8494_v14 = vmul.f32 %v18351_v59, %v18351_v59 }
 0x91c   :  { %v8420_v22 = vadd.f32 %v8419_v3, %v18331_v28 }
 0x91d   :  { %v8553_v40 = vadd.f32 %v8552_v9, %v8490_v6 }
 0x91e   :  { %v8421_v10 = vadd.f32 %v18317_v24, %v8420_v22  ;;  %v8495_v22 = vmul.f32 %v18337_v2, %v18337_v2 }
 0x91f   :  { %v8554_v13 = vadd.f32 %v8553_v40, %v8491_v63  ;;  %v8496_v63 = vmul.f32 %v18346_v53, %v18346_v53 }
 0x920   :  { %v8422_v35 = vadd.f32 %v18326_v60, %v8421_v10 }
 0x921   :  { %v8555_v1 = vadd.f32 %v8554_v13, %v8492_v50  ;;  %v8497_v50 = vmul.f32 %v18364_v33, %v18364_v33 }
 0x922   :  { %v8423_v31 = vadd.f32 %v8422_v35, %v18344_v17  ;;  %v21788_v17 = vld [vmem:[#allocation161_spill] sm:$0xff] }
 0x923   :  { %v8556_v3 = vadd.f32 %v8555_v1, %v8493_v47  ;;  %v8498_v47 = vmul.f32 %v18371_v26, %v18371_v26 }
 0x924   :  { %v8424_v49 = vadd.f32 %v8423_v31, %v18351_v59  ;;  %v21789_v59 = vld [vmem:[#allocation164_spill] sm:$0xff] }
 0x925   :  { %v8557_v9 = vadd.f32 %v8556_v3, %v8494_v14  ;;  %v8499_v14 = vmul.f32 %v18357_v4, %v18357_v4 }
 0x926   :  { %v8425_v6 = vadd.f32 %v18337_v2, %v8424_v49 }
 0x927   :  { %v8558_v10 = vadd.f32 %v8557_v9, %v8495_v22  ;;  %v8500_v22 = vmul.f32 %v18366_v42, %v18366_v42 }
 0x928   :  { %v8426_v40 = vadd.f32 %v18346_v53, %v8425_v6 }
 0x929   :  { %v8559_v35 = vadd.f32 %v8558_v10, %v8496_v63  ;;  %v8501_v63 = vmul.f32 %v18384_v23, %v18384_v23 }
 0x92a   :  { %v8427_v13 = vadd.f32 %v8426_v40, %v18364_v33 }
 0x92b   :  { %v8560_v31 = vadd.f32 %v8559_v35, %v8497_v50  ;;  %v8502_v50 = vmul.f32 %v18391_v34, %v18391_v34 }
 0x92c   :  { %v8428_v1 = vadd.f32 %v8427_v13, %v18371_v26 }
 0x92d   :  { %v8561_v49 = vadd.f32 %v8560_v31, %v8498_v47  ;;  %v8503_v47 = vmul.f32 %v18377_v51, %v18377_v51 }
 0x92e   :  { %v8429_v3 = vadd.f32 %v18357_v4, %v8428_v1 }
 0x92f   :  { %v8562_v6 = vadd.f32 %v8561_v49, %v8499_v14  ;;  %v8504_v14 = vmul.f32 %v18386_v19, %v18386_v19 }
 0x930   :  { %v8430_v9 = vadd.f32 %v18366_v42, %v8429_v3 }
 0x931   :  { %v8563_v40 = vadd.f32 %v8562_v6, %v8500_v22 }
 0x932   :  { %v8431_v10 = vadd.f32 %v8430_v9, %v18384_v23 }
 0x933   :  { %v8564_v13 = vadd.f32 %v8563_v40, %v8501_v63 }
 0x934   :  { %v8432_v35 = vadd.f32 %v8431_v10, %v18391_v34 }
 0x935   :  { %v8565_v1 = vadd.f32 %v8564_v13, %v8502_v50 }
 0x936   :  { %v8433_v31 = vadd.f32 %v18377_v51, %v8432_v35 }
 0x937   :  { %v8566_v49 = vadd.f32 %v8565_v1, %v8503_v47  ;;  %v21769_v1 = vld [vmem:[#allocation58_spill] sm:$0xff] }
 0x938   :  { %v8434_v3 = vadd.f32 %v18386_v19, %v8433_v31 }
 0x939   :  { %v8567_v22 = vadd.f32 %v8566_v49, %v8504_v14  ;;  %v21784_v14 = vld [vmem:[#allocation147_spill] sm:$0xff] }
 0x93a   :  { %v8435_v9 = vrot.slane %v8434_v3, 4 }
 0x93b   :  { %v8568_v23 = vrot.slane %v8567_v22, 4 }
 0x93c   :  { %v8436_v6 = vadd.f32 %v8435_v9, %v8434_v3  ;;  %v21771_v3 = vld [vmem:[#allocation149_spill] sm:$0xff] }
 0x93d   :  { %v8569_v63 = vadd.f32 %v8568_v23, %v8567_v22  ;;  %v21774_v22 = vld [vmem:[#allocation184_spill] sm:$0xff] }
 0x93e   :  { %v8437_v42 = vrot.slane %v8436_v6, 2 }
 0x93f   :  { %v8570_v10 = vrot.slane %v8569_v63, 2 }
 0x940   :  { %v8438_v40 = vadd.f32 %v8437_v42, %v8436_v6  ;;  %v21770_v42 = vld [vmem:[#allocation178_spill] sm:$0xff]  ;;  %v21779_v6 = vld [vmem:[#allocation95_spill] sm:$0xff] }
 0x941   :  { %v8571_v26 = vadd.f32 %v8570_v10, %v8569_v63  ;;  %v21775_v63 = vld [vmem:[#allocation188_spill] sm:$0xff]  ;;  %v21781_v10 = vld [vmem:[#allocation207_spill] sm:$0xff] }
 0x942   :  { %v8439_v4 = vrot.slane %v8438_v40, 1 }
 0x943   :  { %v8572_v53 = vrot.slane %v8571_v26, 1 }
 0x944   :  { %v8440_v33 = vadd.f32 %v8439_v4, %v8438_v40  ;;  %v21776_v4 = vld [vmem:[#allocation73_spill] sm:$0xff] }
 0x945   :  { %v8573_v35 = vadd.f32 %v8572_v53, %v8571_v26  ;;  %v21772_v53 = vld [vmem:[#allocation76_spill] sm:$0xff]  ;;  %v21773_v26 = vld [vmem:[#allocation81_spill] sm:$0xff] }
 0x946   :  { %v18448_v50 = vmul.f32 0.001953125, %v8440_v33  ;;  %v21780_v40 = vld [vmem:[#allocation97_spill] sm:$0xff] }
 0x947   :  { %v8575_v13 = vmul.f32 0.001953125, %v8573_v35  ;;  %v21782_v35 = vld [vmem:[#allocation89_spill] sm:$0xff] }
 0x948   :  { %v8576_v31 = vmul.f32 %v18448_v50, %v18448_v50  ;;  %v21790_v28 = vsub.f32 %v18391_v34, %v18448_v50  ;;  %v21791_v33 = vsub.f32 %v21769_v1, %v18448_v50  ;;  %v21792_v23 = vsub.f32 %v21770_v42, %v18448_v50 }
 0x949   :  { %v21793_v34 = vsub.f32 %v21771_v3, %v18448_v50  ;;  %v21794_v24 = vsub.f32 %v21772_v53, %v18448_v50  ;;  %v21798_v53 = vsub.f32 %v21775_v63, %v18448_v50 }
 0x94a   :  { %v8577_v9 = vsub.f32 %v8575_v13, %v8576_v31  ;;  %v21783_v13 = vld [vmem:[#allocation205_spill] sm:$0xff] }
 0x94c   :  { %v8642_v31 = vadd.f32 1e-05, %v8577_v9 }
 0x94e   :  { %11163 = vrsqrt.f32 %v8642_v31  ;;  %v21778_v31 = vld [vmem:[#allocation186_spill] sm:$0xff] }
 0x958   :  { %v18570_v37 = vpop.eup %11163 }
 0x959   :  { %v8705_v47 = vmul.f32 %v18570_v37, %v21790_v28  ;;  %v18590_v9 = vmul.f32 %v18570_v37, %v21791_v33  ;;  %v18596_v49 = vmul.f32 %v18570_v37, %v21792_v23  ;;  %v18602_v28 = vmul.f32 %v18570_v37, %v21793_v34  ;;  %v21797_v34 = vld [vmem:[#allocation124_spill] sm:$0xff] }
 0x95a   :  { %v18608_v1 = vmul.f32 %v18570_v37, %v21794_v24  ;;  %v21795_v33 = vsub.f32 %v21773_v26, %v18448_v50  ;;  %v21796_v23 = vsub.f32 %v21774_v22, %v18448_v50  ;;  %v18627_v24 = vmul.f32 %v18570_v37, %v21798_v53 }
 0x95b   :  { %v8769_v15 = vadd.f32 %v8705_v47, %v21797_v34  ;;  %v21799_v26 = vsub.f32 %v21735_v46, %v18448_v50  ;;  %v21800_v22 = vsub.f32 %v21739_v21, %v18448_v50  ;;  %v21801_v47 = vsub.f32 %v21740_v56, %v18448_v50 }
 0x95c   :  { %v18614_v42 = vmul.f32 %v18570_v37, %v21795_v33  ;;  %v18620_v3 = vmul.f32 %v18570_v37, %v21796_v23  ;;  %v21802_v34 = vsub.f32 %v21741_v18, %v18448_v50  ;;  %v21803_v53 = vsub.f32 %v21742_v48, %v18448_v50 }
 0x95d   :  { %v18633_v33 = vmul.f32 %v18570_v37, %v21799_v26  ;;  %v18639_v23 = vmul.f32 %v18570_v37, %v21800_v22  ;;  %v18645_v63 = vmul.f32 %v18570_v37, %v21801_v47  ;;  %v21804_v26 = vsub.f32 %v21743_v62, %v18448_v50 }
 0x95e   :  { %v18651_v46 = vmul.f32 %v18570_v37, %v21802_v34  ;;  %v18657_v21 = vmul.f32 %v18570_v37, %v21803_v53  ;;  %v8833_v22 = vmax.f32 %v8769_v15, 0.0  ;;  %v21805_v47 = vsub.f32 %v21744_v58, %v18448_v50 }
 0x95f   :  { %v18663_v56 = vmul.f32 %v18570_v37, %v21804_v26  ;;  %v21806_v34 = vsub.f32 %v21745_v54, %v18448_v50  ;;  %v21807_v53 = vsub.f32 %v21746_v5, %v18448_v50  ;;  %v21808_v15 = vsub.f32 %v17814_v55, %v18448_v50 }
 0x960   :  { %v18669_v18 = vmul.f32 %v18570_v37, %v21805_v47  ;;  %v21809_v26 = vsub.f32 %v17866_v20, %v18448_v50  ;;  %v21810_v47 = vsub.f32 %v21747_v32, %v18448_v50  ;;  %8897 = vst [vmem:[#allocation10 + $0x1e8] sm:$0xff] %v8833_v22  ;;  %v21815_v22 = vsub.f32 %v18040_v25, %v18448_v50 }
 0x961   :  { %v18675_v48 = vmul.f32 %v18570_v37, %v21806_v34  ;;  %v18681_v62 = vmul.f32 %v18570_v37, %v21807_v53  ;;  %v18687_v58 = vmul.f32 %v18570_v37, %v21808_v15  ;;  %v21811_v34 = vsub.f32 %v17840_v61, %v18448_v50 }
 0x962   :  { %v18693_v54 = vmul.f32 %v18570_v37, %v21809_v26  ;;  %v18699_v5 = vmul.f32 %v18570_v37, %v21810_v47  ;;  %v21812_v53 = vsub.f32 %v18014_v27, %v18448_v50  ;;  %v21813_v15 = vsub.f32 %v18066_v8, %v18448_v50 }
 0x963   :  { %v18705_v55 = vmul.f32 %v18570_v37, %v21811_v34  ;;  %v21814_v26 = vsub.f32 %v17988_v52, %v18448_v50  ;;  %v18729_v27 = vmul.f32 %v18570_v37, %v21815_v22  ;;  %v21816_v47 = vsub.f32 %v18202_v39, %v18448_v50 }
 0x964   :  { %v18711_v20 = vmul.f32 %v18570_v37, %v21812_v53  ;;  %v18717_v32 = vmul.f32 %v18570_v37, %v21813_v15  ;;  %v21817_v34 = vsub.f32 %v18211_v57, %v18448_v50  ;;  %v21818_v53 = vsub.f32 %v18188_v44, %v18448_v50 }
 0x965   :  { %v18723_v61 = vmul.f32 %v18570_v37, %v21814_v26  ;;  %v18735_v8 = vmul.f32 %v18570_v37, %v21816_v47  ;;  %v21819_v15 = vsub.f32 %v18206_v16, %v18448_v50  ;;  %v21820_v26 = vsub.f32 %v18224_v36, %v18448_v50 }
 0x966   :  { %v18741_v52 = vmul.f32 %v18570_v37, %v21817_v34  ;;  %v18747_v25 = vmul.f32 %v18570_v37, %v21818_v53  ;;  %v21821_v22 = vsub.f32 %v18231_v45, %v18448_v50  ;;  %v21822_v47 = vsub.f32 %v18217_v0, %v18448_v50 }
 0x967   :  { %v18753_v39 = vmul.f32 %v18570_v37, %v21819_v15  ;;  %v18759_v57 = vmul.f32 %v18570_v37, %v21820_v26  ;;  %v21823_v34 = vsub.f32 %v18226_v41, %v18448_v50  ;;  %v21824_v53 = vsub.f32 %v18244_v38, %v18448_v50 }
 0x968   :  { %v18765_v44 = vmul.f32 %v18570_v37, %v21821_v22  ;;  %v18771_v16 = vmul.f32 %v18570_v37, %v21822_v47  ;;  %v21825_v15 = vsub.f32 %v18251_v11, %v18448_v50  ;;  %v21826_v26 = vsub.f32 %v18237_v43, %v18448_v50  ;;  %v21828_v47 = vld [vmem:[#allocation77_spill] sm:$0xff] }
 0x969   :  { %v18777_v36 = vmul.f32 %v18570_v37, %v21823_v34  ;;  %v18783_v45 = vmul.f32 %v18570_v37, %v21824_v53  ;;  %v21827_v22 = vsub.f32 %v18246_v12, %v18448_v50  ;;  %v21829_v34 = vsub.f32 %v21828_v47, %v18448_v50 }
 0x96a   :  { %v18789_v0 = vmul.f32 %v18570_v37, %v21825_v15  ;;  %v18795_v41 = vmul.f32 %v18570_v37, %v21826_v26  ;;  %v21830_v53 = vsub.f32 %v21776_v4, %v18448_v50  ;;  %v21831_v15 = vld [vmem:[#allocation185_spill] sm:$0xff] }
 0x96b   :  { %v18801_v38 = vmul.f32 %v18570_v37, %v21827_v22  ;;  %v18807_v11 = vmul.f32 %v18570_v37, %v21829_v34  ;;  %v21832_v26 = vsub.f32 %v21831_v15, %v18448_v50  ;;  %v21833_v22 = vsub.f32 %v21778_v31, %v18448_v50 }
 0x96c   :  { %v18813_v43 = vmul.f32 %v18570_v37, %v21830_v53  ;;  %v21834_v34 = vsub.f32 %v21779_v6, %v18448_v50  ;;  %v21835_v53 = vsub.f32 %v21780_v40, %v18448_v50 }
 0x96d   :  { %v18819_v12 = vmul.f32 %v18570_v37, %v21832_v26  ;;  %v18825_v47 = vmul.f32 %v18570_v37, %v21833_v22  ;;  %v21836_v26 = vsub.f32 %v21781_v10, %v18448_v50  ;;  %v21837_v22 = vsub.f32 %v21782_v35, %v18448_v50 }
 0x96e   :  { %v18831_v4 = vmul.f32 %v18570_v37, %v21834_v34  ;;  %v18837_v15 = vmul.f32 %v18570_v37, %v21835_v53  ;;  %v21839_v34 = vsub.f32 %v18304_v30, %v18448_v50  ;;  %v21841_v53 = vsub.f32 %v21783_v13, %v18448_v50 }
 0x96f   :  { %v18843_v31 = vmul.f32 %v18570_v37, %v21836_v26  ;;  %v18849_v6 = vmul.f32 %v18570_v37, %v21837_v22  ;;  %v21843_v26 = vsub.f32 %v18297_v7, %v18448_v50  ;;  %v21845_v22 = vld [vmem:[#allocation170_spill] sm:$0xff] }
 0x970   :  { %v18855_v40 = vmul.f32 %v18570_v37, %v21839_v34  ;;  %v18861_v10 = vmul.f32 %v18570_v37, %v21841_v53  ;;  %v21847_v34 = vld [vmem:[#allocation119_spill] sm:$0xff]  ;;  %v21850_v53 = vld [vmem:[#allocation65_spill] sm:$0xff] }
 0x971   :  { %21838 = vst [vmem:[#allocation148_spill] sm:$0xff] %v18849_v6  ;;  %v18867_v35 = vmul.f32 %v18570_v37, %v21843_v26  ;;  %v21846_v6 = vsub.f32 %v21845_v22, %v18448_v50  ;;  %v21853_v26 = vld [vmem:[#allocation172_spill] sm:$0xff] }
 0x972   :  { %21840 = vst [vmem:[#allocation189_spill] sm:$0xff] %v18855_v40  ;;  %21842 = vst [vmem:[#allocation150_spill] sm:$0xff] %v18861_v10  ;;  %v21848_v40 = vsub.f32 %v21847_v34, %v18448_v50  ;;  %v21851_v10 = vsub.f32 %v21850_v53, %v18448_v50 }
 0x973   :  { %21844 = vst [vmem:[#allocation72_spill] sm:$0xff] %v18867_v35  ;;  %v18873_v30 = vmul.f32 %v18570_v37, %v21846_v6  ;;  %v21854_v35 = vsub.f32 %v21853_v26, %v18448_v50  ;;  %v21855_v6 = vsub.f32 %v18326_v60, %v18448_v50 }
 0x974   :  { %v18879_v13 = vmul.f32 %v18570_v37, %v21848_v40  ;;  %v18885_v7 = vmul.f32 %v18570_v37, %v21851_v10  ;;  %v21856_v40 = vld [vmem:[#allocation111_spill] sm:$0xff]  ;;  %v21859_v10 = vld [vmem:[#allocation78_spill] sm:$0xff] }
 0x975   :  { %v18891_v22 = vmul.f32 %v18570_v37, %v21854_v35  ;;  %v18897_v34 = vmul.f32 %v18570_v37, %v21855_v6  ;;  %v21861_v35 = vsub.f32 %v18337_v2, %v18448_v50  ;;  %v21863_v6 = vsub.f32 %v21784_v14, %v18448_v50 }
 0x976   :  { %21849 = vst [vmem:[#allocation134_spill] sm:$0xff] %v18879_v13  ;;  %21852 = vst [vmem:[#allocation196_spill] sm:$0xff] %v18885_v7  ;;  %v21857_v13 = vsub.f32 %v21856_v40, %v18448_v50  ;;  %v21860_v7 = vsub.f32 %v21859_v10, %v18448_v50 }
 0x977   :  { %v18915_v60 = vmul.f32 %v18570_v37, %v21861_v35  ;;  %v18921_v40 = vmul.f32 %v18570_v37, %v21863_v6  ;;  %v21867_v35 = vld [vmem:[#allocation203_spill] sm:$0xff]  ;;  %v21869_v6 = vsub.f32 %v21788_v17, %v18448_v50 }
 0x978   :  { %v18903_v53 = vmul.f32 %v18570_v37, %v21857_v13  ;;  %v18909_v26 = vmul.f32 %v18570_v37, %v21860_v7  ;;  %v21864_v13 = vld [vmem:[#allocation151_spill] sm:$0xff]  ;;  %v21866_v7 = vsub.f32 %v21786_v29, %v18448_v50 }
 0x979   :  { %21862 = vst [vmem:[#allocation159_spill] sm:$0xff] %v18915_v60  ;;  %v21868_v60 = vsub.f32 %v21867_v35, %v18448_v50 }
 0x97a   :  { %21858 = vst [vmem:[#allocation144_spill] sm:$0xff] %v18903_v53  ;;  %v21865_v53 = vsub.f32 %v21864_v13, %v18448_v50  ;;  %v18933_v2 = vmul.f32 %v18570_v37, %v21866_v7  ;;  %v18945_v13 = vmul.f32 %v18570_v37, %v21869_v6  ;;  %v21873_v7 = vsub.f32 %v18377_v51, %v18448_v50  ;;  %v21876_v6 = vld [vmem:[#allocation49_spill] sm:$0xff] }
 0x97b   :  { %v18939_v14 = vmul.f32 %v18570_v37, %v21868_v60  ;;  %v21875_v60 = vsub.f32 %v18386_v19, %v18448_v50  ;;  %v21880_v19 = vld [vmem:[#allocation202_spill] sm:$0xff] }
 0x97c   :  { %v18927_v10 = vmul.f32 %v18570_v37, %v21865_v53  ;;  %21870 = vst [vmem:[#allocation137_spill] sm:$0xff] %v18945_v13  ;;  %v21871_v53 = vsub.f32 %v21789_v59, %v18448_v50  ;;  %v18957_v35 = vmul.f32 %v18570_v37, %v21873_v7  ;;  %v18967_v13 = vadd.f32 %v18590_v9, %v21876_v6  ;;  %v21877_v59 = vld [vmem:[#allocation52_spill] sm:$0xff]  ;;  %v21879_v7 = vld [vmem:[#allocation85_spill] sm:$0xff] }
 0x97d   :  { %v18963_v17 = vmul.f32 %v18570_v37, %v21875_v60  ;;  %v21881_v50 = vld [vmem:[#allocation120_spill] sm:$0xff]  ;;  %v21882_v60 = vld [vmem:[#allocation50_spill] sm:$0xff] }
 0x97e   :  { %v18951_v29 = vmul.f32 %v18570_v37, %v21871_v53  ;;  %21874 = vst [vmem:[#allocation113_spill] sm:$0xff] %v18957_v35  ;;  %v18971_v53 = vadd.f32 %v18596_v49, %v21877_v59  ;;  %v18979_v35 = vadd.f32 %v18608_v1, %v21879_v7  ;;  %v18983_v37 = vadd.f32 %v18614_v42, %v21880_v19  ;;  %v21883_v6 = vld [vmem:[#allocation128_spill] sm:$0xff]  ;;  %v21885_v59 = vld [vmem:[#allocation51_spill] sm:$0xff]  ;;  %v21887_v19 = vld [vmem:[#allocation129_spill] sm:$0xff] }
 0x97f   :  { %v18987_v9 = vadd.f32 %v18620_v3, %v21881_v50  ;;  %v18991_v49 = vadd.f32 %v18627_v24, %v21882_v60  ;;  %v19003_v42 = vadd.f32 %v18645_v63, %v21885_v59  ;;  %v21886_v7 = vld [vmem:[#allocation127_spill] sm:$0xff]  ;;  %v19011_v24 = vadd.f32 %v18657_v21, %v21887_v19  ;;  %v21889_v60 = vld [vmem:[#allocation169_spill] sm:$0xff] }
 0x980   :  { %21872 = vst [vmem:[#allocation61_spill] sm:$0xff] %v18951_v29  ;;  %v21878_v29 = vld [vmem:[#allocation133_spill] sm:$0xff]  ;;  %v19007_v3 = vadd.f32 %v18651_v46, %v21886_v7  ;;  %v21888_v50 = vld [vmem:[#allocation135_spill] sm:$0xff] }
 0x981   :  { %v18975_v51 = vadd.f32 %v18602_v28, %v21878_v29  ;;  %v18995_v28 = vadd.f32 %v18633_v33, %v21883_v6  ;;  %v21884_v29 = vld [vmem:[#allocation131_spill] sm:$0xff]  ;;  %v19015_v33 = vadd.f32 %v18663_v56, %v21888_v50  ;;  %v21890_v6 = vld [vmem:[#allocation74_spill] sm:$0xff]  ;;  %v21893_v7 = vld [vmem:[#allocation41_spill] sm:$0xff] }
 0x982   :  { %v18999_v1 = vadd.f32 %v18639_v23, %v21884_v29  ;;  %v19019_v23 = vadd.f32 %v18669_v18, %v21889_v60  ;;  %v19023_v63 = vadd.f32 %v18675_v48, %v21890_v6  ;;  %v21891_v29 = vld [vmem:[#allocation83_spill] sm:$0xff]  ;;  %v19035_v56 = vadd.f32 %v18693_v54, %v21893_v7  ;;  %v21894_v19 = vld [vmem:[#allocation109_spill] sm:$0xff]  ;;  %v21897_v6 = vld [vmem:[#allocation46_spill] sm:$0xff] }
 0x983   :  { %v19027_v46 = vadd.f32 %v18681_v62, %v21891_v29  ;;  %v21892_v59 = vld [vmem:[#allocation79_spill] sm:$0xff]  ;;  %v19039_v18 = vadd.f32 %v18699_v5, %v21894_v19  ;;  %v21898_v29 = vld [vmem:[#allocation201_spill] sm:$0xff]  ;;  %v21901_v19 = vld [vmem:[#allocation122_spill] sm:$0xff] }
 0x984   :  { %v19031_v21 = vadd.f32 %v18687_v58, %v21892_v59  ;;  %v21895_v50 = vld [vmem:[#allocation43_spill] sm:$0xff]  ;;  %v19051_v58 = vadd.f32 %v18717_v32, %v21897_v6  ;;  %v19055_v54 = vadd.f32 %v18723_v61, %v21898_v29  ;;  %v21899_v59 = vld [vmem:[#allocation141_spill] sm:$0xff]  ;;  %v21904_v6 = vld [vmem:[#allocation64_spill] sm:$0xff] }
 0x985   :  { %v19043_v48 = vadd.f32 %v18705_v55, %v21895_v50  ;;  %v21896_v60 = vld [vmem:[#allocation115_spill] sm:$0xff]  ;;  %v19059_v5 = vadd.f32 %v18729_v27, %v21899_v59  ;;  %v21902_v50 = vld [vmem:[#allocation62_spill] sm:$0xff]  ;;  %v19079_v27 = vadd.f32 %v18759_v57, %v21904_v6  ;;  %v21906_v59 = vld [vmem:[#allocation68_spill] sm:$0xff] }
 0x986   :  { %v19047_v62 = vadd.f32 %v18711_v20, %v21896_v60  ;;  %v21900_v7 = vld [vmem:[#allocation195_spill] sm:$0xff]  ;;  %v19067_v20 = vadd.f32 %v18741_v52, %v21901_v19  ;;  %v19071_v32 = vadd.f32 %v18747_v25, %v21902_v50  ;;  %v21903_v60 = vld [vmem:[#allocation177_spill] sm:$0xff]  ;;  %v21905_v29 = vld [vmem:[#allocation138_spill] sm:$0xff]  ;;  %v19087_v52 = vadd.f32 %v18771_v16, %v21906_v59 }
 0x987   :  { %v19063_v55 = vadd.f32 %v18735_v8, %v21900_v7  ;;  %v19075_v61 = vadd.f32 %v18753_v39, %v21903_v60  ;;  %v19083_v8 = vadd.f32 %v18765_v44, %v21905_v29  ;;  %v21907_v7 = vld [vmem:[#allocation180_spill] sm:$0xff]  ;;  %v21908_v19 = vld [vmem:[#allocation142_spill] sm:$0xff]  ;;  %v21909_v50 = vld [vmem:[#allocation67_spill] sm:$0xff] }
 0x988   :  { %v19091_v25 = vadd.f32 %v18777_v36, %v21907_v7  ;;  %v19095_v39 = vadd.f32 %v18783_v45, %v21908_v19  ;;  %v19099_v57 = vadd.f32 %v18789_v0, %v21909_v50  ;;  %v21910_v60 = vld [vmem:[#allocation168_spill] sm:$0xff]  ;;  %v21911_v6 = vld [vmem:[#allocation69_spill] sm:$0xff]  ;;  %v21912_v29 = vld [vmem:[#allocation182_spill] sm:$0xff] }
 0x989   :  { %v19103_v44 = vadd.f32 %v18795_v41, %v21910_v60  ;;  %v19107_v16 = vadd.f32 %v18801_v38, %v21911_v6  ;;  %v19111_v36 = vadd.f32 %v18807_v11, %v21912_v29  ;;  %v21913_v59 = vld [vmem:[#allocation75_spill] sm:$0xff]  ;;  %v21914_v7 = vld [vmem:[#allocation146_spill] sm:$0xff]  ;;  %v21918_v50 = vld [vmem:[#allocation152_spill] sm:$0xff] }
 0x98a   :  { %v19115_v45 = vadd.f32 %v18813_v43, %v21913_v59  ;;  %v19119_v0 = vadd.f32 %v18819_v12, %v21914_v7  ;;  %v21916_v19 = vld [vmem:[#allocation91_spill] sm:$0xff]  ;;  %v19127_v38 = vadd.f32 %v18831_v4, %v21918_v50  ;;  %v21921_v6 = vld [vmem:[#allocation125_spill] sm:$0xff]  ;;  %v21923_v29 = vld [vmem:[#allocation130_spill] sm:$0xff] }
 0x98b   :  { %v19123_v41 = vadd.f32 %v18825_v47, %v21916_v19  ;;  %v21920_v60 = vld [vmem:[#allocation87_spill] sm:$0xff]  ;;  %v19135_v43 = vadd.f32 %v18843_v31, %v21921_v6  ;;  %v21924_v59 = vld [vmem:[#allocation148_spill] sm:$0xff]  ;;  %v21926_v7 = vld [vmem:[#allocation82_spill] sm:$0xff] }
 0x98c   :  { %21915 = vst [vmem:[#allocation143_spill] sm:$0xff] %v19119_v0  ;;  %21919 = vst [vmem:[#allocation192_spill] sm:$0xff] %v19127_v38  ;;  %v19131_v11 = vadd.f32 %v18837_v15, %v21920_v60  ;;  %v19139_v12 = vadd.f32 %v21924_v59, %v21923_v29  ;;  %v21927_v0 = vld [vmem:[#allocation189_spill] sm:$0xff]  ;;  %v21928_v19 = vld [vmem:[#allocation158_spill] sm:$0xff] }
 0x98d   :  { %21917 = vst [vmem:[#allocation96_spill] sm:$0xff] %v19123_v41  ;;  %21922 = vst [vmem:[#allocation103_spill] sm:$0xff] %v19135_v43  ;;  %v19143_v47 = vadd.f32 %v21927_v0, %v21926_v7  ;;  %v21929_v41 = vld [vmem:[#allocation150_spill] sm:$0xff]  ;;  %v21930_v50 = vld [vmem:[#allocation93_spill] sm:$0xff] }
 0x98e   :  { %21925 = vst [vmem:[#allocation44_spill] sm:$0xff] %v19139_v12  ;;  %v19147_v4 = vadd.f32 %v21929_v41, %v21928_v19  ;;  %v21931_v38 = vld [vmem:[#allocation72_spill] sm:$0xff]  ;;  %v21934_v6 = vld [vmem:[#allocation155_spill] sm:$0xff]  ;;  %v21935_v43 = vld [vmem:[#allocation134_spill] sm:$0xff] }
 0x98f   :  { %v19151_v15 = vadd.f32 %v21931_v38, %v21930_v50  ;;  %v21933_v60 = vld [vmem:[#allocation88_spill] sm:$0xff]  ;;  %v19159_v29 = vadd.f32 %v21935_v43, %v21934_v6  ;;  %v21937_v59 = vld [vmem:[#allocation105_spill] sm:$0xff] }
 0x990   :  { %v19155_v31 = vadd.f32 %v18873_v30, %v21933_v60  ;;  %v21938_v12 = vld [vmem:[#allocation196_spill] sm:$0xff]  ;;  %v21939_v7 = vld [vmem:[#allocation157_spill] sm:$0xff]  ;;  %v21943_v60 = vld [vmem:[#allocation110_spill] sm:$0xff] }
 0x991   :  { %21932 = vst [vmem:[#allocation107_spill] sm:$0xff] %v19151_v15  ;;  %21936 = vst [vmem:[#allocation47_spill] sm:$0xff] %v19159_v29  ;;  %v19163_v0 = vadd.f32 %v21938_v12, %v21937_v59  ;;  %v19167_v41 = vadd.f32 %v18891_v22, %v21939_v7  ;;  %v21940_v19 = vld [vmem:[#allocation60_spill] sm:$0xff]  ;;  %v21941_v50 = vld [vmem:[#allocation153_spill] sm:$0xff]  ;;  %v19179_v43 = vadd.f32 %v18909_v26, %v21943_v60 }
 0x992   :  { %v19171_v38 = vadd.f32 %v18897_v34, %v21940_v19  ;;  %v21942_v15 = vld [vmem:[#allocation144_spill] sm:$0xff]  ;;  %v21946_v29 = vld [vmem:[#allocation159_spill] sm:$0xff]  ;;  %v21950_v7 = vld [vmem:[#allocation114_spill] sm:$0xff] }
 0x993   :  { %v19175_v30 = vadd.f32 %v21942_v15, %v21941_v50  ;;  %21944 = vst [vmem:[#allocation101_spill] sm:$0xff] %v19179_v43  ;;  %v21945_v6 = vld [vmem:[#allocation204_spill] sm:$0xff]  ;;  %v21948_v59 = vld [vmem:[#allocation63_spill] sm:$0xff]  ;;  %v19191_v34 = vadd.f32 %v18927_v10, %v21950_v7  ;;  %v21951_v19 = vld [vmem:[#allocation66_spill] sm:$0xff] }
 0x994   :  { %v19183_v12 = vadd.f32 %v21946_v29, %v21945_v6  ;;  %v19187_v22 = vadd.f32 %v18921_v40, %v21948_v59  ;;  %v19195_v15 = vadd.f32 %v18933_v2, %v21951_v19  ;;  %v21952_v50 = vld [vmem:[#allocation156_spill] sm:$0xff]  ;;  %v21953_v60 = vld [vmem:[#allocation206_spill] sm:$0xff]  ;;  %v21954_v43 = vld [vmem:[#allocation137_spill] sm:$0xff]  ;;  %v8772_v19 = vmax.f32 %v18967_v13, 0.0 }
 0x995   :  { %v19199_v26 = vadd.f32 %v18939_v14, %v21952_v50  ;;  %v19203_v29 = vadd.f32 %v21954_v43, %v21953_v60  ;;  %v21955_v6 = vld [vmem:[#allocation166_spill] sm:$0xff]  ;;  %v21957_v59 = vld [vmem:[#allocation160_spill] sm:$0xff]  ;;  %v8773_v14 = vmax.f32 %v18971_v53, 0.0  ;;  %v8774_v50 = vmax.f32 %v18975_v51, 0.0 }
 0x996   :  { %21947 = vst [vmem:[#allocation140_spill] sm:$0xff] %v19183_v12  ;;  %21949 = vst [vmem:[#allocation163_spill] sm:$0xff] %v19187_v22  ;;  %v21956_v12 = vld [vmem:[#allocation61_spill] sm:$0xff]  ;;  %v21959_v7 = vld [vmem:[#allocation112_spill] sm:$0xff]  ;;  %v8775_v43 = vmax.f32 %v18979_v35, 0.0  ;;  %v8776_v60 = vmax.f32 %v18983_v37, 0.0 }
 0x997   :  { %v19207_v40 = vadd.f32 %v21956_v12, %v21955_v6  ;;  %v21958_v22 = vld [vmem:[#allocation113_spill] sm:$0xff]  ;;  %v19215_v2 = vadd.f32 %v18963_v17, %v21959_v7  ;;  %v8777_v12 = vmax.f32 %v18987_v9, 0.0  ;;  %v8778_v6 = vmax.f32 %v18991_v49, 0.0  ;;  %8836 = vst [vmem:[#allocation10] sm:$0xff] %v8772_v19  ;;  %8837 = vst [vmem:[#allocation10 + $0x8] sm:$0xff] %v8773_v14 }
 0x998   :  { %v19211_v10 = vadd.f32 %v21958_v22, %v21957_v59  ;;  %v8779_v22 = vmax.f32 %v18995_v28, 0.0  ;;  %v8780_v59 = vmax.f32 %v18999_v1, 0.0  ;;  %v8781_v17 = vmax.f32 %v19003_v42, 0.0  ;;  %8838 = vst [vmem:[#allocation10 + $0x10] sm:$0xff] %v8774_v50  ;;  %8839 = vst [vmem:[#allocation10 + $0x18] sm:$0xff] %v8775_v43  ;;  %v21965_v50 = vld [vmem:[#allocation107_spill] sm:$0xff] }
 0x999   :  { %v8782_v13 = vmax.f32 %v19007_v3, 0.0  ;;  %v8783_v53 = vmax.f32 %v19011_v24, 0.0  ;;  %v8784_v35 = vmax.f32 %v19015_v33, 0.0  ;;  %v8785_v51 = vmax.f32 %v19019_v23, 0.0  ;;  %8840 = vst [vmem:[#allocation10 + $0x20] sm:$0xff] %v8776_v60  ;;  %8841 = vst [vmem:[#allocation10 + $0x28] sm:$0xff] %v8777_v12 }
 0x99a   :  { %v8786_v37 = vmax.f32 %v19023_v63, 0.0  ;;  %v8787_v9 = vmax.f32 %v19027_v46, 0.0  ;;  %v8788_v49 = vmax.f32 %v19031_v21, 0.0  ;;  %v8789_v28 = vmax.f32 %v19035_v56, 0.0  ;;  %8842 = vst [vmem:[#allocation10 + $0x30] sm:$0xff] %v8778_v6  ;;  %8843 = vst [vmem:[#allocation10 + $0x38] sm:$0xff] %v8779_v22 }
 0x99b   :  { %8844 = vst [vmem:[#allocation10 + $0x40] sm:$0xff] %v8780_v59  ;;  %8845 = vst [vmem:[#allocation10 + $0x48] sm:$0xff] %v8781_v17  ;;  %v8790_v1 = vmax.f32 %v19039_v18, 0.0  ;;  %v8791_v42 = vmax.f32 %v19043_v48, 0.0  ;;  %v8792_v3 = vmax.f32 %v19047_v62, 0.0  ;;  %v8793_v24 = vmax.f32 %v19051_v58, 0.0 }
 0x99c   :  { %8846 = vst [vmem:[#allocation10 + $0x50] sm:$0xff] %v8782_v13  ;;  %8847 = vst [vmem:[#allocation10 + $0x58] sm:$0xff] %v8783_v53  ;;  %v8794_v33 = vmax.f32 %v19055_v54, 0.0  ;;  %v8795_v23 = vmax.f32 %v19059_v5, 0.0  ;;  %v8796_v63 = vmax.f32 %v19063_v55, 0.0  ;;  %v8797_v46 = vmax.f32 %v19067_v20, 0.0 }
 0x99d   :  { %8848 = vst [vmem:[#allocation10 + $0x60] sm:$0xff] %v8784_v35  ;;  %8849 = vst [vmem:[#allocation10 + $0x68] sm:$0xff] %v8785_v51  ;;  %v8798_v21 = vmax.f32 %v19071_v32, 0.0  ;;  %v8799_v56 = vmax.f32 %v19075_v61, 0.0  ;;  %v8800_v18 = vmax.f32 %v19079_v27, 0.0  ;;  %v8801_v48 = vmax.f32 %v19083_v8, 0.0 }
 0x99e   :  { %8850 = vst [vmem:[#allocation10 + $0x70] sm:$0xff] %v8786_v37  ;;  %8851 = vst [vmem:[#allocation10 + $0x78] sm:$0xff] %v8787_v9  ;;  %v8802_v62 = vmax.f32 %v19087_v52, 0.0  ;;  %v8803_v58 = vmax.f32 %v19091_v25, 0.0  ;;  %v8804_v54 = vmax.f32 %v19095_v39, 0.0  ;;  %v8805_v5 = vmax.f32 %v19099_v57, 0.0 }
 0x99f   :  { %8852 = vst [vmem:[#allocation10 + $0x80] sm:$0xff] %v8788_v49  ;;  %8853 = vst [vmem:[#allocation10 + $0x88] sm:$0xff] %v8789_v28  ;;  %v8806_v55 = vmax.f32 %v19103_v44, 0.0  ;;  %v8807_v20 = vmax.f32 %v19107_v16, 0.0  ;;  %v8808_v32 = vmax.f32 %v19111_v36, 0.0  ;;  %v8809_v61 = vmax.f32 %v19115_v45, 0.0 }
 0x9a0   :  { %8854 = vst [vmem:[#allocation10 + $0x90] sm:$0xff] %v8790_v1  ;;  %8855 = vst [vmem:[#allocation10 + $0x98] sm:$0xff] %v8791_v42  ;;  %v21960_v27 = vld [vmem:[#allocation143_spill] sm:$0xff]  ;;  %v21961_v52 = vld [vmem:[#allocation96_spill] sm:$0xff]  ;;  %v8813_v7 = vmax.f32 %v19131_v11, 0.0  ;;  %v8816_v19 = vmax.f32 %v19143_v47, 0.0 }
 0x9a1   :  { %8856 = vst [vmem:[#allocation10 + $0xa0] sm:$0xff] %v8792_v3  ;;  %8857 = vst [vmem:[#allocation10 + $0xa8] sm:$0xff] %v8793_v24  ;;  %v8810_v8 = vmax.f32 %v21960_v27, 0.0  ;;  %v8811_v25 = vmax.f32 %v21961_v52, 0.0  ;;  %v21962_v39 = vld [vmem:[#allocation192_spill] sm:$0xff]  ;;  %v21963_v44 = vld [vmem:[#allocation103_spill] sm:$0xff] }
 0x9a2   :  { %8858 = vst [vmem:[#allocation10 + $0xb0] sm:$0xff] %v8794_v33  ;;  %8859 = vst [vmem:[#allocation10 + $0xb8] sm:$0xff] %v8795_v23  ;;  %v8812_v57 = vmax.f32 %v21962_v39, 0.0  ;;  %v8814_v16 = vmax.f32 %v21963_v44, 0.0  ;;  %v21964_v36 = vld [vmem:[#allocation44_spill] sm:$0xff]  ;;  %v8817_v14 = vmax.f32 %v19147_v4, 0.0 }
 0x9a3   :  { %8860 = vst [vmem:[#allocation10 + $0xc0] sm:$0xff] %v8796_v63  ;;  %8861 = vst [vmem:[#allocation10 + $0xc8] sm:$0xff] %v8797_v46  ;;  %v8815_v45 = vmax.f32 %v21964_v36, 0.0  ;;  %v8818_v43 = vmax.f32 %v21965_v50, 0.0  ;;  %v8819_v11 = vmax.f32 %v19155_v31, 0.0  ;;  %v21966_v60 = vld [vmem:[#allocation47_spill] sm:$0xff] }
 0x9a4   :  { %8862 = vst [vmem:[#allocation10 + $0xd0] sm:$0xff] %v8798_v21  ;;  %8863 = vst [vmem:[#allocation10 + $0xd8] sm:$0xff] %v8799_v56  ;;  %v8820_v12 = vmax.f32 %v21966_v60, 0.0  ;;  %v8821_v6 = vmax.f32 %v19163_v0, 0.0  ;;  %v8822_v47 = vmax.f32 %v19167_v41, 0.0  ;;  %v8823_v4 = vmax.f32 %v19171_v38, 0.0 }
 0x9a5   :  { %8864 = vst [vmem:[#allocation10 + $0xe0] sm:$0xff] %v8800_v18  ;;  %8865 = vst [vmem:[#allocation10 + $0xe8] sm:$0xff] %v8801_v48  ;;  %v8824_v22 = vmax.f32 %v19175_v30, 0.0  ;;  %v21967_v59 = vld [vmem:[#allocation101_spill] sm:$0xff]  ;;  %v21968_v31 = vld [vmem:[#allocation140_spill] sm:$0xff]  ;;  %v8828_v35 = vmax.f32 %v19191_v34, 0.0 }
 0x9a6   :  { %8866 = vst [vmem:[#allocation10 + $0xf0] sm:$0xff] %v8802_v62  ;;  %8867 = vst [vmem:[#allocation10 + $0xf8] sm:$0xff] %v8803_v58  ;;  %v8825_v17 = vmax.f32 %v21967_v59, 0.0  ;;  %v8826_v0 = vmax.f32 %v21968_v31, 0.0  ;;  %v21969_v13 = vld [vmem:[#allocation163_spill] sm:$0xff]  ;;  %v8829_v51 = vmax.f32 %v19195_v15, 0.0 }
 0x9a7   :  { %8868 = vst [vmem:[#allocation10 + $0x100] sm:$0xff] %v8804_v54  ;;  %8869 = vst [vmem:[#allocation10 + $0x108] sm:$0xff] %v8805_v5  ;;  %v8827_v53 = vmax.f32 %v21969_v13, 0.0  ;;  %v8830_v41 = vmax.f32 %v19199_v26, 0.0  ;;  %v8831_v38 = vmax.f32 %v19203_v29, 0.0  ;;  %v8832_v30 = vmax.f32 %v19207_v40, 0.0 }
 0x9a8   :  { %8870 = vst [vmem:[#allocation10 + $0x110] sm:$0xff] %v8806_v55  ;;  %8871 = vst [vmem:[#allocation10 + $0x118] sm:$0xff] %v8807_v20  ;;  %v8834_v37 = vmax.f32 %v19211_v10, 0.0  ;;  %v8835_v34 = vmax.f32 %v19215_v2, 0.0 }
 0x9a9   :  { %8872 = vst [vmem:[#allocation10 + $0x120] sm:$0xff] %v8808_v32  ;;  %8873 = vst [vmem:[#allocation10 + $0x128] sm:$0xff] %v8809_v61 }
 0x9aa   :  { %8874 = vst [vmem:[#allocation10 + $0x130] sm:$0xff] %v8810_v8  ;;  %8875 = vst [vmem:[#allocation10 + $0x138] sm:$0xff] %v8811_v25 }
 0x9ab   :  { %8876 = vst [vmem:[#allocation10 + $0x140] sm:$0xff] %v8812_v57  ;;  %8877 = vst [vmem:[#allocation10 + $0x148] sm:$0xff] %v8813_v7 }
 0x9ac   :  { %8878 = vst [vmem:[#allocation10 + $0x150] sm:$0xff] %v8814_v16  ;;  %8879 = vst [vmem:[#allocation10 + $0x158] sm:$0xff] %v8815_v45 }
 0x9ad   :  { %8880 = vst [vmem:[#allocation10 + $0x160] sm:$0xff] %v8816_v19  ;;  %8881 = vst [vmem:[#allocation10 + $0x168] sm:$0xff] %v8817_v14 }
 0x9ae   :  { %8882 = vst [vmem:[#allocation10 + $0x170] sm:$0xff] %v8818_v43  ;;  %8883 = vst [vmem:[#allocation10 + $0x178] sm:$0xff] %v8819_v11 }
 0x9af   :  { %8884 = vst [vmem:[#allocation10 + $0x180] sm:$0xff] %v8820_v12  ;;  %8885 = vst [vmem:[#allocation10 + $0x188] sm:$0xff] %v8821_v6 }
 0x9b0   :  { %8886 = vst [vmem:[#allocation10 + $0x190] sm:$0xff] %v8822_v47  ;;  %8887 = vst [vmem:[#allocation10 + $0x198] sm:$0xff] %v8823_v4 }
 0x9b1   :  { %8888 = vst [vmem:[#allocation10 + $0x1a0] sm:$0xff] %v8824_v22  ;;  %8889 = vst [vmem:[#allocation10 + $0x1a8] sm:$0xff] %v8825_v17 }
 0x9b2   :  { %8890 = vst [vmem:[#allocation10 + $0x1b0] sm:$0xff] %v8826_v0  ;;  %8891 = vst [vmem:[#allocation10 + $0x1b8] sm:$0xff] %v8827_v53 }
 0x9b3   :  { %8892 = vst [vmem:[#allocation10 + $0x1c0] sm:$0xff] %v8828_v35  ;;  %8893 = vst [vmem:[#allocation10 + $0x1c8] sm:$0xff] %v8829_v51 }
 0x9b4   :  { %8894 = vst [vmem:[#allocation10 + $0x1d0] sm:$0xff] %v8830_v41  ;;  %8895 = vst [vmem:[#allocation10 + $0x1d8] sm:$0xff] %v8831_v38 }
 0x9b5   :  { %8896 = vst [vmem:[#allocation10 + $0x1e0] sm:$0xff] %v8832_v30  ;;  %8898 = vst [vmem:[#allocation10 + $0x1f0] sm:$0xff] %v8834_v37 }
 0x9b6   :  { %8899 = vst [vmem:[#allocation10 + $0x1f8] sm:$0xff] %v8835_v34 }
 0x9b7   :  { %11332 = shalt.err (!%p11329_p8)
}
 0x9b8   :  { %s11333_s14 = scalar_lea.hbm %s19298_s6, 8192 }
 0x9b9   :  { %p11334_p9 = scmp.ne.s32.totalorder %s19298_s6, %s11333_s14  ;;  %p11337_p10 = scmp.lt.u32.totalorder %s11333_s14, %s19298_s6 }
 0x9bb   :  { %p11339_p11 = pnand %p11337_p10, %p11334_p9 }
 0x9bd   :  { %11342 = shalt.err (!%p11339_p11)
}
 0x9be   :  { %s11359_s19 = smov 128   ;;  %s11360_s20 = smov 8  }
 0x9bf   :  { %8911 = dma.vmem_to_hbm [thread:$0]  %s8906_s2, 8192, %s19298_s6, [#allocation4], %s11359_s19, %s11359_s19, %s11360_s20  }
 0x9c0   :  { %11349 = dma.done.wait [#allocation4], 8192  }
 0x9c1   :  { %11350 = vsyncadd [#allocation4], 4294959104 }
 0x9c2   :  { %8915 = vsyncpa [#allocation3], 1 }
 0x9c3   :  { %8916 = vsyncpa [#allocation6], 1 }
 0x9c4   :  { %8917 = vsyncpa [#allocation9], 1 }
 0x9c5   :  { %8918 = vsyncpa [#allocation4], 1 }

</bundles_post_ra>
